<compile_context>
chip_gen: v5e
topology: v5e:2x2
jax: 0.10.0
libtpu: 0.0.40
codegen_flags: <defaults>
</compile_context>

<pallas_src>
import jax
import jax.numpy as jnp
from jax import lax
from jax.experimental import pallas as pl
from jax.experimental.pallas import tpu as pltpu


_LANES = 128  # TPU lane width; batch blocks are multiples of this


def _round_up(x, m):
    return ((x + m - 1) // m) * m


def _choose_batch_block(B, block_b):
    """Pad B to a multiple of 128 and pick a lane-block size tb (multiple of
    128, <= block_b) that divides the padded batch and, when possible, leaves
    >= 2 grid steps so both v7x TensorCores get work on the parallel axis."""
    b_pad = _round_up(max(B, 1), _LANES)
    n128 = b_pad // _LANES
    d_max = max(block_b // _LANES, 1)
    if n128 >= 2:
        d_max = min(d_max, n128 // 2)   # keep at least 2 grid steps
    d = 1
    for cand in range(1, d_max + 1):
        if n128 % cand == 0:
            d = cand
    tb = d * _LANES
    nb = n128 // d
    return b_pad, tb, nb


def _mmnet_linear_kernel(w_ref, rt_ref, sh_ref, h_ref, zt_ref, iwh_ref):
    # Batch-on-lanes block views (TB = batch block on the lane axis):
    #   w_ref  : (NT, NR, TB)   rt_ref : (NR, TB)   sh_ref : (NT, TB)
    #   h_ref  : (NR, NT, TB)
    #   zt_ref : (NT, TB)       iwh_ref: (NT, NT, TB)
    nt, nr, tb = w_ref.shape
    f32 = jnp.float32

    rt = rt_ref[...].astype(f32)          # (NR, TB) — small, stays resident
    sh = sh_ref[...].astype(f32)          # (NT, TB)

    # Identity-row selector, hoisted out of the loops (no CSE across iters).
    sub_idx = lax.broadcasted_iota(jnp.int32, (nt, tb), 0)

    # Fully unrolled static loops (NT, NR are small compile-time constants);
    # everything below is lane-wise VPU work — no MXU pushes at all.
    for n in range(nt):
        w_n = w_ref[n].astype(f32)                                # (NR, TB)

        # zt[n] = shatt[n] + sum_k W[n,k]*rt[k]
        zt_row = sh[n:n + 1, :] + jnp.sum(w_n * rt, axis=0, keepdims=True)
        zt_ref[n:n + 1, :] = zt_row.astype(zt_ref.dtype)

        # I_WH[n] = e_n - sum_k W[n,k]*H[k]  (lane-dense (NT,TB) slab store)
        acc = (sub_idx == n).astype(f32)                          # (NT, TB)
        for k in range(nr):
            acc = acc - w_n[k:k + 1, :] * h_ref[k].astype(f32)    # (NT, TB)
        iwh_ref[n] = acc.astype(iwh_ref.dtype)


def mmnet_linear_forward(W, shatt, rt, H, *, block_b=512):
    """Pallas implementation of MMNet_linear.forward.

    Returns (zt, {'W': W, 'I_WH': I_WH}) like the PyTorch module.
    """
    B, NT, NR = W.shape
    assert shatt.shape == (B, NT)
    assert rt.shape == (B, NR)
    assert H.shape == (B, NR, NT)

    W_param = W  # returned unchanged in the helper dict
    dtype = W.dtype

    # Batch-on-lanes layout: batch becomes the trailing (lane) axis.
    Wt = jnp.transpose(W, (1, 2, 0))       # (NT, NR, B)
    Ht = jnp.transpose(H, (1, 2, 0))       # (NR, NT, B)
    rtT = jnp.transpose(rt, (1, 0))        # (NR, B)
    shT = jnp.transpose(shatt, (1, 0))     # (NT, B)

    b_pad, tb, nb = _choose_batch_block(B, block_b)
    if b_pad != B:
        pad = b_pad - B
        Wt = jnp.pad(Wt, ((0, 0), (0, 0), (0, pad)))
        Ht = jnp.pad(Ht, ((0, 0), (0, 0), (0, pad)))
        rtT = jnp.pad(rtT, ((0, 0), (0, pad)))
        shT = jnp.pad(shT, ((0, 0), (0, pad)))

    itemsize = jnp.dtype(dtype).itemsize
    bytes_per_elt = itemsize * (NT * NR + NR * NT + NR + 2 * NT + NT * NT)
    cost = pl.CostEstimate(
        flops=2 * B * NT * NR * (NT + 1) + B * NT * NT,
        transcendentals=0,
        bytes_accessed=B * bytes_per_elt,
    )

    ztT, iwhT = pl.pallas_call(
        _mmnet_linear_kernel,
        out_shape=(
            jax.ShapeDtypeStruct((NT, b_pad), dtype),
            jax.ShapeDtypeStruct((NT, NT, b_pad), dtype),
        ),
        grid_spec=pltpu.PrefetchScalarGridSpec(
            num_scalar_prefetch=0,
            grid=(nb,),
            in_specs=[
                pl.BlockSpec((NT, NR, tb), lambda b: (0, 0, b)),   # W (lanes=B)
                pl.BlockSpec((NR, tb), lambda b: (0, b)),          # rt
                pl.BlockSpec((NT, tb), lambda b: (0, b)),          # shatt
                pl.BlockSpec((NR, NT, tb), lambda b: (0, 0, b)),   # H
            ],
            out_specs=[
                pl.BlockSpec((NT, tb), lambda b: (0, b)),          # zt
                pl.BlockSpec((NT, NT, tb), lambda b: (0, 0, b)),   # I_WH
            ],
        ),
        compiler_params=pltpu.CompilerParams(
            dimension_semantics=("parallel",),
            vmem_limit_bytes=32 * 1024 * 1024,
        ),
        cost_estimate=cost,
    )(Wt, rtT, shT, Ht)

    zt = jnp.transpose(ztT[:, :B], (1, 0))                 # (B, NT)
    iwh = jnp.transpose(iwhT[:, :, :B], (2, 0, 1))         # (B, NT, NT)

    helper = {'W': W_param, 'I_WH': iwh}
    return zt, helper


def make_W(key, batch_size, NT, NR):
    """Deterministic synthetic init mirroring the module's __init__ structure:
       W_cat = [[Wr, -Wi], [Wi, Wr]] repeated over the batch."""
    kr, ki = jax.random.split(key)
    Wr = 0.01 * jax.random.normal(kr, (1, NT // 2, NR // 2), jnp.float32)
    Wi = 0.01 * jax.random.normal(ki, (1, NT // 2, NR // 2), jnp.float32)
    top = jnp.concatenate([Wr, -Wi], axis=2)
    bot = jnp.concatenate([Wi, Wr], axis=2)
    W_cat = jnp.concatenate([top, bot], axis=1)            # (1, NT, NR)
    return jnp.tile(W_cat, (batch_size, 1, 1))             # (B, NT, NR)


def _reference(W, shatt, rt, H):
    """Plain-JAX reference with the same semantics as the PyTorch module."""
    NT = W.shape[1]
    zt = shatt + jnp.einsum('bnk,bk->bn', W, rt)
    iwh = jnp.eye(NT, dtype=W.dtype)[None] - jnp.einsum('bnk,bkm->bnm', W, H)
    return zt, iwh


if __name__ == "__main__":
    # params = {'NT': 8, 'NR': 8, 'batch_size': 2, 'cuda': False}
    params_NT, params_NR, batch_size = 8, 8, 2
    NT, NR = 2 * params_NT, 2 * params_NR                  # 16, 16

    key = jax.random.PRNGKey(0)
    kW, ks, kr, kH, kB = jax.random.split(key, 5)

    W = make_W(kW, batch_size, NT, NR)                     # (2, 16, 16)
    shatt = jax.random.normal(ks, (batch_size, NT), jnp.float32)
    rt = jax.random.normal(kr, (batch_size, NR), jnp.float32)
    H = jax.random.normal(kH, (batch_size, NR, NT), jnp.float32)

    zt, helper = mmnet_linear_forward(W, shatt, rt, H)
    zt = jax.block_until_ready(zt)
    I_WH = jax.block_until_ready(helper['I_WH'])

    zt_ref, iwh_ref = _reference(W, shatt, rt, H)
    assert jnp.allclose(zt, zt_ref, atol=1e-5, rtol=1e-5)
    assert jnp.allclose(I_WH, iwh_ref, atol=1e-5, rtol=1e-5)

    # Larger, non-multiple-of-128 batch: exercises padding + a multi-step
    # parallel grid (nb >= 2 so both v7x TensorCores get work).
    B2 = 300
    k1, k2, k3, k4 = jax.random.split(kB, 4)
    W2 = 0.01 * jax.random.normal(k1, (B2, NT, NR), jnp.float32)
    shatt2 = jax.random.normal(k2, (B2, NT), jnp.float32)
    rt2 = jax.random.normal(k3, (B2, NR), jnp.float32)
    H2 = jax.random.normal(k4, (B2, NR, NT), jnp.float32)

    zt2, helper2 = mmnet_linear_forward(W2, shatt2, rt2, H2)
    zt2 = jax.block_until_ready(zt2)
    iwh2 = jax.block_until_ready(helper2['I_WH'])
    zt2_ref, iwh2_ref = _reference(W2, shatt2, rt2, H2)
    assert jnp.allclose(zt2, zt2_ref, atol=1e-5, rtol=1e-5)
    assert jnp.allclose(iwh2, iwh2_ref, atol=1e-5, rtol=1e-5)

    print("KERNEL_OK")
</pallas_src>

<mosaic_0001>
module attributes {stable_mosaic.version = 11 : i64} {
  func.func @_mmnet_linear_kernel(%arg0: i32, %arg1: memref<16x16x128xf32, #tpu.memory_space<vmem>>, %arg2: memref<16x128xf32, #tpu.memory_space<vmem>>, %arg3: memref<16x128xf32, #tpu.memory_space<vmem>>, %arg4: memref<16x16x128xf32, #tpu.memory_space<vmem>>, %arg5: memref<16x128xf32, #tpu.memory_space<vmem>>, %arg6: memref<16x16x128xf32, #tpu.memory_space<vmem>>) attributes {dimension_semantics = [#tpu.dimension_semantics<parallel>], iteration_bounds = array<i64: 1>, scalar_prefetch = 0 : i64, scratch_operands = 0 : i64, tpu.core_type = #tpu.core_type<tc>, window_params = [{transform_indices = @transform_0, window_bounds = array<i64: 16, 16, 128>}, {transform_indices = @transform_1, window_bounds = array<i64: 16, 128>}, {transform_indices = @transform_2, window_bounds = array<i64: 16, 128>}, {transform_indices = @transform_3, window_bounds = array<i64: 16, 16, 128>}, {transform_indices = @transform_4, window_bounds = array<i64: 16, 128>}, {transform_indices = @transform_5, window_bounds = array<i64: 16, 16, 128>}]} {
    %c0 = arith.constant 0 : index
    %c0_0 = arith.constant 0 : index
    %0 = vector.load %arg2[%c0, %c0_0] : memref<16x128xf32, #tpu.memory_space<vmem>>, vector<16x128xf32>
    %c0_1 = arith.constant 0 : index
    %c0_2 = arith.constant 0 : index
    %1 = vector.load %arg3[%c0_1, %c0_2] : memref<16x128xf32, #tpu.memory_space<vmem>>, vector<16x128xf32>
    %2 = tpu.iota {dimensions = array<i32: 0>} : vector<16x128xi32>
    %c0_3 = arith.constant 0 : index
    %c0_4 = arith.constant 0 : index
    %c0_5 = arith.constant 0 : index
    %3 = vector.load %arg1[%c0_3, %c0_4, %c0_5] : memref<16x16x128xf32, #tpu.memory_space<vmem>>, vector<1x16x128xf32>
    %4 = vector.shape_cast %3 : vector<1x16x128xf32> to vector<16x128xf32>
    %5 = vector.extract_strided_slice %1 {offsets = [0, 0], sizes = [1, 128], strides = [1, 1]} : vector<16x128xf32> to vector<1x128xf32>
    %6 = arith.mulf %4, %0 : vector<16x128xf32>
    %cst = arith.constant dense<0.000000e+00> : vector<128xf32>
    %7 = vector.multi_reduction <add>, %6, %cst [0] : vector<16x128xf32> to vector<128xf32>
    %8 = vector.shape_cast %7 : vector<128xf32> to vector<1x128xf32>
    %9 = arith.addf %5, %8 : vector<1x128xf32>
    %c0_6 = arith.constant 0 : index
    %c0_7 = arith.constant 0 : index
    %10 = vector.load %arg5[%c0_6, %c0_7] : memref<16x128xf32, #tpu.memory_space<vmem>>, vector<1x128xf32>
    tpu.vector_store %arg5[%c0_6, %c0_7], %9 {strides = array<i32>} : memref<16x128xf32, #tpu.memory_space<vmem>>, vector<1x128xf32>,
    %c0_i32 = arith.constant 0 : i32
    %11 = vector.broadcast %c0_i32 : i32 to vector<16x128xi32>
    %12 = arith.cmpi eq, %2, %11 : vector<16x128xi32>
    %13 = arith.extui %12 : vector<16x128xi1> to vector<16x128xi32>
    %14 = arith.sitofp %13 : vector<16x128xi32> to vector<16x128xf32>
    %15 = vector.extract_strided_slice %4 {offsets = [0, 0], sizes = [1, 128], strides = [1, 1]} : vector<16x128xf32> to vector<1x128xf32>
    %c0_8 = arith.constant 0 : index
    %c0_9 = arith.constant 0 : index
    %c0_10 = arith.constant 0 : index
    %16 = vector.load %arg4[%c0_8, %c0_9, %c0_10] : memref<16x16x128xf32, #tpu.memory_space<vmem>>, vector<1x16x128xf32>
    %17 = vector.shape_cast %16 : vector<1x16x128xf32> to vector<16x128xf32>
    %18 = vector.broadcast %15 : vector<1x128xf32> to vector<16x128xf32>
    %19 = arith.mulf %18, %17 : vector<16x128xf32>
    %20 = arith.subf %14, %19 : vector<16x128xf32>
    %21 = vector.extract_strided_slice %4 {offsets = [1, 0], sizes = [1, 128], strides = [1, 1]} : vector<16x128xf32> to vector<1x128xf32>
    %c1 = arith.constant 1 : index
    %c0_11 = arith.constant 0 : index
    %c0_12 = arith.constant 0 : index
    %22 = vector.load %arg4[%c1, %c0_11, %c0_12] : memref<16x16x128xf32, #tpu.memory_space<vmem>>, vector<1x16x128xf32>
    %23 = vector.shape_cast %22 : vector<1x16x128xf32> to vector<16x128xf32>
    %24 = vector.broadcast %21 : vector<1x128xf32> to vector<16x128xf32>
    %25 = arith.mulf %24, %23 : vector<16x128xf32>
    %26 = arith.subf %20, %25 : vector<16x128xf32>
    %27 = vector.extract_strided_slice %4 {offsets = [2, 0], sizes = [1, 128], strides = [1, 1]} : vector<16x128xf32> to vector<1x128xf32>
    %c2 = arith.constant 2 : index
    %c0_13 = arith.constant 0 : index
    %c0_14 = arith.constant 0 : index
    %28 = vector.load %arg4[%c2, %c0_13, %c0_14] : memref<16x16x128xf32, #tpu.memory_space<vmem>>, vector<1x16x128xf32>
    %29 = vector.shape_cast %28 : vector<1x16x128xf32> to vector<16x128xf32>
    %30 = vector.broadcast %27 : vector<1x128xf32> to vector<16x128xf32>
    %31 = arith.mulf %30, %29 : vector<16x128xf32>
    %32 = arith.subf %26, %31 : vector<16x128xf32>
    %33 = vector.extract_strided_slice %4 {offsets = [3, 0], sizes = [1, 128], strides = [1, 1]} : vector<16x128xf32> to vector<1x128xf32>
    %c3 = arith.constant 3 : index
    %c0_15 = arith.constant 0 : index
    %c0_16 = arith.constant 0 : index
    %34 = vector.load %arg4[%c3, %c0_15, %c0_16] : memref<16x16x128xf32, #tpu.memory_space<vmem>>, vector<1x16x128xf32>
    %35 = vector.shape_cast %34 : vector<1x16x128xf32> to vector<16x128xf32>
    %36 = vector.broadcast %33 : vector<1x128xf32> to vector<16x128xf32>
    %37 = arith.mulf %36, %35 : vector<16x128xf32>
    %38 = arith.subf %32, %37 : vector<16x128xf32>
    %39 = vector.extract_strided_slice %4 {offsets = [4, 0], sizes = [1, 128], strides = [1, 1]} : vector<16x128xf32> to vector<1x128xf32>
    %c4 = arith.constant 4 : index
    %c0_17 = arith.constant 0 : index
    %c0_18 = arith.constant 0 : index
    %40 = vector.load %arg4[%c4, %c0_17, %c0_18] : memref<16x16x128xf32, #tpu.memory_space<vmem>>, vector<1x16x128xf32>
    %41 = vector.shape_cast %40 : vector<1x16x128xf32> to vector<16x128xf32>
    %42 = vector.broadcast %39 : vector<1x128xf32> to vector<16x128xf32>
    %43 = arith.mulf %42, %41 : vector<16x128xf32>
    %44 = arith.subf %38, %43 : vector<16x128xf32>
    %45 = vector.extract_strided_slice %4 {offsets = [5, 0], sizes = [1, 128], strides = [1, 1]} : vector<16x128xf32> to vector<1x128xf32>
    %c5 = arith.constant 5 : index
    %c0_19 = arith.constant 0 : index
    %c0_20 = arith.constant 0 : index
    %46 = vector.load %arg4[%c5, %c0_19, %c0_20] : memref<16x16x128xf32, #tpu.memory_space<vmem>>, vector<1x16x128xf32>
    %47 = vector.shape_cast %46 : vector<1x16x128xf32> to vector<16x128xf32>
    %48 = vector.broadcast %45 : vector<1x128xf32> to vector<16x128xf32>
    %49 = arith.mulf %48, %47 : vector<16x128xf32>
    %50 = arith.subf %44, %49 : vector<16x128xf32>
    %51 = vector.extract_strided_slice %4 {offsets = [6, 0], sizes = [1, 128], strides = [1, 1]} : vector<16x128xf32> to vector<1x128xf32>
    %c6 = arith.constant 6 : index
    %c0_21 = arith.constant 0 : index
    %c0_22 = arith.constant 0 : index
    %52 = vector.load %arg4[%c6, %c0_21, %c0_22] : memref<16x16x128xf32, #tpu.memory_space<vmem>>, vector<1x16x128xf32>
    %53 = vector.shape_cast %52 : vector<1x16x128xf32> to vector<16x128xf32>
    %54 = vector.broadcast %51 : vector<1x128xf32> to vector<16x128xf32>
    %55 = arith.mulf %54, %53 : vector<16x128xf32>
    %56 = arith.subf %50, %55 : vector<16x128xf32>
    %57 = vector.extract_strided_slice %4 {offsets = [7, 0], sizes = [1, 128], strides = [1, 1]} : vector<16x128xf32> to vector<1x128xf32>
    %c7 = arith.constant 7 : index
    %c0_23 = arith.constant 0 : index
    %c0_24 = arith.constant 0 : index
    %58 = vector.load %arg4[%c7, %c0_23, %c0_24] : memref<16x16x128xf32, #tpu.memory_space<vmem>>, vector<1x16x128xf32>
    %59 = vector.shape_cast %58 : vector<1x16x128xf32> to vector<16x128xf32>
    %60 = vector.broadcast %57 : vector<1x128xf32> to vector<16x128xf32>
    %61 = arith.mulf %60, %59 : vector<16x128xf32>
    %62 = arith.subf %56, %61 : vector<16x128xf32>
    %63 = vector.extract_strided_slice %4 {offsets = [8, 0], sizes = [1, 128], strides = [1, 1]} : vector<16x128xf32> to vector<1x128xf32>
    %c8 = arith.constant 8 : index
    %c0_25 = arith.constant 0 : index
    %c0_26 = arith.constant 0 : index
    %64 = vector.load %arg4[%c8, %c0_25, %c0_26] : memref<16x16x128xf32, #tpu.memory_space<vmem>>, vector<1x16x128xf32>
    %65 = vector.shape_cast %64 : vector<1x16x128xf32> to vector<16x128xf32>
    %66 = vector.broadcast %63 : vector<1x128xf32> to vector<16x128xf32>
    %67 = arith.mulf %66, %65 : vector<16x128xf32>
    %68 = arith.subf %62, %67 : vector<16x128xf32>
    %69 = vector.extract_strided_slice %4 {offsets = [9, 0], sizes = [1, 128], strides = [1, 1]} : vector<16x128xf32> to vector<1x128xf32>
    %c9 = arith.constant 9 : index
    %c0_27 = arith.constant 0 : index
    %c0_28 = arith.constant 0 : index
    %70 = vector.load %arg4[%c9, %c0_27, %c0_28] : memref<16x16x128xf32, #tpu.memory_space<vmem>>, vector<1x16x128xf32>
    %71 = vector.shape_cast %70 : vector<1x16x128xf32> to vector<16x128xf32>
    %72 = vector.broadcast %69 : vector<1x128xf32> to vector<16x128xf32>
    %73 = arith.mulf %72, %71 : vector<16x128xf32>
    %74 = arith.subf %68, %73 : vector<16x128xf32>
    %75 = vector.extract_strided_slice %4 {offsets = [10, 0], sizes = [1, 128], strides = [1, 1]} : vector<16x128xf32> to vector<1x128xf32>
    %c10 = arith.constant 10 : index
    %c0_29 = arith.constant 0 : index
    %c0_30 = arith.constant 0 : index
    %76 = vector.load %arg4[%c10, %c0_29, %c0_30] : memref<16x16x128xf32, #tpu.memory_space<vmem>>, vector<1x16x128xf32>
    %77 = vector.shape_cast %76 : vector<1x16x128xf32> to vector<16x128xf32>
    %78 = vector.broadcast %75 : vector<1x128xf32> to vector<16x128xf32>
    %79 = arith.mulf %78, %77 : vector<16x128xf32>
    %80 = arith.subf %74, %79 : vector<16x128xf32>
    %81 = vector.extract_strided_slice %4 {offsets = [11, 0], sizes = [1, 128], strides = [1, 1]} : vector<16x128xf32> to vector<1x128xf32>
    %c11 = arith.constant 11 : index
    %c0_31 = arith.constant 0 : index
    %c0_32 = arith.constant 0 : index
    %82 = vector.load %arg4[%c11, %c0_31, %c0_32] : memref<16x16x128xf32, #tpu.memory_space<vmem>>, vector<1x16x128xf32>
    %83 = vector.shape_cast %82 : vector<1x16x128xf32> to vector<16x128xf32>
    %84 = vector.broadcast %81 : vector<1x128xf32> to vector<16x128xf32>
    %85 = arith.mulf %84, %83 : vector<16x128xf32>
    %86 = arith.subf %80, %85 : vector<16x128xf32>
    %87 = vector.extract_strided_slice %4 {offsets = [12, 0], sizes = [1, 128], strides = [1, 1]} : vector<16x128xf32> to vector<1x128xf32>
    %c12 = arith.constant 12 : index
    %c0_33 = arith.constant 0 : index
    %c0_34 = arith.constant 0 : index
    %88 = vector.load %arg4[%c12, %c0_33, %c0_34] : memref<16x16x128xf32, #tpu.memory_space<vmem>>, vector<1x16x128xf32>
    %89 = vector.shape_cast %88 : vector<1x16x128xf32> to vector<16x128xf32>
    %90 = vector.broadcast %87 : vector<1x128xf32> to vector<16x128xf32>
    %91 = arith.mulf %90, %89 : vector<16x128xf32>
    %92 = arith.subf %86, %91 : vector<16x128xf32>
    %93 = vector.extract_strided_slice %4 {offsets = [13, 0], sizes = [1, 128], strides = [1, 1]} : vector<16x128xf32> to vector<1x128xf32>
    %c13 = arith.constant 13 : index
    %c0_35 = arith.constant 0 : index
    %c0_36 = arith.constant 0 : index
    %94 = vector.load %arg4[%c13, %c0_35, %c0_36] : memref<16x16x128xf32, #tpu.memory_space<vmem>>, vector<1x16x128xf32>
    %95 = vector.shape_cast %94 : vector<1x16x128xf32> to vector<16x128xf32>
    %96 = vector.broadcast %93 : vector<1x128xf32> to vector<16x128xf32>
    %97 = arith.mulf %96, %95 : vector<16x128xf32>
    %98 = arith.subf %92, %97 : vector<16x128xf32>
    %99 = vector.extract_strided_slice %4 {offsets = [14, 0], sizes = [1, 128], strides = [1, 1]} : vector<16x128xf32> to vector<1x128xf32>
    %c14 = arith.constant 14 : index
    %c0_37 = arith.constant 0 : index
    %c0_38 = arith.constant 0 : index
    %100 = vector.load %arg4[%c14, %c0_37, %c0_38] : memref<16x16x128xf32, #tpu.memory_space<vmem>>, vector<1x16x128xf32>
    %101 = vector.shape_cast %100 : vector<1x16x128xf32> to vector<16x128xf32>
    %102 = vector.broadcast %99 : vector<1x128xf32> to vector<16x128xf32>
    %103 = arith.mulf %102, %101 : vector<16x128xf32>
    %104 = arith.subf %98, %103 : vector<16x128xf32>
    %105 = vector.extract_strided_slice %4 {offsets = [15, 0], sizes = [1, 128], strides = [1, 1]} : vector<16x128xf32> to vector<1x128xf32>
    %c15 = arith.constant 15 : index
    %c0_39 = arith.constant 0 : index
    %c0_40 = arith.constant 0 : index
    %106 = vector.load %arg4[%c15, %c0_39, %c0_40] : memref<16x16x128xf32, #tpu.memory_space<vmem>>, vector<1x16x128xf32>
    %107 = vector.shape_cast %106 : vector<1x16x128xf32> to vector<16x128xf32>
    %108 = vector.broadcast %105 : vector<1x128xf32> to vector<16x128xf32>
    %109 = arith.mulf %108, %107 : vector<16x128xf32>
    %110 = arith.subf %104, %109 : vector<16x128xf32>
    %c0_41 = arith.constant 0 : index
    %c0_42 = arith.constant 0 : index
    %c0_43 = arith.constant 0 : index
    %111 = vector.load %arg6[%c0_41, %c0_42, %c0_43] : memref<16x16x128xf32, #tpu.memory_space<vmem>>, vector<1x16x128xf32>
    %112 = vector.shape_cast %111 : vector<1x16x128xf32> to vector<16x128xf32>
    %113 = vector.shape_cast %110 : vector<16x128xf32> to vector<1x16x128xf32>
    tpu.vector_store %arg6[%c0_41, %c0_42, %c0_43], %113 {strides = array<i32>} : memref<16x16x128xf32, #tpu.memory_space<vmem>>, vector<1x16x128xf32>,
    %c1_44 = arith.constant 1 : index
    %c0_45 = arith.constant 0 : index
    %c0_46 = arith.constant 0 : index
    %114 = vector.load %arg1[%c1_44, %c0_45, %c0_46] : memref<16x16x128xf32, #tpu.memory_space<vmem>>, vector<1x16x128xf32>
    %115 = vector.shape_cast %114 : vector<1x16x128xf32> to vector<16x128xf32>
    %116 = vector.extract_strided_slice %1 {offsets = [1, 0], sizes = [1, 128], strides = [1, 1]} : vector<16x128xf32> to vector<1x128xf32>
    %117 = arith.mulf %115, %0 : vector<16x128xf32>
    %cst_47 = arith.constant dense<0.000000e+00> : vector<128xf32>
    %118 = vector.multi_reduction <add>, %117, %cst_47 [0] : vector<16x128xf32> to vector<128xf32>
    %119 = vector.shape_cast %118 : vector<128xf32> to vector<1x128xf32>
    %120 = arith.addf %116, %119 : vector<1x128xf32>
    %c1_48 = arith.constant 1 : index
    %c0_49 = arith.constant 0 : index
    %121 = vector.load %arg5[%c1_48, %c0_49] : memref<16x128xf32, #tpu.memory_space<vmem>>, vector<1x128xf32>
    tpu.vector_store %arg5[%c1_48, %c0_49], %120 {strides = array<i32>} : memref<16x128xf32, #tpu.memory_space<vmem>>, vector<1x128xf32>,
    %c1_i32 = arith.constant 1 : i32
    %122 = vector.broadcast %c1_i32 : i32 to vector<16x128xi32>
    %123 = arith.cmpi eq, %2, %122 : vector<16x128xi32>
    %124 = arith.extui %123 : vector<16x128xi1> to vector<16x128xi32>
    %125 = arith.sitofp %124 : vector<16x128xi32> to vector<16x128xf32>
    %126 = vector.extract_strided_slice %115 {offsets = [0, 0], sizes = [1, 128], strides = [1, 1]} : vector<16x128xf32> to vector<1x128xf32>
    %c0_50 = arith.constant 0 : index
    %c0_51 = arith.constant 0 : index
    %c0_52 = arith.constant 0 : index
    %127 = vector.load %arg4[%c0_50, %c0_51, %c0_52] : memref<16x16x128xf32, #tpu.memory_space<vmem>>, vector<1x16x128xf32>
    %128 = vector.shape_cast %127 : vector<1x16x128xf32> to vector<16x128xf32>
    %129 = vector.broadcast %126 : vector<1x128xf32> to vector<16x128xf32>
    %130 = arith.mulf %129, %128 : vector<16x128xf32>
    %131 = arith.subf %125, %130 : vector<16x128xf32>
    %132 = vector.extract_strided_slice %115 {offsets = [1, 0], sizes = [1, 128], strides = [1, 1]} : vector<16x128xf32> to vector<1x128xf32>
    %c1_53 = arith.constant 1 : index
    %c0_54 = arith.constant 0 : index
    %c0_55 = arith.constant 0 : index
    %133 = vector.load %arg4[%c1_53, %c0_54, %c0_55] : memref<16x16x128xf32, #tpu.memory_space<vmem>>, vector<1x16x128xf32>
    %134 = vector.shape_cast %133 : vector<1x16x128xf32> to vector<16x128xf32>
    %135 = vector.broadcast %132 : vector<1x128xf32> to vector<16x128xf32>
    %136 = arith.mulf %135, %134 : vector<16x128xf32>
    %137 = arith.subf %131, %136 : vector<16x128xf32>
    %138 = vector.extract_strided_slice %115 {offsets = [2, 0], sizes = [1, 128], strides = [1, 1]} : vector<16x128xf32> to vector<1x128xf32>
    %c2_56 = arith.constant 2 : index
    %c0_57 = arith.constant 0 : index
    %c0_58 = arith.constant 0 : index
    %139 = vector.load %arg4[%c2_56, %c0_57, %c0_58] : memref<16x16x128xf32, #tpu.memory_space<vmem>>, vector<1x16x128xf32>
    %140 = vector.shape_cast %139 : vector<1x16x128xf32> to vector<16x128xf32>
    %141 = vector.broadcast %138 : vector<1x128xf32> to vector<16x128xf32>
    %142 = arith.mulf %141, %140 : vector<16x128xf32>
    %143 = arith.subf %137, %142 : vector<16x128xf32>
    %144 = vector.extract_strided_slice %115 {offsets = [3, 0], sizes = [1, 128], strides = [1, 1]} : vector<16x128xf32> to vector<1x128xf32>
    %c3_59 = arith.constant 3 : index
    %c0_60 = arith.constant 0 : index
    %c0_61 = arith.constant 0 : index
    %145 = vector.load %arg4[%c3_59, %c0_60, %c0_61] : memref<16x16x128xf32, #tpu.memory_space<vmem>>, vector<1x16x128xf32>
    %146 = vector.shape_cast %145 : vector<1x16x128xf32> to vector<16x128xf32>
    %147 = vector.broadcast %144 : vector<1x128xf32> to vector<16x128xf32>
    %148 = arith.mulf %147, %146 : vector<16x128xf32>
    %149 = arith.subf %143, %148 : vector<16x128xf32>
    %150 = vector.extract_strided_slice %115 {offsets = [4, 0], sizes = [1, 128], strides = [1, 1]} : vector<16x128xf32> to vector<1x128xf32>
    %c4_62 = arith.constant 4 : index
    %c0_63 = arith.constant 0 : index
    %c0_64 = arith.constant 0 : index
    %151 = vector.load %arg4[%c4_62, %c0_63, %c0_64] : memref<16x16x128xf32, #tpu.memory_space<vmem>>, vector<1x16x128xf32>
    %152 = vector.shape_cast %151 : vector<1x16x128xf32> to vector<16x128xf32>
    %153 = vector.broadcast %150 : vector<1x128xf32> to vector<16x128xf32>
    %154 = arith.mulf %153, %152 : vector<16x128xf32>
    %155 = arith.subf %149, %154 : vector<16x128xf32>
    %156 = vector.extract_strided_slice %115 {offsets = [5, 0], sizes = [1, 128], strides = [1, 1]} : vector<16x128xf32> to vector<1x128xf32>
    %c5_65 = arith.constant 5 : index
    %c0_66 = arith.constant 0 : index
    %c0_67 = arith.constant 0 : index
    %157 = vector.load %arg4[%c5_65, %c0_66, %c0_67] : memref<16x16x128xf32, #tpu.memory_space<vmem>>, vector<1x16x128xf32>
    %158 = vector.shape_cast %157 : vector<1x16x128xf32> to vector<16x128xf32>
    %159 = vector.broadcast %156 : vector<1x128xf32> to vector<16x128xf32>
    %160 = arith.mulf %159, %158 : vector<16x128xf32>
    %161 = arith.subf %155, %160 : vector<16x128xf32>
    %162 = vector.extract_strided_slice %115 {offsets = [6, 0], sizes = [1, 128], strides = [1, 1]} : vector<16x128xf32> to vector<1x128xf32>
    %c6_68 = arith.constant 6 : index
    %c0_69 = arith.constant 0 : index
    %c0_70 = arith.constant 0 : index
    %163 = vector.load %arg4[%c6_68, %c0_69, %c0_70] : memref<16x16x128xf32, #tpu.memory_space<vmem>>, vector<1x16x128xf32>
    %164 = vector.shape_cast %163 : vector<1x16x128xf32> to vector<16x128xf32>
    %165 = vector.broadcast %162 : vector<1x128xf32> to vector<16x128xf32>
    %166 = arith.mulf %165, %164 : vector<16x128xf32>
    %167 = arith.subf %161, %166 : vector<16x128xf32>
    %168 = vector.extract_strided_slice %115 {offsets = [7, 0], sizes = [1, 128], strides = [1, 1]} : vector<16x128xf32> to vector<1x128xf32>
    %c7_71 = arith.constant 7 : index
    %c0_72 = arith.constant 0 : index
    %c0_73 = arith.constant 0 : index
    %169 = vector.load %arg4[%c7_71, %c0_72, %c0_73] : memref<16x16x128xf32, #tpu.memory_space<vmem>>, vector<1x16x128xf32>
    %170 = vector.shape_cast %169 : vector<1x16x128xf32> to vector<16x128xf32>
    %171 = vector.broadcast %168 : vector<1x128xf32> to vector<16x128xf32>
    %172 = arith.mulf %171, %170 : vector<16x128xf32>
    %173 = arith.subf %167, %172 : vector<16x128xf32>
    %174 = vector.extract_strided_slice %115 {offsets = [8, 0], sizes = [1, 128], strides = [1, 1]} : vector<16x128xf32> to vector<1x128xf32>
    %c8_74 = arith.constant 8 : index
    %c0_75 = arith.constant 0 : index
    %c0_76 = arith.constant 0 : index
    %175 = vector.load %arg4[%c8_74, %c0_75, %c0_76] : memref<16x16x128xf32, #tpu.memory_space<vmem>>, vector<1x16x128xf32>
    %176 = vector.shape_cast %175 : vector<1x16x128xf32> to vector<16x128xf32>
    %177 = vector.broadcast %174 : vector<1x128xf32> to vector<16x128xf32>
    %178 = arith.mulf %177, %176 : vector<16x128xf32>
    %179 = arith.subf %173, %178 : vector<16x128xf32>
    %180 = vector.extract_strided_slice %115 {offsets = [9, 0], sizes = [1, 128], strides = [1, 1]} : vector<16x128xf32> to vector<1x128xf32>
    %c9_77 = arith.constant 9 : index
    %c0_78 = arith.constant 0 : index
    %c0_79 = arith.constant 0 : index
    %181 = vector.load %arg4[%c9_77, %c0_78, %c0_79] : memref<16x16x128xf32, #tpu.memory_space<vmem>>, vector<1x16x128xf32>
    %182 = vector.shape_cast %181 : vector<1x16x128xf32> to vector<16x128xf32>
    %183 = vector.broadcast %180 : vector<1x128xf32> to vector<16x128xf32>
    %184 = arith.mulf %183, %182 : vector<16x128xf32>
    %185 = arith.subf %179, %184 : vector<16x128xf32>
    %186 = vector.extract_strided_slice %115 {offsets = [10, 0], sizes = [1, 128], strides = [1, 1]} : vector<16x128xf32> to vector<1x128xf32>
    %c10_80 = arith.constant 10 : index
    %c0_81 = arith.constant 0 : index
    %c0_82 = arith.constant 0 : index
    %187 = vector.load %arg4[%c10_80, %c0_81, %c0_82] : memref<16x16x128xf32, #tpu.memory_space<vmem>>, vector<1x16x128xf32>
    %188 = vector.shape_cast %187 : vector<1x16x128xf32> to vector<16x128xf32>
    %189 = vector.broadcast %186 : vector<1x128xf32> to vector<16x128xf32>
    %190 = arith.mulf %189, %188 : vector<16x128xf32>
    %191 = arith.subf %185, %190 : vector<16x128xf32>
    %192 = vector.extract_strided_slice %115 {offsets = [11, 0], sizes = [1, 128], strides = [1, 1]} : vector<16x128xf32> to vector<1x128xf32>
    %c11_83 = arith.constant 11 : index
    %c0_84 = arith.constant 0 : index
    %c0_85 = arith.constant 0 : index
    %193 = vector.load %arg4[%c11_83, %c0_84, %c0_85] : memref<16x16x128xf32, #tpu.memory_space<vmem>>, vector<1x16x128xf32>
    %194 = vector.shape_cast %193 : vector<1x16x128xf32> to vector<16x128xf32>
    %195 = vector.broadcast %192 : vector<1x128xf32> to vector<16x128xf32>
    %196 = arith.mulf %195, %194 : vector<16x128xf32>
    %197 = arith.subf %191, %196 : vector<16x128xf32>
    %198 = vector.extract_strided_slice %115 {offsets = [12, 0], sizes = [1, 128], strides = [1, 1]} : vector<16x128xf32> to vector<1x128xf32>
    %c12_86 = arith.constant 12 : index
    %c0_87 = arith.constant 0 : index
    %c0_88 = arith.constant 0 : index
    %199 = vector.load %arg4[%c12_86, %c0_87, %c0_88] : memref<16x16x128xf32, #tpu.memory_space<vmem>>, vector<1x16x128xf32>
    %200 = vector.shape_cast %199 : vector<1x16x128xf32> to vector<16x128xf32>
    %201 = vector.broadcast %198 : vector<1x128xf32> to vector<16x128xf32>
    %202 = arith.mulf %201, %200 : vector<16x128xf32>
    %203 = arith.subf %197, %202 : vector<16x128xf32>
    %204 = vector.extract_strided_slice %115 {offsets = [13, 0], sizes = [1, 128], strides = [1, 1]} : vector<16x128xf32> to vector<1x128xf32>
    %c13_89 = arith.constant 13 : index
    %c0_90 = arith.constant 0 : index
    %c0_91 = arith.constant 0 : index
    %205 = vector.load %arg4[%c13_89, %c0_90, %c0_91] : memref<16x16x128xf32, #tpu.memory_space<vmem>>, vector<1x16x128xf32>
    %206 = vector.shape_cast %205 : vector<1x16x128xf32> to vector<16x128xf32>
    %207 = vector.broadcast %204 : vector<1x128xf32> to vector<16x128xf32>
    %208 = arith.mulf %207, %206 : vector<16x128xf32>
    %209 = arith.subf %203, %208 : vector<16x128xf32>
    %210 = vector.extract_strided_slice %115 {offsets = [14, 0], sizes = [1, 128], strides = [1, 1]} : vector<16x128xf32> to vector<1x128xf32>
    %c14_92 = arith.constant 14 : index
    %c0_93 = arith.constant 0 : index
    %c0_94 = arith.constant 0 : index
    %211 = vector.load %arg4[%c14_92, %c0_93, %c0_94] : memref<16x16x128xf32, #tpu.memory_space<vmem>>, vector<1x16x128xf32>
    %212 = vector.shape_cast %211 : vector<1x16x128xf32> to vector<16x128xf32>
    %213 = vector.broadcast %210 : vector<1x128xf32> to vector<16x128xf32>
    %214 = arith.mulf %213, %212 : vector<16x128xf32>
    %215 = arith.subf %209, %214 : vector<16x128xf32>
    %216 = vector.extract_strided_slice %115 {offsets = [15, 0], sizes = [1, 128], strides = [1, 1]} : vector<16x128xf32> to vector<1x128xf32>
    %c15_95 = arith.constant 15 : index
    %c0_96 = arith.constant 0 : index
    %c0_97 = arith.constant 0 : index
    %217 = vector.load %arg4[%c15_95, %c0_96, %c0_97] : memref<16x16x128xf32, #tpu.memory_space<vmem>>, vector<1x16x128xf32>
    %218 = vector.shape_cast %217 : vector<1x16x128xf32> to vector<16x128xf32>
    %219 = vector.broadcast %216 : vector<1x128xf32> to vector<16x128xf32>
    %220 = arith.mulf %219, %218 : vector<16x128xf32>
    %221 = arith.subf %215, %220 : vector<16x128xf32>
    %c1_98 = arith.constant 1 : index
    %c0_99 = arith.constant 0 : index
    %c0_100 = arith.constant 0 : index
    %222 = vector.load %arg6[%c1_98, %c0_99, %c0_100] : memref<16x16x128xf32, #tpu.memory_space<vmem>>, vector<1x16x128xf32>
    %223 = vector.shape_cast %222 : vector<1x16x128xf32> to vector<16x128xf32>
    %224 = vector.shape_cast %221 : vector<16x128xf32> to vector<1x16x128xf32>
    tpu.vector_store %arg6[%c1_98, %c0_99, %c0_100], %224 {strides = array<i32>} : memref<16x16x128xf32, #tpu.memory_space<vmem>>, vector<1x16x128xf32>,
    %c2_101 = arith.constant 2 : index
    %c0_102 = arith.constant 0 : index
    %c0_103 = arith.constant 0 : index
    %225 = vector.load %arg1[%c2_101, %c0_102, %c0_103] : memref<16x16x128xf32, #tpu.memory_space<vmem>>, vector<1x16x128xf32>
    %226 = vector.shape_cast %225 : vector<1x16x128xf32> to vector<16x128xf32>
    %227 = vector.extract_strided_slice %1 {offsets = [2, 0], sizes = [1, 128], strides = [1, 1]} : vector<16x128xf32> to vector<1x128xf32>
    %228 = arith.mulf %226, %0 : vector<16x128xf32>
    %cst_104 = arith.constant dense<0.000000e+00> : vector<128xf32>
    %229 = vector.multi_reduction <add>, %228, %cst_104 [0] : vector<16x128xf32> to vector<128xf32>
    %230 = vector.shape_cast %229 : vector<128xf32> to vector<1x128xf32>
    %231 = arith.addf %227, %230 : vector<1x128xf32>
    %c2_105 = arith.constant 2 : index
    %c0_106 = arith.constant 0 : index
    %232 = vector.load %arg5[%c2_105, %c0_106] : memref<16x128xf32, #tpu.memory_space<vmem>>, vector<1x128xf32>
    tpu.vector_store %arg5[%c2_105, %c0_106], %231 {strides = array<i32>} : memref<16x128xf32, #tpu.memory_space<vmem>>, vector<1x128xf32>,
    %c2_i32 = arith.constant 2 : i32
    %233 = vector.broadcast %c2_i32 : i32 to vector<16x128xi32>
    %234 = arith.cmpi eq, %2, %233 : vector<16x128xi32>
    %235 = arith.extui %234 : vector<16x128xi1> to vector<16x128xi32>
    %236 = arith.sitofp %235 : vector<16x128xi32> to vector<16x128xf32>
    %237 = vector.extract_strided_slice %226 {offsets = [0, 0], sizes = [1, 128], strides = [1, 1]} : vector<16x128xf32> to vector<1x128xf32>
    %c0_107 = arith.constant 0 : index
    %c0_108 = arith.constant 0 : index
    %c0_109 = arith.constant 0 : index
    %238 = vector.load %arg4[%c0_107, %c0_108, %c0_109] : memref<16x16x128xf32, #tpu.memory_space<vmem>>, vector<1x16x128xf32>
    %239 = vector.shape_cast %238 : vector<1x16x128xf32> to vector<16x128xf32>
    %240 = vector.broadcast %237 : vector<1x128xf32> to vector<16x128xf32>
    %241 = arith.mulf %240, %239 : vector<16x128xf32>
    %242 = arith.subf %236, %241 : vector<16x128xf32>
    %243 = vector.extract_strided_slice %226 {offsets = [1, 0], sizes = [1, 128], strides = [1, 1]} : vector<16x128xf32> to vector<1x128xf32>
    %c1_110 = arith.constant 1 : index
    %c0_111 = arith.constant 0 : index
    %c0_112 = arith.constant 0 : index
    %244 = vector.load %arg4[%c1_110, %c0_111, %c0_112] : memref<16x16x128xf32, #tpu.memory_space<vmem>>, vector<1x16x128xf32>
    %245 = vector.shape_cast %244 : vector<1x16x128xf32> to vector<16x128xf32>
    %246 = vector.broadcast %243 : vector<1x128xf32> to vector<16x128xf32>
    %247 = arith.mulf %246, %245 : vector<16x128xf32>
    %248 = arith.subf %242, %247 : vector<16x128xf32>
    %249 = vector.extract_strided_slice %226 {offsets = [2, 0], sizes = [1, 128], strides = [1, 1]} : vector<16x128xf32> to vector<1x128xf32>
    %c2_113 = arith.constant 2 : index
    %c0_114 = arith.constant 0 : index
    %c0_115 = arith.constant 0 : index
    %250 = vector.load %arg4[%c2_113, %c0_114, %c0_115] : memref<16x16x128xf32, #tpu.memory_space<vmem>>, vector<1x16x128xf32>
    %251 = vector.shape_cast %250 : vector<1x16x128xf32> to vector<16x128xf32>
    %252 = vector.broadcast %249 : vector<1x128xf32> to vector<16x128xf32>
    %253 = arith.mulf %252, %251 : vector<16x128xf32>
    %254 = arith.subf %248, %253 : vector<16x128xf32>
    %255 = vector.extract_strided_slice %226 {offsets = [3, 0], sizes = [1, 128], strides = [1, 1]} : vector<16x128xf32> to vector<1x128xf32>
    %c3_116 = arith.constant 3 : index
    %c0_117 = arith.constant 0 : index
    %c0_118 = arith.constant 0 : index
    %256 = vector.load %arg4[%c3_116, %c0_117, %c0_118] : memref<16x16x128xf32, #tpu.memory_space<vmem>>, vector<1x16x128xf32>
    %257 = vector.shape_cast %256 : vector<1x16x128xf32> to vector<16x128xf32>
    %258 = vector.broadcast %255 : vector<1x128xf32> to vector<16x128xf32>
    %259 = arith.mulf %258, %257 : vector<16x128xf32>
    %260 = arith.subf %254, %259 : vector<16x128xf32>
    %261 = vector.extract_strided_slice %226 {offsets = [4, 0], sizes = [1, 128], strides = [1, 1]} : vector<16x128xf32> to vector<1x128xf32>
    %c4_119 = arith.constant 4 : index
    %c0_120 = arith.constant 0 : index
    %c0_121 = arith.constant 0 : index
    %262 = vector.load %arg4[%c4_119, %c0_120, %c0_121] : memref<16x16x128xf32, #tpu.memory_space<vmem>>, vector<1x16x128xf32>
    %263 = vector.shape_cast %262 : vector<1x16x128xf32> to vector<16x128xf32>
    %264 = vector.broadcast %261 : vector<1x128xf32> to vector<16x128xf32>
    %265 = arith.mulf %264, %263 : vector<16x128xf32>
    %266 = arith.subf %260, %265 : vector<16x128xf32>
    %267 = vector.extract_strided_slice %226 {offsets = [5, 0], sizes = [1, 128], strides = [1, 1]} : vector<16x128xf32> to vector<1x128xf32>
    %c5_122 = arith.constant 5 : index
    %c0_123 = arith.constant 0 : index
    %c0_124 = arith.constant 0 : index
    %268 = vector.load %arg4[%c5_122, %c0_123, %c0_124] : memref<16x16x128xf32, #tpu.memory_space<vmem>>, vector<1x16x128xf32>
    %269 = vector.shape_cast %268 : vector<1x16x128xf32> to vector<16x128xf32>
    %270 = vector.broadcast %267 : vector<1x128xf32> to vector<16x128xf32>
    %271 = arith.mulf %270, %269 : vector<16x128xf32>
    %272 = arith.subf %266, %271 : vector<16x128xf32>
    %273 = vector.extract_strided_slice %226 {offsets = [6, 0], sizes = [1, 128], strides = [1, 1]} : vector<16x128xf32> to vector<1x128xf32>
    %c6_125 = arith.constant 6 : index
    %c0_126 = arith.constant 0 : index
    %c0_127 = arith.constant 0 : index
    %274 = vector.load %arg4[%c6_125, %c0_126, %c0_127] : memref<16x16x128xf32, #tpu.memory_space<vmem>>, vector<1x16x128xf32>
    %275 = vector.shape_cast %274 : vector<1x16x128xf32> to vector<16x128xf32>
    %276 = vector.broadcast %273 : vector<1x128xf32> to vector<16x128xf32>
    %277 = arith.mulf %276, %275 : vector<16x128xf32>
    %278 = arith.subf %272, %277 : vector<16x128xf32>
    %279 = vector.extract_strided_slice %226 {offsets = [7, 0], sizes = [1, 128], strides = [1, 1]} : vector<16x128xf32> to vector<1x128xf32>
    %c7_128 = arith.constant 7 : index
    %c0_129 = arith.constant 0 : index
    %c0_130 = arith.constant 0 : index
    %280 = vector.load %arg4[%c7_128, %c0_129, %c0_130] : memref<16x16x128xf32, #tpu.memory_space<vmem>>, vector<1x16x128xf32>
    %281 = vector.shape_cast %280 : vector<1x16x128xf32> to vector<16x128xf32>
    %282 = vector.broadcast %279 : vector<1x128xf32> to vector<16x128xf32>
    %283 = arith.mulf %282, %281 : vector<16x128xf32>
    %284 = arith.subf %278, %283 : vector<16x128xf32>
    %285 = vector.extract_strided_slice %226 {offsets = [8, 0], sizes = [1, 128], strides = [1, 1]} : vector<16x128xf32> to vector<1x128xf32>
    %c8_131 = arith.constant 8 : index
    %c0_132 = arith.constant 0 : index
    %c0_133 = arith.constant 0 : index
    %286 = vector.load %arg4[%c8_131, %c0_132, %c0_133] : memref<16x16x128xf32, #tpu.memory_space<vmem>>, vector<1x16x128xf32>
    %287 = vector.shape_cast %286 : vector<1x16x128xf32> to vector<16x128xf32>
    %288 = vector.broadcast %285 : vector<1x128xf32> to vector<16x128xf32>
    %289 = arith.mulf %288, %287 : vector<16x128xf32>
    %290 = arith.subf %284, %289 : vector<16x128xf32>
    %291 = vector.extract_strided_slice %226 {offsets = [9, 0], sizes = [1, 128], strides = [1, 1]} : vector<16x128xf32> to vector<1x128xf32>
    %c9_134 = arith.constant 9 : index
    %c0_135 = arith.constant 0 : index
    %c0_136 = arith.constant 0 : index
    %292 = vector.load %arg4[%c9_134, %c0_135, %c0_136] : memref<16x16x128xf32, #tpu.memory_space<vmem>>, vector<1x16x128xf32>
    %293 = vector.shape_cast %292 : vector<1x16x128xf32> to vector<16x128xf32>
    %294 = vector.broadcast %291 : vector<1x128xf32> to vector<16x128xf32>
    %295 = arith.mulf %294, %293 : vector<16x128xf32>
    %296 = arith.subf %290, %295 : vector<16x128xf32>
    %297 = vector.extract_strided_slice %226 {offsets = [10, 0], sizes = [1, 128], strides = [1, 1]} : vector<16x128xf32> to vector<1x128xf32>
    %c10_137 = arith.constant 10 : index
    %c0_138 = arith.constant 0 : index
    %c0_139 = arith.constant 0 : index
    %298 = vector.load %arg4[%c10_137, %c0_138, %c0_139] : memref<16x16x128xf32, #tpu.memory_space<vmem>>, vector<1x16x128xf32>
    %299 = vector.shape_cast %298 : vector<1x16x128xf32> to vector<16x128xf32>
    %300 = vector.broadcast %297 : vector<1x128xf32> to vector<16x128xf32>
    %301 = arith.mulf %300, %299 : vector<16x128xf32>
    %302 = arith.subf %296, %301 : vector<16x128xf32>
    %303 = vector.extract_strided_slice %226 {offsets = [11, 0], sizes = [1, 128], strides = [1, 1]} : vector<16x128xf32> to vector<1x128xf32>
    %c11_140 = arith.constant 11 : index
    %c0_141 = arith.constant 0 : index
    %c0_142 = arith.constant 0 : index
    %304 = vector.load %arg4[%c11_140, %c0_141, %c0_142] : memref<16x16x128xf32, #tpu.memory_space<vmem>>, vector<1x16x128xf32>
    %305 = vector.shape_cast %304 : vector<1x16x128xf32> to vector<16x128xf32>
    %306 = vector.broadcast %303 : vector<1x128xf32> to vector<16x128xf32>
    %307 = arith.mulf %306, %305 : vector<16x128xf32>
    %308 = arith.subf %302, %307 : vector<16x128xf32>
    %309 = vector.extract_strided_slice %226 {offsets = [12, 0], sizes = [1, 128], strides = [1, 1]} : vector<16x128xf32> to vector<1x128xf32>
    %c12_143 = arith.constant 12 : index
    %c0_144 = arith.constant 0 : index
    %c0_145 = arith.constant 0 : index
    %310 = vector.load %arg4[%c12_143, %c0_144, %c0_145] : memref<16x16x128xf32, #tpu.memory_space<vmem>>, vector<1x16x128xf32>
    %311 = vector.shape_cast %310 : vector<1x16x128xf32> to vector<16x128xf32>
    %312 = vector.broadcast %309 : vector<1x128xf32> to vector<16x128xf32>
    %313 = arith.mulf %312, %311 : vector<16x128xf32>
    %314 = arith.subf %308, %313 : vector<16x128xf32>
    %315 = vector.extract_strided_slice %226 {offsets = [13, 0], sizes = [1, 128], strides = [1, 1]} : vector<16x128xf32> to vector<1x128xf32>
    %c13_146 = arith.constant 13 : index
    %c0_147 = arith.constant 0 : index
    %c0_148 = arith.constant 0 : index
    %316 = vector.load %arg4[%c13_146, %c0_147, %c0_148] : memref<16x16x128xf32, #tpu.memory_space<vmem>>, vector<1x16x128xf32>
    %317 = vector.shape_cast %316 : vector<1x16x128xf32> to vector<16x128xf32>
    %318 = vector.broadcast %315 : vector<1x128xf32> to vector<16x128xf32>
    %319 = arith.mulf %318, %317 : vector<16x128xf32>
    %320 = arith.subf %314, %319 : vector<16x128xf32>
    %321 = vector.extract_strided_slice %226 {offsets = [14, 0], sizes = [1, 128], strides = [1, 1]} : vector<16x128xf32> to vector<1x128xf32>
    %c14_149 = arith.constant 14 : index
    %c0_150 = arith.constant 0 : index
    %c0_151 = arith.constant 0 : index
    %322 = vector.load %arg4[%c14_149, %c0_150, %c0_151] : memref<16x16x128xf32, #tpu.memory_space<vmem>>, vector<1x16x128xf32>
    %323 = vector.shape_cast %322 : vector<1x16x128xf32> to vector<16x128xf32>
    %324 = vector.broadcast %321 : vector<1x128xf32> to vector<16x128xf32>
    %325 = arith.mulf %324, %323 : vector<16x128xf32>
    %326 = arith.subf %320, %325 : vector<16x128xf32>
    %327 = vector.extract_strided_slice %226 {offsets = [15, 0], sizes = [1, 128], strides = [1, 1]} : vector<16x128xf32> to vector<1x128xf32>
    %c15_152 = arith.constant 15 : index
    %c0_153 = arith.constant 0 : index
    %c0_154 = arith.constant 0 : index
    %328 = vector.load %arg4[%c15_152, %c0_153, %c0_154] : memref<16x16x128xf32, #tpu.memory_space<vmem>>, vector<1x16x128xf32>
    %329 = vector.shape_cast %328 : vector<1x16x128xf32> to vector<16x128xf32>
    %330 = vector.broadcast %327 : vector<1x128xf32> to vector<16x128xf32>
    %331 = arith.mulf %330, %329 : vector<16x128xf32>
    %332 = arith.subf %326, %331 : vector<16x128xf32>
    %c2_155 = arith.constant 2 : index
    %c0_156 = arith.constant 0 : index
    %c0_157 = arith.constant 0 : index
    %333 = vector.load %arg6[%c2_155, %c0_156, %c0_157] : memref<16x16x128xf32, #tpu.memory_space<vmem>>, vector<1x16x128xf32>
    %334 = vector.shape_cast %333 : vector<1x16x128xf32> to vector<16x128xf32>
    %335 = vector.shape_cast %332 : vector<16x128xf32> to vector<1x16x128xf32>
    tpu.vector_store %arg6[%c2_155, %c0_156, %c0_157], %335 {strides = array<i32>} : memref<16x16x128xf32, #tpu.memory_space<vmem>>, vector<1x16x128xf32>,
    %c3_158 = arith.constant 3 : index
    %c0_159 = arith.constant 0 : index
    %c0_160 = arith.constant 0 : index
    %336 = vector.load %arg1[%c3_158, %c0_159, %c0_160] : memref<16x16x128xf32, #tpu.memory_space<vmem>>, vector<1x16x128xf32>
    %337 = vector.shape_cast %336 : vector<1x16x128xf32> to vector<16x128xf32>
    %338 = vector.extract_strided_slice %1 {offsets = [3, 0], sizes = [1, 128], strides = [1, 1]} : vector<16x128xf32> to vector<1x128xf32>
    %339 = arith.mulf %337, %0 : vector<16x128xf32>
    %cst_161 = arith.constant dense<0.000000e+00> : vector<128xf32>
    %340 = vector.multi_reduction <add>, %339, %cst_161 [0] : vector<16x128xf32> to vector<128xf32>
    %341 = vector.shape_cast %340 : vector<128xf32> to vector<1x128xf32>
    %342 = arith.addf %338, %341 : vector<1x128xf32>
    %c3_162 = arith.constant 3 : index
    %c0_163 = arith.constant 0 : index
    %343 = vector.load %arg5[%c3_162, %c0_163] : memref<16x128xf32, #tpu.memory_space<vmem>>, vector<1x128xf32>
    tpu.vector_store %arg5[%c3_162, %c0_163], %342 {strides = array<i32>} : memref<16x128xf32, #tpu.memory_space<vmem>>, vector<1x128xf32>,
    %c3_i32 = arith.constant 3 : i32
    %344 = vector.broadcast %c3_i32 : i32 to vector<16x128xi32>
    %345 = arith.cmpi eq, %2, %344 : vector<16x128xi32>
    %346 = arith.extui %345 : vector<16x128xi1> to vector<16x128xi32>
    %347 = arith.sitofp %346 : vector<16x128xi32> to vector<16x128xf32>
    %348 = vector.extract_strided_slice %337 {offsets = [0, 0], sizes = [1, 128], strides = [1, 1]} : vector<16x128xf32> to vector<1x128xf32>
    %c0_164 = arith.constant 0 : index
    %c0_165 = arith.constant 0 : index
    %c0_166 = arith.constant 0 : index
    %349 = vector.load %arg4[%c0_164, %c0_165, %c0_166] : memref<16x16x128xf32, #tpu.memory_space<vmem>>, vector<1x16x128xf32>
    %350 = vector.shape_cast %349 : vector<1x16x128xf32> to vector<16x128xf32>
    %351 = vector.broadcast %348 : vector<1x128xf32> to vector<16x128xf32>
    %352 = arith.mulf %351, %350 : vector<16x128xf32>
    %353 = arith.subf %347, %352 : vector<16x128xf32>
    %354 = vector.extract_strided_slice %337 {offsets = [1, 0], sizes = [1, 128], strides = [1, 1]} : vector<16x128xf32> to vector<1x128xf32>
    %c1_167 = arith.constant 1 : index
    %c0_168 = arith.constant 0 : index
    %c0_169 = arith.constant 0 : index
    %355 = vector.load %arg4[%c1_167, %c0_168, %c0_169] : memref<16x16x128xf32, #tpu.memory_space<vmem>>, vector<1x16x128xf32>
    %356 = vector.shape_cast %355 : vector<1x16x128xf32> to vector<16x128xf32>
    %357 = vector.broadcast %354 : vector<1x128xf32> to vector<16x128xf32>
    %358 = arith.mulf %357, %356 : vector<16x128xf32>
    %359 = arith.subf %353, %358 : vector<16x128xf32>
    %360 = vector.extract_strided_slice %337 {offsets = [2, 0], sizes = [1, 128], strides = [1, 1]} : vector<16x128xf32> to vector<1x128xf32>
    %c2_170 = arith.constant 2 : index
    %c0_171 = arith.constant 0 : index
    %c0_172 = arith.constant 0 : index
    %361 = vector.load %arg4[%c2_170, %c0_171, %c0_172] : memref<16x16x128xf32, #tpu.memory_space<vmem>>, vector<1x16x128xf32>
    %362 = vector.shape_cast %361 : vector<1x16x128xf32> to vector<16x128xf32>
    %363 = vector.broadcast %360 : vector<1x128xf32> to vector<16x128xf32>
    %364 = arith.mulf %363, %362 : vector<16x128xf32>
    %365 = arith.subf %359, %364 : vector<16x128xf32>
    %366 = vector.extract_strided_slice %337 {offsets = [3, 0], sizes = [1, 128], strides = [1, 1]} : vector<16x128xf32> to vector<1x128xf32>
    %c3_173 = arith.constant 3 : index
    %c0_174 = arith.constant 0 : index
    %c0_175 = arith.constant 0 : index
    %367 = vector.load %arg4[%c3_173, %c0_174, %c0_175] : memref<16x16x128xf32, #tpu.memory_space<vmem>>, vector<1x16x128xf32>
    %368 = vector.shape_cast %367 : vector<1x16x128xf32> to vector<16x128xf32>
    %369 = vector.broadcast %366 : vector<1x128xf32> to vector<16x128xf32>
    %370 = arith.mulf %369, %368 : vector<16x128xf32>
    %371 = arith.subf %365, %370 : vector<16x128xf32>
    %372 = vector.extract_strided_slice %337 {offsets = [4, 0], sizes = [1, 128], strides = [1, 1]} : vector<16x128xf32> to vector<1x128xf32>
    %c4_176 = arith.constant 4 : index
    %c0_177 = arith.constant 0 : index
    %c0_178 = arith.constant 0 : index
    %373 = vector.load %arg4[%c4_176, %c0_177, %c0_178] : memref<16x16x128xf32, #tpu.memory_space<vmem>>, vector<1x16x128xf32>
    %374 = vector.shape_cast %373 : vector<1x16x128xf32> to vector<16x128xf32>
    %375 = vector.broadcast %372 : vector<1x128xf32> to vector<16x128xf32>
    %376 = arith.mulf %375, %374 : vector<16x128xf32>
    %377 = arith.subf %371, %376 : vector<16x128xf32>
    %378 = vector.extract_strided_slice %337 {offsets = [5, 0], sizes = [1, 128], strides = [1, 1]} : vector<16x128xf32> to vector<1x128xf32>
    %c5_179 = arith.constant 5 : index
    %c0_180 = arith.constant 0 : index
    %c0_181 = arith.constant 0 : index
    %379 = vector.load %arg4[%c5_179, %c0_180, %c0_181] : memref<16x16x128xf32, #tpu.memory_space<vmem>>, vector<1x16x128xf32>
    %380 = vector.shape_cast %379 : vector<1x16x128xf32> to vector<16x128xf32>
    %381 = vector.broadcast %378 : vector<1x128xf32> to vector<16x128xf32>
    %382 = arith.mulf %381, %380 : vector<16x128xf32>
    %383 = arith.subf %377, %382 : vector<16x128xf32>
    %384 = vector.extract_strided_slice %337 {offsets = [6, 0], sizes = [1, 128], strides = [1, 1]} : vector<16x128xf32> to vector<1x128xf32>
    %c6_182 = arith.constant 6 : index
    %c0_183 = arith.constant 0 : index
    %c0_184 = arith.constant 0 : index
    %385 = vector.load %arg4[%c6_182, %c0_183, %c0_184] : memref<16x16x128xf32, #tpu.memory_space<vmem>>, vector<1x16x128xf32>
    %386 = vector.shape_cast %385 : vector<1x16x128xf32> to vector<16x128xf32>
    %387 = vector.broadcast %384 : vector<1x128xf32> to vector<16x128xf32>
    %388 = arith.mulf %387, %386 : vector<16x128xf32>
    %389 = arith.subf %383, %388 : vector<16x128xf32>
    %390 = vector.extract_strided_slice %337 {offsets = [7, 0], sizes = [1, 128], strides = [1, 1]} : vector<16x128xf32> to vector<1x128xf32>
    %c7_185 = arith.constant 7 : index
    %c0_186 = arith.constant 0 : index
    %c0_187 = arith.constant 0 : index
    %391 = vector.load %arg4[%c7_185, %c0_186, %c0_187] : memref<16x16x128xf32, #tpu.memory_space<vmem>>, vector<1x16x128xf32>
    %392 = vector.shape_cast %391 : vector<1x16x128xf32> to vector<16x128xf32>
    %393 = vector.broadcast %390 : vector<1x128xf32> to vector<16x128xf32>
    %394 = arith.mulf %393, %392 : vector<16x128xf32>
    %395 = arith.subf %389, %394 : vector<16x128xf32>
    %396 = vector.extract_strided_slice %337 {offsets = [8, 0], sizes = [1, 128], strides = [1, 1]} : vector<16x128xf32> to vector<1x128xf32>
    %c8_188 = arith.constant 8 : index
    %c0_189 = arith.constant 0 : index
    %c0_190 = arith.constant 0 : index
    %397 = vector.load %arg4[%c8_188, %c0_189, %c0_190] : memref<16x16x128xf32, #tpu.memory_space<vmem>>, vector<1x16x128xf32>
    %398 = vector.shape_cast %397 : vector<1x16x128xf32> to vector<16x128xf32>
    %399 = vector.broadcast %396 : vector<1x128xf32> to vector<16x128xf32>
    %400 = arith.mulf %399, %398 : vector<16x128xf32>
    %401 = arith.subf %395, %400 : vector<16x128xf32>
    %402 = vector.extract_strided_slice %337 {offsets = [9, 0], sizes = [1, 128], strides = [1, 1]} : vector<16x128xf32> to vector<1x128xf32>
    %c9_191 = arith.constant 9 : index
    %c0_192 = arith.constant 0 : index
    %c0_193 = arith.constant 0 : index
    %403 = vector.load %arg4[%c9_191, %c0_192, %c0_193] : memref<16x16x128xf32, #tpu.memory_space<vmem>>, vector<1x16x128xf32>
    %404 = vector.shape_cast %403 : vector<1x16x128xf32> to vector<16x128xf32>
    %405 = vector.broadcast %402 : vector<1x128xf32> to vector<16x128xf32>
    %406 = arith.mulf %405, %404 : vector<16x128xf32>
    %407 = arith.subf %401, %406 : vector<16x128xf32>
    %408 = vector.extract_strided_slice %337 {offsets = [10, 0], sizes = [1, 128], strides = [1, 1]} : vector<16x128xf32> to vector<1x128xf32>
    %c10_194 = arith.constant 10 : index
    %c0_195 = arith.constant 0 : index
    %c0_196 = arith.constant 0 : index
    %409 = vector.load %arg4[%c10_194, %c0_195, %c0_196] : memref<16x16x128xf32, #tpu.memory_space<vmem>>, vector<1x16x128xf32>
    %410 = vector.shape_cast %409 : vector<1x16x128xf32> to vector<16x128xf32>
    %411 = vector.broadcast %408 : vector<1x128xf32> to vector<16x128xf32>
    %412 = arith.mulf %411, %410 : vector<16x128xf32>
    %413 = arith.subf %407, %412 : vector<16x128xf32>
    %414 = vector.extract_strided_slice %337 {offsets = [11, 0], sizes = [1, 128], strides = [1, 1]} : vector<16x128xf32> to vector<1x128xf32>
    %c11_197 = arith.constant 11 : index
    %c0_198 = arith.constant 0 : index
    %c0_199 = arith.constant 0 : index
    %415 = vector.load %arg4[%c11_197, %c0_198, %c0_199] : memref<16x16x128xf32, #tpu.memory_space<vmem>>, vector<1x16x128xf32>
    %416 = vector.shape_cast %415 : vector<1x16x128xf32> to vector<16x128xf32>
    %417 = vector.broadcast %414 : vector<1x128xf32> to vector<16x128xf32>
    %418 = arith.mulf %417, %416 : vector<16x128xf32>
    %419 = arith.subf %413, %418 : vector<16x128xf32>
    %420 = vector.extract_strided_slice %337 {offsets = [12, 0], sizes = [1, 128], strides = [1, 1]} : vector<16x128xf32> to vector<1x128xf32>
    %c12_200 = arith.constant 12 : index
    %c0_201 = arith.constant 0 : index
    %c0_202 = arith.constant 0 : index
    %421 = vector.load %arg4[%c12_200, %c0_201, %c0_202] : memref<16x16x128xf32, #tpu.memory_space<vmem>>, vector<1x16x128xf32>
    %422 = vector.shape_cast %421 : vector<1x16x128xf32> to vector<16x128xf32>
    %423 = vector.broadcast %420 : vector<1x128xf32> to vector<16x128xf32>
    %424 = arith.mulf %423, %422 : vector<16x128xf32>
    %425 = arith.subf %419, %424 : vector<16x128xf32>
    %426 = vector.extract_strided_slice %337 {offsets = [13, 0], sizes = [1, 128], strides = [1, 1]} : vector<16x128xf32> to vector<1x128xf32>
    %c13_203 = arith.constant 13 : index
    %c0_204 = arith.constant 0 : index
    %c0_205 = arith.constant 0 : index
    %427 = vector.load %arg4[%c13_203, %c0_204, %c0_205] : memref<16x16x128xf32, #tpu.memory_space<vmem>>, vector<1x16x128xf32>
    %428 = vector.shape_cast %427 : vector<1x16x128xf32> to vector<16x128xf32>
    %429 = vector.broadcast %426 : vector<1x128xf32> to vector<16x128xf32>
    %430 = arith.mulf %429, %428 : vector<16x128xf32>
    %431 = arith.subf %425, %430 : vector<16x128xf32>
    %432 = vector.extract_strided_slice %337 {offsets = [14, 0], sizes = [1, 128], strides = [1, 1]} : vector<16x128xf32> to vector<1x128xf32>
    %c14_206 = arith.constant 14 : index
    %c0_207 = arith.constant 0 : index
    %c0_208 = arith.constant 0 : index
    %433 = vector.load %arg4[%c14_206, %c0_207, %c0_208] : memref<16x16x128xf32, #tpu.memory_space<vmem>>, vector<1x16x128xf32>
    %434 = vector.shape_cast %433 : vector<1x16x128xf32> to vector<16x128xf32>
    %435 = vector.broadcast %432 : vector<1x128xf32> to vector<16x128xf32>
    %436 = arith.mulf %435, %434 : vector<16x128xf32>
    %437 = arith.subf %431, %436 : vector<16x128xf32>
    %438 = vector.extract_strided_slice %337 {offsets = [15, 0], sizes = [1, 128], strides = [1, 1]} : vector<16x128xf32> to vector<1x128xf32>
    %c15_209 = arith.constant 15 : index
    %c0_210 = arith.constant 0 : index
    %c0_211 = arith.constant 0 : index
    %439 = vector.load %arg4[%c15_209, %c0_210, %c0_211] : memref<16x16x128xf32, #tpu.memory_space<vmem>>, vector<1x16x128xf32>
    %440 = vector.shape_cast %439 : vector<1x16x128xf32> to vector<16x128xf32>
    %441 = vector.broadcast %438 : vector<1x128xf32> to vector<16x128xf32>
    %442 = arith.mulf %441, %440 : vector<16x128xf32>
    %443 = arith.subf %437, %442 : vector<16x128xf32>
    %c3_212 = arith.constant 3 : index
    %c0_213 = arith.constant 0 : index
    %c0_214 = arith.constant 0 : index
    %444 = vector.load %arg6[%c3_212, %c0_213, %c0_214] : memref<16x16x128xf32, #tpu.memory_space<vmem>>, vector<1x16x128xf32>
    %445 = vector.shape_cast %444 : vector<1x16x128xf32> to vector<16x128xf32>
    %446 = vector.shape_cast %443 : vector<16x128xf32> to vector<1x16x128xf32>
    tpu.vector_store %arg6[%c3_212, %c0_213, %c0_214], %446 {strides = array<i32>} : memref<16x16x128xf32, #tpu.memory_space<vmem>>, vector<1x16x128xf32>,
    %c4_215 = arith.constant 4 : index
    %c0_216 = arith.constant 0 : index
    %c0_217 = arith.constant 0 : index
    %447 = vector.load %arg1[%c4_215, %c0_216, %c0_217] : memref<16x16x128xf32, #tpu.memory_space<vmem>>, vector<1x16x128xf32>
    %448 = vector.shape_cast %447 : vector<1x16x128xf32> to vector<16x128xf32>
    %449 = vector.extract_strided_slice %1 {offsets = [4, 0], sizes = [1, 128], strides = [1, 1]} : vector<16x128xf32> to vector<1x128xf32>
    %450 = arith.mulf %448, %0 : vector<16x128xf32>
    %cst_218 = arith.constant dense<0.000000e+00> : vector<128xf32>
    %451 = vector.multi_reduction <add>, %450, %cst_218 [0] : vector<16x128xf32> to vector<128xf32>
    %452 = vector.shape_cast %451 : vector<128xf32> to vector<1x128xf32>
    %453 = arith.addf %449, %452 : vector<1x128xf32>
    %c4_219 = arith.constant 4 : index
    %c0_220 = arith.constant 0 : index
    %454 = vector.load %arg5[%c4_219, %c0_220] : memref<16x128xf32, #tpu.memory_space<vmem>>, vector<1x128xf32>
    tpu.vector_store %arg5[%c4_219, %c0_220], %453 {strides = array<i32>} : memref<16x128xf32, #tpu.memory_space<vmem>>, vector<1x128xf32>,
    %c4_i32 = arith.constant 4 : i32
    %455 = vector.broadcast %c4_i32 : i32 to vector<16x128xi32>
    %456 = arith.cmpi eq, %2, %455 : vector<16x128xi32>
    %457 = arith.extui %456 : vector<16x128xi1> to vector<16x128xi32>
    %458 = arith.sitofp %457 : vector<16x128xi32> to vector<16x128xf32>
    %459 = vector.extract_strided_slice %448 {offsets = [0, 0], sizes = [1, 128], strides = [1, 1]} : vector<16x128xf32> to vector<1x128xf32>
    %c0_221 = arith.constant 0 : index
    %c0_222 = arith.constant 0 : index
    %c0_223 = arith.constant 0 : index
    %460 = vector.load %arg4[%c0_221, %c0_222, %c0_223] : memref<16x16x128xf32, #tpu.memory_space<vmem>>, vector<1x16x128xf32>
    %461 = vector.shape_cast %460 : vector<1x16x128xf32> to vector<16x128xf32>
    %462 = vector.broadcast %459 : vector<1x128xf32> to vector<16x128xf32>
    %463 = arith.mulf %462, %461 : vector<16x128xf32>
    %464 = arith.subf %458, %463 : vector<16x128xf32>
    %465 = vector.extract_strided_slice %448 {offsets = [1, 0], sizes = [1, 128], strides = [1, 1]} : vector<16x128xf32> to vector<1x128xf32>
    %c1_224 = arith.constant 1 : index
    %c0_225 = arith.constant 0 : index
    %c0_226 = arith.constant 0 : index
    %466 = vector.load %arg4[%c1_224, %c0_225, %c0_226] : memref<16x16x128xf32, #tpu.memory_space<vmem>>, vector<1x16x128xf32>
    %467 = vector.shape_cast %466 : vector<1x16x128xf32> to vector<16x128xf32>
    %468 = vector.broadcast %465 : vector<1x128xf32> to vector<16x128xf32>
    %469 = arith.mulf %468, %467 : vector<16x128xf32>
    %470 = arith.subf %464, %469 : vector<16x128xf32>
    %471 = vector.extract_strided_slice %448 {offsets = [2, 0], sizes = [1, 128], strides = [1, 1]} : vector<16x128xf32> to vector<1x128xf32>
    %c2_227 = arith.constant 2 : index
    %c0_228 = arith.constant 0 : index
    %c0_229 = arith.constant 0 : index
    %472 = vector.load %arg4[%c2_227, %c0_228, %c0_229] : memref<16x16x128xf32, #tpu.memory_space<vmem>>, vector<1x16x128xf32>
    %473 = vector.shape_cast %472 : vector<1x16x128xf32> to vector<16x128xf32>
    %474 = vector.broadcast %471 : vector<1x128xf32> to vector<16x128xf32>
    %475 = arith.mulf %474, %473 : vector<16x128xf32>
    %476 = arith.subf %470, %475 : vector<16x128xf32>
    %477 = vector.extract_strided_slice %448 {offsets = [3, 0], sizes = [1, 128], strides = [1, 1]} : vector<16x128xf32> to vector<1x128xf32>
    %c3_230 = arith.constant 3 : index
    %c0_231 = arith.constant 0 : index
    %c0_232 = arith.constant 0 : index
    %478 = vector.load %arg4[%c3_230, %c0_231, %c0_232] : memref<16x16x128xf32, #tpu.memory_space<vmem>>, vector<1x16x128xf32>
    %479 = vector.shape_cast %478 : vector<1x16x128xf32> to vector<16x128xf32>
    %480 = vector.broadcast %477 : vector<1x128xf32> to vector<16x128xf32>
    %481 = arith.mulf %480, %479 : vector<16x128xf32>
    %482 = arith.subf %476, %481 : vector<16x128xf32>
    %483 = vector.extract_strided_slice %448 {offsets = [4, 0], sizes = [1, 128], strides = [1, 1]} : vector<16x128xf32> to vector<1x128xf32>
    %c4_233 = arith.constant 4 : index
    %c0_234 = arith.constant 0 : index
    %c0_235 = arith.constant 0 : index
    %484 = vector.load %arg4[%c4_233, %c0_234, %c0_235] : memref<16x16x128xf32, #tpu.memory_space<vmem>>, vector<1x16x128xf32>
    %485 = vector.shape_cast %484 : vector<1x16x128xf32> to vector<16x128xf32>
    %486 = vector.broadcast %483 : vector<1x128xf32> to vector<16x128xf32>
    %487 = arith.mulf %486, %485 : vector<16x128xf32>
    %488 = arith.subf %482, %487 : vector<16x128xf32>
    %489 = vector.extract_strided_slice %448 {offsets = [5, 0], sizes = [1, 128], strides = [1, 1]} : vector<16x128xf32> to vector<1x128xf32>
    %c5_236 = arith.constant 5 : index
    %c0_237 = arith.constant 0 : index
    %c0_238 = arith.constant 0 : index
    %490 = vector.load %arg4[%c5_236, %c0_237, %c0_238] : memref<16x16x128xf32, #tpu.memory_space<vmem>>, vector<1x16x128xf32>
    %491 = vector.shape_cast %490 : vector<1x16x128xf32> to vector<16x128xf32>
    %492 = vector.broadcast %489 : vector<1x128xf32> to vector<16x128xf32>
    %493 = arith.mulf %492, %491 : vector<16x128xf32>
    %494 = arith.subf %488, %493 : vector<16x128xf32>
    %495 = vector.extract_strided_slice %448 {offsets = [6, 0], sizes = [1, 128], strides = [1, 1]} : vector<16x128xf32> to vector<1x128xf32>
    %c6_239 = arith.constant 6 : index
    %c0_240 = arith.constant 0 : index
    %c0_241 = arith.constant 0 : index
    %496 = vector.load %arg4[%c6_239, %c0_240, %c0_241] : memref<16x16x128xf32, #tpu.memory_space<vmem>>, vector<1x16x128xf32>
    %497 = vector.shape_cast %496 : vector<1x16x128xf32> to vector<16x128xf32>
    %498 = vector.broadcast %495 : vector<1x128xf32> to vector<16x128xf32>
    %499 = arith.mulf %498, %497 : vector<16x128xf32>
    %500 = arith.subf %494, %499 : vector<16x128xf32>
    %501 = vector.extract_strided_slice %448 {offsets = [7, 0], sizes = [1, 128], strides = [1, 1]} : vector<16x128xf32> to vector<1x128xf32>
    %c7_242 = arith.constant 7 : index
    %c0_243 = arith.constant 0 : index
    %c0_244 = arith.constant 0 : index
    %502 = vector.load %arg4[%c7_242, %c0_243, %c0_244] : memref<16x16x128xf32, #tpu.memory_space<vmem>>, vector<1x16x128xf32>
    %503 = vector.shape_cast %502 : vector<1x16x128xf32> to vector<16x128xf32>
    %504 = vector.broadcast %501 : vector<1x128xf32> to vector<16x128xf32>
    %505 = arith.mulf %504, %503 : vector<16x128xf32>
    %506 = arith.subf %500, %505 : vector<16x128xf32>
    %507 = vector.extract_strided_slice %448 {offsets = [8, 0], sizes = [1, 128], strides = [1, 1]} : vector<16x128xf32> to vector<1x128xf32>
    %c8_245 = arith.constant 8 : index
    %c0_246 = arith.constant 0 : index
    %c0_247 = arith.constant 0 : index
    %508 = vector.load %arg4[%c8_245, %c0_246, %c0_247] : memref<16x16x128xf32, #tpu.memory_space<vmem>>, vector<1x16x128xf32>
    %509 = vector.shape_cast %508 : vector<1x16x128xf32> to vector<16x128xf32>
    %510 = vector.broadcast %507 : vector<1x128xf32> to vector<16x128xf32>
    %511 = arith.mulf %510, %509 : vector<16x128xf32>
    %512 = arith.subf %506, %511 : vector<16x128xf32>
    %513 = vector.extract_strided_slice %448 {offsets = [9, 0], sizes = [1, 128], strides = [1, 1]} : vector<16x128xf32> to vector<1x128xf32>
    %c9_248 = arith.constant 9 : index
    %c0_249 = arith.constant 0 : index
    %c0_250 = arith.constant 0 : index
    %514 = vector.load %arg4[%c9_248, %c0_249, %c0_250] : memref<16x16x128xf32, #tpu.memory_space<vmem>>, vector<1x16x128xf32>
    %515 = vector.shape_cast %514 : vector<1x16x128xf32> to vector<16x128xf32>
    %516 = vector.broadcast %513 : vector<1x128xf32> to vector<16x128xf32>
    %517 = arith.mulf %516, %515 : vector<16x128xf32>
    %518 = arith.subf %512, %517 : vector<16x128xf32>
    %519 = vector.extract_strided_slice %448 {offsets = [10, 0], sizes = [1, 128], strides = [1, 1]} : vector<16x128xf32> to vector<1x128xf32>
    %c10_251 = arith.constant 10 : index
    %c0_252 = arith.constant 0 : index
    %c0_253 = arith.constant 0 : index
    %520 = vector.load %arg4[%c10_251, %c0_252, %c0_253] : memref<16x16x128xf32, #tpu.memory_space<vmem>>, vector<1x16x128xf32>
    %521 = vector.shape_cast %520 : vector<1x16x128xf32> to vector<16x128xf32>
    %522 = vector.broadcast %519 : vector<1x128xf32> to vector<16x128xf32>
    %523 = arith.mulf %522, %521 : vector<16x128xf32>
    %524 = arith.subf %518, %523 : vector<16x128xf32>
    %525 = vector.extract_strided_slice %448 {offsets = [11, 0], sizes = [1, 128], strides = [1, 1]} : vector<16x128xf32> to vector<1x128xf32>
    %c11_254 = arith.constant 11 : index
    %c0_255 = arith.constant 0 : index
    %c0_256 = arith.constant 0 : index
    %526 = vector.load %arg4[%c11_254, %c0_255, %c0_256] : memref<16x16x128xf32, #tpu.memory_space<vmem>>, vector<1x16x128xf32>
    %527 = vector.shape_cast %526 : vector<1x16x128xf32> to vector<16x128xf32>
    %528 = vector.broadcast %525 : vector<1x128xf32> to vector<16x128xf32>
    %529 = arith.mulf %528, %527 : vector<16x128xf32>
    %530 = arith.subf %524, %529 : vector<16x128xf32>
    %531 = vector.extract_strided_slice %448 {offsets = [12, 0], sizes = [1, 128], strides = [1, 1]} : vector<16x128xf32> to vector<1x128xf32>
    %c12_257 = arith.constant 12 : index
    %c0_258 = arith.constant 0 : index
    %c0_259 = arith.constant 0 : index
    %532 = vector.load %arg4[%c12_257, %c0_258, %c0_259] : memref<16x16x128xf32, #tpu.memory_space<vmem>>, vector<1x16x128xf32>
    %533 = vector.shape_cast %532 : vector<1x16x128xf32> to vector<16x128xf32>
    %534 = vector.broadcast %531 : vector<1x128xf32> to vector<16x128xf32>
    %535 = arith.mulf %534, %533 : vector<16x128xf32>
    %536 = arith.subf %530, %535 : vector<16x128xf32>
    %537 = vector.extract_strided_slice %448 {offsets = [13, 0], sizes = [1, 128], strides = [1, 1]} : vector<16x128xf32> to vector<1x128xf32>
    %c13_260 = arith.constant 13 : index
    %c0_261 = arith.constant 0 : index
    %c0_262 = arith.constant 0 : index
    %538 = vector.load %arg4[%c13_260, %c0_261, %c0_262] : memref<16x16x128xf32, #tpu.memory_space<vmem>>, vector<1x16x128xf32>
    %539 = vector.shape_cast %538 : vector<1x16x128xf32> to vector<16x128xf32>
    %540 = vector.broadcast %537 : vector<1x128xf32> to vector<16x128xf32>
    %541 = arith.mulf %540, %539 : vector<16x128xf32>
    %542 = arith.subf %536, %541 : vector<16x128xf32>
    %543 = vector.extract_strided_slice %448 {offsets = [14, 0], sizes = [1, 128], strides = [1, 1]} : vector<16x128xf32> to vector<1x128xf32>
    %c14_263 = arith.constant 14 : index
    %c0_264 = arith.constant 0 : index
    %c0_265 = arith.constant 0 : index
    %544 = vector.load %arg4[%c14_263, %c0_264, %c0_265] : memref<16x16x128xf32, #tpu.memory_space<vmem>>, vector<1x16x128xf32>
    %545 = vector.shape_cast %544 : vector<1x16x128xf32> to vector<16x128xf32>
    %546 = vector.broadcast %543 : vector<1x128xf32> to vector<16x128xf32>
    %547 = arith.mulf %546, %545 : vector<16x128xf32>
    %548 = arith.subf %542, %547 : vector<16x128xf32>
    %549 = vector.extract_strided_slice %448 {offsets = [15, 0], sizes = [1, 128], strides = [1, 1]} : vector<16x128xf32> to vector<1x128xf32>
    %c15_266 = arith.constant 15 : index
    %c0_267 = arith.constant 0 : index
    %c0_268 = arith.constant 0 : index
    %550 = vector.load %arg4[%c15_266, %c0_267, %c0_268] : memref<16x16x128xf32, #tpu.memory_space<vmem>>, vector<1x16x128xf32>
    %551 = vector.shape_cast %550 : vector<1x16x128xf32> to vector<16x128xf32>
    %552 = vector.broadcast %549 : vector<1x128xf32> to vector<16x128xf32>
    %553 = arith.mulf %552, %551 : vector<16x128xf32>
    %554 = arith.subf %548, %553 : vector<16x128xf32>
    %c4_269 = arith.constant 4 : index
    %c0_270 = arith.constant 0 : index
    %c0_271 = arith.constant 0 : index
    %555 = vector.load %arg6[%c4_269, %c0_270, %c0_271] : memref<16x16x128xf32, #tpu.memory_space<vmem>>, vector<1x16x128xf32>
    %556 = vector.shape_cast %555 : vector<1x16x128xf32> to vector<16x128xf32>
    %557 = vector.shape_cast %554 : vector<16x128xf32> to vector<1x16x128xf32>
    tpu.vector_store %arg6[%c4_269, %c0_270, %c0_271], %557 {strides = array<i32>} : memref<16x16x128xf32, #tpu.memory_space<vmem>>, vector<1x16x128xf32>,
    %c5_272 = arith.constant 5 : index
    %c0_273 = arith.constant 0 : index
    %c0_274 = arith.constant 0 : index
    %558 = vector.load %arg1[%c5_272, %c0_273, %c0_274] : memref<16x16x128xf32, #tpu.memory_space<vmem>>, vector<1x16x128xf32>
    %559 = vector.shape_cast %558 : vector<1x16x128xf32> to vector<16x128xf32>
    %560 = vector.extract_strided_slice %1 {offsets = [5, 0], sizes = [1, 128], strides = [1, 1]} : vector<16x128xf32> to vector<1x128xf32>
    %561 = arith.mulf %559, %0 : vector<16x128xf32>
    %cst_275 = arith.constant dense<0.000000e+00> : vector<128xf32>
    %562 = vector.multi_reduction <add>, %561, %cst_275 [0] : vector<16x128xf32> to vector<128xf32>
    %563 = vector.shape_cast %562 : vector<128xf32> to vector<1x128xf32>
    %564 = arith.addf %560, %563 : vector<1x128xf32>
    %c5_276 = arith.constant 5 : index
    %c0_277 = arith.constant 0 : index
    %565 = vector.load %arg5[%c5_276, %c0_277] : memref<16x128xf32, #tpu.memory_space<vmem>>, vector<1x128xf32>
    tpu.vector_store %arg5[%c5_276, %c0_277], %564 {strides = array<i32>} : memref<16x128xf32, #tpu.memory_space<vmem>>, vector<1x128xf32>,
    %c5_i32 = arith.constant 5 : i32
    %566 = vector.broadcast %c5_i32 : i32 to vector<16x128xi32>
    %567 = arith.cmpi eq, %2, %566 : vector<16x128xi32>
    %568 = arith.extui %567 : vector<16x128xi1> to vector<16x128xi32>
    %569 = arith.sitofp %568 : vector<16x128xi32> to vector<16x128xf32>
    %570 = vector.extract_strided_slice %559 {offsets = [0, 0], sizes = [1, 128], strides = [1, 1]} : vector<16x128xf32> to vector<1x128xf32>
    %c0_278 = arith.constant 0 : index
    %c0_279 = arith.constant 0 : index
    %c0_280 = arith.constant 0 : index
    %571 = vector.load %arg4[%c0_278, %c0_279, %c0_280] : memref<16x16x128xf32, #tpu.memory_space<vmem>>, vector<1x16x128xf32>
    %572 = vector.shape_cast %571 : vector<1x16x128xf32> to vector<16x128xf32>
    %573 = vector.broadcast %570 : vector<1x128xf32> to vector<16x128xf32>
    %574 = arith.mulf %573, %572 : vector<16x128xf32>
    %575 = arith.subf %569, %574 : vector<16x128xf32>
    %576 = vector.extract_strided_slice %559 {offsets = [1, 0], sizes = [1, 128], strides = [1, 1]} : vector<16x128xf32> to vector<1x128xf32>
    %c1_281 = arith.constant 1 : index
    %c0_282 = arith.constant 0 : index
    %c0_283 = arith.constant 0 : index
    %577 = vector.load %arg4[%c1_281, %c0_282, %c0_283] : memref<16x16x128xf32, #tpu.memory_space<vmem>>, vector<1x16x128xf32>
    %578 = vector.shape_cast %577 : vector<1x16x128xf32> to vector<16x128xf32>
    %579 = vector.broadcast %576 : vector<1x128xf32> to vector<16x128xf32>
    %580 = arith.mulf %579, %578 : vector<16x128xf32>
    %581 = arith.subf %575, %580 : vector<16x128xf32>
    %582 = vector.extract_strided_slice %559 {offsets = [2, 0], sizes = [1, 128], strides = [1, 1]} : vector<16x128xf32> to vector<1x128xf32>
    %c2_284 = arith.constant 2 : index
    %c0_285 = arith.constant 0 : index
    %c0_286 = arith.constant 0 : index
    %583 = vector.load %arg4[%c2_284, %c0_285, %c0_286] : memref<16x16x128xf32, #tpu.memory_space<vmem>>, vector<1x16x128xf32>
    %584 = vector.shape_cast %583 : vector<1x16x128xf32> to vector<16x128xf32>
    %585 = vector.broadcast %582 : vector<1x128xf32> to vector<16x128xf32>
    %586 = arith.mulf %585, %584 : vector<16x128xf32>
    %587 = arith.subf %581, %586 : vector<16x128xf32>
    %588 = vector.extract_strided_slice %559 {offsets = [3, 0], sizes = [1, 128], strides = [1, 1]} : vector<16x128xf32> to vector<1x128xf32>
    %c3_287 = arith.constant 3 : index
    %c0_288 = arith.constant 0 : index
    %c0_289 = arith.constant 0 : index
    %589 = vector.load %arg4[%c3_287, %c0_288, %c0_289] : memref<16x16x128xf32, #tpu.memory_space<vmem>>, vector<1x16x128xf32>
    %590 = vector.shape_cast %589 : vector<1x16x128xf32> to vector<16x128xf32>
    %591 = vector.broadcast %588 : vector<1x128xf32> to vector<16x128xf32>
    %592 = arith.mulf %591, %590 : vector<16x128xf32>
    %593 = arith.subf %587, %592 : vector<16x128xf32>
    %594 = vector.extract_strided_slice %559 {offsets = [4, 0], sizes = [1, 128], strides = [1, 1]} : vector<16x128xf32> to vector<1x128xf32>
    %c4_290 = arith.constant 4 : index
    %c0_291 = arith.constant 0 : index
    %c0_292 = arith.constant 0 : index
    %595 = vector.load %arg4[%c4_290, %c0_291, %c0_292] : memref<16x16x128xf32, #tpu.memory_space<vmem>>, vector<1x16x128xf32>
    %596 = vector.shape_cast %595 : vector<1x16x128xf32> to vector<16x128xf32>
    %597 = vector.broadcast %594 : vector<1x128xf32> to vector<16x128xf32>
    %598 = arith.mulf %597, %596 : vector<16x128xf32>
    %599 = arith.subf %593, %598 : vector<16x128xf32>
    %600 = vector.extract_strided_slice %559 {offsets = [5, 0], sizes = [1, 128], strides = [1, 1]} : vector<16x128xf32> to vector<1x128xf32>
    %c5_293 = arith.constant 5 : index
    %c0_294 = arith.constant 0 : index
    %c0_295 = arith.constant 0 : index
    %601 = vector.load %arg4[%c5_293, %c0_294, %c0_295] : memref<16x16x128xf32, #tpu.memory_space<vmem>>, vector<1x16x128xf32>
    %602 = vector.shape_cast %601 : vector<1x16x128xf32> to vector<16x128xf32>
    %603 = vector.broadcast %600 : vector<1x128xf32> to vector<16x128xf32>
    %604 = arith.mulf %603, %602 : vector<16x128xf32>
    %605 = arith.subf %599, %604 : vector<16x128xf32>
    %606 = vector.extract_strided_slice %559 {offsets = [6, 0], sizes = [1, 128], strides = [1, 1]} : vector<16x128xf32> to vector<1x128xf32>
    %c6_296 = arith.constant 6 : index
    %c0_297 = arith.constant 0 : index
    %c0_298 = arith.constant 0 : index
    %607 = vector.load %arg4[%c6_296, %c0_297, %c0_298] : memref<16x16x128xf32, #tpu.memory_space<vmem>>, vector<1x16x128xf32>
    %608 = vector.shape_cast %607 : vector<1x16x128xf32> to vector<16x128xf32>
    %609 = vector.broadcast %606 : vector<1x128xf32> to vector<16x128xf32>
    %610 = arith.mulf %609, %608 : vector<16x128xf32>
    %611 = arith.subf %605, %610 : vector<16x128xf32>
    %612 = vector.extract_strided_slice %559 {offsets = [7, 0], sizes = [1, 128], strides = [1, 1]} : vector<16x128xf32> to vector<1x128xf32>
    %c7_299 = arith.constant 7 : index
    %c0_300 = arith.constant 0 : index
    %c0_301 = arith.constant 0 : index
    %613 = vector.load %arg4[%c7_299, %c0_300, %c0_301] : memref<16x16x128xf32, #tpu.memory_space<vmem>>, vector<1x16x128xf32>
    %614 = vector.shape_cast %613 : vector<1x16x128xf32> to vector<16x128xf32>
    %615 = vector.broadcast %612 : vector<1x128xf32> to vector<16x128xf32>
    %616 = arith.mulf %615, %614 : vector<16x128xf32>
    %617 = arith.subf %611, %616 : vector<16x128xf32>
    %618 = vector.extract_strided_slice %559 {offsets = [8, 0], sizes = [1, 128], strides = [1, 1]} : vector<16x128xf32> to vector<1x128xf32>
    %c8_302 = arith.constant 8 : index
    %c0_303 = arith.constant 0 : index
    %c0_304 = arith.constant 0 : index
    %619 = vector.load %arg4[%c8_302, %c0_303, %c0_304] : memref<16x16x128xf32, #tpu.memory_space<vmem>>, vector<1x16x128xf32>
    %620 = vector.shape_cast %619 : vector<1x16x128xf32> to vector<16x128xf32>
    %621 = vector.broadcast %618 : vector<1x128xf32> to vector<16x128xf32>
    %622 = arith.mulf %621, %620 : vector<16x128xf32>
    %623 = arith.subf %617, %622 : vector<16x128xf32>
    %624 = vector.extract_strided_slice %559 {offsets = [9, 0], sizes = [1, 128], strides = [1, 1]} : vector<16x128xf32> to vector<1x128xf32>
    %c9_305 = arith.constant 9 : index
    %c0_306 = arith.constant 0 : index
    %c0_307 = arith.constant 0 : index
    %625 = vector.load %arg4[%c9_305, %c0_306, %c0_307] : memref<16x16x128xf32, #tpu.memory_space<vmem>>, vector<1x16x128xf32>
    %626 = vector.shape_cast %625 : vector<1x16x128xf32> to vector<16x128xf32>
    %627 = vector.broadcast %624 : vector<1x128xf32> to vector<16x128xf32>
    %628 = arith.mulf %627, %626 : vector<16x128xf32>
    %629 = arith.subf %623, %628 : vector<16x128xf32>
    %630 = vector.extract_strided_slice %559 {offsets = [10, 0], sizes = [1, 128], strides = [1, 1]} : vector<16x128xf32> to vector<1x128xf32>
    %c10_308 = arith.constant 10 : index
    %c0_309 = arith.constant 0 : index
    %c0_310 = arith.constant 0 : index
    %631 = vector.load %arg4[%c10_308, %c0_309, %c0_310] : memref<16x16x128xf32, #tpu.memory_space<vmem>>, vector<1x16x128xf32>
    %632 = vector.shape_cast %631 : vector<1x16x128xf32> to vector<16x128xf32>
    %633 = vector.broadcast %630 : vector<1x128xf32> to vector<16x128xf32>
    %634 = arith.mulf %633, %632 : vector<16x128xf32>
    %635 = arith.subf %629, %634 : vector<16x128xf32>
    %636 = vector.extract_strided_slice %559 {offsets = [11, 0], sizes = [1, 128], strides = [1, 1]} : vector<16x128xf32> to vector<1x128xf32>
    %c11_311 = arith.constant 11 : index
    %c0_312 = arith.constant 0 : index
    %c0_313 = arith.constant 0 : index
    %637 = vector.load %arg4[%c11_311, %c0_312, %c0_313] : memref<16x16x128xf32, #tpu.memory_space<vmem>>, vector<1x16x128xf32>
    %638 = vector.shape_cast %637 : vector<1x16x128xf32> to vector<16x128xf32>
    %639 = vector.broadcast %636 : vector<1x128xf32> to vector<16x128xf32>
    %640 = arith.mulf %639, %638 : vector<16x128xf32>
    %641 = arith.subf %635, %640 : vector<16x128xf32>
    %642 = vector.extract_strided_slice %559 {offsets = [12, 0], sizes = [1, 128], strides = [1, 1]} : vector<16x128xf32> to vector<1x128xf32>
    %c12_314 = arith.constant 12 : index
    %c0_315 = arith.constant 0 : index
    %c0_316 = arith.constant 0 : index
    %643 = vector.load %arg4[%c12_314, %c0_315, %c0_316] : memref<16x16x128xf32, #tpu.memory_space<vmem>>, vector<1x16x128xf32>
    %644 = vector.shape_cast %643 : vector<1x16x128xf32> to vector<16x128xf32>
    %645 = vector.broadcast %642 : vector<1x128xf32> to vector<16x128xf32>
    %646 = arith.mulf %645, %644 : vector<16x128xf32>
    %647 = arith.subf %641, %646 : vector<16x128xf32>
    %648 = vector.extract_strided_slice %559 {offsets = [13, 0], sizes = [1, 128], strides = [1, 1]} : vector<16x128xf32> to vector<1x128xf32>
    %c13_317 = arith.constant 13 : index
    %c0_318 = arith.constant 0 : index
    %c0_319 = arith.constant 0 : index
    %649 = vector.load %arg4[%c13_317, %c0_318, %c0_319] : memref<16x16x128xf32, #tpu.memory_space<vmem>>, vector<1x16x128xf32>
    %650 = vector.shape_cast %649 : vector<1x16x128xf32> to vector<16x128xf32>
    %651 = vector.broadcast %648 : vector<1x128xf32> to vector<16x128xf32>
    %652 = arith.mulf %651, %650 : vector<16x128xf32>
    %653 = arith.subf %647, %652 : vector<16x128xf32>
    %654 = vector.extract_strided_slice %559 {offsets = [14, 0], sizes = [1, 128], strides = [1, 1]} : vector<16x128xf32> to vector<1x128xf32>
    %c14_320 = arith.constant 14 : index
    %c0_321 = arith.constant 0 : index
    %c0_322 = arith.constant 0 : index
    %655 = vector.load %arg4[%c14_320, %c0_321, %c0_322] : memref<16x16x128xf32, #tpu.memory_space<vmem>>, vector<1x16x128xf32>
    %656 = vector.shape_cast %655 : vector<1x16x128xf32> to vector<16x128xf32>
    %657 = vector.broadcast %654 : vector<1x128xf32> to vector<16x128xf32>
    %658 = arith.mulf %657, %656 : vector<16x128xf32>
    %659 = arith.subf %653, %658 : vector<16x128xf32>
    %660 = vector.extract_strided_slice %559 {offsets = [15, 0], sizes = [1, 128], strides = [1, 1]} : vector<16x128xf32> to vector<1x128xf32>
    %c15_323 = arith.constant 15 : index
    %c0_324 = arith.constant 0 : index
    %c0_325 = arith.constant 0 : index
    %661 = vector.load %arg4[%c15_323, %c0_324, %c0_325] : memref<16x16x128xf32, #tpu.memory_space<vmem>>, vector<1x16x128xf32>
    %662 = vector.shape_cast %661 : vector<1x16x128xf32> to vector<16x128xf32>
    %663 = vector.broadcast %660 : vector<1x128xf32> to vector<16x128xf32>
    %664 = arith.mulf %663, %662 : vector<16x128xf32>
    %665 = arith.subf %659, %664 : vector<16x128xf32>
    %c5_326 = arith.constant 5 : index
    %c0_327 = arith.constant 0 : index
    %c0_328 = arith.constant 0 : index
    %666 = vector.load %arg6[%c5_326, %c0_327, %c0_328] : memref<16x16x128xf32, #tpu.memory_space<vmem>>, vector<1x16x128xf32>
    %667 = vector.shape_cast %666 : vector<1x16x128xf32> to vector<16x128xf32>
    %668 = vector.shape_cast %665 : vector<16x128xf32> to vector<1x16x128xf32>
    tpu.vector_store %arg6[%c5_326, %c0_327, %c0_328], %668 {strides = array<i32>} : memref<16x16x128xf32, #tpu.memory_space<vmem>>, vector<1x16x128xf32>,
    %c6_329 = arith.constant 6 : index
    %c0_330 = arith.constant 0 : index
    %c0_331 = arith.constant 0 : index
    %669 = vector.load %arg1[%c6_329, %c0_330, %c0_331] : memref<16x16x128xf32, #tpu.memory_space<vmem>>, vector<1x16x128xf32>
    %670 = vector.shape_cast %669 : vector<1x16x128xf32> to vector<16x128xf32>
    %671 = vector.extract_strided_slice %1 {offsets = [6, 0], sizes = [1, 128], strides = [1, 1]} : vector<16x128xf32> to vector<1x128xf32>
    %672 = arith.mulf %670, %0 : vector<16x128xf32>
    %cst_332 = arith.constant dense<0.000000e+00> : vector<128xf32>
    %673 = vector.multi_reduction <add>, %672, %cst_332 [0] : vector<16x128xf32> to vector<128xf32>
    %674 = vector.shape_cast %673 : vector<128xf32> to vector<1x128xf32>
    %675 = arith.addf %671, %674 : vector<1x128xf32>
    %c6_333 = arith.constant 6 : index
    %c0_334 = arith.constant 0 : index
    %676 = vector.load %arg5[%c6_333, %c0_334] : memref<16x128xf32, #tpu.memory_space<vmem>>, vector<1x128xf32>
    tpu.vector_store %arg5[%c6_333, %c0_334], %675 {strides = array<i32>} : memref<16x128xf32, #tpu.memory_space<vmem>>, vector<1x128xf32>,
    %c6_i32 = arith.constant 6 : i32
    %677 = vector.broadcast %c6_i32 : i32 to vector<16x128xi32>
    %678 = arith.cmpi eq, %2, %677 : vector<16x128xi32>
    %679 = arith.extui %678 : vector<16x128xi1> to vector<16x128xi32>
    %680 = arith.sitofp %679 : vector<16x128xi32> to vector<16x128xf32>
    %681 = vector.extract_strided_slice %670 {offsets = [0, 0], sizes = [1, 128], strides = [1, 1]} : vector<16x128xf32> to vector<1x128xf32>
    %c0_335 = arith.constant 0 : index
    %c0_336 = arith.constant 0 : index
    %c0_337 = arith.constant 0 : index
    %682 = vector.load %arg4[%c0_335, %c0_336, %c0_337] : memref<16x16x128xf32, #tpu.memory_space<vmem>>, vector<1x16x128xf32>
    %683 = vector.shape_cast %682 : vector<1x16x128xf32> to vector<16x128xf32>
    %684 = vector.broadcast %681 : vector<1x128xf32> to vector<16x128xf32>
    %685 = arith.mulf %684, %683 : vector<16x128xf32>
    %686 = arith.subf %680, %685 : vector<16x128xf32>
    %687 = vector.extract_strided_slice %670 {offsets = [1, 0], sizes = [1, 128], strides = [1, 1]} : vector<16x128xf32> to vector<1x128xf32>
    %c1_338 = arith.constant 1 : index
    %c0_339 = arith.constant 0 : index
    %c0_340 = arith.constant 0 : index
    %688 = vector.load %arg4[%c1_338, %c0_339, %c0_340] : memref<16x16x128xf32, #tpu.memory_space<vmem>>, vector<1x16x128xf32>
    %689 = vector.shape_cast %688 : vector<1x16x128xf32> to vector<16x128xf32>
    %690 = vector.broadcast %687 : vector<1x128xf32> to vector<16x128xf32>
    %691 = arith.mulf %690, %689 : vector<16x128xf32>
    %692 = arith.subf %686, %691 : vector<16x128xf32>
    %693 = vector.extract_strided_slice %670 {offsets = [2, 0], sizes = [1, 128], strides = [1, 1]} : vector<16x128xf32> to vector<1x128xf32>
    %c2_341 = arith.constant 2 : index
    %c0_342 = arith.constant 0 : index
    %c0_343 = arith.constant 0 : index
    %694 = vector.load %arg4[%c2_341, %c0_342, %c0_343] : memref<16x16x128xf32, #tpu.memory_space<vmem>>, vector<1x16x128xf32>
    %695 = vector.shape_cast %694 : vector<1x16x128xf32> to vector<16x128xf32>
    %696 = vector.broadcast %693 : vector<1x128xf32> to vector<16x128xf32>
    %697 = arith.mulf %696, %695 : vector<16x128xf32>
    %698 = arith.subf %692, %697 : vector<16x128xf32>
    %699 = vector.extract_strided_slice %670 {offsets = [3, 0], sizes = [1, 128], strides = [1, 1]} : vector<16x128xf32> to vector<1x128xf32>
    %c3_344 = arith.constant 3 : index
    %c0_345 = arith.constant 0 : index
    %c0_346 = arith.constant 0 : index
    %700 = vector.load %arg4[%c3_344, %c0_345, %c0_346] : memref<16x16x128xf32, #tpu.memory_space<vmem>>, vector<1x16x128xf32>
    %701 = vector.shape_cast %700 : vector<1x16x128xf32> to vector<16x128xf32>
    %702 = vector.broadcast %699 : vector<1x128xf32> to vector<16x128xf32>
    %703 = arith.mulf %702, %701 : vector<16x128xf32>
    %704 = arith.subf %698, %703 : vector<16x128xf32>
    %705 = vector.extract_strided_slice %670 {offsets = [4, 0], sizes = [1, 128], strides = [1, 1]} : vector<16x128xf32> to vector<1x128xf32>
    %c4_347 = arith.constant 4 : index
    %c0_348 = arith.constant 0 : index
    %c0_349 = arith.constant 0 : index
    %706 = vector.load %arg4[%c4_347, %c0_348, %c0_349] : memref<16x16x128xf32, #tpu.memory_space<vmem>>, vector<1x16x128xf32>
    %707 = vector.shape_cast %706 : vector<1x16x128xf32> to vector<16x128xf32>
    %708 = vector.broadcast %705 : vector<1x128xf32> to vector<16x128xf32>
    %709 = arith.mulf %708, %707 : vector<16x128xf32>
    %710 = arith.subf %704, %709 : vector<16x128xf32>
    %711 = vector.extract_strided_slice %670 {offsets = [5, 0], sizes = [1, 128], strides = [1, 1]} : vector<16x128xf32> to vector<1x128xf32>
    %c5_350 = arith.constant 5 : index
    %c0_351 = arith.constant 0 : index
    %c0_352 = arith.constant 0 : index
    %712 = vector.load %arg4[%c5_350, %c0_351, %c0_352] : memref<16x16x128xf32, #tpu.memory_space<vmem>>, vector<1x16x128xf32>
    %713 = vector.shape_cast %712 : vector<1x16x128xf32> to vector<16x128xf32>
    %714 = vector.broadcast %711 : vector<1x128xf32> to vector<16x128xf32>
    %715 = arith.mulf %714, %713 : vector<16x128xf32>
    %716 = arith.subf %710, %715 : vector<16x128xf32>
    %717 = vector.extract_strided_slice %670 {offsets = [6, 0], sizes = [1, 128], strides = [1, 1]} : vector<16x128xf32> to vector<1x128xf32>
    %c6_353 = arith.constant 6 : index
    %c0_354 = arith.constant 0 : index
    %c0_355 = arith.constant 0 : index
    %718 = vector.load %arg4[%c6_353, %c0_354, %c0_355] : memref<16x16x128xf32, #tpu.memory_space<vmem>>, vector<1x16x128xf32>
    %719 = vector.shape_cast %718 : vector<1x16x128xf32> to vector<16x128xf32>
    %720 = vector.broadcast %717 : vector<1x128xf32> to vector<16x128xf32>
    %721 = arith.mulf %720, %719 : vector<16x128xf32>
    %722 = arith.subf %716, %721 : vector<16x128xf32>
    %723 = vector.extract_strided_slice %670 {offsets = [7, 0], sizes = [1, 128], strides = [1, 1]} : vector<16x128xf32> to vector<1x128xf32>
    %c7_356 = arith.constant 7 : index
    %c0_357 = arith.constant 0 : index
    %c0_358 = arith.constant 0 : index
    %724 = vector.load %arg4[%c7_356, %c0_357, %c0_358] : memref<16x16x128xf32, #tpu.memory_space<vmem>>, vector<1x16x128xf32>
    %725 = vector.shape_cast %724 : vector<1x16x128xf32> to vector<16x128xf32>
    %726 = vector.broadcast %723 : vector<1x128xf32> to vector<16x128xf32>
    %727 = arith.mulf %726, %725 : vector<16x128xf32>
    %728 = arith.subf %722, %727 : vector<16x128xf32>
    %729 = vector.extract_strided_slice %670 {offsets = [8, 0], sizes = [1, 128], strides = [1, 1]} : vector<16x128xf32> to vector<1x128xf32>
    %c8_359 = arith.constant 8 : index
    %c0_360 = arith.constant 0 : index
    %c0_361 = arith.constant 0 : index
    %730 = vector.load %arg4[%c8_359, %c0_360, %c0_361] : memref<16x16x128xf32, #tpu.memory_space<vmem>>, vector<1x16x128xf32>
    %731 = vector.shape_cast %730 : vector<1x16x128xf32> to vector<16x128xf32>
    %732 = vector.broadcast %729 : vector<1x128xf32> to vector<16x128xf32>
    %733 = arith.mulf %732, %731 : vector<16x128xf32>
    %734 = arith.subf %728, %733 : vector<16x128xf32>
    %735 = vector.extract_strided_slice %670 {offsets = [9, 0], sizes = [1, 128], strides = [1, 1]} : vector<16x128xf32> to vector<1x128xf32>
    %c9_362 = arith.constant 9 : index
    %c0_363 = arith.constant 0 : index
    %c0_364 = arith.constant 0 : index
    %736 = vector.load %arg4[%c9_362, %c0_363, %c0_364] : memref<16x16x128xf32, #tpu.memory_space<vmem>>, vector<1x16x128xf32>
    %737 = vector.shape_cast %736 : vector<1x16x128xf32> to vector<16x128xf32>
    %738 = vector.broadcast %735 : vector<1x128xf32> to vector<16x128xf32>
    %739 = arith.mulf %738, %737 : vector<16x128xf32>
    %740 = arith.subf %734, %739 : vector<16x128xf32>
    %741 = vector.extract_strided_slice %670 {offsets = [10, 0], sizes = [1, 128], strides = [1, 1]} : vector<16x128xf32> to vector<1x128xf32>
    %c10_365 = arith.constant 10 : index
    %c0_366 = arith.constant 0 : index
    %c0_367 = arith.constant 0 : index
    %742 = vector.load %arg4[%c10_365, %c0_366, %c0_367] : memref<16x16x128xf32, #tpu.memory_space<vmem>>, vector<1x16x128xf32>
    %743 = vector.shape_cast %742 : vector<1x16x128xf32> to vector<16x128xf32>
    %744 = vector.broadcast %741 : vector<1x128xf32> to vector<16x128xf32>
    %745 = arith.mulf %744, %743 : vector<16x128xf32>
    %746 = arith.subf %740, %745 : vector<16x128xf32>
    %747 = vector.extract_strided_slice %670 {offsets = [11, 0], sizes = [1, 128], strides = [1, 1]} : vector<16x128xf32> to vector<1x128xf32>
    %c11_368 = arith.constant 11 : index
    %c0_369 = arith.constant 0 : index
    %c0_370 = arith.constant 0 : index
    %748 = vector.load %arg4[%c11_368, %c0_369, %c0_370] : memref<16x16x128xf32, #tpu.memory_space<vmem>>, vector<1x16x128xf32>
    %749 = vector.shape_cast %748 : vector<1x16x128xf32> to vector<16x128xf32>
    %750 = vector.broadcast %747 : vector<1x128xf32> to vector<16x128xf32>
    %751 = arith.mulf %750, %749 : vector<16x128xf32>
    %752 = arith.subf %746, %751 : vector<16x128xf32>
    %753 = vector.extract_strided_slice %670 {offsets = [12, 0], sizes = [1, 128], strides = [1, 1]} : vector<16x128xf32> to vector<1x128xf32>
    %c12_371 = arith.constant 12 : index
    %c0_372 = arith.constant 0 : index
    %c0_373 = arith.constant 0 : index
    %754 = vector.load %arg4[%c12_371, %c0_372, %c0_373] : memref<16x16x128xf32, #tpu.memory_space<vmem>>, vector<1x16x128xf32>
    %755 = vector.shape_cast %754 : vector<1x16x128xf32> to vector<16x128xf32>
    %756 = vector.broadcast %753 : vector<1x128xf32> to vector<16x128xf32>
    %757 = arith.mulf %756, %755 : vector<16x128xf32>
    %758 = arith.subf %752, %757 : vector<16x128xf32>
    %759 = vector.extract_strided_slice %670 {offsets = [13, 0], sizes = [1, 128], strides = [1, 1]} : vector<16x128xf32> to vector<1x128xf32>
    %c13_374 = arith.constant 13 : index
    %c0_375 = arith.constant 0 : index
    %c0_376 = arith.constant 0 : index
    %760 = vector.load %arg4[%c13_374, %c0_375, %c0_376] : memref<16x16x128xf32, #tpu.memory_space<vmem>>, vector<1x16x128xf32>
    %761 = vector.shape_cast %760 : vector<1x16x128xf32> to vector<16x128xf32>
    %762 = vector.broadcast %759 : vector<1x128xf32> to vector<16x128xf32>
    %763 = arith.mulf %762, %761 : vector<16x128xf32>
    %764 = arith.subf %758, %763 : vector<16x128xf32>
    %765 = vector.extract_strided_slice %670 {offsets = [14, 0], sizes = [1, 128], strides = [1, 1]} : vector<16x128xf32> to vector<1x128xf32>
    %c14_377 = arith.constant 14 : index
    %c0_378 = arith.constant 0 : index
    %c0_379 = arith.constant 0 : index
    %766 = vector.load %arg4[%c14_377, %c0_378, %c0_379] : memref<16x16x128xf32, #tpu.memory_space<vmem>>, vector<1x16x128xf32>
    %767 = vector.shape_cast %766 : vector<1x16x128xf32> to vector<16x128xf32>
    %768 = vector.broadcast %765 : vector<1x128xf32> to vector<16x128xf32>
    %769 = arith.mulf %768, %767 : vector<16x128xf32>
    %770 = arith.subf %764, %769 : vector<16x128xf32>
    %771 = vector.extract_strided_slice %670 {offsets = [15, 0], sizes = [1, 128], strides = [1, 1]} : vector<16x128xf32> to vector<1x128xf32>
    %c15_380 = arith.constant 15 : index
    %c0_381 = arith.constant 0 : index
    %c0_382 = arith.constant 0 : index
    %772 = vector.load %arg4[%c15_380, %c0_381, %c0_382] : memref<16x16x128xf32, #tpu.memory_space<vmem>>, vector<1x16x128xf32>
    %773 = vector.shape_cast %772 : vector<1x16x128xf32> to vector<16x128xf32>
    %774 = vector.broadcast %771 : vector<1x128xf32> to vector<16x128xf32>
    %775 = arith.mulf %774, %773 : vector<16x128xf32>
    %776 = arith.subf %770, %775 : vector<16x128xf32>
    %c6_383 = arith.constant 6 : index
    %c0_384 = arith.constant 0 : index
    %c0_385 = arith.constant 0 : index
    %777 = vector.load %arg6[%c6_383, %c0_384, %c0_385] : memref<16x16x128xf32, #tpu.memory_space<vmem>>, vector<1x16x128xf32>
    %778 = vector.shape_cast %777 : vector<1x16x128xf32> to vector<16x128xf32>
    %779 = vector.shape_cast %776 : vector<16x128xf32> to vector<1x16x128xf32>
    tpu.vector_store %arg6[%c6_383, %c0_384, %c0_385], %779 {strides = array<i32>} : memref<16x16x128xf32, #tpu.memory_space<vmem>>, vector<1x16x128xf32>,
    %c7_386 = arith.constant 7 : index
    %c0_387 = arith.constant 0 : index
    %c0_388 = arith.constant 0 : index
    %780 = vector.load %arg1[%c7_386, %c0_387, %c0_388] : memref<16x16x128xf32, #tpu.memory_space<vmem>>, vector<1x16x128xf32>
    %781 = vector.shape_cast %780 : vector<1x16x128xf32> to vector<16x128xf32>
    %782 = vector.extract_strided_slice %1 {offsets = [7, 0], sizes = [1, 128], strides = [1, 1]} : vector<16x128xf32> to vector<1x128xf32>
    %783 = arith.mulf %781, %0 : vector<16x128xf32>
    %cst_389 = arith.constant dense<0.000000e+00> : vector<128xf32>
    %784 = vector.multi_reduction <add>, %783, %cst_389 [0] : vector<16x128xf32> to vector<128xf32>
    %785 = vector.shape_cast %784 : vector<128xf32> to vector<1x128xf32>
    %786 = arith.addf %782, %785 : vector<1x128xf32>
    %c7_390 = arith.constant 7 : index
    %c0_391 = arith.constant 0 : index
    %787 = vector.load %arg5[%c7_390, %c0_391] : memref<16x128xf32, #tpu.memory_space<vmem>>, vector<1x128xf32>
    tpu.vector_store %arg5[%c7_390, %c0_391], %786 {strides = array<i32>} : memref<16x128xf32, #tpu.memory_space<vmem>>, vector<1x128xf32>,
    %c7_i32 = arith.constant 7 : i32
    %788 = vector.broadcast %c7_i32 : i32 to vector<16x128xi32>
    %789 = arith.cmpi eq, %2, %788 : vector<16x128xi32>
    %790 = arith.extui %789 : vector<16x128xi1> to vector<16x128xi32>
    %791 = arith.sitofp %790 : vector<16x128xi32> to vector<16x128xf32>
    %792 = vector.extract_strided_slice %781 {offsets = [0, 0], sizes = [1, 128], strides = [1, 1]} : vector<16x128xf32> to vector<1x128xf32>
    %c0_392 = arith.constant 0 : index
    %c0_393 = arith.constant 0 : index
    %c0_394 = arith.constant 0 : index
    %793 = vector.load %arg4[%c0_392, %c0_393, %c0_394] : memref<16x16x128xf32, #tpu.memory_space<vmem>>, vector<1x16x128xf32>
    %794 = vector.shape_cast %793 : vector<1x16x128xf32> to vector<16x128xf32>
    %795 = vector.broadcast %792 : vector<1x128xf32> to vector<16x128xf32>
    %796 = arith.mulf %795, %794 : vector<16x128xf32>
    %797 = arith.subf %791, %796 : vector<16x128xf32>
    %798 = vector.extract_strided_slice %781 {offsets = [1, 0], sizes = [1, 128], strides = [1, 1]} : vector<16x128xf32> to vector<1x128xf32>
    %c1_395 = arith.constant 1 : index
    %c0_396 = arith.constant 0 : index
    %c0_397 = arith.constant 0 : index
    %799 = vector.load %arg4[%c1_395, %c0_396, %c0_397] : memref<16x16x128xf32, #tpu.memory_space<vmem>>, vector<1x16x128xf32>
    %800 = vector.shape_cast %799 : vector<1x16x128xf32> to vector<16x128xf32>
    %801 = vector.broadcast %798 : vector<1x128xf32> to vector<16x128xf32>
    %802 = arith.mulf %801, %800 : vector<16x128xf32>
    %803 = arith.subf %797, %802 : vector<16x128xf32>
    %804 = vector.extract_strided_slice %781 {offsets = [2, 0], sizes = [1, 128], strides = [1, 1]} : vector<16x128xf32> to vector<1x128xf32>
    %c2_398 = arith.constant 2 : index
    %c0_399 = arith.constant 0 : index
    %c0_400 = arith.constant 0 : index
    %805 = vector.load %arg4[%c2_398, %c0_399, %c0_400] : memref<16x16x128xf32, #tpu.memory_space<vmem>>, vector<1x16x128xf32>
    %806 = vector.shape_cast %805 : vector<1x16x128xf32> to vector<16x128xf32>
    %807 = vector.broadcast %804 : vector<1x128xf32> to vector<16x128xf32>
    %808 = arith.mulf %807, %806 : vector<16x128xf32>
    %809 = arith.subf %803, %808 : vector<16x128xf32>
    %810 = vector.extract_strided_slice %781 {offsets = [3, 0], sizes = [1, 128], strides = [1, 1]} : vector<16x128xf32> to vector<1x128xf32>
    %c3_401 = arith.constant 3 : index
    %c0_402 = arith.constant 0 : index
    %c0_403 = arith.constant 0 : index
    %811 = vector.load %arg4[%c3_401, %c0_402, %c0_403] : memref<16x16x128xf32, #tpu.memory_space<vmem>>, vector<1x16x128xf32>
    %812 = vector.shape_cast %811 : vector<1x16x128xf32> to vector<16x128xf32>
    %813 = vector.broadcast %810 : vector<1x128xf32> to vector<16x128xf32>
    %814 = arith.mulf %813, %812 : vector<16x128xf32>
    %815 = arith.subf %809, %814 : vector<16x128xf32>
    %816 = vector.extract_strided_slice %781 {offsets = [4, 0], sizes = [1, 128], strides = [1, 1]} : vector<16x128xf32> to vector<1x128xf32>
    %c4_404 = arith.constant 4 : index
    %c0_405 = arith.constant 0 : index
    %c0_406 = arith.constant 0 : index
    %817 = vector.load %arg4[%c4_404, %c0_405, %c0_406] : memref<16x16x128xf32, #tpu.memory_space<vmem>>, vector<1x16x128xf32>
    %818 = vector.shape_cast %817 : vector<1x16x128xf32> to vector<16x128xf32>
    %819 = vector.broadcast %816 : vector<1x128xf32> to vector<16x128xf32>
    %820 = arith.mulf %819, %818 : vector<16x128xf32>
    %821 = arith.subf %815, %820 : vector<16x128xf32>
    %822 = vector.extract_strided_slice %781 {offsets = [5, 0], sizes = [1, 128], strides = [1, 1]} : vector<16x128xf32> to vector<1x128xf32>
    %c5_407 = arith.constant 5 : index
    %c0_408 = arith.constant 0 : index
    %c0_409 = arith.constant 0 : index
    %823 = vector.load %arg4[%c5_407, %c0_408, %c0_409] : memref<16x16x128xf32, #tpu.memory_space<vmem>>, vector<1x16x128xf32>
    %824 = vector.shape_cast %823 : vector<1x16x128xf32> to vector<16x128xf32>
    %825 = vector.broadcast %822 : vector<1x128xf32> to vector<16x128xf32>
    %826 = arith.mulf %825, %824 : vector<16x128xf32>
    %827 = arith.subf %821, %826 : vector<16x128xf32>
    %828 = vector.extract_strided_slice %781 {offsets = [6, 0], sizes = [1, 128], strides = [1, 1]} : vector<16x128xf32> to vector<1x128xf32>
    %c6_410 = arith.constant 6 : index
    %c0_411 = arith.constant 0 : index
    %c0_412 = arith.constant 0 : index
    %829 = vector.load %arg4[%c6_410, %c0_411, %c0_412] : memref<16x16x128xf32, #tpu.memory_space<vmem>>, vector<1x16x128xf32>
    %830 = vector.shape_cast %829 : vector<1x16x128xf32> to vector<16x128xf32>
    %831 = vector.broadcast %828 : vector<1x128xf32> to vector<16x128xf32>
    %832 = arith.mulf %831, %830 : vector<16x128xf32>
    %833 = arith.subf %827, %832 : vector<16x128xf32>
    %834 = vector.extract_strided_slice %781 {offsets = [7, 0], sizes = [1, 128], strides = [1, 1]} : vector<16x128xf32> to vector<1x128xf32>
    %c7_413 = arith.constant 7 : index
    %c0_414 = arith.constant 0 : index
    %c0_415 = arith.constant 0 : index
    %835 = vector.load %arg4[%c7_413, %c0_414, %c0_415] : memref<16x16x128xf32, #tpu.memory_space<vmem>>, vector<1x16x128xf32>
    %836 = vector.shape_cast %835 : vector<1x16x128xf32> to vector<16x128xf32>
    %837 = vector.broadcast %834 : vector<1x128xf32> to vector<16x128xf32>
    %838 = arith.mulf %837, %836 : vector<16x128xf32>
    %839 = arith.subf %833, %838 : vector<16x128xf32>
    %840 = vector.extract_strided_slice %781 {offsets = [8, 0], sizes = [1, 128], strides = [1, 1]} : vector<16x128xf32> to vector<1x128xf32>
    %c8_416 = arith.constant 8 : index
    %c0_417 = arith.constant 0 : index
    %c0_418 = arith.constant 0 : index
    %841 = vector.load %arg4[%c8_416, %c0_417, %c0_418] : memref<16x16x128xf32, #tpu.memory_space<vmem>>, vector<1x16x128xf32>
    %842 = vector.shape_cast %841 : vector<1x16x128xf32> to vector<16x128xf32>
    %843 = vector.broadcast %840 : vector<1x128xf32> to vector<16x128xf32>
    %844 = arith.mulf %843, %842 : vector<16x128xf32>
    %845 = arith.subf %839, %844 : vector<16x128xf32>
    %846 = vector.extract_strided_slice %781 {offsets = [9, 0], sizes = [1, 128], strides = [1, 1]} : vector<16x128xf32> to vector<1x128xf32>
    %c9_419 = arith.constant 9 : index
    %c0_420 = arith.constant 0 : index
    %c0_421 = arith.constant 0 : index
    %847 = vector.load %arg4[%c9_419, %c0_420, %c0_421] : memref<16x16x128xf32, #tpu.memory_space<vmem>>, vector<1x16x128xf32>
    %848 = vector.shape_cast %847 : vector<1x16x128xf32> to vector<16x128xf32>
    %849 = vector.broadcast %846 : vector<1x128xf32> to vector<16x128xf32>
    %850 = arith.mulf %849, %848 : vector<16x128xf32>
    %851 = arith.subf %845, %850 : vector<16x128xf32>
    %852 = vector.extract_strided_slice %781 {offsets = [10, 0], sizes = [1, 128], strides = [1, 1]} : vector<16x128xf32> to vector<1x128xf32>
    %c10_422 = arith.constant 10 : index
    %c0_423 = arith.constant 0 : index
    %c0_424 = arith.constant 0 : index
    %853 = vector.load %arg4[%c10_422, %c0_423, %c0_424] : memref<16x16x128xf32, #tpu.memory_space<vmem>>, vector<1x16x128xf32>
    %854 = vector.shape_cast %853 : vector<1x16x128xf32> to vector<16x128xf32>
    %855 = vector.broadcast %852 : vector<1x128xf32> to vector<16x128xf32>
    %856 = arith.mulf %855, %854 : vector<16x128xf32>
    %857 = arith.subf %851, %856 : vector<16x128xf32>
    %858 = vector.extract_strided_slice %781 {offsets = [11, 0], sizes = [1, 128], strides = [1, 1]} : vector<16x128xf32> to vector<1x128xf32>
    %c11_425 = arith.constant 11 : index
    %c0_426 = arith.constant 0 : index
    %c0_427 = arith.constant 0 : index
    %859 = vector.load %arg4[%c11_425, %c0_426, %c0_427] : memref<16x16x128xf32, #tpu.memory_space<vmem>>, vector<1x16x128xf32>
    %860 = vector.shape_cast %859 : vector<1x16x128xf32> to vector<16x128xf32>
    %861 = vector.broadcast %858 : vector<1x128xf32> to vector<16x128xf32>
    %862 = arith.mulf %861, %860 : vector<16x128xf32>
    %863 = arith.subf %857, %862 : vector<16x128xf32>
    %864 = vector.extract_strided_slice %781 {offsets = [12, 0], sizes = [1, 128], strides = [1, 1]} : vector<16x128xf32> to vector<1x128xf32>
    %c12_428 = arith.constant 12 : index
    %c0_429 = arith.constant 0 : index
    %c0_430 = arith.constant 0 : index
    %865 = vector.load %arg4[%c12_428, %c0_429, %c0_430] : memref<16x16x128xf32, #tpu.memory_space<vmem>>, vector<1x16x128xf32>
    %866 = vector.shape_cast %865 : vector<1x16x128xf32> to vector<16x128xf32>
    %867 = vector.broadcast %864 : vector<1x128xf32> to vector<16x128xf32>
    %868 = arith.mulf %867, %866 : vector<16x128xf32>
    %869 = arith.subf %863, %868 : vector<16x128xf32>
    %870 = vector.extract_strided_slice %781 {offsets = [13, 0], sizes = [1, 128], strides = [1, 1]} : vector<16x128xf32> to vector<1x128xf32>
    %c13_431 = arith.constant 13 : index
    %c0_432 = arith.constant 0 : index
    %c0_433 = arith.constant 0 : index
    %871 = vector.load %arg4[%c13_431, %c0_432, %c0_433] : memref<16x16x128xf32, #tpu.memory_space<vmem>>, vector<1x16x128xf32>
    %872 = vector.shape_cast %871 : vector<1x16x128xf32> to vector<16x128xf32>
    %873 = vector.broadcast %870 : vector<1x128xf32> to vector<16x128xf32>
    %874 = arith.mulf %873, %872 : vector<16x128xf32>
    %875 = arith.subf %869, %874 : vector<16x128xf32>
    %876 = vector.extract_strided_slice %781 {offsets = [14, 0], sizes = [1, 128], strides = [1, 1]} : vector<16x128xf32> to vector<1x128xf32>
    %c14_434 = arith.constant 14 : index
    %c0_435 = arith.constant 0 : index
    %c0_436 = arith.constant 0 : index
    %877 = vector.load %arg4[%c14_434, %c0_435, %c0_436] : memref<16x16x128xf32, #tpu.memory_space<vmem>>, vector<1x16x128xf32>
    %878 = vector.shape_cast %877 : vector<1x16x128xf32> to vector<16x128xf32>
    %879 = vector.broadcast %876 : vector<1x128xf32> to vector<16x128xf32>
    %880 = arith.mulf %879, %878 : vector<16x128xf32>
    %881 = arith.subf %875, %880 : vector<16x128xf32>
    %882 = vector.extract_strided_slice %781 {offsets = [15, 0], sizes = [1, 128], strides = [1, 1]} : vector<16x128xf32> to vector<1x128xf32>
    %c15_437 = arith.constant 15 : index
    %c0_438 = arith.constant 0 : index
    %c0_439 = arith.constant 0 : index
    %883 = vector.load %arg4[%c15_437, %c0_438, %c0_439] : memref<16x16x128xf32, #tpu.memory_space<vmem>>, vector<1x16x128xf32>
    %884 = vector.shape_cast %883 : vector<1x16x128xf32> to vector<16x128xf32>
    %885 = vector.broadcast %882 : vector<1x128xf32> to vector<16x128xf32>
    %886 = arith.mulf %885, %884 : vector<16x128xf32>
    %887 = arith.subf %881, %886 : vector<16x128xf32>
    %c7_440 = arith.constant 7 : index
    %c0_441 = arith.constant 0 : index
    %c0_442 = arith.constant 0 : index
    %888 = vector.load %arg6[%c7_440, %c0_441, %c0_442] : memref<16x16x128xf32, #tpu.memory_space<vmem>>, vector<1x16x128xf32>
    %889 = vector.shape_cast %888 : vector<1x16x128xf32> to vector<16x128xf32>
    %890 = vector.shape_cast %887 : vector<16x128xf32> to vector<1x16x128xf32>
    tpu.vector_store %arg6[%c7_440, %c0_441, %c0_442], %890 {strides = array<i32>} : memref<16x16x128xf32, #tpu.memory_space<vmem>>, vector<1x16x128xf32>,
    %c8_443 = arith.constant 8 : index
    %c0_444 = arith.constant 0 : index
    %c0_445 = arith.constant 0 : index
    %891 = vector.load %arg1[%c8_443, %c0_444, %c0_445] : memref<16x16x128xf32, #tpu.memory_space<vmem>>, vector<1x16x128xf32>
    %892 = vector.shape_cast %891 : vector<1x16x128xf32> to vector<16x128xf32>
    %893 = vector.extract_strided_slice %1 {offsets = [8, 0], sizes = [1, 128], strides = [1, 1]} : vector<16x128xf32> to vector<1x128xf32>
    %894 = arith.mulf %892, %0 : vector<16x128xf32>
    %cst_446 = arith.constant dense<0.000000e+00> : vector<128xf32>
    %895 = vector.multi_reduction <add>, %894, %cst_446 [0] : vector<16x128xf32> to vector<128xf32>
    %896 = vector.shape_cast %895 : vector<128xf32> to vector<1x128xf32>
    %897 = arith.addf %893, %896 : vector<1x128xf32>
    %c8_447 = arith.constant 8 : index
    %c0_448 = arith.constant 0 : index
    %898 = vector.load %arg5[%c8_447, %c0_448] : memref<16x128xf32, #tpu.memory_space<vmem>>, vector<1x128xf32>
    tpu.vector_store %arg5[%c8_447, %c0_448], %897 {strides = array<i32>} : memref<16x128xf32, #tpu.memory_space<vmem>>, vector<1x128xf32>,
    %c8_i32 = arith.constant 8 : i32
    %899 = vector.broadcast %c8_i32 : i32 to vector<16x128xi32>
    %900 = arith.cmpi eq, %2, %899 : vector<16x128xi32>
    %901 = arith.extui %900 : vector<16x128xi1> to vector<16x128xi32>
    %902 = arith.sitofp %901 : vector<16x128xi32> to vector<16x128xf32>
    %903 = vector.extract_strided_slice %892 {offsets = [0, 0], sizes = [1, 128], strides = [1, 1]} : vector<16x128xf32> to vector<1x128xf32>
    %c0_449 = arith.constant 0 : index
    %c0_450 = arith.constant 0 : index
    %c0_451 = arith.constant 0 : index
    %904 = vector.load %arg4[%c0_449, %c0_450, %c0_451] : memref<16x16x128xf32, #tpu.memory_space<vmem>>, vector<1x16x128xf32>
    %905 = vector.shape_cast %904 : vector<1x16x128xf32> to vector<16x128xf32>
    %906 = vector.broadcast %903 : vector<1x128xf32> to vector<16x128xf32>
    %907 = arith.mulf %906, %905 : vector<16x128xf32>
    %908 = arith.subf %902, %907 : vector<16x128xf32>
    %909 = vector.extract_strided_slice %892 {offsets = [1, 0], sizes = [1, 128], strides = [1, 1]} : vector<16x128xf32> to vector<1x128xf32>
    %c1_452 = arith.constant 1 : index
    %c0_453 = arith.constant 0 : index
    %c0_454 = arith.constant 0 : index
    %910 = vector.load %arg4[%c1_452, %c0_453, %c0_454] : memref<16x16x128xf32, #tpu.memory_space<vmem>>, vector<1x16x128xf32>
    %911 = vector.shape_cast %910 : vector<1x16x128xf32> to vector<16x128xf32>
    %912 = vector.broadcast %909 : vector<1x128xf32> to vector<16x128xf32>
    %913 = arith.mulf %912, %911 : vector<16x128xf32>
    %914 = arith.subf %908, %913 : vector<16x128xf32>
    %915 = vector.extract_strided_slice %892 {offsets = [2, 0], sizes = [1, 128], strides = [1, 1]} : vector<16x128xf32> to vector<1x128xf32>
    %c2_455 = arith.constant 2 : index
    %c0_456 = arith.constant 0 : index
    %c0_457 = arith.constant 0 : index
    %916 = vector.load %arg4[%c2_455, %c0_456, %c0_457] : memref<16x16x128xf32, #tpu.memory_space<vmem>>, vector<1x16x128xf32>
    %917 = vector.shape_cast %916 : vector<1x16x128xf32> to vector<16x128xf32>
    %918 = vector.broadcast %915 : vector<1x128xf32> to vector<16x128xf32>
    %919 = arith.mulf %918, %917 : vector<16x128xf32>
    %920 = arith.subf %914, %919 : vector<16x128xf32>
    %921 = vector.extract_strided_slice %892 {offsets = [3, 0], sizes = [1, 128], strides = [1, 1]} : vector<16x128xf32> to vector<1x128xf32>
    %c3_458 = arith.constant 3 : index
    %c0_459 = arith.constant 0 : index
    %c0_460 = arith.constant 0 : index
    %922 = vector.load %arg4[%c3_458, %c0_459, %c0_460] : memref<16x16x128xf32, #tpu.memory_space<vmem>>, vector<1x16x128xf32>
    %923 = vector.shape_cast %922 : vector<1x16x128xf32> to vector<16x128xf32>
    %924 = vector.broadcast %921 : vector<1x128xf32> to vector<16x128xf32>
    %925 = arith.mulf %924, %923 : vector<16x128xf32>
    %926 = arith.subf %920, %925 : vector<16x128xf32>
    %927 = vector.extract_strided_slice %892 {offsets = [4, 0], sizes = [1, 128], strides = [1, 1]} : vector<16x128xf32> to vector<1x128xf32>
    %c4_461 = arith.constant 4 : index
    %c0_462 = arith.constant 0 : index
    %c0_463 = arith.constant 0 : index
    %928 = vector.load %arg4[%c4_461, %c0_462, %c0_463] : memref<16x16x128xf32, #tpu.memory_space<vmem>>, vector<1x16x128xf32>
    %929 = vector.shape_cast %928 : vector<1x16x128xf32> to vector<16x128xf32>
    %930 = vector.broadcast %927 : vector<1x128xf32> to vector<16x128xf32>
    %931 = arith.mulf %930, %929 : vector<16x128xf32>
    %932 = arith.subf %926, %931 : vector<16x128xf32>
    %933 = vector.extract_strided_slice %892 {offsets = [5, 0], sizes = [1, 128], strides = [1, 1]} : vector<16x128xf32> to vector<1x128xf32>
    %c5_464 = arith.constant 5 : index
    %c0_465 = arith.constant 0 : index
    %c0_466 = arith.constant 0 : index
    %934 = vector.load %arg4[%c5_464, %c0_465, %c0_466] : memref<16x16x128xf32, #tpu.memory_space<vmem>>, vector<1x16x128xf32>
    %935 = vector.shape_cast %934 : vector<1x16x128xf32> to vector<16x128xf32>
    %936 = vector.broadcast %933 : vector<1x128xf32> to vector<16x128xf32>
    %937 = arith.mulf %936, %935 : vector<16x128xf32>
    %938 = arith.subf %932, %937 : vector<16x128xf32>
    %939 = vector.extract_strided_slice %892 {offsets = [6, 0], sizes = [1, 128], strides = [1, 1]} : vector<16x128xf32> to vector<1x128xf32>
    %c6_467 = arith.constant 6 : index
    %c0_468 = arith.constant 0 : index
    %c0_469 = arith.constant 0 : index
    %940 = vector.load %arg4[%c6_467, %c0_468, %c0_469] : memref<16x16x128xf32, #tpu.memory_space<vmem>>, vector<1x16x128xf32>
    %941 = vector.shape_cast %940 : vector<1x16x128xf32> to vector<16x128xf32>
    %942 = vector.broadcast %939 : vector<1x128xf32> to vector<16x128xf32>
    %943 = arith.mulf %942, %941 : vector<16x128xf32>
    %944 = arith.subf %938, %943 : vector<16x128xf32>
    %945 = vector.extract_strided_slice %892 {offsets = [7, 0], sizes = [1, 128], strides = [1, 1]} : vector<16x128xf32> to vector<1x128xf32>
    %c7_470 = arith.constant 7 : index
    %c0_471 = arith.constant 0 : index
    %c0_472 = arith.constant 0 : index
    %946 = vector.load %arg4[%c7_470, %c0_471, %c0_472] : memref<16x16x128xf32, #tpu.memory_space<vmem>>, vector<1x16x128xf32>
    %947 = vector.shape_cast %946 : vector<1x16x128xf32> to vector<16x128xf32>
    %948 = vector.broadcast %945 : vector<1x128xf32> to vector<16x128xf32>
    %949 = arith.mulf %948, %947 : vector<16x128xf32>
    %950 = arith.subf %944, %949 : vector<16x128xf32>
    %951 = vector.extract_strided_slice %892 {offsets = [8, 0], sizes = [1, 128], strides = [1, 1]} : vector<16x128xf32> to vector<1x128xf32>
    %c8_473 = arith.constant 8 : index
    %c0_474 = arith.constant 0 : index
    %c0_475 = arith.constant 0 : index
    %952 = vector.load %arg4[%c8_473, %c0_474, %c0_475] : memref<16x16x128xf32, #tpu.memory_space<vmem>>, vector<1x16x128xf32>
    %953 = vector.shape_cast %952 : vector<1x16x128xf32> to vector<16x128xf32>
    %954 = vector.broadcast %951 : vector<1x128xf32> to vector<16x128xf32>
    %955 = arith.mulf %954, %953 : vector<16x128xf32>
    %956 = arith.subf %950, %955 : vector<16x128xf32>
    %957 = vector.extract_strided_slice %892 {offsets = [9, 0], sizes = [1, 128], strides = [1, 1]} : vector<16x128xf32> to vector<1x128xf32>
    %c9_476 = arith.constant 9 : index
    %c0_477 = arith.constant 0 : index
    %c0_478 = arith.constant 0 : index
    %958 = vector.load %arg4[%c9_476, %c0_477, %c0_478] : memref<16x16x128xf32, #tpu.memory_space<vmem>>, vector<1x16x128xf32>
    %959 = vector.shape_cast %958 : vector<1x16x128xf32> to vector<16x128xf32>
    %960 = vector.broadcast %957 : vector<1x128xf32> to vector<16x128xf32>
    %961 = arith.mulf %960, %959 : vector<16x128xf32>
    %962 = arith.subf %956, %961 : vector<16x128xf32>
    %963 = vector.extract_strided_slice %892 {offsets = [10, 0], sizes = [1, 128], strides = [1, 1]} : vector<16x128xf32> to vector<1x128xf32>
    %c10_479 = arith.constant 10 : index
    %c0_480 = arith.constant 0 : index
    %c0_481 = arith.constant 0 : index
    %964 = vector.load %arg4[%c10_479, %c0_480, %c0_481] : memref<16x16x128xf32, #tpu.memory_space<vmem>>, vector<1x16x128xf32>
    %965 = vector.shape_cast %964 : vector<1x16x128xf32> to vector<16x128xf32>
    %966 = vector.broadcast %963 : vector<1x128xf32> to vector<16x128xf32>
    %967 = arith.mulf %966, %965 : vector<16x128xf32>
    %968 = arith.subf %962, %967 : vector<16x128xf32>
    %969 = vector.extract_strided_slice %892 {offsets = [11, 0], sizes = [1, 128], strides = [1, 1]} : vector<16x128xf32> to vector<1x128xf32>
    %c11_482 = arith.constant 11 : index
    %c0_483 = arith.constant 0 : index
    %c0_484 = arith.constant 0 : index
    %970 = vector.load %arg4[%c11_482, %c0_483, %c0_484] : memref<16x16x128xf32, #tpu.memory_space<vmem>>, vector<1x16x128xf32>
    %971 = vector.shape_cast %970 : vector<1x16x128xf32> to vector<16x128xf32>
    %972 = vector.broadcast %969 : vector<1x128xf32> to vector<16x128xf32>
    %973 = arith.mulf %972, %971 : vector<16x128xf32>
    %974 = arith.subf %968, %973 : vector<16x128xf32>
    %975 = vector.extract_strided_slice %892 {offsets = [12, 0], sizes = [1, 128], strides = [1, 1]} : vector<16x128xf32> to vector<1x128xf32>
    %c12_485 = arith.constant 12 : index
    %c0_486 = arith.constant 0 : index
    %c0_487 = arith.constant 0 : index
    %976 = vector.load %arg4[%c12_485, %c0_486, %c0_487] : memref<16x16x128xf32, #tpu.memory_space<vmem>>, vector<1x16x128xf32>
    %977 = vector.shape_cast %976 : vector<1x16x128xf32> to vector<16x128xf32>
    %978 = vector.broadcast %975 : vector<1x128xf32> to vector<16x128xf32>
    %979 = arith.mulf %978, %977 : vector<16x128xf32>
    %980 = arith.subf %974, %979 : vector<16x128xf32>
    %981 = vector.extract_strided_slice %892 {offsets = [13, 0], sizes = [1, 128], strides = [1, 1]} : vector<16x128xf32> to vector<1x128xf32>
    %c13_488 = arith.constant 13 : index
    %c0_489 = arith.constant 0 : index
    %c0_490 = arith.constant 0 : index
    %982 = vector.load %arg4[%c13_488, %c0_489, %c0_490] : memref<16x16x128xf32, #tpu.memory_space<vmem>>, vector<1x16x128xf32>
    %983 = vector.shape_cast %982 : vector<1x16x128xf32> to vector<16x128xf32>
    %984 = vector.broadcast %981 : vector<1x128xf32> to vector<16x128xf32>
    %985 = arith.mulf %984, %983 : vector<16x128xf32>
    %986 = arith.subf %980, %985 : vector<16x128xf32>
    %987 = vector.extract_strided_slice %892 {offsets = [14, 0], sizes = [1, 128], strides = [1, 1]} : vector<16x128xf32> to vector<1x128xf32>
    %c14_491 = arith.constant 14 : index
    %c0_492 = arith.constant 0 : index
    %c0_493 = arith.constant 0 : index
    %988 = vector.load %arg4[%c14_491, %c0_492, %c0_493] : memref<16x16x128xf32, #tpu.memory_space<vmem>>, vector<1x16x128xf32>
    %989 = vector.shape_cast %988 : vector<1x16x128xf32> to vector<16x128xf32>
    %990 = vector.broadcast %987 : vector<1x128xf32> to vector<16x128xf32>
    %991 = arith.mulf %990, %989 : vector<16x128xf32>
    %992 = arith.subf %986, %991 : vector<16x128xf32>
    %993 = vector.extract_strided_slice %892 {offsets = [15, 0], sizes = [1, 128], strides = [1, 1]} : vector<16x128xf32> to vector<1x128xf32>
    %c15_494 = arith.constant 15 : index
    %c0_495 = arith.constant 0 : index
    %c0_496 = arith.constant 0 : index
    %994 = vector.load %arg4[%c15_494, %c0_495, %c0_496] : memref<16x16x128xf32, #tpu.memory_space<vmem>>, vector<1x16x128xf32>
    %995 = vector.shape_cast %994 : vector<1x16x128xf32> to vector<16x128xf32>
    %996 = vector.broadcast %993 : vector<1x128xf32> to vector<16x128xf32>
    %997 = arith.mulf %996, %995 : vector<16x128xf32>
    %998 = arith.subf %992, %997 : vector<16x128xf32>
    %c8_497 = arith.constant 8 : index
    %c0_498 = arith.constant 0 : index
    %c0_499 = arith.constant 0 : index
    %999 = vector.load %arg6[%c8_497, %c0_498, %c0_499] : memref<16x16x128xf32, #tpu.memory_space<vmem>>, vector<1x16x128xf32>
    %1000 = vector.shape_cast %999 : vector<1x16x128xf32> to vector<16x128xf32>
    %1001 = vector.shape_cast %998 : vector<16x128xf32> to vector<1x16x128xf32>
    tpu.vector_store %arg6[%c8_497, %c0_498, %c0_499], %1001 {strides = array<i32>} : memref<16x16x128xf32, #tpu.memory_space<vmem>>, vector<1x16x128xf32>,
    %c9_500 = arith.constant 9 : index
    %c0_501 = arith.constant 0 : index
    %c0_502 = arith.constant 0 : index
    %1002 = vector.load %arg1[%c9_500, %c0_501, %c0_502] : memref<16x16x128xf32, #tpu.memory_space<vmem>>, vector<1x16x128xf32>
    %1003 = vector.shape_cast %1002 : vector<1x16x128xf32> to vector<16x128xf32>
    %1004 = vector.extract_strided_slice %1 {offsets = [9, 0], sizes = [1, 128], strides = [1, 1]} : vector<16x128xf32> to vector<1x128xf32>
    %1005 = arith.mulf %1003, %0 : vector<16x128xf32>
    %cst_503 = arith.constant dense<0.000000e+00> : vector<128xf32>
    %1006 = vector.multi_reduction <add>, %1005, %cst_503 [0] : vector<16x128xf32> to vector<128xf32>
    %1007 = vector.shape_cast %1006 : vector<128xf32> to vector<1x128xf32>
    %1008 = arith.addf %1004, %1007 : vector<1x128xf32>
    %c9_504 = arith.constant 9 : index
    %c0_505 = arith.constant 0 : index
    %1009 = vector.load %arg5[%c9_504, %c0_505] : memref<16x128xf32, #tpu.memory_space<vmem>>, vector<1x128xf32>
    tpu.vector_store %arg5[%c9_504, %c0_505], %1008 {strides = array<i32>} : memref<16x128xf32, #tpu.memory_space<vmem>>, vector<1x128xf32>,
    %c9_i32 = arith.constant 9 : i32
    %1010 = vector.broadcast %c9_i32 : i32 to vector<16x128xi32>
    %1011 = arith.cmpi eq, %2, %1010 : vector<16x128xi32>
    %1012 = arith.extui %1011 : vector<16x128xi1> to vector<16x128xi32>
    %1013 = arith.sitofp %1012 : vector<16x128xi32> to vector<16x128xf32>
    %1014 = vector.extract_strided_slice %1003 {offsets = [0, 0], sizes = [1, 128], strides = [1, 1]} : vector<16x128xf32> to vector<1x128xf32>
    %c0_506 = arith.constant 0 : index
    %c0_507 = arith.constant 0 : index
    %c0_508 = arith.constant 0 : index
    %1015 = vector.load %arg4[%c0_506, %c0_507, %c0_508] : memref<16x16x128xf32, #tpu.memory_space<vmem>>, vector<1x16x128xf32>
    %1016 = vector.shape_cast %1015 : vector<1x16x128xf32> to vector<16x128xf32>
    %1017 = vector.broadcast %1014 : vector<1x128xf32> to vector<16x128xf32>
    %1018 = arith.mulf %1017, %1016 : vector<16x128xf32>
    %1019 = arith.subf %1013, %1018 : vector<16x128xf32>
    %1020 = vector.extract_strided_slice %1003 {offsets = [1, 0], sizes = [1, 128], strides = [1, 1]} : vector<16x128xf32> to vector<1x128xf32>
    %c1_509 = arith.constant 1 : index
    %c0_510 = arith.constant 0 : index
    %c0_511 = arith.constant 0 : index
    %1021 = vector.load %arg4[%c1_509, %c0_510, %c0_511] : memref<16x16x128xf32, #tpu.memory_space<vmem>>, vector<1x16x128xf32>
    %1022 = vector.shape_cast %1021 : vector<1x16x128xf32> to vector<16x128xf32>
    %1023 = vector.broadcast %1020 : vector<1x128xf32> to vector<16x128xf32>
    %1024 = arith.mulf %1023, %1022 : vector<16x128xf32>
    %1025 = arith.subf %1019, %1024 : vector<16x128xf32>
    %1026 = vector.extract_strided_slice %1003 {offsets = [2, 0], sizes = [1, 128], strides = [1, 1]} : vector<16x128xf32> to vector<1x128xf32>
    %c2_512 = arith.constant 2 : index
    %c0_513 = arith.constant 0 : index
    %c0_514 = arith.constant 0 : index
    %1027 = vector.load %arg4[%c2_512, %c0_513, %c0_514] : memref<16x16x128xf32, #tpu.memory_space<vmem>>, vector<1x16x128xf32>
    %1028 = vector.shape_cast %1027 : vector<1x16x128xf32> to vector<16x128xf32>
    %1029 = vector.broadcast %1026 : vector<1x128xf32> to vector<16x128xf32>
    %1030 = arith.mulf %1029, %1028 : vector<16x128xf32>
    %1031 = arith.subf %1025, %1030 : vector<16x128xf32>
    %1032 = vector.extract_strided_slice %1003 {offsets = [3, 0], sizes = [1, 128], strides = [1, 1]} : vector<16x128xf32> to vector<1x128xf32>
    %c3_515 = arith.constant 3 : index
    %c0_516 = arith.constant 0 : index
    %c0_517 = arith.constant 0 : index
    %1033 = vector.load %arg4[%c3_515, %c0_516, %c0_517] : memref<16x16x128xf32, #tpu.memory_space<vmem>>, vector<1x16x128xf32>
    %1034 = vector.shape_cast %1033 : vector<1x16x128xf32> to vector<16x128xf32>
    %1035 = vector.broadcast %1032 : vector<1x128xf32> to vector<16x128xf32>
    %1036 = arith.mulf %1035, %1034 : vector<16x128xf32>
    %1037 = arith.subf %1031, %1036 : vector<16x128xf32>
    %1038 = vector.extract_strided_slice %1003 {offsets = [4, 0], sizes = [1, 128], strides = [1, 1]} : vector<16x128xf32> to vector<1x128xf32>
    %c4_518 = arith.constant 4 : index
    %c0_519 = arith.constant 0 : index
    %c0_520 = arith.constant 0 : index
    %1039 = vector.load %arg4[%c4_518, %c0_519, %c0_520] : memref<16x16x128xf32, #tpu.memory_space<vmem>>, vector<1x16x128xf32>
    %1040 = vector.shape_cast %1039 : vector<1x16x128xf32> to vector<16x128xf32>
    %1041 = vector.broadcast %1038 : vector<1x128xf32> to vector<16x128xf32>
    %1042 = arith.mulf %1041, %1040 : vector<16x128xf32>
    %1043 = arith.subf %1037, %1042 : vector<16x128xf32>
    %1044 = vector.extract_strided_slice %1003 {offsets = [5, 0], sizes = [1, 128], strides = [1, 1]} : vector<16x128xf32> to vector<1x128xf32>
    %c5_521 = arith.constant 5 : index
    %c0_522 = arith.constant 0 : index
    %c0_523 = arith.constant 0 : index
    %1045 = vector.load %arg4[%c5_521, %c0_522, %c0_523] : memref<16x16x128xf32, #tpu.memory_space<vmem>>, vector<1x16x128xf32>
    %1046 = vector.shape_cast %1045 : vector<1x16x128xf32> to vector<16x128xf32>
    %1047 = vector.broadcast %1044 : vector<1x128xf32> to vector<16x128xf32>
    %1048 = arith.mulf %1047, %1046 : vector<16x128xf32>
    %1049 = arith.subf %1043, %1048 : vector<16x128xf32>
    %1050 = vector.extract_strided_slice %1003 {offsets = [6, 0], sizes = [1, 128], strides = [1, 1]} : vector<16x128xf32> to vector<1x128xf32>
    %c6_524 = arith.constant 6 : index
    %c0_525 = arith.constant 0 : index
    %c0_526 = arith.constant 0 : index
    %1051 = vector.load %arg4[%c6_524, %c0_525, %c0_526] : memref<16x16x128xf32, #tpu.memory_space<vmem>>, vector<1x16x128xf32>
    %1052 = vector.shape_cast %1051 : vector<1x16x128xf32> to vector<16x128xf32>
    %1053 = vector.broadcast %1050 : vector<1x128xf32> to vector<16x128xf32>
    %1054 = arith.mulf %1053, %1052 : vector<16x128xf32>
    %1055 = arith.subf %1049, %1054 : vector<16x128xf32>
    %1056 = vector.extract_strided_slice %1003 {offsets = [7, 0], sizes = [1, 128], strides = [1, 1]} : vector<16x128xf32> to vector<1x128xf32>
    %c7_527 = arith.constant 7 : index
    %c0_528 = arith.constant 0 : index
    %c0_529 = arith.constant 0 : index
    %1057 = vector.load %arg4[%c7_527, %c0_528, %c0_529] : memref<16x16x128xf32, #tpu.memory_space<vmem>>, vector<1x16x128xf32>
    %1058 = vector.shape_cast %1057 : vector<1x16x128xf32> to vector<16x128xf32>
    %1059 = vector.broadcast %1056 : vector<1x128xf32> to vector<16x128xf32>
    %1060 = arith.mulf %1059, %1058 : vector<16x128xf32>
    %1061 = arith.subf %1055, %1060 : vector<16x128xf32>
    %1062 = vector.extract_strided_slice %1003 {offsets = [8, 0], sizes = [1, 128], strides = [1, 1]} : vector<16x128xf32> to vector<1x128xf32>
    %c8_530 = arith.constant 8 : index
    %c0_531 = arith.constant 0 : index
    %c0_532 = arith.constant 0 : index
    %1063 = vector.load %arg4[%c8_530, %c0_531, %c0_532] : memref<16x16x128xf32, #tpu.memory_space<vmem>>, vector<1x16x128xf32>
    %1064 = vector.shape_cast %1063 : vector<1x16x128xf32> to vector<16x128xf32>
    %1065 = vector.broadcast %1062 : vector<1x128xf32> to vector<16x128xf32>
    %1066 = arith.mulf %1065, %1064 : vector<16x128xf32>
    %1067 = arith.subf %1061, %1066 : vector<16x128xf32>
    %1068 = vector.extract_strided_slice %1003 {offsets = [9, 0], sizes = [1, 128], strides = [1, 1]} : vector<16x128xf32> to vector<1x128xf32>
    %c9_533 = arith.constant 9 : index
    %c0_534 = arith.constant 0 : index
    %c0_535 = arith.constant 0 : index
    %1069 = vector.load %arg4[%c9_533, %c0_534, %c0_535] : memref<16x16x128xf32, #tpu.memory_space<vmem>>, vector<1x16x128xf32>
    %1070 = vector.shape_cast %1069 : vector<1x16x128xf32> to vector<16x128xf32>
    %1071 = vector.broadcast %1068 : vector<1x128xf32> to vector<16x128xf32>
    %1072 = arith.mulf %1071, %1070 : vector<16x128xf32>
    %1073 = arith.subf %1067, %1072 : vector<16x128xf32>
    %1074 = vector.extract_strided_slice %1003 {offsets = [10, 0], sizes = [1, 128], strides = [1, 1]} : vector<16x128xf32> to vector<1x128xf32>
    %c10_536 = arith.constant 10 : index
    %c0_537 = arith.constant 0 : index
    %c0_538 = arith.constant 0 : index
    %1075 = vector.load %arg4[%c10_536, %c0_537, %c0_538] : memref<16x16x128xf32, #tpu.memory_space<vmem>>, vector<1x16x128xf32>
    %1076 = vector.shape_cast %1075 : vector<1x16x128xf32> to vector<16x128xf32>
    %1077 = vector.broadcast %1074 : vector<1x128xf32> to vector<16x128xf32>
    %1078 = arith.mulf %1077, %1076 : vector<16x128xf32>
    %1079 = arith.subf %1073, %1078 : vector<16x128xf32>
    %1080 = vector.extract_strided_slice %1003 {offsets = [11, 0], sizes = [1, 128], strides = [1, 1]} : vector<16x128xf32> to vector<1x128xf32>
    %c11_539 = arith.constant 11 : index
    %c0_540 = arith.constant 0 : index
    %c0_541 = arith.constant 0 : index
    %1081 = vector.load %arg4[%c11_539, %c0_540, %c0_541] : memref<16x16x128xf32, #tpu.memory_space<vmem>>, vector<1x16x128xf32>
    %1082 = vector.shape_cast %1081 : vector<1x16x128xf32> to vector<16x128xf32>
    %1083 = vector.broadcast %1080 : vector<1x128xf32> to vector<16x128xf32>
    %1084 = arith.mulf %1083, %1082 : vector<16x128xf32>
    %1085 = arith.subf %1079, %1084 : vector<16x128xf32>
    %1086 = vector.extract_strided_slice %1003 {offsets = [12, 0], sizes = [1, 128], strides = [1, 1]} : vector<16x128xf32> to vector<1x128xf32>
    %c12_542 = arith.constant 12 : index
    %c0_543 = arith.constant 0 : index
    %c0_544 = arith.constant 0 : index
    %1087 = vector.load %arg4[%c12_542, %c0_543, %c0_544] : memref<16x16x128xf32, #tpu.memory_space<vmem>>, vector<1x16x128xf32>
    %1088 = vector.shape_cast %1087 : vector<1x16x128xf32> to vector<16x128xf32>
    %1089 = vector.broadcast %1086 : vector<1x128xf32> to vector<16x128xf32>
    %1090 = arith.mulf %1089, %1088 : vector<16x128xf32>
    %1091 = arith.subf %1085, %1090 : vector<16x128xf32>
    %1092 = vector.extract_strided_slice %1003 {offsets = [13, 0], sizes = [1, 128], strides = [1, 1]} : vector<16x128xf32> to vector<1x128xf32>
    %c13_545 = arith.constant 13 : index
    %c0_546 = arith.constant 0 : index
    %c0_547 = arith.constant 0 : index
    %1093 = vector.load %arg4[%c13_545, %c0_546, %c0_547] : memref<16x16x128xf32, #tpu.memory_space<vmem>>, vector<1x16x128xf32>
    %1094 = vector.shape_cast %1093 : vector<1x16x128xf32> to vector<16x128xf32>
    %1095 = vector.broadcast %1092 : vector<1x128xf32> to vector<16x128xf32>
    %1096 = arith.mulf %1095, %1094 : vector<16x128xf32>
    %1097 = arith.subf %1091, %1096 : vector<16x128xf32>
    %1098 = vector.extract_strided_slice %1003 {offsets = [14, 0], sizes = [1, 128], strides = [1, 1]} : vector<16x128xf32> to vector<1x128xf32>
    %c14_548 = arith.constant 14 : index
    %c0_549 = arith.constant 0 : index
    %c0_550 = arith.constant 0 : index
    %1099 = vector.load %arg4[%c14_548, %c0_549, %c0_550] : memref<16x16x128xf32, #tpu.memory_space<vmem>>, vector<1x16x128xf32>
    %1100 = vector.shape_cast %1099 : vector<1x16x128xf32> to vector<16x128xf32>
    %1101 = vector.broadcast %1098 : vector<1x128xf32> to vector<16x128xf32>
    %1102 = arith.mulf %1101, %1100 : vector<16x128xf32>
    %1103 = arith.subf %1097, %1102 : vector<16x128xf32>
    %1104 = vector.extract_strided_slice %1003 {offsets = [15, 0], sizes = [1, 128], strides = [1, 1]} : vector<16x128xf32> to vector<1x128xf32>
    %c15_551 = arith.constant 15 : index
    %c0_552 = arith.constant 0 : index
    %c0_553 = arith.constant 0 : index
    %1105 = vector.load %arg4[%c15_551, %c0_552, %c0_553] : memref<16x16x128xf32, #tpu.memory_space<vmem>>, vector<1x16x128xf32>
    %1106 = vector.shape_cast %1105 : vector<1x16x128xf32> to vector<16x128xf32>
    %1107 = vector.broadcast %1104 : vector<1x128xf32> to vector<16x128xf32>
    %1108 = arith.mulf %1107, %1106 : vector<16x128xf32>
    %1109 = arith.subf %1103, %1108 : vector<16x128xf32>
    %c9_554 = arith.constant 9 : index
    %c0_555 = arith.constant 0 : index
    %c0_556 = arith.constant 0 : index
    %1110 = vector.load %arg6[%c9_554, %c0_555, %c0_556] : memref<16x16x128xf32, #tpu.memory_space<vmem>>, vector<1x16x128xf32>
    %1111 = vector.shape_cast %1110 : vector<1x16x128xf32> to vector<16x128xf32>
    %1112 = vector.shape_cast %1109 : vector<16x128xf32> to vector<1x16x128xf32>
    tpu.vector_store %arg6[%c9_554, %c0_555, %c0_556], %1112 {strides = array<i32>} : memref<16x16x128xf32, #tpu.memory_space<vmem>>, vector<1x16x128xf32>,
    %c10_557 = arith.constant 10 : index
    %c0_558 = arith.constant 0 : index
    %c0_559 = arith.constant 0 : index
    %1113 = vector.load %arg1[%c10_557, %c0_558, %c0_559] : memref<16x16x128xf32, #tpu.memory_space<vmem>>, vector<1x16x128xf32>
    %1114 = vector.shape_cast %1113 : vector<1x16x128xf32> to vector<16x128xf32>
    %1115 = vector.extract_strided_slice %1 {offsets = [10, 0], sizes = [1, 128], strides = [1, 1]} : vector<16x128xf32> to vector<1x128xf32>
    %1116 = arith.mulf %1114, %0 : vector<16x128xf32>
    %cst_560 = arith.constant dense<0.000000e+00> : vector<128xf32>
    %1117 = vector.multi_reduction <add>, %1116, %cst_560 [0] : vector<16x128xf32> to vector<128xf32>
    %1118 = vector.shape_cast %1117 : vector<128xf32> to vector<1x128xf32>
    %1119 = arith.addf %1115, %1118 : vector<1x128xf32>
    %c10_561 = arith.constant 10 : index
    %c0_562 = arith.constant 0 : index
    %1120 = vector.load %arg5[%c10_561, %c0_562] : memref<16x128xf32, #tpu.memory_space<vmem>>, vector<1x128xf32>
    tpu.vector_store %arg5[%c10_561, %c0_562], %1119 {strides = array<i32>} : memref<16x128xf32, #tpu.memory_space<vmem>>, vector<1x128xf32>,
    %c10_i32 = arith.constant 10 : i32
    %1121 = vector.broadcast %c10_i32 : i32 to vector<16x128xi32>
    %1122 = arith.cmpi eq, %2, %1121 : vector<16x128xi32>
    %1123 = arith.extui %1122 : vector<16x128xi1> to vector<16x128xi32>
    %1124 = arith.sitofp %1123 : vector<16x128xi32> to vector<16x128xf32>
    %1125 = vector.extract_strided_slice %1114 {offsets = [0, 0], sizes = [1, 128], strides = [1, 1]} : vector<16x128xf32> to vector<1x128xf32>
    %c0_563 = arith.constant 0 : index
    %c0_564 = arith.constant 0 : index
    %c0_565 = arith.constant 0 : index
    %1126 = vector.load %arg4[%c0_563, %c0_564, %c0_565] : memref<16x16x128xf32, #tpu.memory_space<vmem>>, vector<1x16x128xf32>
    %1127 = vector.shape_cast %1126 : vector<1x16x128xf32> to vector<16x128xf32>
    %1128 = vector.broadcast %1125 : vector<1x128xf32> to vector<16x128xf32>
    %1129 = arith.mulf %1128, %1127 : vector<16x128xf32>
    %1130 = arith.subf %1124, %1129 : vector<16x128xf32>
    %1131 = vector.extract_strided_slice %1114 {offsets = [1, 0], sizes = [1, 128], strides = [1, 1]} : vector<16x128xf32> to vector<1x128xf32>
    %c1_566 = arith.constant 1 : index
    %c0_567 = arith.constant 0 : index
    %c0_568 = arith.constant 0 : index
    %1132 = vector.load %arg4[%c1_566, %c0_567, %c0_568] : memref<16x16x128xf32, #tpu.memory_space<vmem>>, vector<1x16x128xf32>
    %1133 = vector.shape_cast %1132 : vector<1x16x128xf32> to vector<16x128xf32>
    %1134 = vector.broadcast %1131 : vector<1x128xf32> to vector<16x128xf32>
    %1135 = arith.mulf %1134, %1133 : vector<16x128xf32>
    %1136 = arith.subf %1130, %1135 : vector<16x128xf32>
    %1137 = vector.extract_strided_slice %1114 {offsets = [2, 0], sizes = [1, 128], strides = [1, 1]} : vector<16x128xf32> to vector<1x128xf32>
    %c2_569 = arith.constant 2 : index
    %c0_570 = arith.constant 0 : index
    %c0_571 = arith.constant 0 : index
    %1138 = vector.load %arg4[%c2_569, %c0_570, %c0_571] : memref<16x16x128xf32, #tpu.memory_space<vmem>>, vector<1x16x128xf32>
    %1139 = vector.shape_cast %1138 : vector<1x16x128xf32> to vector<16x128xf32>
    %1140 = vector.broadcast %1137 : vector<1x128xf32> to vector<16x128xf32>
    %1141 = arith.mulf %1140, %1139 : vector<16x128xf32>
    %1142 = arith.subf %1136, %1141 : vector<16x128xf32>
    %1143 = vector.extract_strided_slice %1114 {offsets = [3, 0], sizes = [1, 128], strides = [1, 1]} : vector<16x128xf32> to vector<1x128xf32>
    %c3_572 = arith.constant 3 : index
    %c0_573 = arith.constant 0 : index
    %c0_574 = arith.constant 0 : index
    %1144 = vector.load %arg4[%c3_572, %c0_573, %c0_574] : memref<16x16x128xf32, #tpu.memory_space<vmem>>, vector<1x16x128xf32>
    %1145 = vector.shape_cast %1144 : vector<1x16x128xf32> to vector<16x128xf32>
    %1146 = vector.broadcast %1143 : vector<1x128xf32> to vector<16x128xf32>
    %1147 = arith.mulf %1146, %1145 : vector<16x128xf32>
    %1148 = arith.subf %1142, %1147 : vector<16x128xf32>
    %1149 = vector.extract_strided_slice %1114 {offsets = [4, 0], sizes = [1, 128], strides = [1, 1]} : vector<16x128xf32> to vector<1x128xf32>
    %c4_575 = arith.constant 4 : index
    %c0_576 = arith.constant 0 : index
    %c0_577 = arith.constant 0 : index
    %1150 = vector.load %arg4[%c4_575, %c0_576, %c0_577] : memref<16x16x128xf32, #tpu.memory_space<vmem>>, vector<1x16x128xf32>
    %1151 = vector.shape_cast %1150 : vector<1x16x128xf32> to vector<16x128xf32>
    %1152 = vector.broadcast %1149 : vector<1x128xf32> to vector<16x128xf32>
    %1153 = arith.mulf %1152, %1151 : vector<16x128xf32>
    %1154 = arith.subf %1148, %1153 : vector<16x128xf32>
    %1155 = vector.extract_strided_slice %1114 {offsets = [5, 0], sizes = [1, 128], strides = [1, 1]} : vector<16x128xf32> to vector<1x128xf32>
    %c5_578 = arith.constant 5 : index
    %c0_579 = arith.constant 0 : index
    %c0_580 = arith.constant 0 : index
    %1156 = vector.load %arg4[%c5_578, %c0_579, %c0_580] : memref<16x16x128xf32, #tpu.memory_space<vmem>>, vector<1x16x128xf32>
    %1157 = vector.shape_cast %1156 : vector<1x16x128xf32> to vector<16x128xf32>
    %1158 = vector.broadcast %1155 : vector<1x128xf32> to vector<16x128xf32>
    %1159 = arith.mulf %1158, %1157 : vector<16x128xf32>
    %1160 = arith.subf %1154, %1159 : vector<16x128xf32>
    %1161 = vector.extract_strided_slice %1114 {offsets = [6, 0], sizes = [1, 128], strides = [1, 1]} : vector<16x128xf32> to vector<1x128xf32>
    %c6_581 = arith.constant 6 : index
    %c0_582 = arith.constant 0 : index
    %c0_583 = arith.constant 0 : index
    %1162 = vector.load %arg4[%c6_581, %c0_582, %c0_583] : memref<16x16x128xf32, #tpu.memory_space<vmem>>, vector<1x16x128xf32>
    %1163 = vector.shape_cast %1162 : vector<1x16x128xf32> to vector<16x128xf32>
    %1164 = vector.broadcast %1161 : vector<1x128xf32> to vector<16x128xf32>
    %1165 = arith.mulf %1164, %1163 : vector<16x128xf32>
    %1166 = arith.subf %1160, %1165 : vector<16x128xf32>
    %1167 = vector.extract_strided_slice %1114 {offsets = [7, 0], sizes = [1, 128], strides = [1, 1]} : vector<16x128xf32> to vector<1x128xf32>
    %c7_584 = arith.constant 7 : index
    %c0_585 = arith.constant 0 : index
    %c0_586 = arith.constant 0 : index
    %1168 = vector.load %arg4[%c7_584, %c0_585, %c0_586] : memref<16x16x128xf32, #tpu.memory_space<vmem>>, vector<1x16x128xf32>
    %1169 = vector.shape_cast %1168 : vector<1x16x128xf32> to vector<16x128xf32>
    %1170 = vector.broadcast %1167 : vector<1x128xf32> to vector<16x128xf32>
    %1171 = arith.mulf %1170, %1169 : vector<16x128xf32>
    %1172 = arith.subf %1166, %1171 : vector<16x128xf32>
    %1173 = vector.extract_strided_slice %1114 {offsets = [8, 0], sizes = [1, 128], strides = [1, 1]} : vector<16x128xf32> to vector<1x128xf32>
    %c8_587 = arith.constant 8 : index
    %c0_588 = arith.constant 0 : index
    %c0_589 = arith.constant 0 : index
    %1174 = vector.load %arg4[%c8_587, %c0_588, %c0_589] : memref<16x16x128xf32, #tpu.memory_space<vmem>>, vector<1x16x128xf32>
    %1175 = vector.shape_cast %1174 : vector<1x16x128xf32> to vector<16x128xf32>
    %1176 = vector.broadcast %1173 : vector<1x128xf32> to vector<16x128xf32>
    %1177 = arith.mulf %1176, %1175 : vector<16x128xf32>
    %1178 = arith.subf %1172, %1177 : vector<16x128xf32>
    %1179 = vector.extract_strided_slice %1114 {offsets = [9, 0], sizes = [1, 128], strides = [1, 1]} : vector<16x128xf32> to vector<1x128xf32>
    %c9_590 = arith.constant 9 : index
    %c0_591 = arith.constant 0 : index
    %c0_592 = arith.constant 0 : index
    %1180 = vector.load %arg4[%c9_590, %c0_591, %c0_592] : memref<16x16x128xf32, #tpu.memory_space<vmem>>, vector<1x16x128xf32>
    %1181 = vector.shape_cast %1180 : vector<1x16x128xf32> to vector<16x128xf32>
    %1182 = vector.broadcast %1179 : vector<1x128xf32> to vector<16x128xf32>
    %1183 = arith.mulf %1182, %1181 : vector<16x128xf32>
    %1184 = arith.subf %1178, %1183 : vector<16x128xf32>
    %1185 = vector.extract_strided_slice %1114 {offsets = [10, 0], sizes = [1, 128], strides = [1, 1]} : vector<16x128xf32> to vector<1x128xf32>
    %c10_593 = arith.constant 10 : index
    %c0_594 = arith.constant 0 : index
    %c0_595 = arith.constant 0 : index
    %1186 = vector.load %arg4[%c10_593, %c0_594, %c0_595] : memref<16x16x128xf32, #tpu.memory_space<vmem>>, vector<1x16x128xf32>
    %1187 = vector.shape_cast %1186 : vector<1x16x128xf32> to vector<16x128xf32>
    %1188 = vector.broadcast %1185 : vector<1x128xf32> to vector<16x128xf32>
    %1189 = arith.mulf %1188, %1187 : vector<16x128xf32>
    %1190 = arith.subf %1184, %1189 : vector<16x128xf32>
    %1191 = vector.extract_strided_slice %1114 {offsets = [11, 0], sizes = [1, 128], strides = [1, 1]} : vector<16x128xf32> to vector<1x128xf32>
    %c11_596 = arith.constant 11 : index
    %c0_597 = arith.constant 0 : index
    %c0_598 = arith.constant 0 : index
    %1192 = vector.load %arg4[%c11_596, %c0_597, %c0_598] : memref<16x16x128xf32, #tpu.memory_space<vmem>>, vector<1x16x128xf32>
    %1193 = vector.shape_cast %1192 : vector<1x16x128xf32> to vector<16x128xf32>
    %1194 = vector.broadcast %1191 : vector<1x128xf32> to vector<16x128xf32>
    %1195 = arith.mulf %1194, %1193 : vector<16x128xf32>
    %1196 = arith.subf %1190, %1195 : vector<16x128xf32>
    %1197 = vector.extract_strided_slice %1114 {offsets = [12, 0], sizes = [1, 128], strides = [1, 1]} : vector<16x128xf32> to vector<1x128xf32>
    %c12_599 = arith.constant 12 : index
    %c0_600 = arith.constant 0 : index
    %c0_601 = arith.constant 0 : index
    %1198 = vector.load %arg4[%c12_599, %c0_600, %c0_601] : memref<16x16x128xf32, #tpu.memory_space<vmem>>, vector<1x16x128xf32>
    %1199 = vector.shape_cast %1198 : vector<1x16x128xf32> to vector<16x128xf32>
    %1200 = vector.broadcast %1197 : vector<1x128xf32> to vector<16x128xf32>
    %1201 = arith.mulf %1200, %1199 : vector<16x128xf32>
    %1202 = arith.subf %1196, %1201 : vector<16x128xf32>
    %1203 = vector.extract_strided_slice %1114 {offsets = [13, 0], sizes = [1, 128], strides = [1, 1]} : vector<16x128xf32> to vector<1x128xf32>
    %c13_602 = arith.constant 13 : index
    %c0_603 = arith.constant 0 : index
    %c0_604 = arith.constant 0 : index
    %1204 = vector.load %arg4[%c13_602, %c0_603, %c0_604] : memref<16x16x128xf32, #tpu.memory_space<vmem>>, vector<1x16x128xf32>
    %1205 = vector.shape_cast %1204 : vector<1x16x128xf32> to vector<16x128xf32>
    %1206 = vector.broadcast %1203 : vector<1x128xf32> to vector<16x128xf32>
    %1207 = arith.mulf %1206, %1205 : vector<16x128xf32>
    %1208 = arith.subf %1202, %1207 : vector<16x128xf32>
    %1209 = vector.extract_strided_slice %1114 {offsets = [14, 0], sizes = [1, 128], strides = [1, 1]} : vector<16x128xf32> to vector<1x128xf32>
    %c14_605 = arith.constant 14 : index
    %c0_606 = arith.constant 0 : index
    %c0_607 = arith.constant 0 : index
    %1210 = vector.load %arg4[%c14_605, %c0_606, %c0_607] : memref<16x16x128xf32, #tpu.memory_space<vmem>>, vector<1x16x128xf32>
    %1211 = vector.shape_cast %1210 : vector<1x16x128xf32> to vector<16x128xf32>
    %1212 = vector.broadcast %1209 : vector<1x128xf32> to vector<16x128xf32>
    %1213 = arith.mulf %1212, %1211 : vector<16x128xf32>
    %1214 = arith.subf %1208, %1213 : vector<16x128xf32>
    %1215 = vector.extract_strided_slice %1114 {offsets = [15, 0], sizes = [1, 128], strides = [1, 1]} : vector<16x128xf32> to vector<1x128xf32>
    %c15_608 = arith.constant 15 : index
    %c0_609 = arith.constant 0 : index
    %c0_610 = arith.constant 0 : index
    %1216 = vector.load %arg4[%c15_608, %c0_609, %c0_610] : memref<16x16x128xf32, #tpu.memory_space<vmem>>, vector<1x16x128xf32>
    %1217 = vector.shape_cast %1216 : vector<1x16x128xf32> to vector<16x128xf32>
    %1218 = vector.broadcast %1215 : vector<1x128xf32> to vector<16x128xf32>
    %1219 = arith.mulf %1218, %1217 : vector<16x128xf32>
    %1220 = arith.subf %1214, %1219 : vector<16x128xf32>
    %c10_611 = arith.constant 10 : index
    %c0_612 = arith.constant 0 : index
    %c0_613 = arith.constant 0 : index
    %1221 = vector.load %arg6[%c10_611, %c0_612, %c0_613] : memref<16x16x128xf32, #tpu.memory_space<vmem>>, vector<1x16x128xf32>
    %1222 = vector.shape_cast %1221 : vector<1x16x128xf32> to vector<16x128xf32>
    %1223 = vector.shape_cast %1220 : vector<16x128xf32> to vector<1x16x128xf32>
    tpu.vector_store %arg6[%c10_611, %c0_612, %c0_613], %1223 {strides = array<i32>} : memref<16x16x128xf32, #tpu.memory_space<vmem>>, vector<1x16x128xf32>,
    %c11_614 = arith.constant 11 : index
    %c0_615 = arith.constant 0 : index
    %c0_616 = arith.constant 0 : index
    %1224 = vector.load %arg1[%c11_614, %c0_615, %c0_616] : memref<16x16x128xf32, #tpu.memory_space<vmem>>, vector<1x16x128xf32>
    %1225 = vector.shape_cast %1224 : vector<1x16x128xf32> to vector<16x128xf32>
    %1226 = vector.extract_strided_slice %1 {offsets = [11, 0], sizes = [1, 128], strides = [1, 1]} : vector<16x128xf32> to vector<1x128xf32>
    %1227 = arith.mulf %1225, %0 : vector<16x128xf32>
    %cst_617 = arith.constant dense<0.000000e+00> : vector<128xf32>
    %1228 = vector.multi_reduction <add>, %1227, %cst_617 [0] : vector<16x128xf32> to vector<128xf32>
    %1229 = vector.shape_cast %1228 : vector<128xf32> to vector<1x128xf32>
    %1230 = arith.addf %1226, %1229 : vector<1x128xf32>
    %c11_618 = arith.constant 11 : index
    %c0_619 = arith.constant 0 : index
    %1231 = vector.load %arg5[%c11_618, %c0_619] : memref<16x128xf32, #tpu.memory_space<vmem>>, vector<1x128xf32>
    tpu.vector_store %arg5[%c11_618, %c0_619], %1230 {strides = array<i32>} : memref<16x128xf32, #tpu.memory_space<vmem>>, vector<1x128xf32>,
    %c11_i32 = arith.constant 11 : i32
    %1232 = vector.broadcast %c11_i32 : i32 to vector<16x128xi32>
    %1233 = arith.cmpi eq, %2, %1232 : vector<16x128xi32>
    %1234 = arith.extui %1233 : vector<16x128xi1> to vector<16x128xi32>
    %1235 = arith.sitofp %1234 : vector<16x128xi32> to vector<16x128xf32>
    %1236 = vector.extract_strided_slice %1225 {offsets = [0, 0], sizes = [1, 128], strides = [1, 1]} : vector<16x128xf32> to vector<1x128xf32>
    %c0_620 = arith.constant 0 : index
    %c0_621 = arith.constant 0 : index
    %c0_622 = arith.constant 0 : index
    %1237 = vector.load %arg4[%c0_620, %c0_621, %c0_622] : memref<16x16x128xf32, #tpu.memory_space<vmem>>, vector<1x16x128xf32>
    %1238 = vector.shape_cast %1237 : vector<1x16x128xf32> to vector<16x128xf32>
    %1239 = vector.broadcast %1236 : vector<1x128xf32> to vector<16x128xf32>
    %1240 = arith.mulf %1239, %1238 : vector<16x128xf32>
    %1241 = arith.subf %1235, %1240 : vector<16x128xf32>
    %1242 = vector.extract_strided_slice %1225 {offsets = [1, 0], sizes = [1, 128], strides = [1, 1]} : vector<16x128xf32> to vector<1x128xf32>
    %c1_623 = arith.constant 1 : index
    %c0_624 = arith.constant 0 : index
    %c0_625 = arith.constant 0 : index
    %1243 = vector.load %arg4[%c1_623, %c0_624, %c0_625] : memref<16x16x128xf32, #tpu.memory_space<vmem>>, vector<1x16x128xf32>
    %1244 = vector.shape_cast %1243 : vector<1x16x128xf32> to vector<16x128xf32>
    %1245 = vector.broadcast %1242 : vector<1x128xf32> to vector<16x128xf32>
    %1246 = arith.mulf %1245, %1244 : vector<16x128xf32>
    %1247 = arith.subf %1241, %1246 : vector<16x128xf32>
    %1248 = vector.extract_strided_slice %1225 {offsets = [2, 0], sizes = [1, 128], strides = [1, 1]} : vector<16x128xf32> to vector<1x128xf32>
    %c2_626 = arith.constant 2 : index
    %c0_627 = arith.constant 0 : index
    %c0_628 = arith.constant 0 : index
    %1249 = vector.load %arg4[%c2_626, %c0_627, %c0_628] : memref<16x16x128xf32, #tpu.memory_space<vmem>>, vector<1x16x128xf32>
    %1250 = vector.shape_cast %1249 : vector<1x16x128xf32> to vector<16x128xf32>
    %1251 = vector.broadcast %1248 : vector<1x128xf32> to vector<16x128xf32>
    %1252 = arith.mulf %1251, %1250 : vector<16x128xf32>
    %1253 = arith.subf %1247, %1252 : vector<16x128xf32>
    %1254 = vector.extract_strided_slice %1225 {offsets = [3, 0], sizes = [1, 128], strides = [1, 1]} : vector<16x128xf32> to vector<1x128xf32>
    %c3_629 = arith.constant 3 : index
    %c0_630 = arith.constant 0 : index
    %c0_631 = arith.constant 0 : index
    %1255 = vector.load %arg4[%c3_629, %c0_630, %c0_631] : memref<16x16x128xf32, #tpu.memory_space<vmem>>, vector<1x16x128xf32>
    %1256 = vector.shape_cast %1255 : vector<1x16x128xf32> to vector<16x128xf32>
    %1257 = vector.broadcast %1254 : vector<1x128xf32> to vector<16x128xf32>
    %1258 = arith.mulf %1257, %1256 : vector<16x128xf32>
    %1259 = arith.subf %1253, %1258 : vector<16x128xf32>
    %1260 = vector.extract_strided_slice %1225 {offsets = [4, 0], sizes = [1, 128], strides = [1, 1]} : vector<16x128xf32> to vector<1x128xf32>
    %c4_632 = arith.constant 4 : index
    %c0_633 = arith.constant 0 : index
    %c0_634 = arith.constant 0 : index
    %1261 = vector.load %arg4[%c4_632, %c0_633, %c0_634] : memref<16x16x128xf32, #tpu.memory_space<vmem>>, vector<1x16x128xf32>
    %1262 = vector.shape_cast %1261 : vector<1x16x128xf32> to vector<16x128xf32>
    %1263 = vector.broadcast %1260 : vector<1x128xf32> to vector<16x128xf32>
    %1264 = arith.mulf %1263, %1262 : vector<16x128xf32>
    %1265 = arith.subf %1259, %1264 : vector<16x128xf32>
    %1266 = vector.extract_strided_slice %1225 {offsets = [5, 0], sizes = [1, 128], strides = [1, 1]} : vector<16x128xf32> to vector<1x128xf32>
    %c5_635 = arith.constant 5 : index
    %c0_636 = arith.constant 0 : index
    %c0_637 = arith.constant 0 : index
    %1267 = vector.load %arg4[%c5_635, %c0_636, %c0_637] : memref<16x16x128xf32, #tpu.memory_space<vmem>>, vector<1x16x128xf32>
    %1268 = vector.shape_cast %1267 : vector<1x16x128xf32> to vector<16x128xf32>
    %1269 = vector.broadcast %1266 : vector<1x128xf32> to vector<16x128xf32>
    %1270 = arith.mulf %1269, %1268 : vector<16x128xf32>
    %1271 = arith.subf %1265, %1270 : vector<16x128xf32>
    %1272 = vector.extract_strided_slice %1225 {offsets = [6, 0], sizes = [1, 128], strides = [1, 1]} : vector<16x128xf32> to vector<1x128xf32>
    %c6_638 = arith.constant 6 : index
    %c0_639 = arith.constant 0 : index
    %c0_640 = arith.constant 0 : index
    %1273 = vector.load %arg4[%c6_638, %c0_639, %c0_640] : memref<16x16x128xf32, #tpu.memory_space<vmem>>, vector<1x16x128xf32>
    %1274 = vector.shape_cast %1273 : vector<1x16x128xf32> to vector<16x128xf32>
    %1275 = vector.broadcast %1272 : vector<1x128xf32> to vector<16x128xf32>
    %1276 = arith.mulf %1275, %1274 : vector<16x128xf32>
    %1277 = arith.subf %1271, %1276 : vector<16x128xf32>
    %1278 = vector.extract_strided_slice %1225 {offsets = [7, 0], sizes = [1, 128], strides = [1, 1]} : vector<16x128xf32> to vector<1x128xf32>
    %c7_641 = arith.constant 7 : index
    %c0_642 = arith.constant 0 : index
    %c0_643 = arith.constant 0 : index
    %1279 = vector.load %arg4[%c7_641, %c0_642, %c0_643] : memref<16x16x128xf32, #tpu.memory_space<vmem>>, vector<1x16x128xf32>
    %1280 = vector.shape_cast %1279 : vector<1x16x128xf32> to vector<16x128xf32>
    %1281 = vector.broadcast %1278 : vector<1x128xf32> to vector<16x128xf32>
    %1282 = arith.mulf %1281, %1280 : vector<16x128xf32>
    %1283 = arith.subf %1277, %1282 : vector<16x128xf32>
    %1284 = vector.extract_strided_slice %1225 {offsets = [8, 0], sizes = [1, 128], strides = [1, 1]} : vector<16x128xf32> to vector<1x128xf32>
    %c8_644 = arith.constant 8 : index
    %c0_645 = arith.constant 0 : index
    %c0_646 = arith.constant 0 : index
    %1285 = vector.load %arg4[%c8_644, %c0_645, %c0_646] : memref<16x16x128xf32, #tpu.memory_space<vmem>>, vector<1x16x128xf32>
    %1286 = vector.shape_cast %1285 : vector<1x16x128xf32> to vector<16x128xf32>
    %1287 = vector.broadcast %1284 : vector<1x128xf32> to vector<16x128xf32>
    %1288 = arith.mulf %1287, %1286 : vector<16x128xf32>
    %1289 = arith.subf %1283, %1288 : vector<16x128xf32>
    %1290 = vector.extract_strided_slice %1225 {offsets = [9, 0], sizes = [1, 128], strides = [1, 1]} : vector<16x128xf32> to vector<1x128xf32>
    %c9_647 = arith.constant 9 : index
    %c0_648 = arith.constant 0 : index
    %c0_649 = arith.constant 0 : index
    %1291 = vector.load %arg4[%c9_647, %c0_648, %c0_649] : memref<16x16x128xf32, #tpu.memory_space<vmem>>, vector<1x16x128xf32>
    %1292 = vector.shape_cast %1291 : vector<1x16x128xf32> to vector<16x128xf32>
    %1293 = vector.broadcast %1290 : vector<1x128xf32> to vector<16x128xf32>
    %1294 = arith.mulf %1293, %1292 : vector<16x128xf32>
    %1295 = arith.subf %1289, %1294 : vector<16x128xf32>
    %1296 = vector.extract_strided_slice %1225 {offsets = [10, 0], sizes = [1, 128], strides = [1, 1]} : vector<16x128xf32> to vector<1x128xf32>
    %c10_650 = arith.constant 10 : index
    %c0_651 = arith.constant 0 : index
    %c0_652 = arith.constant 0 : index
    %1297 = vector.load %arg4[%c10_650, %c0_651, %c0_652] : memref<16x16x128xf32, #tpu.memory_space<vmem>>, vector<1x16x128xf32>
    %1298 = vector.shape_cast %1297 : vector<1x16x128xf32> to vector<16x128xf32>
    %1299 = vector.broadcast %1296 : vector<1x128xf32> to vector<16x128xf32>
    %1300 = arith.mulf %1299, %1298 : vector<16x128xf32>
    %1301 = arith.subf %1295, %1300 : vector<16x128xf32>
    %1302 = vector.extract_strided_slice %1225 {offsets = [11, 0], sizes = [1, 128], strides = [1, 1]} : vector<16x128xf32> to vector<1x128xf32>
    %c11_653 = arith.constant 11 : index
    %c0_654 = arith.constant 0 : index
    %c0_655 = arith.constant 0 : index
    %1303 = vector.load %arg4[%c11_653, %c0_654, %c0_655] : memref<16x16x128xf32, #tpu.memory_space<vmem>>, vector<1x16x128xf32>
    %1304 = vector.shape_cast %1303 : vector<1x16x128xf32> to vector<16x128xf32>
    %1305 = vector.broadcast %1302 : vector<1x128xf32> to vector<16x128xf32>
    %1306 = arith.mulf %1305, %1304 : vector<16x128xf32>
    %1307 = arith.subf %1301, %1306 : vector<16x128xf32>
    %1308 = vector.extract_strided_slice %1225 {offsets = [12, 0], sizes = [1, 128], strides = [1, 1]} : vector<16x128xf32> to vector<1x128xf32>
    %c12_656 = arith.constant 12 : index
    %c0_657 = arith.constant 0 : index
    %c0_658 = arith.constant 0 : index
    %1309 = vector.load %arg4[%c12_656, %c0_657, %c0_658] : memref<16x16x128xf32, #tpu.memory_space<vmem>>, vector<1x16x128xf32>
    %1310 = vector.shape_cast %1309 : vector<1x16x128xf32> to vector<16x128xf32>
    %1311 = vector.broadcast %1308 : vector<1x128xf32> to vector<16x128xf32>
    %1312 = arith.mulf %1311, %1310 : vector<16x128xf32>
    %1313 = arith.subf %1307, %1312 : vector<16x128xf32>
    %1314 = vector.extract_strided_slice %1225 {offsets = [13, 0], sizes = [1, 128], strides = [1, 1]} : vector<16x128xf32> to vector<1x128xf32>
    %c13_659 = arith.constant 13 : index
    %c0_660 = arith.constant 0 : index
    %c0_661 = arith.constant 0 : index
    %1315 = vector.load %arg4[%c13_659, %c0_660, %c0_661] : memref<16x16x128xf32, #tpu.memory_space<vmem>>, vector<1x16x128xf32>
    %1316 = vector.shape_cast %1315 : vector<1x16x128xf32> to vector<16x128xf32>
    %1317 = vector.broadcast %1314 : vector<1x128xf32> to vector<16x128xf32>
    %1318 = arith.mulf %1317, %1316 : vector<16x128xf32>
    %1319 = arith.subf %1313, %1318 : vector<16x128xf32>
    %1320 = vector.extract_strided_slice %1225 {offsets = [14, 0], sizes = [1, 128], strides = [1, 1]} : vector<16x128xf32> to vector<1x128xf32>
    %c14_662 = arith.constant 14 : index
    %c0_663 = arith.constant 0 : index
    %c0_664 = arith.constant 0 : index
    %1321 = vector.load %arg4[%c14_662, %c0_663, %c0_664] : memref<16x16x128xf32, #tpu.memory_space<vmem>>, vector<1x16x128xf32>
    %1322 = vector.shape_cast %1321 : vector<1x16x128xf32> to vector<16x128xf32>
    %1323 = vector.broadcast %1320 : vector<1x128xf32> to vector<16x128xf32>
    %1324 = arith.mulf %1323, %1322 : vector<16x128xf32>
    %1325 = arith.subf %1319, %1324 : vector<16x128xf32>
    %1326 = vector.extract_strided_slice %1225 {offsets = [15, 0], sizes = [1, 128], strides = [1, 1]} : vector<16x128xf32> to vector<1x128xf32>
    %c15_665 = arith.constant 15 : index
    %c0_666 = arith.constant 0 : index
    %c0_667 = arith.constant 0 : index
    %1327 = vector.load %arg4[%c15_665, %c0_666, %c0_667] : memref<16x16x128xf32, #tpu.memory_space<vmem>>, vector<1x16x128xf32>
    %1328 = vector.shape_cast %1327 : vector<1x16x128xf32> to vector<16x128xf32>
    %1329 = vector.broadcast %1326 : vector<1x128xf32> to vector<16x128xf32>
    %1330 = arith.mulf %1329, %1328 : vector<16x128xf32>
    %1331 = arith.subf %1325, %1330 : vector<16x128xf32>
    %c11_668 = arith.constant 11 : index
    %c0_669 = arith.constant 0 : index
    %c0_670 = arith.constant 0 : index
    %1332 = vector.load %arg6[%c11_668, %c0_669, %c0_670] : memref<16x16x128xf32, #tpu.memory_space<vmem>>, vector<1x16x128xf32>
    %1333 = vector.shape_cast %1332 : vector<1x16x128xf32> to vector<16x128xf32>
    %1334 = vector.shape_cast %1331 : vector<16x128xf32> to vector<1x16x128xf32>
    tpu.vector_store %arg6[%c11_668, %c0_669, %c0_670], %1334 {strides = array<i32>} : memref<16x16x128xf32, #tpu.memory_space<vmem>>, vector<1x16x128xf32>,
    %c12_671 = arith.constant 12 : index
    %c0_672 = arith.constant 0 : index
    %c0_673 = arith.constant 0 : index
    %1335 = vector.load %arg1[%c12_671, %c0_672, %c0_673] : memref<16x16x128xf32, #tpu.memory_space<vmem>>, vector<1x16x128xf32>
    %1336 = vector.shape_cast %1335 : vector<1x16x128xf32> to vector<16x128xf32>
    %1337 = vector.extract_strided_slice %1 {offsets = [12, 0], sizes = [1, 128], strides = [1, 1]} : vector<16x128xf32> to vector<1x128xf32>
    %1338 = arith.mulf %1336, %0 : vector<16x128xf32>
    %cst_674 = arith.constant dense<0.000000e+00> : vector<128xf32>
    %1339 = vector.multi_reduction <add>, %1338, %cst_674 [0] : vector<16x128xf32> to vector<128xf32>
    %1340 = vector.shape_cast %1339 : vector<128xf32> to vector<1x128xf32>
    %1341 = arith.addf %1337, %1340 : vector<1x128xf32>
    %c12_675 = arith.constant 12 : index
    %c0_676 = arith.constant 0 : index
    %1342 = vector.load %arg5[%c12_675, %c0_676] : memref<16x128xf32, #tpu.memory_space<vmem>>, vector<1x128xf32>
    tpu.vector_store %arg5[%c12_675, %c0_676], %1341 {strides = array<i32>} : memref<16x128xf32, #tpu.memory_space<vmem>>, vector<1x128xf32>,
    %c12_i32 = arith.constant 12 : i32
    %1343 = vector.broadcast %c12_i32 : i32 to vector<16x128xi32>
    %1344 = arith.cmpi eq, %2, %1343 : vector<16x128xi32>
    %1345 = arith.extui %1344 : vector<16x128xi1> to vector<16x128xi32>
    %1346 = arith.sitofp %1345 : vector<16x128xi32> to vector<16x128xf32>
    %1347 = vector.extract_strided_slice %1336 {offsets = [0, 0], sizes = [1, 128], strides = [1, 1]} : vector<16x128xf32> to vector<1x128xf32>
    %c0_677 = arith.constant 0 : index
    %c0_678 = arith.constant 0 : index
    %c0_679 = arith.constant 0 : index
    %1348 = vector.load %arg4[%c0_677, %c0_678, %c0_679] : memref<16x16x128xf32, #tpu.memory_space<vmem>>, vector<1x16x128xf32>
    %1349 = vector.shape_cast %1348 : vector<1x16x128xf32> to vector<16x128xf32>
    %1350 = vector.broadcast %1347 : vector<1x128xf32> to vector<16x128xf32>
    %1351 = arith.mulf %1350, %1349 : vector<16x128xf32>
    %1352 = arith.subf %1346, %1351 : vector<16x128xf32>
    %1353 = vector.extract_strided_slice %1336 {offsets = [1, 0], sizes = [1, 128], strides = [1, 1]} : vector<16x128xf32> to vector<1x128xf32>
    %c1_680 = arith.constant 1 : index
    %c0_681 = arith.constant 0 : index
    %c0_682 = arith.constant 0 : index
    %1354 = vector.load %arg4[%c1_680, %c0_681, %c0_682] : memref<16x16x128xf32, #tpu.memory_space<vmem>>, vector<1x16x128xf32>
    %1355 = vector.shape_cast %1354 : vector<1x16x128xf32> to vector<16x128xf32>
    %1356 = vector.broadcast %1353 : vector<1x128xf32> to vector<16x128xf32>
    %1357 = arith.mulf %1356, %1355 : vector<16x128xf32>
    %1358 = arith.subf %1352, %1357 : vector<16x128xf32>
    %1359 = vector.extract_strided_slice %1336 {offsets = [2, 0], sizes = [1, 128], strides = [1, 1]} : vector<16x128xf32> to vector<1x128xf32>
    %c2_683 = arith.constant 2 : index
    %c0_684 = arith.constant 0 : index
    %c0_685 = arith.constant 0 : index
    %1360 = vector.load %arg4[%c2_683, %c0_684, %c0_685] : memref<16x16x128xf32, #tpu.memory_space<vmem>>, vector<1x16x128xf32>
    %1361 = vector.shape_cast %1360 : vector<1x16x128xf32> to vector<16x128xf32>
    %1362 = vector.broadcast %1359 : vector<1x128xf32> to vector<16x128xf32>
    %1363 = arith.mulf %1362, %1361 : vector<16x128xf32>
    %1364 = arith.subf %1358, %1363 : vector<16x128xf32>
    %1365 = vector.extract_strided_slice %1336 {offsets = [3, 0], sizes = [1, 128], strides = [1, 1]} : vector<16x128xf32> to vector<1x128xf32>
    %c3_686 = arith.constant 3 : index
    %c0_687 = arith.constant 0 : index
    %c0_688 = arith.constant 0 : index
    %1366 = vector.load %arg4[%c3_686, %c0_687, %c0_688] : memref<16x16x128xf32, #tpu.memory_space<vmem>>, vector<1x16x128xf32>
    %1367 = vector.shape_cast %1366 : vector<1x16x128xf32> to vector<16x128xf32>
    %1368 = vector.broadcast %1365 : vector<1x128xf32> to vector<16x128xf32>
    %1369 = arith.mulf %1368, %1367 : vector<16x128xf32>
    %1370 = arith.subf %1364, %1369 : vector<16x128xf32>
    %1371 = vector.extract_strided_slice %1336 {offsets = [4, 0], sizes = [1, 128], strides = [1, 1]} : vector<16x128xf32> to vector<1x128xf32>
    %c4_689 = arith.constant 4 : index
    %c0_690 = arith.constant 0 : index
    %c0_691 = arith.constant 0 : index
    %1372 = vector.load %arg4[%c4_689, %c0_690, %c0_691] : memref<16x16x128xf32, #tpu.memory_space<vmem>>, vector<1x16x128xf32>
    %1373 = vector.shape_cast %1372 : vector<1x16x128xf32> to vector<16x128xf32>
    %1374 = vector.broadcast %1371 : vector<1x128xf32> to vector<16x128xf32>
    %1375 = arith.mulf %1374, %1373 : vector<16x128xf32>
    %1376 = arith.subf %1370, %1375 : vector<16x128xf32>
    %1377 = vector.extract_strided_slice %1336 {offsets = [5, 0], sizes = [1, 128], strides = [1, 1]} : vector<16x128xf32> to vector<1x128xf32>
    %c5_692 = arith.constant 5 : index
    %c0_693 = arith.constant 0 : index
    %c0_694 = arith.constant 0 : index
    %1378 = vector.load %arg4[%c5_692, %c0_693, %c0_694] : memref<16x16x128xf32, #tpu.memory_space<vmem>>, vector<1x16x128xf32>
    %1379 = vector.shape_cast %1378 : vector<1x16x128xf32> to vector<16x128xf32>
    %1380 = vector.broadcast %1377 : vector<1x128xf32> to vector<16x128xf32>
    %1381 = arith.mulf %1380, %1379 : vector<16x128xf32>
    %1382 = arith.subf %1376, %1381 : vector<16x128xf32>
    %1383 = vector.extract_strided_slice %1336 {offsets = [6, 0], sizes = [1, 128], strides = [1, 1]} : vector<16x128xf32> to vector<1x128xf32>
    %c6_695 = arith.constant 6 : index
    %c0_696 = arith.constant 0 : index
    %c0_697 = arith.constant 0 : index
    %1384 = vector.load %arg4[%c6_695, %c0_696, %c0_697] : memref<16x16x128xf32, #tpu.memory_space<vmem>>, vector<1x16x128xf32>
    %1385 = vector.shape_cast %1384 : vector<1x16x128xf32> to vector<16x128xf32>
    %1386 = vector.broadcast %1383 : vector<1x128xf32> to vector<16x128xf32>
    %1387 = arith.mulf %1386, %1385 : vector<16x128xf32>
    %1388 = arith.subf %1382, %1387 : vector<16x128xf32>
    %1389 = vector.extract_strided_slice %1336 {offsets = [7, 0], sizes = [1, 128], strides = [1, 1]} : vector<16x128xf32> to vector<1x128xf32>
    %c7_698 = arith.constant 7 : index
    %c0_699 = arith.constant 0 : index
    %c0_700 = arith.constant 0 : index
    %1390 = vector.load %arg4[%c7_698, %c0_699, %c0_700] : memref<16x16x128xf32, #tpu.memory_space<vmem>>, vector<1x16x128xf32>
    %1391 = vector.shape_cast %1390 : vector<1x16x128xf32> to vector<16x128xf32>
    %1392 = vector.broadcast %1389 : vector<1x128xf32> to vector<16x128xf32>
    %1393 = arith.mulf %1392, %1391 : vector<16x128xf32>
    %1394 = arith.subf %1388, %1393 : vector<16x128xf32>
    %1395 = vector.extract_strided_slice %1336 {offsets = [8, 0], sizes = [1, 128], strides = [1, 1]} : vector<16x128xf32> to vector<1x128xf32>
    %c8_701 = arith.constant 8 : index
    %c0_702 = arith.constant 0 : index
    %c0_703 = arith.constant 0 : index
    %1396 = vector.load %arg4[%c8_701, %c0_702, %c0_703] : memref<16x16x128xf32, #tpu.memory_space<vmem>>, vector<1x16x128xf32>
    %1397 = vector.shape_cast %1396 : vector<1x16x128xf32> to vector<16x128xf32>
    %1398 = vector.broadcast %1395 : vector<1x128xf32> to vector<16x128xf32>
    %1399 = arith.mulf %1398, %1397 : vector<16x128xf32>
    %1400 = arith.subf %1394, %1399 : vector<16x128xf32>
    %1401 = vector.extract_strided_slice %1336 {offsets = [9, 0], sizes = [1, 128], strides = [1, 1]} : vector<16x128xf32> to vector<1x128xf32>
    %c9_704 = arith.constant 9 : index
    %c0_705 = arith.constant 0 : index
    %c0_706 = arith.constant 0 : index
    %1402 = vector.load %arg4[%c9_704, %c0_705, %c0_706] : memref<16x16x128xf32, #tpu.memory_space<vmem>>, vector<1x16x128xf32>
    %1403 = vector.shape_cast %1402 : vector<1x16x128xf32> to vector<16x128xf32>
    %1404 = vector.broadcast %1401 : vector<1x128xf32> to vector<16x128xf32>
    %1405 = arith.mulf %1404, %1403 : vector<16x128xf32>
    %1406 = arith.subf %1400, %1405 : vector<16x128xf32>
    %1407 = vector.extract_strided_slice %1336 {offsets = [10, 0], sizes = [1, 128], strides = [1, 1]} : vector<16x128xf32> to vector<1x128xf32>
    %c10_707 = arith.constant 10 : index
    %c0_708 = arith.constant 0 : index
    %c0_709 = arith.constant 0 : index
    %1408 = vector.load %arg4[%c10_707, %c0_708, %c0_709] : memref<16x16x128xf32, #tpu.memory_space<vmem>>, vector<1x16x128xf32>
    %1409 = vector.shape_cast %1408 : vector<1x16x128xf32> to vector<16x128xf32>
    %1410 = vector.broadcast %1407 : vector<1x128xf32> to vector<16x128xf32>
    %1411 = arith.mulf %1410, %1409 : vector<16x128xf32>
    %1412 = arith.subf %1406, %1411 : vector<16x128xf32>
    %1413 = vector.extract_strided_slice %1336 {offsets = [11, 0], sizes = [1, 128], strides = [1, 1]} : vector<16x128xf32> to vector<1x128xf32>
    %c11_710 = arith.constant 11 : index
    %c0_711 = arith.constant 0 : index
    %c0_712 = arith.constant 0 : index
    %1414 = vector.load %arg4[%c11_710, %c0_711, %c0_712] : memref<16x16x128xf32, #tpu.memory_space<vmem>>, vector<1x16x128xf32>
    %1415 = vector.shape_cast %1414 : vector<1x16x128xf32> to vector<16x128xf32>
    %1416 = vector.broadcast %1413 : vector<1x128xf32> to vector<16x128xf32>
    %1417 = arith.mulf %1416, %1415 : vector<16x128xf32>
    %1418 = arith.subf %1412, %1417 : vector<16x128xf32>
    %1419 = vector.extract_strided_slice %1336 {offsets = [12, 0], sizes = [1, 128], strides = [1, 1]} : vector<16x128xf32> to vector<1x128xf32>
    %c12_713 = arith.constant 12 : index
    %c0_714 = arith.constant 0 : index
    %c0_715 = arith.constant 0 : index
    %1420 = vector.load %arg4[%c12_713, %c0_714, %c0_715] : memref<16x16x128xf32, #tpu.memory_space<vmem>>, vector<1x16x128xf32>
    %1421 = vector.shape_cast %1420 : vector<1x16x128xf32> to vector<16x128xf32>
    %1422 = vector.broadcast %1419 : vector<1x128xf32> to vector<16x128xf32>
    %1423 = arith.mulf %1422, %1421 : vector<16x128xf32>
    %1424 = arith.subf %1418, %1423 : vector<16x128xf32>
    %1425 = vector.extract_strided_slice %1336 {offsets = [13, 0], sizes = [1, 128], strides = [1, 1]} : vector<16x128xf32> to vector<1x128xf32>
    %c13_716 = arith.constant 13 : index
    %c0_717 = arith.constant 0 : index
    %c0_718 = arith.constant 0 : index
    %1426 = vector.load %arg4[%c13_716, %c0_717, %c0_718] : memref<16x16x128xf32, #tpu.memory_space<vmem>>, vector<1x16x128xf32>
    %1427 = vector.shape_cast %1426 : vector<1x16x128xf32> to vector<16x128xf32>
    %1428 = vector.broadcast %1425 : vector<1x128xf32> to vector<16x128xf32>
    %1429 = arith.mulf %1428, %1427 : vector<16x128xf32>
    %1430 = arith.subf %1424, %1429 : vector<16x128xf32>
    %1431 = vector.extract_strided_slice %1336 {offsets = [14, 0], sizes = [1, 128], strides = [1, 1]} : vector<16x128xf32> to vector<1x128xf32>
    %c14_719 = arith.constant 14 : index
    %c0_720 = arith.constant 0 : index
    %c0_721 = arith.constant 0 : index
    %1432 = vector.load %arg4[%c14_719, %c0_720, %c0_721] : memref<16x16x128xf32, #tpu.memory_space<vmem>>, vector<1x16x128xf32>
    %1433 = vector.shape_cast %1432 : vector<1x16x128xf32> to vector<16x128xf32>
    %1434 = vector.broadcast %1431 : vector<1x128xf32> to vector<16x128xf32>
    %1435 = arith.mulf %1434, %1433 : vector<16x128xf32>
    %1436 = arith.subf %1430, %1435 : vector<16x128xf32>
    %1437 = vector.extract_strided_slice %1336 {offsets = [15, 0], sizes = [1, 128], strides = [1, 1]} : vector<16x128xf32> to vector<1x128xf32>
    %c15_722 = arith.constant 15 : index
    %c0_723 = arith.constant 0 : index
    %c0_724 = arith.constant 0 : index
    %1438 = vector.load %arg4[%c15_722, %c0_723, %c0_724] : memref<16x16x128xf32, #tpu.memory_space<vmem>>, vector<1x16x128xf32>
    %1439 = vector.shape_cast %1438 : vector<1x16x128xf32> to vector<16x128xf32>
    %1440 = vector.broadcast %1437 : vector<1x128xf32> to vector<16x128xf32>
    %1441 = arith.mulf %1440, %1439 : vector<16x128xf32>
    %1442 = arith.subf %1436, %1441 : vector<16x128xf32>
    %c12_725 = arith.constant 12 : index
    %c0_726 = arith.constant 0 : index
    %c0_727 = arith.constant 0 : index
    %1443 = vector.load %arg6[%c12_725, %c0_726, %c0_727] : memref<16x16x128xf32, #tpu.memory_space<vmem>>, vector<1x16x128xf32>
    %1444 = vector.shape_cast %1443 : vector<1x16x128xf32> to vector<16x128xf32>
    %1445 = vector.shape_cast %1442 : vector<16x128xf32> to vector<1x16x128xf32>
    tpu.vector_store %arg6[%c12_725, %c0_726, %c0_727], %1445 {strides = array<i32>} : memref<16x16x128xf32, #tpu.memory_space<vmem>>, vector<1x16x128xf32>,
    %c13_728 = arith.constant 13 : index
    %c0_729 = arith.constant 0 : index
    %c0_730 = arith.constant 0 : index
    %1446 = vector.load %arg1[%c13_728, %c0_729, %c0_730] : memref<16x16x128xf32, #tpu.memory_space<vmem>>, vector<1x16x128xf32>
    %1447 = vector.shape_cast %1446 : vector<1x16x128xf32> to vector<16x128xf32>
    %1448 = vector.extract_strided_slice %1 {offsets = [13, 0], sizes = [1, 128], strides = [1, 1]} : vector<16x128xf32> to vector<1x128xf32>
    %1449 = arith.mulf %1447, %0 : vector<16x128xf32>
    %cst_731 = arith.constant dense<0.000000e+00> : vector<128xf32>
    %1450 = vector.multi_reduction <add>, %1449, %cst_731 [0] : vector<16x128xf32> to vector<128xf32>
    %1451 = vector.shape_cast %1450 : vector<128xf32> to vector<1x128xf32>
    %1452 = arith.addf %1448, %1451 : vector<1x128xf32>
    %c13_732 = arith.constant 13 : index
    %c0_733 = arith.constant 0 : index
    %1453 = vector.load %arg5[%c13_732, %c0_733] : memref<16x128xf32, #tpu.memory_space<vmem>>, vector<1x128xf32>
    tpu.vector_store %arg5[%c13_732, %c0_733], %1452 {strides = array<i32>} : memref<16x128xf32, #tpu.memory_space<vmem>>, vector<1x128xf32>,
    %c13_i32 = arith.constant 13 : i32
    %1454 = vector.broadcast %c13_i32 : i32 to vector<16x128xi32>
    %1455 = arith.cmpi eq, %2, %1454 : vector<16x128xi32>
    %1456 = arith.extui %1455 : vector<16x128xi1> to vector<16x128xi32>
    %1457 = arith.sitofp %1456 : vector<16x128xi32> to vector<16x128xf32>
    %1458 = vector.extract_strided_slice %1447 {offsets = [0, 0], sizes = [1, 128], strides = [1, 1]} : vector<16x128xf32> to vector<1x128xf32>
    %c0_734 = arith.constant 0 : index
    %c0_735 = arith.constant 0 : index
    %c0_736 = arith.constant 0 : index
    %1459 = vector.load %arg4[%c0_734, %c0_735, %c0_736] : memref<16x16x128xf32, #tpu.memory_space<vmem>>, vector<1x16x128xf32>
    %1460 = vector.shape_cast %1459 : vector<1x16x128xf32> to vector<16x128xf32>
    %1461 = vector.broadcast %1458 : vector<1x128xf32> to vector<16x128xf32>
    %1462 = arith.mulf %1461, %1460 : vector<16x128xf32>
    %1463 = arith.subf %1457, %1462 : vector<16x128xf32>
    %1464 = vector.extract_strided_slice %1447 {offsets = [1, 0], sizes = [1, 128], strides = [1, 1]} : vector<16x128xf32> to vector<1x128xf32>
    %c1_737 = arith.constant 1 : index
    %c0_738 = arith.constant 0 : index
    %c0_739 = arith.constant 0 : index
    %1465 = vector.load %arg4[%c1_737, %c0_738, %c0_739] : memref<16x16x128xf32, #tpu.memory_space<vmem>>, vector<1x16x128xf32>
    %1466 = vector.shape_cast %1465 : vector<1x16x128xf32> to vector<16x128xf32>
    %1467 = vector.broadcast %1464 : vector<1x128xf32> to vector<16x128xf32>
    %1468 = arith.mulf %1467, %1466 : vector<16x128xf32>
    %1469 = arith.subf %1463, %1468 : vector<16x128xf32>
    %1470 = vector.extract_strided_slice %1447 {offsets = [2, 0], sizes = [1, 128], strides = [1, 1]} : vector<16x128xf32> to vector<1x128xf32>
    %c2_740 = arith.constant 2 : index
    %c0_741 = arith.constant 0 : index
    %c0_742 = arith.constant 0 : index
    %1471 = vector.load %arg4[%c2_740, %c0_741, %c0_742] : memref<16x16x128xf32, #tpu.memory_space<vmem>>, vector<1x16x128xf32>
    %1472 = vector.shape_cast %1471 : vector<1x16x128xf32> to vector<16x128xf32>
    %1473 = vector.broadcast %1470 : vector<1x128xf32> to vector<16x128xf32>
    %1474 = arith.mulf %1473, %1472 : vector<16x128xf32>
    %1475 = arith.subf %1469, %1474 : vector<16x128xf32>
    %1476 = vector.extract_strided_slice %1447 {offsets = [3, 0], sizes = [1, 128], strides = [1, 1]} : vector<16x128xf32> to vector<1x128xf32>
    %c3_743 = arith.constant 3 : index
    %c0_744 = arith.constant 0 : index
    %c0_745 = arith.constant 0 : index
    %1477 = vector.load %arg4[%c3_743, %c0_744, %c0_745] : memref<16x16x128xf32, #tpu.memory_space<vmem>>, vector<1x16x128xf32>
    %1478 = vector.shape_cast %1477 : vector<1x16x128xf32> to vector<16x128xf32>
    %1479 = vector.broadcast %1476 : vector<1x128xf32> to vector<16x128xf32>
    %1480 = arith.mulf %1479, %1478 : vector<16x128xf32>
    %1481 = arith.subf %1475, %1480 : vector<16x128xf32>
    %1482 = vector.extract_strided_slice %1447 {offsets = [4, 0], sizes = [1, 128], strides = [1, 1]} : vector<16x128xf32> to vector<1x128xf32>
    %c4_746 = arith.constant 4 : index
    %c0_747 = arith.constant 0 : index
    %c0_748 = arith.constant 0 : index
    %1483 = vector.load %arg4[%c4_746, %c0_747, %c0_748] : memref<16x16x128xf32, #tpu.memory_space<vmem>>, vector<1x16x128xf32>
    %1484 = vector.shape_cast %1483 : vector<1x16x128xf32> to vector<16x128xf32>
    %1485 = vector.broadcast %1482 : vector<1x128xf32> to vector<16x128xf32>
    %1486 = arith.mulf %1485, %1484 : vector<16x128xf32>
    %1487 = arith.subf %1481, %1486 : vector<16x128xf32>
    %1488 = vector.extract_strided_slice %1447 {offsets = [5, 0], sizes = [1, 128], strides = [1, 1]} : vector<16x128xf32> to vector<1x128xf32>
    %c5_749 = arith.constant 5 : index
    %c0_750 = arith.constant 0 : index
    %c0_751 = arith.constant 0 : index
    %1489 = vector.load %arg4[%c5_749, %c0_750, %c0_751] : memref<16x16x128xf32, #tpu.memory_space<vmem>>, vector<1x16x128xf32>
    %1490 = vector.shape_cast %1489 : vector<1x16x128xf32> to vector<16x128xf32>
    %1491 = vector.broadcast %1488 : vector<1x128xf32> to vector<16x128xf32>
    %1492 = arith.mulf %1491, %1490 : vector<16x128xf32>
    %1493 = arith.subf %1487, %1492 : vector<16x128xf32>
    %1494 = vector.extract_strided_slice %1447 {offsets = [6, 0], sizes = [1, 128], strides = [1, 1]} : vector<16x128xf32> to vector<1x128xf32>
    %c6_752 = arith.constant 6 : index
    %c0_753 = arith.constant 0 : index
    %c0_754 = arith.constant 0 : index
    %1495 = vector.load %arg4[%c6_752, %c0_753, %c0_754] : memref<16x16x128xf32, #tpu.memory_space<vmem>>, vector<1x16x128xf32>
    %1496 = vector.shape_cast %1495 : vector<1x16x128xf32> to vector<16x128xf32>
    %1497 = vector.broadcast %1494 : vector<1x128xf32> to vector<16x128xf32>
    %1498 = arith.mulf %1497, %1496 : vector<16x128xf32>
    %1499 = arith.subf %1493, %1498 : vector<16x128xf32>
    %1500 = vector.extract_strided_slice %1447 {offsets = [7, 0], sizes = [1, 128], strides = [1, 1]} : vector<16x128xf32> to vector<1x128xf32>
    %c7_755 = arith.constant 7 : index
    %c0_756 = arith.constant 0 : index
    %c0_757 = arith.constant 0 : index
    %1501 = vector.load %arg4[%c7_755, %c0_756, %c0_757] : memref<16x16x128xf32, #tpu.memory_space<vmem>>, vector<1x16x128xf32>
    %1502 = vector.shape_cast %1501 : vector<1x16x128xf32> to vector<16x128xf32>
    %1503 = vector.broadcast %1500 : vector<1x128xf32> to vector<16x128xf32>
    %1504 = arith.mulf %1503, %1502 : vector<16x128xf32>
    %1505 = arith.subf %1499, %1504 : vector<16x128xf32>
    %1506 = vector.extract_strided_slice %1447 {offsets = [8, 0], sizes = [1, 128], strides = [1, 1]} : vector<16x128xf32> to vector<1x128xf32>
    %c8_758 = arith.constant 8 : index
    %c0_759 = arith.constant 0 : index
    %c0_760 = arith.constant 0 : index
    %1507 = vector.load %arg4[%c8_758, %c0_759, %c0_760] : memref<16x16x128xf32, #tpu.memory_space<vmem>>, vector<1x16x128xf32>
    %1508 = vector.shape_cast %1507 : vector<1x16x128xf32> to vector<16x128xf32>
    %1509 = vector.broadcast %1506 : vector<1x128xf32> to vector<16x128xf32>
    %1510 = arith.mulf %1509, %1508 : vector<16x128xf32>
    %1511 = arith.subf %1505, %1510 : vector<16x128xf32>
    %1512 = vector.extract_strided_slice %1447 {offsets = [9, 0], sizes = [1, 128], strides = [1, 1]} : vector<16x128xf32> to vector<1x128xf32>
    %c9_761 = arith.constant 9 : index
    %c0_762 = arith.constant 0 : index
    %c0_763 = arith.constant 0 : index
    %1513 = vector.load %arg4[%c9_761, %c0_762, %c0_763] : memref<16x16x128xf32, #tpu.memory_space<vmem>>, vector<1x16x128xf32>
    %1514 = vector.shape_cast %1513 : vector<1x16x128xf32> to vector<16x128xf32>
    %1515 = vector.broadcast %1512 : vector<1x128xf32> to vector<16x128xf32>
    %1516 = arith.mulf %1515, %1514 : vector<16x128xf32>
    %1517 = arith.subf %1511, %1516 : vector<16x128xf32>
    %1518 = vector.extract_strided_slice %1447 {offsets = [10, 0], sizes = [1, 128], strides = [1, 1]} : vector<16x128xf32> to vector<1x128xf32>
    %c10_764 = arith.constant 10 : index
    %c0_765 = arith.constant 0 : index
    %c0_766 = arith.constant 0 : index
    %1519 = vector.load %arg4[%c10_764, %c0_765, %c0_766] : memref<16x16x128xf32, #tpu.memory_space<vmem>>, vector<1x16x128xf32>
    %1520 = vector.shape_cast %1519 : vector<1x16x128xf32> to vector<16x128xf32>
    %1521 = vector.broadcast %1518 : vector<1x128xf32> to vector<16x128xf32>
    %1522 = arith.mulf %1521, %1520 : vector<16x128xf32>
    %1523 = arith.subf %1517, %1522 : vector<16x128xf32>
    %1524 = vector.extract_strided_slice %1447 {offsets = [11, 0], sizes = [1, 128], strides = [1, 1]} : vector<16x128xf32> to vector<1x128xf32>
    %c11_767 = arith.constant 11 : index
    %c0_768 = arith.constant 0 : index
    %c0_769 = arith.constant 0 : index
    %1525 = vector.load %arg4[%c11_767, %c0_768, %c0_769] : memref<16x16x128xf32, #tpu.memory_space<vmem>>, vector<1x16x128xf32>
    %1526 = vector.shape_cast %1525 : vector<1x16x128xf32> to vector<16x128xf32>
    %1527 = vector.broadcast %1524 : vector<1x128xf32> to vector<16x128xf32>
    %1528 = arith.mulf %1527, %1526 : vector<16x128xf32>
    %1529 = arith.subf %1523, %1528 : vector<16x128xf32>
    %1530 = vector.extract_strided_slice %1447 {offsets = [12, 0], sizes = [1, 128], strides = [1, 1]} : vector<16x128xf32> to vector<1x128xf32>
    %c12_770 = arith.constant 12 : index
    %c0_771 = arith.constant 0 : index
    %c0_772 = arith.constant 0 : index
    %1531 = vector.load %arg4[%c12_770, %c0_771, %c0_772] : memref<16x16x128xf32, #tpu.memory_space<vmem>>, vector<1x16x128xf32>
    %1532 = vector.shape_cast %1531 : vector<1x16x128xf32> to vector<16x128xf32>
    %1533 = vector.broadcast %1530 : vector<1x128xf32> to vector<16x128xf32>
    %1534 = arith.mulf %1533, %1532 : vector<16x128xf32>
    %1535 = arith.subf %1529, %1534 : vector<16x128xf32>
    %1536 = vector.extract_strided_slice %1447 {offsets = [13, 0], sizes = [1, 128], strides = [1, 1]} : vector<16x128xf32> to vector<1x128xf32>
    %c13_773 = arith.constant 13 : index
    %c0_774 = arith.constant 0 : index
    %c0_775 = arith.constant 0 : index
    %1537 = vector.load %arg4[%c13_773, %c0_774, %c0_775] : memref<16x16x128xf32, #tpu.memory_space<vmem>>, vector<1x16x128xf32>
    %1538 = vector.shape_cast %1537 : vector<1x16x128xf32> to vector<16x128xf32>
    %1539 = vector.broadcast %1536 : vector<1x128xf32> to vector<16x128xf32>
    %1540 = arith.mulf %1539, %1538 : vector<16x128xf32>
    %1541 = arith.subf %1535, %1540 : vector<16x128xf32>
    %1542 = vector.extract_strided_slice %1447 {offsets = [14, 0], sizes = [1, 128], strides = [1, 1]} : vector<16x128xf32> to vector<1x128xf32>
    %c14_776 = arith.constant 14 : index
    %c0_777 = arith.constant 0 : index
    %c0_778 = arith.constant 0 : index
    %1543 = vector.load %arg4[%c14_776, %c0_777, %c0_778] : memref<16x16x128xf32, #tpu.memory_space<vmem>>, vector<1x16x128xf32>
    %1544 = vector.shape_cast %1543 : vector<1x16x128xf32> to vector<16x128xf32>
    %1545 = vector.broadcast %1542 : vector<1x128xf32> to vector<16x128xf32>
    %1546 = arith.mulf %1545, %1544 : vector<16x128xf32>
    %1547 = arith.subf %1541, %1546 : vector<16x128xf32>
    %1548 = vector.extract_strided_slice %1447 {offsets = [15, 0], sizes = [1, 128], strides = [1, 1]} : vector<16x128xf32> to vector<1x128xf32>
    %c15_779 = arith.constant 15 : index
    %c0_780 = arith.constant 0 : index
    %c0_781 = arith.constant 0 : index
    %1549 = vector.load %arg4[%c15_779, %c0_780, %c0_781] : memref<16x16x128xf32, #tpu.memory_space<vmem>>, vector<1x16x128xf32>
    %1550 = vector.shape_cast %1549 : vector<1x16x128xf32> to vector<16x128xf32>
    %1551 = vector.broadcast %1548 : vector<1x128xf32> to vector<16x128xf32>
    %1552 = arith.mulf %1551, %1550 : vector<16x128xf32>
    %1553 = arith.subf %1547, %1552 : vector<16x128xf32>
    %c13_782 = arith.constant 13 : index
    %c0_783 = arith.constant 0 : index
    %c0_784 = arith.constant 0 : index
    %1554 = vector.load %arg6[%c13_782, %c0_783, %c0_784] : memref<16x16x128xf32, #tpu.memory_space<vmem>>, vector<1x16x128xf32>
    %1555 = vector.shape_cast %1554 : vector<1x16x128xf32> to vector<16x128xf32>
    %1556 = vector.shape_cast %1553 : vector<16x128xf32> to vector<1x16x128xf32>
    tpu.vector_store %arg6[%c13_782, %c0_783, %c0_784], %1556 {strides = array<i32>} : memref<16x16x128xf32, #tpu.memory_space<vmem>>, vector<1x16x128xf32>,
    %c14_785 = arith.constant 14 : index
    %c0_786 = arith.constant 0 : index
    %c0_787 = arith.constant 0 : index
    %1557 = vector.load %arg1[%c14_785, %c0_786, %c0_787] : memref<16x16x128xf32, #tpu.memory_space<vmem>>, vector<1x16x128xf32>
    %1558 = vector.shape_cast %1557 : vector<1x16x128xf32> to vector<16x128xf32>
    %1559 = vector.extract_strided_slice %1 {offsets = [14, 0], sizes = [1, 128], strides = [1, 1]} : vector<16x128xf32> to vector<1x128xf32>
    %1560 = arith.mulf %1558, %0 : vector<16x128xf32>
    %cst_788 = arith.constant dense<0.000000e+00> : vector<128xf32>
    %1561 = vector.multi_reduction <add>, %1560, %cst_788 [0] : vector<16x128xf32> to vector<128xf32>
    %1562 = vector.shape_cast %1561 : vector<128xf32> to vector<1x128xf32>
    %1563 = arith.addf %1559, %1562 : vector<1x128xf32>
    %c14_789 = arith.constant 14 : index
    %c0_790 = arith.constant 0 : index
    %1564 = vector.load %arg5[%c14_789, %c0_790] : memref<16x128xf32, #tpu.memory_space<vmem>>, vector<1x128xf32>
    tpu.vector_store %arg5[%c14_789, %c0_790], %1563 {strides = array<i32>} : memref<16x128xf32, #tpu.memory_space<vmem>>, vector<1x128xf32>,
    %c14_i32 = arith.constant 14 : i32
    %1565 = vector.broadcast %c14_i32 : i32 to vector<16x128xi32>
    %1566 = arith.cmpi eq, %2, %1565 : vector<16x128xi32>
    %1567 = arith.extui %1566 : vector<16x128xi1> to vector<16x128xi32>
    %1568 = arith.sitofp %1567 : vector<16x128xi32> to vector<16x128xf32>
    %1569 = vector.extract_strided_slice %1558 {offsets = [0, 0], sizes = [1, 128], strides = [1, 1]} : vector<16x128xf32> to vector<1x128xf32>
    %c0_791 = arith.constant 0 : index
    %c0_792 = arith.constant 0 : index
    %c0_793 = arith.constant 0 : index
    %1570 = vector.load %arg4[%c0_791, %c0_792, %c0_793] : memref<16x16x128xf32, #tpu.memory_space<vmem>>, vector<1x16x128xf32>
    %1571 = vector.shape_cast %1570 : vector<1x16x128xf32> to vector<16x128xf32>
    %1572 = vector.broadcast %1569 : vector<1x128xf32> to vector<16x128xf32>
    %1573 = arith.mulf %1572, %1571 : vector<16x128xf32>
    %1574 = arith.subf %1568, %1573 : vector<16x128xf32>
    %1575 = vector.extract_strided_slice %1558 {offsets = [1, 0], sizes = [1, 128], strides = [1, 1]} : vector<16x128xf32> to vector<1x128xf32>
    %c1_794 = arith.constant 1 : index
    %c0_795 = arith.constant 0 : index
    %c0_796 = arith.constant 0 : index
    %1576 = vector.load %arg4[%c1_794, %c0_795, %c0_796] : memref<16x16x128xf32, #tpu.memory_space<vmem>>, vector<1x16x128xf32>
    %1577 = vector.shape_cast %1576 : vector<1x16x128xf32> to vector<16x128xf32>
    %1578 = vector.broadcast %1575 : vector<1x128xf32> to vector<16x128xf32>
    %1579 = arith.mulf %1578, %1577 : vector<16x128xf32>
    %1580 = arith.subf %1574, %1579 : vector<16x128xf32>
    %1581 = vector.extract_strided_slice %1558 {offsets = [2, 0], sizes = [1, 128], strides = [1, 1]} : vector<16x128xf32> to vector<1x128xf32>
    %c2_797 = arith.constant 2 : index
    %c0_798 = arith.constant 0 : index
    %c0_799 = arith.constant 0 : index
    %1582 = vector.load %arg4[%c2_797, %c0_798, %c0_799] : memref<16x16x128xf32, #tpu.memory_space<vmem>>, vector<1x16x128xf32>
    %1583 = vector.shape_cast %1582 : vector<1x16x128xf32> to vector<16x128xf32>
    %1584 = vector.broadcast %1581 : vector<1x128xf32> to vector<16x128xf32>
    %1585 = arith.mulf %1584, %1583 : vector<16x128xf32>
    %1586 = arith.subf %1580, %1585 : vector<16x128xf32>
    %1587 = vector.extract_strided_slice %1558 {offsets = [3, 0], sizes = [1, 128], strides = [1, 1]} : vector<16x128xf32> to vector<1x128xf32>
    %c3_800 = arith.constant 3 : index
    %c0_801 = arith.constant 0 : index
    %c0_802 = arith.constant 0 : index
    %1588 = vector.load %arg4[%c3_800, %c0_801, %c0_802] : memref<16x16x128xf32, #tpu.memory_space<vmem>>, vector<1x16x128xf32>
    %1589 = vector.shape_cast %1588 : vector<1x16x128xf32> to vector<16x128xf32>
    %1590 = vector.broadcast %1587 : vector<1x128xf32> to vector<16x128xf32>
    %1591 = arith.mulf %1590, %1589 : vector<16x128xf32>
    %1592 = arith.subf %1586, %1591 : vector<16x128xf32>
    %1593 = vector.extract_strided_slice %1558 {offsets = [4, 0], sizes = [1, 128], strides = [1, 1]} : vector<16x128xf32> to vector<1x128xf32>
    %c4_803 = arith.constant 4 : index
    %c0_804 = arith.constant 0 : index
    %c0_805 = arith.constant 0 : index
    %1594 = vector.load %arg4[%c4_803, %c0_804, %c0_805] : memref<16x16x128xf32, #tpu.memory_space<vmem>>, vector<1x16x128xf32>
    %1595 = vector.shape_cast %1594 : vector<1x16x128xf32> to vector<16x128xf32>
    %1596 = vector.broadcast %1593 : vector<1x128xf32> to vector<16x128xf32>
    %1597 = arith.mulf %1596, %1595 : vector<16x128xf32>
    %1598 = arith.subf %1592, %1597 : vector<16x128xf32>
    %1599 = vector.extract_strided_slice %1558 {offsets = [5, 0], sizes = [1, 128], strides = [1, 1]} : vector<16x128xf32> to vector<1x128xf32>
    %c5_806 = arith.constant 5 : index
    %c0_807 = arith.constant 0 : index
    %c0_808 = arith.constant 0 : index
    %1600 = vector.load %arg4[%c5_806, %c0_807, %c0_808] : memref<16x16x128xf32, #tpu.memory_space<vmem>>, vector<1x16x128xf32>
    %1601 = vector.shape_cast %1600 : vector<1x16x128xf32> to vector<16x128xf32>
    %1602 = vector.broadcast %1599 : vector<1x128xf32> to vector<16x128xf32>
    %1603 = arith.mulf %1602, %1601 : vector<16x128xf32>
    %1604 = arith.subf %1598, %1603 : vector<16x128xf32>
    %1605 = vector.extract_strided_slice %1558 {offsets = [6, 0], sizes = [1, 128], strides = [1, 1]} : vector<16x128xf32> to vector<1x128xf32>
    %c6_809 = arith.constant 6 : index
    %c0_810 = arith.constant 0 : index
    %c0_811 = arith.constant 0 : index
    %1606 = vector.load %arg4[%c6_809, %c0_810, %c0_811] : memref<16x16x128xf32, #tpu.memory_space<vmem>>, vector<1x16x128xf32>
    %1607 = vector.shape_cast %1606 : vector<1x16x128xf32> to vector<16x128xf32>
    %1608 = vector.broadcast %1605 : vector<1x128xf32> to vector<16x128xf32>
    %1609 = arith.mulf %1608, %1607 : vector<16x128xf32>
    %1610 = arith.subf %1604, %1609 : vector<16x128xf32>
    %1611 = vector.extract_strided_slice %1558 {offsets = [7, 0], sizes = [1, 128], strides = [1, 1]} : vector<16x128xf32> to vector<1x128xf32>
    %c7_812 = arith.constant 7 : index
    %c0_813 = arith.constant 0 : index
    %c0_814 = arith.constant 0 : index
    %1612 = vector.load %arg4[%c7_812, %c0_813, %c0_814] : memref<16x16x128xf32, #tpu.memory_space<vmem>>, vector<1x16x128xf32>
    %1613 = vector.shape_cast %1612 : vector<1x16x128xf32> to vector<16x128xf32>
    %1614 = vector.broadcast %1611 : vector<1x128xf32> to vector<16x128xf32>
    %1615 = arith.mulf %1614, %1613 : vector<16x128xf32>
    %1616 = arith.subf %1610, %1615 : vector<16x128xf32>
    %1617 = vector.extract_strided_slice %1558 {offsets = [8, 0], sizes = [1, 128], strides = [1, 1]} : vector<16x128xf32> to vector<1x128xf32>
    %c8_815 = arith.constant 8 : index
    %c0_816 = arith.constant 0 : index
    %c0_817 = arith.constant 0 : index
    %1618 = vector.load %arg4[%c8_815, %c0_816, %c0_817] : memref<16x16x128xf32, #tpu.memory_space<vmem>>, vector<1x16x128xf32>
    %1619 = vector.shape_cast %1618 : vector<1x16x128xf32> to vector<16x128xf32>
    %1620 = vector.broadcast %1617 : vector<1x128xf32> to vector<16x128xf32>
    %1621 = arith.mulf %1620, %1619 : vector<16x128xf32>
    %1622 = arith.subf %1616, %1621 : vector<16x128xf32>
    %1623 = vector.extract_strided_slice %1558 {offsets = [9, 0], sizes = [1, 128], strides = [1, 1]} : vector<16x128xf32> to vector<1x128xf32>
    %c9_818 = arith.constant 9 : index
    %c0_819 = arith.constant 0 : index
    %c0_820 = arith.constant 0 : index
    %1624 = vector.load %arg4[%c9_818, %c0_819, %c0_820] : memref<16x16x128xf32, #tpu.memory_space<vmem>>, vector<1x16x128xf32>
    %1625 = vector.shape_cast %1624 : vector<1x16x128xf32> to vector<16x128xf32>
    %1626 = vector.broadcast %1623 : vector<1x128xf32> to vector<16x128xf32>
    %1627 = arith.mulf %1626, %1625 : vector<16x128xf32>
    %1628 = arith.subf %1622, %1627 : vector<16x128xf32>
    %1629 = vector.extract_strided_slice %1558 {offsets = [10, 0], sizes = [1, 128], strides = [1, 1]} : vector<16x128xf32> to vector<1x128xf32>
    %c10_821 = arith.constant 10 : index
    %c0_822 = arith.constant 0 : index
    %c0_823 = arith.constant 0 : index
    %1630 = vector.load %arg4[%c10_821, %c0_822, %c0_823] : memref<16x16x128xf32, #tpu.memory_space<vmem>>, vector<1x16x128xf32>
    %1631 = vector.shape_cast %1630 : vector<1x16x128xf32> to vector<16x128xf32>
    %1632 = vector.broadcast %1629 : vector<1x128xf32> to vector<16x128xf32>
    %1633 = arith.mulf %1632, %1631 : vector<16x128xf32>
    %1634 = arith.subf %1628, %1633 : vector<16x128xf32>
    %1635 = vector.extract_strided_slice %1558 {offsets = [11, 0], sizes = [1, 128], strides = [1, 1]} : vector<16x128xf32> to vector<1x128xf32>
    %c11_824 = arith.constant 11 : index
    %c0_825 = arith.constant 0 : index
    %c0_826 = arith.constant 0 : index
    %1636 = vector.load %arg4[%c11_824, %c0_825, %c0_826] : memref<16x16x128xf32, #tpu.memory_space<vmem>>, vector<1x16x128xf32>
    %1637 = vector.shape_cast %1636 : vector<1x16x128xf32> to vector<16x128xf32>
    %1638 = vector.broadcast %1635 : vector<1x128xf32> to vector<16x128xf32>
    %1639 = arith.mulf %1638, %1637 : vector<16x128xf32>
    %1640 = arith.subf %1634, %1639 : vector<16x128xf32>
    %1641 = vector.extract_strided_slice %1558 {offsets = [12, 0], sizes = [1, 128], strides = [1, 1]} : vector<16x128xf32> to vector<1x128xf32>
    %c12_827 = arith.constant 12 : index
    %c0_828 = arith.constant 0 : index
    %c0_829 = arith.constant 0 : index
    %1642 = vector.load %arg4[%c12_827, %c0_828, %c0_829] : memref<16x16x128xf32, #tpu.memory_space<vmem>>, vector<1x16x128xf32>
    %1643 = vector.shape_cast %1642 : vector<1x16x128xf32> to vector<16x128xf32>
    %1644 = vector.broadcast %1641 : vector<1x128xf32> to vector<16x128xf32>
    %1645 = arith.mulf %1644, %1643 : vector<16x128xf32>
    %1646 = arith.subf %1640, %1645 : vector<16x128xf32>
    %1647 = vector.extract_strided_slice %1558 {offsets = [13, 0], sizes = [1, 128], strides = [1, 1]} : vector<16x128xf32> to vector<1x128xf32>
    %c13_830 = arith.constant 13 : index
    %c0_831 = arith.constant 0 : index
    %c0_832 = arith.constant 0 : index
    %1648 = vector.load %arg4[%c13_830, %c0_831, %c0_832] : memref<16x16x128xf32, #tpu.memory_space<vmem>>, vector<1x16x128xf32>
    %1649 = vector.shape_cast %1648 : vector<1x16x128xf32> to vector<16x128xf32>
    %1650 = vector.broadcast %1647 : vector<1x128xf32> to vector<16x128xf32>
    %1651 = arith.mulf %1650, %1649 : vector<16x128xf32>
    %1652 = arith.subf %1646, %1651 : vector<16x128xf32>
    %1653 = vector.extract_strided_slice %1558 {offsets = [14, 0], sizes = [1, 128], strides = [1, 1]} : vector<16x128xf32> to vector<1x128xf32>
    %c14_833 = arith.constant 14 : index
    %c0_834 = arith.constant 0 : index
    %c0_835 = arith.constant 0 : index
    %1654 = vector.load %arg4[%c14_833, %c0_834, %c0_835] : memref<16x16x128xf32, #tpu.memory_space<vmem>>, vector<1x16x128xf32>
    %1655 = vector.shape_cast %1654 : vector<1x16x128xf32> to vector<16x128xf32>
    %1656 = vector.broadcast %1653 : vector<1x128xf32> to vector<16x128xf32>
    %1657 = arith.mulf %1656, %1655 : vector<16x128xf32>
    %1658 = arith.subf %1652, %1657 : vector<16x128xf32>
    %1659 = vector.extract_strided_slice %1558 {offsets = [15, 0], sizes = [1, 128], strides = [1, 1]} : vector<16x128xf32> to vector<1x128xf32>
    %c15_836 = arith.constant 15 : index
    %c0_837 = arith.constant 0 : index
    %c0_838 = arith.constant 0 : index
    %1660 = vector.load %arg4[%c15_836, %c0_837, %c0_838] : memref<16x16x128xf32, #tpu.memory_space<vmem>>, vector<1x16x128xf32>
    %1661 = vector.shape_cast %1660 : vector<1x16x128xf32> to vector<16x128xf32>
    %1662 = vector.broadcast %1659 : vector<1x128xf32> to vector<16x128xf32>
    %1663 = arith.mulf %1662, %1661 : vector<16x128xf32>
    %1664 = arith.subf %1658, %1663 : vector<16x128xf32>
    %c14_839 = arith.constant 14 : index
    %c0_840 = arith.constant 0 : index
    %c0_841 = arith.constant 0 : index
    %1665 = vector.load %arg6[%c14_839, %c0_840, %c0_841] : memref<16x16x128xf32, #tpu.memory_space<vmem>>, vector<1x16x128xf32>
    %1666 = vector.shape_cast %1665 : vector<1x16x128xf32> to vector<16x128xf32>
    %1667 = vector.shape_cast %1664 : vector<16x128xf32> to vector<1x16x128xf32>
    tpu.vector_store %arg6[%c14_839, %c0_840, %c0_841], %1667 {strides = array<i32>} : memref<16x16x128xf32, #tpu.memory_space<vmem>>, vector<1x16x128xf32>,
    %c15_842 = arith.constant 15 : index
    %c0_843 = arith.constant 0 : index
    %c0_844 = arith.constant 0 : index
    %1668 = vector.load %arg1[%c15_842, %c0_843, %c0_844] : memref<16x16x128xf32, #tpu.memory_space<vmem>>, vector<1x16x128xf32>
    %1669 = vector.shape_cast %1668 : vector<1x16x128xf32> to vector<16x128xf32>
    %1670 = vector.extract_strided_slice %1 {offsets = [15, 0], sizes = [1, 128], strides = [1, 1]} : vector<16x128xf32> to vector<1x128xf32>
    %1671 = arith.mulf %1669, %0 : vector<16x128xf32>
    %cst_845 = arith.constant dense<0.000000e+00> : vector<128xf32>
    %1672 = vector.multi_reduction <add>, %1671, %cst_845 [0] : vector<16x128xf32> to vector<128xf32>
    %1673 = vector.shape_cast %1672 : vector<128xf32> to vector<1x128xf32>
    %1674 = arith.addf %1670, %1673 : vector<1x128xf32>
    %c15_846 = arith.constant 15 : index
    %c0_847 = arith.constant 0 : index
    %1675 = vector.load %arg5[%c15_846, %c0_847] : memref<16x128xf32, #tpu.memory_space<vmem>>, vector<1x128xf32>
    tpu.vector_store %arg5[%c15_846, %c0_847], %1674 {strides = array<i32>} : memref<16x128xf32, #tpu.memory_space<vmem>>, vector<1x128xf32>,
    %c15_i32 = arith.constant 15 : i32
    %1676 = vector.broadcast %c15_i32 : i32 to vector<16x128xi32>
    %1677 = arith.cmpi eq, %2, %1676 : vector<16x128xi32>
    %1678 = arith.extui %1677 : vector<16x128xi1> to vector<16x128xi32>
    %1679 = arith.sitofp %1678 : vector<16x128xi32> to vector<16x128xf32>
    %1680 = vector.extract_strided_slice %1669 {offsets = [0, 0], sizes = [1, 128], strides = [1, 1]} : vector<16x128xf32> to vector<1x128xf32>
    %c0_848 = arith.constant 0 : index
    %c0_849 = arith.constant 0 : index
    %c0_850 = arith.constant 0 : index
    %1681 = vector.load %arg4[%c0_848, %c0_849, %c0_850] : memref<16x16x128xf32, #tpu.memory_space<vmem>>, vector<1x16x128xf32>
    %1682 = vector.shape_cast %1681 : vector<1x16x128xf32> to vector<16x128xf32>
    %1683 = vector.broadcast %1680 : vector<1x128xf32> to vector<16x128xf32>
    %1684 = arith.mulf %1683, %1682 : vector<16x128xf32>
    %1685 = arith.subf %1679, %1684 : vector<16x128xf32>
    %1686 = vector.extract_strided_slice %1669 {offsets = [1, 0], sizes = [1, 128], strides = [1, 1]} : vector<16x128xf32> to vector<1x128xf32>
    %c1_851 = arith.constant 1 : index
    %c0_852 = arith.constant 0 : index
    %c0_853 = arith.constant 0 : index
    %1687 = vector.load %arg4[%c1_851, %c0_852, %c0_853] : memref<16x16x128xf32, #tpu.memory_space<vmem>>, vector<1x16x128xf32>
    %1688 = vector.shape_cast %1687 : vector<1x16x128xf32> to vector<16x128xf32>
    %1689 = vector.broadcast %1686 : vector<1x128xf32> to vector<16x128xf32>
    %1690 = arith.mulf %1689, %1688 : vector<16x128xf32>
    %1691 = arith.subf %1685, %1690 : vector<16x128xf32>
    %1692 = vector.extract_strided_slice %1669 {offsets = [2, 0], sizes = [1, 128], strides = [1, 1]} : vector<16x128xf32> to vector<1x128xf32>
    %c2_854 = arith.constant 2 : index
    %c0_855 = arith.constant 0 : index
    %c0_856 = arith.constant 0 : index
    %1693 = vector.load %arg4[%c2_854, %c0_855, %c0_856] : memref<16x16x128xf32, #tpu.memory_space<vmem>>, vector<1x16x128xf32>
    %1694 = vector.shape_cast %1693 : vector<1x16x128xf32> to vector<16x128xf32>
    %1695 = vector.broadcast %1692 : vector<1x128xf32> to vector<16x128xf32>
    %1696 = arith.mulf %1695, %1694 : vector<16x128xf32>
    %1697 = arith.subf %1691, %1696 : vector<16x128xf32>
    %1698 = vector.extract_strided_slice %1669 {offsets = [3, 0], sizes = [1, 128], strides = [1, 1]} : vector<16x128xf32> to vector<1x128xf32>
    %c3_857 = arith.constant 3 : index
    %c0_858 = arith.constant 0 : index
    %c0_859 = arith.constant 0 : index
    %1699 = vector.load %arg4[%c3_857, %c0_858, %c0_859] : memref<16x16x128xf32, #tpu.memory_space<vmem>>, vector<1x16x128xf32>
    %1700 = vector.shape_cast %1699 : vector<1x16x128xf32> to vector<16x128xf32>
    %1701 = vector.broadcast %1698 : vector<1x128xf32> to vector<16x128xf32>
    %1702 = arith.mulf %1701, %1700 : vector<16x128xf32>
    %1703 = arith.subf %1697, %1702 : vector<16x128xf32>
    %1704 = vector.extract_strided_slice %1669 {offsets = [4, 0], sizes = [1, 128], strides = [1, 1]} : vector<16x128xf32> to vector<1x128xf32>
    %c4_860 = arith.constant 4 : index
    %c0_861 = arith.constant 0 : index
    %c0_862 = arith.constant 0 : index
    %1705 = vector.load %arg4[%c4_860, %c0_861, %c0_862] : memref<16x16x128xf32, #tpu.memory_space<vmem>>, vector<1x16x128xf32>
    %1706 = vector.shape_cast %1705 : vector<1x16x128xf32> to vector<16x128xf32>
    %1707 = vector.broadcast %1704 : vector<1x128xf32> to vector<16x128xf32>
    %1708 = arith.mulf %1707, %1706 : vector<16x128xf32>
    %1709 = arith.subf %1703, %1708 : vector<16x128xf32>
    %1710 = vector.extract_strided_slice %1669 {offsets = [5, 0], sizes = [1, 128], strides = [1, 1]} : vector<16x128xf32> to vector<1x128xf32>
    %c5_863 = arith.constant 5 : index
    %c0_864 = arith.constant 0 : index
    %c0_865 = arith.constant 0 : index
    %1711 = vector.load %arg4[%c5_863, %c0_864, %c0_865] : memref<16x16x128xf32, #tpu.memory_space<vmem>>, vector<1x16x128xf32>
    %1712 = vector.shape_cast %1711 : vector<1x16x128xf32> to vector<16x128xf32>
    %1713 = vector.broadcast %1710 : vector<1x128xf32> to vector<16x128xf32>
    %1714 = arith.mulf %1713, %1712 : vector<16x128xf32>
    %1715 = arith.subf %1709, %1714 : vector<16x128xf32>
    %1716 = vector.extract_strided_slice %1669 {offsets = [6, 0], sizes = [1, 128], strides = [1, 1]} : vector<16x128xf32> to vector<1x128xf32>
    %c6_866 = arith.constant 6 : index
    %c0_867 = arith.constant 0 : index
    %c0_868 = arith.constant 0 : index
    %1717 = vector.load %arg4[%c6_866, %c0_867, %c0_868] : memref<16x16x128xf32, #tpu.memory_space<vmem>>, vector<1x16x128xf32>
    %1718 = vector.shape_cast %1717 : vector<1x16x128xf32> to vector<16x128xf32>
    %1719 = vector.broadcast %1716 : vector<1x128xf32> to vector<16x128xf32>
    %1720 = arith.mulf %1719, %1718 : vector<16x128xf32>
    %1721 = arith.subf %1715, %1720 : vector<16x128xf32>
    %1722 = vector.extract_strided_slice %1669 {offsets = [7, 0], sizes = [1, 128], strides = [1, 1]} : vector<16x128xf32> to vector<1x128xf32>
    %c7_869 = arith.constant 7 : index
    %c0_870 = arith.constant 0 : index
    %c0_871 = arith.constant 0 : index
    %1723 = vector.load %arg4[%c7_869, %c0_870, %c0_871] : memref<16x16x128xf32, #tpu.memory_space<vmem>>, vector<1x16x128xf32>
    %1724 = vector.shape_cast %1723 : vector<1x16x128xf32> to vector<16x128xf32>
    %1725 = vector.broadcast %1722 : vector<1x128xf32> to vector<16x128xf32>
    %1726 = arith.mulf %1725, %1724 : vector<16x128xf32>
    %1727 = arith.subf %1721, %1726 : vector<16x128xf32>
    %1728 = vector.extract_strided_slice %1669 {offsets = [8, 0], sizes = [1, 128], strides = [1, 1]} : vector<16x128xf32> to vector<1x128xf32>
    %c8_872 = arith.constant 8 : index
    %c0_873 = arith.constant 0 : index
    %c0_874 = arith.constant 0 : index
    %1729 = vector.load %arg4[%c8_872, %c0_873, %c0_874] : memref<16x16x128xf32, #tpu.memory_space<vmem>>, vector<1x16x128xf32>
    %1730 = vector.shape_cast %1729 : vector<1x16x128xf32> to vector<16x128xf32>
    %1731 = vector.broadcast %1728 : vector<1x128xf32> to vector<16x128xf32>
    %1732 = arith.mulf %1731, %1730 : vector<16x128xf32>
    %1733 = arith.subf %1727, %1732 : vector<16x128xf32>
    %1734 = vector.extract_strided_slice %1669 {offsets = [9, 0], sizes = [1, 128], strides = [1, 1]} : vector<16x128xf32> to vector<1x128xf32>
    %c9_875 = arith.constant 9 : index
    %c0_876 = arith.constant 0 : index
    %c0_877 = arith.constant 0 : index
    %1735 = vector.load %arg4[%c9_875, %c0_876, %c0_877] : memref<16x16x128xf32, #tpu.memory_space<vmem>>, vector<1x16x128xf32>
    %1736 = vector.shape_cast %1735 : vector<1x16x128xf32> to vector<16x128xf32>
    %1737 = vector.broadcast %1734 : vector<1x128xf32> to vector<16x128xf32>
    %1738 = arith.mulf %1737, %1736 : vector<16x128xf32>
    %1739 = arith.subf %1733, %1738 : vector<16x128xf32>
    %1740 = vector.extract_strided_slice %1669 {offsets = [10, 0], sizes = [1, 128], strides = [1, 1]} : vector<16x128xf32> to vector<1x128xf32>
    %c10_878 = arith.constant 10 : index
    %c0_879 = arith.constant 0 : index
    %c0_880 = arith.constant 0 : index
    %1741 = vector.load %arg4[%c10_878, %c0_879, %c0_880] : memref<16x16x128xf32, #tpu.memory_space<vmem>>, vector<1x16x128xf32>
    %1742 = vector.shape_cast %1741 : vector<1x16x128xf32> to vector<16x128xf32>
    %1743 = vector.broadcast %1740 : vector<1x128xf32> to vector<16x128xf32>
    %1744 = arith.mulf %1743, %1742 : vector<16x128xf32>
    %1745 = arith.subf %1739, %1744 : vector<16x128xf32>
    %1746 = vector.extract_strided_slice %1669 {offsets = [11, 0], sizes = [1, 128], strides = [1, 1]} : vector<16x128xf32> to vector<1x128xf32>
    %c11_881 = arith.constant 11 : index
    %c0_882 = arith.constant 0 : index
    %c0_883 = arith.constant 0 : index
    %1747 = vector.load %arg4[%c11_881, %c0_882, %c0_883] : memref<16x16x128xf32, #tpu.memory_space<vmem>>, vector<1x16x128xf32>
    %1748 = vector.shape_cast %1747 : vector<1x16x128xf32> to vector<16x128xf32>
    %1749 = vector.broadcast %1746 : vector<1x128xf32> to vector<16x128xf32>
    %1750 = arith.mulf %1749, %1748 : vector<16x128xf32>
    %1751 = arith.subf %1745, %1750 : vector<16x128xf32>
    %1752 = vector.extract_strided_slice %1669 {offsets = [12, 0], sizes = [1, 128], strides = [1, 1]} : vector<16x128xf32> to vector<1x128xf32>
    %c12_884 = arith.constant 12 : index
    %c0_885 = arith.constant 0 : index
    %c0_886 = arith.constant 0 : index
    %1753 = vector.load %arg4[%c12_884, %c0_885, %c0_886] : memref<16x16x128xf32, #tpu.memory_space<vmem>>, vector<1x16x128xf32>
    %1754 = vector.shape_cast %1753 : vector<1x16x128xf32> to vector<16x128xf32>
    %1755 = vector.broadcast %1752 : vector<1x128xf32> to vector<16x128xf32>
    %1756 = arith.mulf %1755, %1754 : vector<16x128xf32>
    %1757 = arith.subf %1751, %1756 : vector<16x128xf32>
    %1758 = vector.extract_strided_slice %1669 {offsets = [13, 0], sizes = [1, 128], strides = [1, 1]} : vector<16x128xf32> to vector<1x128xf32>
    %c13_887 = arith.constant 13 : index
    %c0_888 = arith.constant 0 : index
    %c0_889 = arith.constant 0 : index
    %1759 = vector.load %arg4[%c13_887, %c0_888, %c0_889] : memref<16x16x128xf32, #tpu.memory_space<vmem>>, vector<1x16x128xf32>
    %1760 = vector.shape_cast %1759 : vector<1x16x128xf32> to vector<16x128xf32>
    %1761 = vector.broadcast %1758 : vector<1x128xf32> to vector<16x128xf32>
    %1762 = arith.mulf %1761, %1760 : vector<16x128xf32>
    %1763 = arith.subf %1757, %1762 : vector<16x128xf32>
    %1764 = vector.extract_strided_slice %1669 {offsets = [14, 0], sizes = [1, 128], strides = [1, 1]} : vector<16x128xf32> to vector<1x128xf32>
    %c14_890 = arith.constant 14 : index
    %c0_891 = arith.constant 0 : index
    %c0_892 = arith.constant 0 : index
    %1765 = vector.load %arg4[%c14_890, %c0_891, %c0_892] : memref<16x16x128xf32, #tpu.memory_space<vmem>>, vector<1x16x128xf32>
    %1766 = vector.shape_cast %1765 : vector<1x16x128xf32> to vector<16x128xf32>
    %1767 = vector.broadcast %1764 : vector<1x128xf32> to vector<16x128xf32>
    %1768 = arith.mulf %1767, %1766 : vector<16x128xf32>
    %1769 = arith.subf %1763, %1768 : vector<16x128xf32>
    %1770 = vector.extract_strided_slice %1669 {offsets = [15, 0], sizes = [1, 128], strides = [1, 1]} : vector<16x128xf32> to vector<1x128xf32>
    %c15_893 = arith.constant 15 : index
    %c0_894 = arith.constant 0 : index
    %c0_895 = arith.constant 0 : index
    %1771 = vector.load %arg4[%c15_893, %c0_894, %c0_895] : memref<16x16x128xf32, #tpu.memory_space<vmem>>, vector<1x16x128xf32>
    %1772 = vector.shape_cast %1771 : vector<1x16x128xf32> to vector<16x128xf32>
    %1773 = vector.broadcast %1770 : vector<1x128xf32> to vector<16x128xf32>
    %1774 = arith.mulf %1773, %1772 : vector<16x128xf32>
    %1775 = arith.subf %1769, %1774 : vector<16x128xf32>
    %c15_896 = arith.constant 15 : index
    %c0_897 = arith.constant 0 : index
    %c0_898 = arith.constant 0 : index
    %1776 = vector.load %arg6[%c15_896, %c0_897, %c0_898] : memref<16x16x128xf32, #tpu.memory_space<vmem>>, vector<1x16x128xf32>
    %1777 = vector.shape_cast %1776 : vector<1x16x128xf32> to vector<16x128xf32>
    %1778 = vector.shape_cast %1775 : vector<16x128xf32> to vector<1x16x128xf32>
    tpu.vector_store %arg6[%c15_896, %c0_897, %c0_898], %1778 {strides = array<i32>} : memref<16x16x128xf32, #tpu.memory_space<vmem>>, vector<1x16x128xf32>,
    return
  }
  func.func @transform_0(%arg0: i32) -> (i32, i32, i32) {
    %c0_i32 = arith.constant 0 : i32
    %c0_i32_0 = arith.constant 0 : i32
    %c0_i32_1 = arith.constant 0 : i32
    return %c0_i32, %c0_i32_0, %arg0 : i32, i32, i32
  }
  func.func @transform_1(%arg0: i32) -> (i32, i32) {
    %c0_i32 = arith.constant 0 : i32
    %c0_i32_0 = arith.constant 0 : i32
    return %c0_i32, %arg0 : i32, i32
  }
  func.func @transform_2(%arg0: i32) -> (i32, i32) {
    %c0_i32 = arith.constant 0 : i32
    %c0_i32_0 = arith.constant 0 : i32
    return %c0_i32, %arg0 : i32, i32
  }
  func.func @transform_3(%arg0: i32) -> (i32, i32, i32) {
    %c0_i32 = arith.constant 0 : i32
    %c0_i32_0 = arith.constant 0 : i32
    %c0_i32_1 = arith.constant 0 : i32
    return %c0_i32, %c0_i32_0, %arg0 : i32, i32, i32
  }
  func.func @transform_4(%arg0: i32) -> (i32, i32) {
    %c0_i32 = arith.constant 0 : i32
    %c0_i32_0 = arith.constant 0 : i32
    return %c0_i32, %arg0 : i32, i32
  }
  func.func @transform_5(%arg0: i32) -> (i32, i32, i32) {
    %c0_i32 = arith.constant 0 : i32
    %c0_i32_0 = arith.constant 0 : i32
    %c0_i32_1 = arith.constant 0 : i32
    return %c0_i32, %c0_i32_0, %arg0 : i32, i32, i32
  }
}

</mosaic_0001>

<bundles_post_ra>
// kernel: tpu_custom_call.1
= control target key start
LH: loop header
LB: loop body
LE: loop exit
PB: predicated region body
PF: predicated region fallthrough
CT: control target
= control target key end

     0   :  { %11 = vsyncpa [#allocation3], 0  ;;  %s4717_s0 = inlined_call_operand.hbm [shape: f32[16,16,128], index: 0, kind: input, shape index: {}]   ;;  %s4718_s1 = inlined_call_operand.hbm [shape: f32[16,128], index: 1, kind: input, shape index: {}]   ;;  %s4719_s2 = inlined_call_operand.hbm [shape: f32[16,128], index: 2, kind: input, shape index: {}]   ;;  %s4720_s3 = inlined_call_operand.hbm [shape: f32[16,16,128], index: 3, kind: input, shape index: {}]   ;;  %s4721_s4 = inlined_call_operand.hbm [shape: f32[16,128], index: 4, kind: output, shape index: {0}]   ;;  %s4722_s5 = inlined_call_operand.hbm [shape: f32[16,16,128], index: 5, kind: output, shape index: {1}]  }
   0x1   :  { %12 = vsyncpa [#allocation6], 0 }
   0x2   :  { %13 = vsyncpa [#allocation9], 0 }
   0x3   :  { %14 = vsyncpa [#allocation4], 0 }
   0x4   :  { %15 = vsyncpa [#allocation12], 0  ;;  %s33_s20 = sshll.u32 %s4718_s1, 4  ;;  %s2489_s21 = smov [#allocation5]   ;;  %s34_s20 = int_to_ptr.hbm [resolvable:$true] %s33_s20 }
   0x5   :  { %s35_s22 = sshll.u32 %s2489_s21, 4  ;;  %s20_s25 = sshll.u32 %s4717_s0, 4  ;;  %s36_s22 = int_to_ptr.vmem [resolvable:$true] %s35_s22  ;;  %s21_s25 = int_to_ptr.hbm [resolvable:$true] %s20_s25 }
   0x6   :  { %s2490_s26 = smov 128   ;;  %s2491_s27 = smov 8  }
   0x7   :  { %41 = dma.hbm_to_vmem [thread:$0]  %s34_s20, 256, %s36_s22, [#allocation6], %s2490_s26, %s2490_s26, %s2491_s27  }
   0x8   :  { %s2492_s28 = smov [#allocation2]   ;;  %s46_s1 = sshll.u32 %s4719_s2, 4  ;;  %s47_s1 = int_to_ptr.hbm [resolvable:$true] %s46_s1 }
   0x9   :  { %s22_s29 = sshll.u32 %s2492_s28, 4  ;;  %s59_s8 = sshll.u32 %s4720_s3, 4  ;;  %s23_s29 = int_to_ptr.vmem [resolvable:$true] %s22_s29  ;;  %s60_s8 = int_to_ptr.hbm [resolvable:$true] %s59_s8 }
   0xa   :  { %28 = dma.hbm_to_vmem [thread:$0]  %s21_s25, 4096, %s23_s29, [#allocation3], %s2490_s26, %s2490_s26, %s2491_s27  }
   0xb   :  { %s2493_s9 = smov [#allocation7]   ;;  %s2494_s11 = smov [#allocation8]  }
   0xc   :  { %s48_s10 = sshll.u32 %s2493_s9, 4  ;;  %s61_s2 = sshll.u32 %s2494_s11, 4  ;;  %s49_s10 = int_to_ptr.vmem [resolvable:$true] %s48_s10  ;;  %s62_s2 = int_to_ptr.vmem [resolvable:$true] %s61_s2 }
   0xd   :  { %54 = dma.hbm_to_vmem [thread:$0]  %s47_s1, 256, %s49_s10, [#allocation6], %s2490_s26, %s2490_s26, %s2491_s27  }
   0xe   :  { %67 = dma.hbm_to_vmem [thread:$0]  %s60_s8, 4096, %s62_s2, [#allocation9], %s2490_s26, %s2490_s26, %s2491_s27  }
   0xf   :  { %2479 = dma.done.wait [#allocation3], 4096  }
  0x10   :  { %2480 = vsyncadd [#allocation3], 4294963200 }
  0x11   :  { %2481 = dma.done.wait [#allocation6], 512  }
  0x12   :  { %2482 = vsyncadd [#allocation6], 4294966784 }
  0x13   :  { %2483 = dma.done.wait [#allocation9], 4096  }
  0x14   :  { %2484 = vsyncadd [#allocation9], 4294963200  ;;  %v88_v0 = vlaneseq  ;;  %v2554_v2 = vld [vmem:[#allocation5] sm:$0xff]  ;;  %v2556_v3 = vld [vmem:[#allocation5 + $0x8] sm:$0xff]  ;;  %v4723_v12 = vmov 0.0   ;;  %s2496_s3 = smov [#allocation10]  }
  0x15   :  { %v2559_v4 = vld [vmem:[#allocation2] sm:$0xff]  ;;  %v2561_v5 = vld [vmem:[#allocation2 + $0x8] sm:$0xff]  ;;  %v2570_v10 = vld [vmem:[#allocation8 + $0x10] sm:$0xff]  ;;  %s4636_s12 = sshll.u32 %s2496_s3, 4  ;;  %s2270_s15 = sshll.u32 %s4721_s4, 4  ;;  %s2269_s12 = int_to_ptr.vmem [resolvable:$true] %s4636_s12  ;;  %s2271_s15 = int_to_ptr.hbm [resolvable:$true] %s2270_s15 }
  0x16   :  { %v2552_v1 = vshrl.u32 %v88_v0, 7  ;;  %v2563_v6 = vld [vmem:[#allocation8] sm:$0xff]  ;;  %v93_v7 = vmul.f32 %v2559_v4, %v2554_v2  ;;  %v94_v8 = vmul.f32 %v2561_v5, %v2556_v3  ;;  %v112_v9 = vperm.slane %v2559_v4, 0  ;;  %4861 = vst [vmem:[#allocation20_spill] sm:$0xff] %v2570_v10  ;;  %v2580_v20 = vld [vmem:[#allocation8 + $0x30] sm:$0xff]  ;;  %v2595_v34 = vld [vmem:[#allocation8 + $0x8] sm:$0xff] }
  0x17   :  { %4860 = vst [vmem:[#allocation19_spill] sm:$0xff] %v2563_v6  ;;  %v120_v11 = vperm.slane %v2559_v4, 1  ;;  %v2574_v14 = vld [vmem:[#allocation8 + $0x20] sm:$0xff]  ;;  %v128_v15 = vperm.slane %v2559_v4, 2  ;;  %v136_v19 = vperm.slane %v2559_v4, 3  ;;  %v144_v21 = vperm.slane %v2559_v4, 4 }
  0x18   :  { %4859 = vst [vmem:[#allocation18_spill] sm:$0xff] %v2552_v1  ;;  %vm104_vm0 = vcmp.eq.s32.totalorder %v2552_v1, 0  ;;  %v95_v16 = vadd.f32 %v94_v8, %v93_v7  ;;  %v113_v17 = vmul.f32 %v112_v9, %v2563_v6  ;;  %v152_v22 = vperm.slane %v2559_v4, 5  ;;  %v2586_v27 = vld [vmem:[#allocation8 + $0x40] sm:$0xff]  ;;  %v2588_v28 = vld [vmem:[#allocation8 + $0x50] sm:$0xff]  ;;  %v2597_v35 = vld [vmem:[#allocation8 + $0x18] sm:$0xff] }
  0x19   :  { %v2303_v13 = vsel %vm104_vm0, 1.0, %v4723_v12  ;;  %4862 = vst [vmem:[#allocation21_spill] sm:$0xff] %v2574_v14  ;;  %v121_v18 = vmul.f32 %v120_v11, %v2570_v10  ;;  %v160_v23 = vperm.slane %v2559_v4, 6  ;;  %v129_v26 = vmul.f32 %v128_v15, %v2574_v14  ;;  %v2590_v29 = vld [vmem:[#allocation8 + $0x60] sm:$0xff]  ;;  %v2608_v39 = vld [vmem:[#allocation8 + $0x70] sm:$0xff]  ;;  %v2615_v45 = vld [vmem:[#allocation8 + $0x28] sm:$0xff] }
  0x1a   :  { %4863 = vst [vmem:[#allocation22_spill] sm:$0xff] %v2580_v20  ;;  %v96_v24 = vrot.slane %v95_v16, 4  ;;  %v115_v25 = vsub.f32 %v2303_v13, %v113_v17  ;;  %vm253_vm1 = vcmp.eq.s32.totalorder %v2552_v1, 1  ;;  %v137_v32 = vmul.f32 %v136_v19, %v2580_v20  ;;  %v2617_v46 = vld [vmem:[#allocation8 + $0x80] sm:$0xff]  ;;  %v2626_v54 = vld [vmem:[#allocation8 + $0x90] sm:$0xff]  ;;  %v2631_v57 = vld [vmem:[#allocation8 + $0x38] sm:$0xff] }
  0x1b   :  { %4864 = vst [vmem:[#allocation23_spill] sm:$0xff] %v2586_v27  ;;  %v168_v33 = vperm.slane %v2559_v4, 7  ;;  %v145_v36 = vmul.f32 %v144_v21, %v2586_v27  ;;  %v153_v37 = vmul.f32 %v152_v22, %v2588_v28  ;;  %v161_v38 = vmul.f32 %v160_v23, %v2590_v29  ;;  %v2628_v55 = vld [vmem:[#allocation8 + $0xa0] sm:$0xff]  ;;  %v2633_v58 = vld [vmem:[#allocation8 + $0xb0] sm:$0xff]  ;;  %s2497_s4 = smov [#allocation11]   ;;  %s2283_s19 = sshll.u32 %s4722_s5, 4  ;;  %s2284_s19 = int_to_ptr.hbm [resolvable:$true] %s2283_s19 }
  0x1c   :  { %v97_v30 = vadd.f32 %v96_v24, %v95_v16  ;;  %v123_v31 = vsub.f32 %v115_v25, %v121_v18  ;;  %4865 = vst [vmem:[#allocation24_spill] sm:$0xff] %v2608_v39  ;;  %v2611_v40 = vsel %vm253_vm1, 1.0, %v4723_v12  ;;  %v176_v43 = vperm.slane %v2561_v5, 0  ;;  %v2635_v59 = vld [vmem:[#allocation8 + $0xc0] sm:$0xff]  ;;  %v2648_v16 = vld [vmem:[#allocation8 + $0x48] sm:$0xff]  ;;  %v2650_v17 = vld [vmem:[#allocation7] sm:$0xff] }
  0x1d   :  { %v184_v44 = vperm.slane %v2561_v5, 1  ;;  %v4730_v47 = vperm.slane %v2561_v5, 2  ;;  %v4729_v48 = vperm.slane %v2561_v5, 3  ;;  %v114_v49 = vmul.f32 %v112_v9, %v2595_v34  ;;  %v2643_v9 = vld [vmem:[#allocation8 + $0xd0] sm:$0xff]  ;;  %v2699_v12 = vld [vmem:[#allocation2 + $0x18] sm:$0xff]  ;;  %s2281_s16 = sshll.u32 %s2497_s4, 4  ;;  %s2282_s16 = int_to_ptr.vmem [resolvable:$true] %s2281_s16 }
  0x1e   :  { %v98_v41 = vrot.slane %v97_v30, 2  ;;  %v131_v42 = vsub.f32 %v123_v31, %v129_v26  ;;  %v122_v50 = vmul.f32 %v120_v11, %v2597_v35  ;;  %v169_v53 = vmul.f32 %v168_v33, %v2608_v39  ;;  %v2645_v11 = vld [vmem:[#allocation8 + $0xe0] sm:$0xff]  ;;  %v2660_v24 = vld [vmem:[#allocation8 + $0xf0] sm:$0xff] }
  0x1f   :  { %v4728_v56 = vperm.slane %v2561_v5, 4  ;;  %v4727_v60 = vperm.slane %v2561_v5, 5  ;;  %v4726_v61 = vperm.slane %v2561_v5, 6  ;;  %v116_v62 = vsub.f32 0.0, %v114_v49  ;;  %4866 = vst [vmem:[#allocation25_spill] sm:$0xff] %v2660_v24 }
  0x20   :  { %v99_v51 = vadd.f32 %v98_v41, %v97_v30  ;;  %v139_v52 = vsub.f32 %v131_v42, %v137_v32  ;;  %v130_v63 = vmul.f32 %v128_v15, %v2615_v45  ;;  %v177_v8 = vmul.f32 %v176_v43, %v2617_v46  ;;  %v2663_v30 = vld [vmem:[#allocation8 + $0x58] sm:$0xff]  ;;  %v2673_v42 = vld [vmem:[#allocation2 + $0x10] sm:$0xff] }
  0x21   :  { %v4725_v13 = vperm.slane %v2561_v5, 7  ;;  %v185_v15 = vmul.f32 %v184_v44, %v2626_v54  ;;  %v2658_v18 = vmul.f32 %v4730_v47, %v2628_v55  ;;  %v124_v25 = vsub.f32 %v116_v62, %v122_v50  ;;  %v2728_v47 = vld [vmem:[#allocation8 + $0xa8] sm:$0xff] }
  0x22   :  { %v100_v0 = vrot.slane %v99_v51, 1  ;;  %v147_v7 = vsub.f32 %v139_v52, %v145_v36  ;;  %v138_v26 = vmul.f32 %v136_v19, %v2631_v57  ;;  %v201_v36 = vmul.f32 %v4729_v48, %v2633_v58  ;;  %4868 = vst [vmem:[#allocation27_spill] sm:$0xff] %v2728_v47 }
  0x23   :  { %v2671_v41 = vmul.f32 %v4728_v56, %v2635_v59  ;;  %v2678_v49 = vmul.f32 %v4727_v60, %v2643_v9  ;;  %v2683_v19 = vmul.f32 %v4726_v61, %v2645_v11  ;;  %v146_v50 = vmul.f32 %v144_v21, %v2648_v16  ;;  %v2716_v56 = vld [vmem:[#allocation8 + $0x98] sm:$0xff] }
  0x24   :  { %v101_v31 = vadd.f32 %v100_v0, %v99_v51  ;;  %v155_v32 = vsub.f32 %v147_v7, %v153_v37  ;;  %v132_v37 = vsub.f32 %v124_v25, %v130_v63  ;;  %v2692_v62 = vmul.f32 %v4725_v13, %v2660_v24  ;;  %v2697_v7 = vld [vmem:[#allocation8 + $0x68] sm:$0xff]  ;;  %v2701_v25 = vld [vmem:[#allocation8 + $0x78] sm:$0xff] }
  0x25   :  { %v154_v0 = vmul.f32 %v152_v22, %v2663_v30  ;;  %v242_v21 = vmul.f32 %v2673_v42, %v2554_v2  ;;  %v4731_v13 = vperm.slane %v2673_v42, 1  ;;  %v4732_v22 = vperm.slane %v2673_v42, 2 }
  0x26   :  { %v102_v51 = vadd.f32 %v101_v31, %v2650_v17  ;;  %v163_v52 = vsub.f32 %v155_v32, %v161_v38  ;;  %v140_v63 = vsub.f32 %v132_v37, %v138_v26  ;;  %v243_v38 = vmul.f32 %v2699_v12, %v2556_v3  ;;  %v2714_v37 = vld [vmem:[#allocation8 + $0x88] sm:$0xff] }
  0x27   :  { %v4733_v31 = vperm.slane %v2673_v42, 0  ;;  %v162_v26 = vmul.f32 %v160_v23, %v2697_v7  ;;  %4867 = vst [vmem:[#allocation26_spill] sm:$0xff] %v2714_v37  ;;  %v4736_v23 = vperm.slane %v2673_v42, 4  ;;  %v178_v4 = vmul.f32 %v176_v43, %v2714_v37 }
  0x28   :  { %103 = vst [vmem:[#allocation10] sm:$0x1] %v102_v51  ;;  %v171_v32 = vsub.f32 %v163_v52, %v169_v53  ;;  %v148_v60 = vsub.f32 %v140_v63, %v146_v50  ;;  %v244_v48 = vadd.f32 %v243_v38, %v242_v21  ;;  %v170_v52 = vmul.f32 %v168_v33, %v2701_v25 }
  0x29   :  { %v262_v53 = vmul.f32 %v4733_v31, %v2563_v6  ;;  %v269_v50 = vmul.f32 %v4731_v13, %v2570_v10  ;;  %v186_v33 = vmul.f32 %v184_v44, %v2716_v56  ;;  %v2743_v13 = vld [vmem:[#allocation8 + $0xb8] sm:$0xff]  ;;  %v4870_v43 = vperm.slane %v2561_v5, 2 }
  0x2a   :  { %v179_v51 = vsub.f32 %v171_v32, %v177_v8  ;;  %v156_v63 = vsub.f32 %v148_v60, %v154_v0  ;;  %v245_v61 = vrot.slane %v244_v48, 4  ;;  %v276_v8 = vmul.f32 %v4732_v22, %v2574_v14 }
  0x2b   :  { %v264_v21 = vsub.f32 %v2611_v40, %v262_v53  ;;  %v4869_v60 = vperm.slane %v2673_v42, 3  ;;  %v2745_v40 = vld [vmem:[#allocation8 + $0xc8] sm:$0xff]  ;;  %v194_v31 = vmul.f32 %v4870_v43, %v2728_v47  ;;  %v290_v44 = vmul.f32 %v4736_v23, %v2586_v27 }
  0x2c   :  { %v187_v38 = vsub.f32 %v179_v51, %v185_v15  ;;  %v164_v32 = vsub.f32 %v156_v63, %v162_v26  ;;  %v246_v53 = vadd.f32 %v245_v61, %v244_v48  ;;  %v4873_v43 = vperm.slane %v2561_v5, 4 }
  0x2d   :  { %v283_v0 = vmul.f32 %v4869_v60, %v2580_v20  ;;  %v271_v22 = vsub.f32 %v264_v21, %v269_v50  ;;  %v2756_v60 = vld [vmem:[#allocation8 + $0xd8] sm:$0xff]  ;;  %v2758_v20 = vld [vmem:[#allocation8 + $0xe8] sm:$0xff]  ;;  %v4872_v21 = vperm.slane %v2561_v5, 3  ;;  %v4741_v26 = vperm.slane %v2699_v12, 0 }
  0x2e   :  { %v195_v51 = vsub.f32 %v187_v38, %v2658_v18  ;;  %v172_v63 = vsub.f32 %v164_v32, %v170_v52  ;;  %4871 = vst [vmem:[#allocation28_spill] sm:$0xff] %v2758_v20  ;;  %v247_v48 = vrot.slane %v246_v53, 2  ;;  %v210_v23 = vmul.f32 %v4873_v43, %v2745_v40 }
  0x2f   :  { %v278_v61 = vsub.f32 %v271_v22, %v276_v8  ;;  %v202_v38 = vmul.f32 %v4872_v21, %v2743_v13  ;;  %v4874_v47 = vperm.slane %v2673_v42, 5  ;;  %v4876_v21 = vperm.slane %v2561_v5, 6 }
  0x30   :  { %v203_v18 = vsub.f32 %v195_v51, %v201_v36  ;;  %v180_v52 = vsub.f32 %v172_v63, %v178_v4  ;;  %v248_v32 = vadd.f32 %v247_v48, %v246_v53  ;;  %v4875_v36 = vperm.slane %v2561_v5, 5 }
  0x31   :  { %v285_v15 = vsub.f32 %v278_v61, %v283_v0  ;;  %v297_v22 = vmul.f32 %v4874_v47, %v2588_v28  ;;  %v226_v50 = vmul.f32 %v4876_v21, %v2758_v20  ;;  %v4877_v43 = vperm.slane %v2673_v42, 6 }
  0x32   :  { %v211_v8 = vsub.f32 %v203_v18, %v2671_v41  ;;  %v218_v51 = vmul.f32 %v4875_v36, %v2756_v60  ;;  %v188_v53 = vsub.f32 %v180_v52, %v186_v33  ;;  %v249_v0 = vrot.slane %v248_v32, 1  ;;  %v2794_v52 = vld [vmem:[#allocation8 + $0xf8] sm:$0xff] }
  0x33   :  { %v304_v4 = vmul.f32 %v4877_v43, %v2590_v29  ;;  %v292_v63 = vsub.f32 %v285_v15, %v290_v44  ;;  %v4878_v47 = vperm.slane %v2673_v42, 7  ;;  %v318_v61 = vmul.f32 %v4741_v26, %v2617_v46 }
  0x34   :  { %v219_v41 = vsub.f32 %v211_v8, %v2678_v49  ;;  %v4746_v18 = vperm.slane %v2699_v12, 1  ;;  %v196_v21 = vsub.f32 %v188_v53, %v194_v31  ;;  %v250_v20 = vadd.f32 %v249_v0, %v248_v32 }
  0x35   :  { %v311_v48 = vmul.f32 %v4878_v47, %v2608_v39  ;;  %v299_v43 = vsub.f32 %v292_v63, %v297_v22  ;;  %v4879_v33 = vperm.slane %v2673_v42, 0  ;;  %v4745_v49 = vperm.slane %v2699_v12, 3 }
  0x36   :  { %v227_v44 = vsub.f32 %v219_v41, %v2683_v19  ;;  %v4744_v8 = vperm.slane %v2699_v12, 4  ;;  %v4742_v47 = vperm.slane %v2699_v12, 5  ;;  %v204_v26 = vsub.f32 %v196_v21, %v202_v38 }
  0x37   :  { %v263_v15 = vmul.f32 %v4879_v33, %v2595_v34  ;;  %v251_v36 = vadd.f32 %v250_v20, %v2650_v17  ;;  %v306_v31 = vsub.f32 %v299_v43, %v304_v4  ;;  %v4743_v53 = vperm.slane %v2699_v12, 6 }
  0x38   :  { %v235_v22 = vsub.f32 %v227_v44, %v2692_v62  ;;  %v4880_v19 = vperm.slane %v2673_v42, 1  ;;  %v4881_v63 = vperm.slane %v2673_v42, 2  ;;  %v212_v33 = vsub.f32 %v204_v26, %v210_v23 }
  0x39   :  { %v265_v32 = vsub.f32 0.0, %v263_v15  ;;  %v4882_v38 = vperm.slane %v2561_v5, 7  ;;  %252 = vst [vmem:[#allocation10] sm:$0x2] %v251_v36  ;;  %v313_v20 = vsub.f32 %v306_v31, %v311_v48  ;;  %v325_v62 = vmul.f32 %v4746_v18, %v2626_v54 }
  0x3a   :  { %v270_v0 = vmul.f32 %v4880_v19, %v2597_v35  ;;  %v277_v41 = vmul.f32 %v4881_v63, %v2615_v45  ;;  %237 = vst [vmem:[#allocation11] sm:$0xff] %v235_v22  ;;  %v4883_v4 = vperm.slane %v2699_v12, 2  ;;  %v339_v15 = vmul.f32 %v4745_v49, %v2633_v58 }
  0x3b   :  { %v234_v21 = vmul.f32 %v4882_v38, %v2794_v52  ;;  %v4884_v5 = vperm.slane %v2673_v42, 3  ;;  %v220_v36 = vsub.f32 %v212_v33, %v218_v51  ;;  %v320_v48 = vsub.f32 %v313_v20, %v318_v61  ;;  %v2836_v61 = vld [vmem:[#allocation2 + $0x20] sm:$0xff] }
  0x3c   :  { %v332_v43 = vmul.f32 %v4883_v4, %v2628_v55  ;;  %v272_v23 = vsub.f32 %v265_v32, %v270_v0  ;;  %v346_v44 = vmul.f32 %v4744_v8, %v2635_v59  ;;  %v353_v22 = vmul.f32 %v4742_v47, %v2643_v9  ;;  %v2844_v47 = vld [vmem:[#allocation2 + $0x28] sm:$0xff] }
  0x3d   :  { %v284_v26 = vmul.f32 %v4884_v5, %v2631_v57  ;;  %v360_v32 = vmul.f32 %v4743_v53, %v2645_v11  ;;  %v4885_v0 = vperm.slane %v2673_v42, 4  ;;  %v228_v63 = vsub.f32 %v220_v36, %v226_v50 }
  0x3e   :  { %v279_v19 = vsub.f32 %v272_v23, %v277_v41  ;;  %v327_v33 = vsub.f32 %v320_v48, %v325_v62  ;;  %v4886_v38 = vperm.slane %v2673_v42, 5  ;;  %v4887_v4 = vperm.slane %v2673_v42, 6 }
  0x3f   :  { %v291_v51 = vmul.f32 %v4885_v0, %v2648_v16  ;;  %v377_v41 = vmul.f32 %v2836_v61, %v2554_v2  ;;  %v378_v23 = vmul.f32 %v2844_v47, %v2556_v3  ;;  %vm388_vm2 = vcmp.eq.s32.totalorder %v2552_v1, 2 }
  0x40   :  { %v298_v20 = vmul.f32 %v4886_v38, %v2663_v30  ;;  %v305_v5 = vmul.f32 %v4887_v4, %v2697_v7  ;;  %v286_v53 = vsub.f32 %v279_v19, %v284_v26  ;;  %v236_v50 = vsub.f32 %v228_v63, %v234_v21 }
  0x41   :  { %v334_v62 = vsub.f32 %v327_v33, %v332_v43  ;;  %v4888_v36 = vmov 0.0   ;;  %v396_v0 = vperm.slane %v2836_v61, 0  ;;  %v379_v8 = vadd.f32 %v378_v23, %v377_v41 }
  0x42   :  { %v2305_v48 = vsel %vm388_vm2, 1.0, %v4888_v36  ;;  %v293_v38 = vsub.f32 %v286_v53, %v291_v51  ;;  %v403_v4 = vperm.slane %v2836_v61, 1  ;;  %v410_v26 = vperm.slane %v2836_v61, 2  ;;  %238 = vst [vmem:[#allocation11 + $0x8] sm:$0xff] %v236_v50 }
  0x43   :  { %v341_v19 = vsub.f32 %v334_v62, %v339_v15  ;;  %v4889_v49 = vperm.slane %v2673_v42, 7  ;;  %v397_v31 = vmul.f32 %v396_v0, %v2563_v6  ;;  %v380_v63 = vrot.slane %v379_v8, 4 }
  0x44   :  { %v300_v43 = vsub.f32 %v293_v38, %v298_v20  ;;  %v404_v33 = vmul.f32 %v403_v4, %v2570_v10  ;;  %v4890_v41 = vperm.slane %v2699_v12, 7  ;;  %v411_v50 = vmul.f32 %v410_v26, %v2574_v14 }
  0x45   :  { %v312_v18 = vmul.f32 %v4889_v49, %v2701_v25  ;;  %v348_v51 = vsub.f32 %v341_v19, %v346_v44  ;;  %v399_v15 = vsub.f32 %v2305_v48, %v397_v31  ;;  %v4891_v49 = vperm.slane %v2699_v12, 0  ;;  %v4893_v44 = vld [vmem:[#allocation22_spill] sm:$0xff] }
  0x46   :  { %v367_v23 = vmul.f32 %v4890_v41, %v2660_v24  ;;  %v307_v42 = vsub.f32 %v300_v43, %v305_v5  ;;  %v4892_v20 = vperm.slane %v2699_v12, 1  ;;  %v381_v21 = vadd.f32 %v380_v63, %v379_v8 }
  0x47   :  { %v319_v62 = vmul.f32 %v4891_v49, %v2714_v37  ;;  %v355_v10 = vsub.f32 %v348_v51, %v353_v22  ;;  %v406_v53 = vsub.f32 %v399_v15, %v404_v33  ;;  %v4894_v19 = vperm.slane %v2836_v61, 3  ;;  %v4896_v33 = vld [vmem:[#allocation27_spill] sm:$0xff]  ;;  %v4901_v22 = vld [vmem:[#allocation28_spill] sm:$0xff] }
  0x48   :  { %v326_v38 = vmul.f32 %v4892_v20, %v2716_v56  ;;  %v431_v31 = vperm.slane %v2836_v61, 5  ;;  %v314_v48 = vsub.f32 %v307_v42, %v312_v18  ;;  %v382_v41 = vrot.slane %v381_v21, 2 }
  0x49   :  { %v418_v6 = vmul.f32 %v4894_v19, %v4893_v44  ;;  %v4895_v5 = vperm.slane %v2836_v61, 4  ;;  %v438_v49 = vperm.slane %v2836_v61, 6  ;;  %v362_v14 = vsub.f32 %v355_v10, %v360_v32 }
  0x4a   :  { %v413_v37 = vsub.f32 %v406_v53, %v411_v50  ;;  %v321_v63 = vsub.f32 %v314_v48, %v319_v62  ;;  %v4897_v51 = vperm.slane %v2699_v12, 2  ;;  %v4898_v18 = vperm.slane %v2699_v12, 3 }
  0x4b   :  { %v425_v43 = vmul.f32 %v4895_v5, %v2586_v27  ;;  %v383_v20 = vadd.f32 %v382_v41, %v381_v21  ;;  %v369_v19 = vsub.f32 %v362_v14, %v367_v23  ;;  %v4899_v5 = vperm.slane %v2699_v12, 4 }
  0x4c   :  { %v333_v15 = vmul.f32 %v4897_v51, %v4896_v33  ;;  %v340_v42 = vmul.f32 %v4898_v18, %v2743_v13  ;;  %v420_v32 = vsub.f32 %v413_v37, %v418_v6  ;;  %v432_v53 = vmul.f32 %v431_v31, %v2588_v28 }
  0x4d   :  { %v347_v10 = vmul.f32 %v4899_v5, %v2745_v40  ;;  %v328_v50 = vsub.f32 %v321_v63, %v326_v38  ;;  %v4900_v62 = vperm.slane %v2699_v12, 5  ;;  %v4902_v51 = vperm.slane %v2699_v12, 6  ;;  %372 = vst [vmem:[#allocation11 + $0x10] sm:$0xff] %v369_v19 }
  0x4e   :  { %v384_v27 = vrot.slane %v383_v20, 1  ;;  %v427_v21 = vsub.f32 %v420_v32, %v425_v43  ;;  %v439_v14 = vmul.f32 %v438_v49, %v2590_v29  ;;  %v4903_v23 = vperm.slane %v2836_v61, 7 }
  0x4f   :  { %v354_v48 = vmul.f32 %v4900_v62, %v2756_v60  ;;  %v361_v8 = vmul.f32 %v4902_v51, %v4901_v22  ;;  %v4904_v37 = vperm.slane %v2844_v47, 0  ;;  %v335_v41 = vsub.f32 %v328_v50, %v333_v15 }
  0x50   :  { %v446_v6 = vmul.f32 %v4903_v23, %v2608_v39  ;;  %v385_v63 = vadd.f32 %v384_v27, %v383_v20  ;;  %v4759_v18 = vperm.slane %v2844_v47, 1  ;;  %v4758_v5 = vperm.slane %v2844_v47, 2 }
  0x51   :  { %v453_v38 = vmul.f32 %v4904_v37, %v2617_v46  ;;  %v434_v62 = vsub.f32 %v427_v21, %v432_v53  ;;  %v4757_v19 = vperm.slane %v2844_v47, 3  ;;  %v398_v43 = vmul.f32 %v396_v0, %v2595_v34 }
  0x52   :  { %v405_v32 = vmul.f32 %v403_v4, %v2597_v35  ;;  %v342_v51 = vsub.f32 %v335_v41, %v340_v42  ;;  %v386_v23 = vadd.f32 %v385_v63, %v2650_v17  ;;  %v4755_v39 = vperm.slane %v2844_v47, 4 }
  0x53   :  { %v4754_v37 = vperm.slane %v2844_v47, 5  ;;  %v441_v15 = vsub.f32 %v434_v62, %v439_v14  ;;  %v4756_v27 = vperm.slane %v2844_v47, 6  ;;  %v400_v20 = vsub.f32 0.0, %v398_v43 }
  0x54   :  { %v412_v50 = vmul.f32 %v410_v26, %v2615_v45  ;;  %v349_v53 = vsub.f32 %v342_v51, %v347_v10  ;;  %v4905_v21 = vperm.slane %v2699_v12, 7  ;;  %387 = vst [vmem:[#allocation10] sm:$0x4] %v386_v23  ;;  %v460_v4 = vmul.f32 %v4759_v18, %v2626_v54 }
  0x55   :  { %v467_v42 = vmul.f32 %v4758_v5, %v2628_v55  ;;  %v448_v14 = vsub.f32 %v441_v15, %v446_v6  ;;  %v474_v41 = vmul.f32 %v4757_v19, %v2633_v58  ;;  %v407_v26 = vsub.f32 %v400_v20, %v405_v32  ;;  %v2943_v20 = vld [vmem:[#allocation2 + $0x30] sm:$0xff]  ;;  %v4910_v5 = vld [vmem:[#allocation20_spill] sm:$0xff] }
  0x56   :  { %v368_v0 = vmul.f32 %v4905_v21, %v2794_v52  ;;  %v4906_v10 = vperm.slane %v2836_v61, 3  ;;  %v356_v63 = vsub.f32 %v349_v53, %v354_v48  ;;  %v481_v62 = vmul.f32 %v4755_v39, %v2635_v59 }
  0x57   :  { %v488_v43 = vmul.f32 %v4754_v37, %v2643_v9  ;;  %v455_v51 = vsub.f32 %v448_v14, %v453_v38  ;;  %v495_v32 = vmul.f32 %v4756_v27, %v2645_v11  ;;  %v414_v23 = vsub.f32 %v407_v26, %v412_v50  ;;  %v2947_v37 = vld [vmem:[#allocation2 + $0x38] sm:$0xff] }
  0x58   :  { %v419_v12 = vmul.f32 %v4906_v10, %v2631_v57  ;;  %v4907_v15 = vperm.slane %v2836_v61, 4  ;;  %v363_v53 = vsub.f32 %v356_v63, %v361_v8  ;;  %v433_v21 = vmul.f32 %v431_v31, %v2663_v30 }
  0x59   :  { %v440_v10 = vmul.f32 %v438_v49, %v2697_v7  ;;  %v512_v38 = vmul.f32 %v2943_v20, %v2554_v2  ;;  %v462_v14 = vsub.f32 %v455_v51, %v460_v4  ;;  %v513_v50 = vmul.f32 %v2947_v37, %v2556_v3  ;;  %v4909_v51 = vld [vmem:[#allocation19_spill] sm:$0xff] }
  0x5a   :  { %v426_v48 = vmul.f32 %v4907_v15, %v2648_v16  ;;  %v421_v39 = vsub.f32 %v414_v23, %v419_v12  ;;  %vm523_vm3 = vcmp.eq.s32.totalorder %v2552_v1, 3  ;;  %v370_v26 = vsub.f32 %v363_v53, %v368_v0 }
  0x5b   :  { %v2306_v15 = vsel %vm523_vm3, 1.0, %v4888_v36  ;;  %v531_v8 = vperm.slane %v2943_v20, 0  ;;  %v538_v31 = vperm.slane %v2943_v20, 1  ;;  %v469_v49 = vsub.f32 %v462_v14, %v467_v42 }
  0x5c   :  { %v428_v63 = vsub.f32 %v421_v39, %v426_v48  ;;  %v514_v27 = vadd.f32 %v513_v50, %v512_v38  ;;  %v545_v19 = vperm.slane %v2943_v20, 2  ;;  %373 = vst [vmem:[#allocation11 + $0x18] sm:$0xff] %v370_v26  ;;  %v4908_v4 = vperm.slane %v2836_v61, 7  ;;  %v4912_v38 = vld [vmem:[#allocation26_spill] sm:$0xff]  ;;  %v4914_v26 = vld [vmem:[#allocation21_spill] sm:$0xff] }
  0x5d   :  { %v532_v23 = vmul.f32 %v531_v8, %v4909_v51  ;;  %v539_v0 = vmul.f32 %v538_v31, %v4910_v5  ;;  %v476_v18 = vsub.f32 %v469_v49, %v474_v41  ;;  %v4911_v39 = vperm.slane %v2844_v47, 7 }
  0x5e   :  { %v447_v12 = vmul.f32 %v4908_v4, %v2701_v25  ;;  %v435_v6 = vsub.f32 %v428_v63, %v433_v21  ;;  %v515_v36 = vrot.slane %v514_v27, 4  ;;  %v4913_v14 = vperm.slane %v2844_v47, 0 }
  0x5f   :  { %v502_v48 = vmul.f32 %v4911_v39, %v2660_v24  ;;  %v534_v50 = vsub.f32 %v2306_v15, %v532_v23  ;;  %v546_v4 = vmul.f32 %v545_v19, %v4914_v26  ;;  %v483_v51 = vsub.f32 %v476_v18, %v481_v62  ;;  %v4918_v62 = vld [vmem:[#allocation23_spill] sm:$0xff] }
  0x60   :  { %v454_v61 = vmul.f32 %v4913_v14, %v4912_v38  ;;  %v442_v5 = vsub.f32 %v435_v6, %v440_v10  ;;  %v4915_v41 = vperm.slane %v2844_v47, 1  ;;  %v516_v49 = vadd.f32 %v515_v36, %v514_v27 }
  0x61   :  { %v4916_v63 = vperm.slane %v2844_v47, 2  ;;  %v541_v53 = vsub.f32 %v534_v50, %v539_v0  ;;  %v4917_v39 = vperm.slane %v2943_v20, 3  ;;  %v566_v15 = vperm.slane %v2943_v20, 5 }
  0x62   :  { %v461_v21 = vmul.f32 %v4915_v41, %v2716_v56  ;;  %v490_v23 = vsub.f32 %v483_v51, %v488_v43  ;;  %v449_v14 = vsub.f32 %v442_v5, %v447_v12  ;;  %v517_v18 = vrot.slane %v516_v49, 2 }
  0x63   :  { %v468_v42 = vmul.f32 %v4916_v63, %v4896_v33  ;;  %v553_v24 = vmul.f32 %v4917_v39, %v4893_v44  ;;  %v4919_v6 = vperm.slane %v2943_v20, 4  ;;  %v548_v26 = vsub.f32 %v541_v53, %v546_v4 }
  0x64   :  { %v573_v36 = vperm.slane %v2943_v20, 6  ;;  %v580_v27 = vperm.slane %v2943_v20, 7  ;;  %v587_v0 = vperm.slane %v2947_v37, 0  ;;  %v497_v50 = vsub.f32 %v490_v23, %v495_v32 }
  0x65   :  { %v560_v10 = vmul.f32 %v4919_v6, %v4918_v62  ;;  %v456_v41 = vsub.f32 %v449_v14, %v454_v61  ;;  %v4920_v44 = vperm.slane %v2844_v47, 3  ;;  %v518_v43 = vadd.f32 %v517_v18, %v516_v49  ;;  %v4924_v18 = vld [vmem:[#allocation24_spill] sm:$0xff] }
  0x66   :  { %v4921_v12 = vperm.slane %v2844_v47, 4  ;;  %v4922_v53 = vperm.slane %v2844_v47, 5  ;;  %v555_v5 = vsub.f32 %v548_v26, %v553_v24  ;;  %v567_v39 = vmul.f32 %v566_v15, %v2588_v28 }
  0x67   :  { %v475_v63 = vmul.f32 %v4920_v44, %v2743_v13  ;;  %v504_v62 = vsub.f32 %v497_v50, %v502_v48  ;;  %v463_v6 = vsub.f32 %v456_v41, %v461_v21  ;;  %v4923_v32 = vperm.slane %v2844_v47, 6 }
  0x68   :  { %v482_v51 = vmul.f32 %v4921_v12, %v2745_v40  ;;  %v489_v4 = vmul.f32 %v4922_v53, %v2756_v60  ;;  %v519_v23 = vrot.slane %v518_v43, 1  ;;  %v562_v14 = vsub.f32 %v555_v5, %v560_v10 }
  0x69   :  { %v496_v61 = vmul.f32 %v4923_v32, %v4901_v22  ;;  %v574_v49 = vmul.f32 %v573_v36, %v2590_v29  ;;  %v581_v44 = vmul.f32 %v580_v27, %v4924_v18  ;;  %v588_v24 = vmul.f32 %v587_v0, %v2617_v46  ;;  %507 = vst [vmem:[#allocation11 + $0x20] sm:$0xff] %v504_v62  ;;  %v3048_v18 = vld [vmem:[#allocation2 + $0x40] sm:$0xff] }
  0x6a   :  { %v470_v28 = vsub.f32 %v463_v6, %v468_v42  ;;  %v520_v48 = vadd.f32 %v519_v23, %v518_v43  ;;  %v594_v21 = vperm.slane %v2947_v37, 1  ;;  %v601_v26 = vperm.slane %v2947_v37, 2 }
  0x6b   :  { %v569_v50 = vsub.f32 %v562_v14, %v567_v39  ;;  %v608_v10 = vperm.slane %v2947_v37, 3  ;;  %v533_v29 = vmul.f32 %v531_v8, %v2595_v34  ;;  %v540_v41 = vmul.f32 %v538_v31, %v2597_v35 }
  0x6c   :  { %v477_v12 = vsub.f32 %v470_v28, %v475_v63  ;;  %v521_v53 = vadd.f32 %v520_v48, %v2650_v17  ;;  %v615_v5 = vperm.slane %v2947_v37, 4  ;;  %v622_v46 = vperm.slane %v2947_v37, 5  ;;  %v3052_v28 = vld [vmem:[#allocation2 + $0x48] sm:$0xff] }
  0x6d   :  { %v576_v42 = vsub.f32 %v569_v50, %v574_v49  ;;  %v629_v43 = vperm.slane %v2947_v37, 6  ;;  %v535_v62 = vsub.f32 0.0, %v533_v29  ;;  %v547_v6 = vmul.f32 %v545_v19, %v2615_v45  ;;  %v3061_v29 = vld [vmem:[#allocation8 + $0x10] sm:$0xff] }
  0x6e   :  { %v484_v39 = vsub.f32 %v477_v12, %v482_v51  ;;  %v4925_v32 = vperm.slane %v2844_v47, 7  ;;  %522 = vst [vmem:[#allocation10] sm:$0x8] %v521_v53  ;;  %v595_v35 = vmul.f32 %v594_v21, %v2626_v54  ;;  %v602_v8 = vmul.f32 %v601_v26, %v2628_v55 }
  0x6f   :  { %v583_v31 = vsub.f32 %v576_v42, %v581_v44  ;;  %v609_v63 = vmul.f32 %v608_v10, %v2633_v58  ;;  %v542_v45 = vsub.f32 %v535_v62, %v540_v41  ;;  %v4926_v19 = vperm.slane %v2943_v20, 3  ;;  %v3066_v42 = vld [vmem:[#allocation8 + $0x20] sm:$0xff] }
  0x70   :  { %v503_v34 = vmul.f32 %v4925_v32, %v2794_v52  ;;  %v491_v51 = vsub.f32 %v484_v39, %v489_v4  ;;  %v616_v23 = vmul.f32 %v615_v5, %v2635_v59  ;;  %v623_v54 = vmul.f32 %v622_v46, %v2643_v9 }
  0x71   :  { %v554_v47 = vmul.f32 %v4926_v19, %v2631_v57  ;;  %v636_v55 = vperm.slane %v2947_v37, 7  ;;  %v590_v14 = vsub.f32 %v583_v31, %v588_v24  ;;  %v3043_v58 = vmul.f32 %v629_v43, %v2645_v11  ;;  %v3079_v31 = vld [vmem:[#allocation8 + $0x30] sm:$0xff]  ;;  %v4929_v19 = vld [vmem:[#allocation25_spill] sm:$0xff] }
  0x72   :  { %v549_v49 = vsub.f32 %v542_v45, %v547_v6  ;;  %v4927_v57 = vperm.slane %v2943_v20, 4  ;;  %v498_v59 = vsub.f32 %v491_v51, %v496_v61  ;;  %v568_v44 = vmul.f32 %v566_v15, %v2663_v30 }
  0x73   :  { %v575_v9 = vmul.f32 %v573_v36, %v2697_v7  ;;  %v647_v24 = vmul.f32 %v3048_v18, %v2554_v2  ;;  %v597_v48 = vsub.f32 %v590_v14, %v595_v35  ;;  %v648_v50 = vmul.f32 %v3052_v28, %v2556_v3 }
  0x74   :  { %v561_v4 = vmul.f32 %v4927_v57, %v2648_v16  ;;  %v556_v11 = vsub.f32 %v549_v49, %v554_v47  ;;  %vm658_vm4 = vcmp.eq.s32.totalorder %v2552_v1, 4  ;;  %v3059_v16 = vld [vmem:[#allocation8] sm:$0xff]  ;;  %v505_v61 = vsub.f32 %v498_v59, %v503_v34 }
  0x75   :  { %v4928_v30 = vmov 0.0   ;;  %v666_v7 = vperm.slane %v3048_v18, 0  ;;  %v673_v36 = vperm.slane %v3048_v18, 1  ;;  %v604_v41 = vsub.f32 %v597_v48, %v602_v8 }
  0x76   :  { %v2307_v15 = vsel %vm658_vm4, 1.0, %v4928_v30  ;;  %v563_v12 = vsub.f32 %v556_v11, %v561_v4  ;;  %v649_v53 = vadd.f32 %v648_v50, %v647_v24  ;;  %v680_v3 = vperm.slane %v3048_v18, 2  ;;  %508 = vst [vmem:[#allocation11 + $0x28] sm:$0xff] %v505_v61 }
  0x77   :  { %v582_v62 = vmul.f32 %v580_v27, %v2701_v25  ;;  %v667_v6 = vmul.f32 %v666_v7, %v3059_v16  ;;  %v674_v39 = vmul.f32 %v673_v36, %v3061_v29  ;;  %v687_v32 = vperm.slane %v3048_v18, 3 }
  0x78   :  { %v611_v34 = vsub.f32 %v604_v41, %v609_v63  ;;  %v570_v35 = vsub.f32 %v563_v12, %v568_v44  ;;  %v650_v8 = vrot.slane %v649_v53, 4  ;;  %v694_v45 = vperm.slane %v3048_v18, 4  ;;  %v3091_v63 = vld [vmem:[#allocation8 + $0x40] sm:$0xff]  ;;  %v3117_v41 = vld [vmem:[#allocation8 + $0x70] sm:$0xff] }
  0x79   :  { %v637_v25 = vmul.f32 %v636_v55, %v4929_v19  ;;  %v589_v20 = vmul.f32 %v587_v0, %v4912_v38  ;;  %v669_v27 = vsub.f32 %v2307_v15, %v667_v6  ;;  %v681_v47 = vmul.f32 %v680_v3, %v3066_v42  ;;  %v3115_v15 = vld [vmem:[#allocation8 + $0x60] sm:$0xff]  ;;  %4930 = vst [vmem:[#allocation22_spill] sm:$0xff] %v3117_v41 }
  0x7a   :  { %v618_v51 = vsub.f32 %v611_v34, %v616_v23  ;;  %v577_v14 = vsub.f32 %v570_v35, %v575_v9  ;;  %v596_v49 = vmul.f32 %v594_v21, %v2716_v56  ;;  %v651_v57 = vadd.f32 %v650_v8, %v649_v53  ;;  %v3106_v56 = vld [vmem:[#allocation8 + $0x50] sm:$0xff]  ;;  %v3119_v12 = vld [vmem:[#allocation8 + $0x80] sm:$0xff]  ;;  %v3135_v35 = vld [vmem:[#allocation8 + $0x8] sm:$0xff] }
  0x7b   :  { %v603_v4 = vmul.f32 %v601_v26, %v4896_v33  ;;  %v676_v59 = vsub.f32 %v669_v27, %v674_v39  ;;  %v688_v38 = vmul.f32 %v687_v32, %v3079_v31  ;;  %v701_v0 = vperm.slane %v3048_v18, 5 }
  0x7c   :  { %v625_v44 = vsub.f32 %v618_v51, %v623_v54  ;;  %v584_v24 = vsub.f32 %v577_v14, %v582_v62  ;;  %v652_v23 = vrot.slane %v651_v57, 2  ;;  %v695_v9 = vmul.f32 %v694_v45, %v3091_v63  ;;  %v3154_v51 = vld [vmem:[#allocation8 + $0xa0] sm:$0xff] }
  0x7d   :  { %v683_v21 = vsub.f32 %v676_v59, %v681_v47  ;;  %v708_v48 = vperm.slane %v3048_v18, 6  ;;  %v715_v33 = vperm.slane %v3048_v18, 7  ;;  %v722_v26 = vperm.slane %v3052_v28, 0  ;;  %v3152_v47 = vld [vmem:[#allocation8 + $0x90] sm:$0xff] }
  0x7e   :  { %v632_v11 = vsub.f32 %v625_v44, %v3043_v58  ;;  %v591_v50 = vsub.f32 %v584_v24, %v589_v20  ;;  %v610_v54 = vmul.f32 %v608_v10, %v2743_v13  ;;  %v653_v61 = vadd.f32 %v652_v23, %v651_v57  ;;  %v3150_v20 = vld [vmem:[#allocation8 + $0x28] sm:$0xff]  ;;  %v3168_v23 = vld [vmem:[#allocation8 + $0x38] sm:$0xff] }
  0x7f   :  { %v617_v53 = vmul.f32 %v615_v5, %v2745_v40  ;;  %v624_v58 = vmul.f32 %v622_v46, %v2756_v60  ;;  %v690_v62 = vsub.f32 %v683_v21, %v688_v38  ;;  %v702_v13 = vmul.f32 %v701_v0, %v3106_v56  ;;  %v3137_v40 = vld [vmem:[#allocation8 + $0x18] sm:$0xff]  ;;  %v3164_v38 = vld [vmem:[#allocation8 + $0xb0] sm:$0xff]  ;;  %v3170_v21 = vld [vmem:[#allocation8 + $0xc0] sm:$0xff] }
  0x80   :  { %v639_v10 = vsub.f32 %v632_v11, %v637_v25  ;;  %v598_v6 = vsub.f32 %v591_v50, %v596_v49  ;;  %v3133_v39 = vmul.f32 %v629_v43, %v4901_v22  ;;  %v654_v34 = vrot.slane %v653_v61, 1  ;;  %v3172_v11 = vld [vmem:[#allocation8 + $0xd0] sm:$0xff] }
  0x81   :  { %v697_v5 = vsub.f32 %v690_v62, %v695_v9  ;;  %v709_v60 = vmul.f32 %v708_v48, %v3115_v15  ;;  %v716_v46 = vmul.f32 %v715_v33, %v3117_v41  ;;  %v723_v8 = vmul.f32 %v722_v26, %v3119_v12 }
  0x82   :  { %642 = vst [vmem:[#allocation11 + $0x30] sm:$0xff] %v639_v10  ;;  %v605_v22 = vsub.f32 %v598_v6, %v603_v4  ;;  %v655_v43 = vadd.f32 %v654_v34, %v653_v61  ;;  %v729_v19 = vperm.slane %v3052_v28, 1  ;;  %v736_v25 = vperm.slane %v3052_v28, 2  ;;  %v3189_v10 = vld [vmem:[#allocation8 + $0x48] sm:$0xff] }
  0x83   :  { %v704_v27 = vsub.f32 %v697_v5, %v702_v13  ;;  %v743_v14 = vperm.slane %v3052_v28, 3  ;;  %v668_v49 = vmul.f32 %v666_v7, %v3135_v35  ;;  %v675_v57 = vmul.f32 %v673_v36, %v3137_v40  ;;  %v3187_v13 = vld [vmem:[#allocation8 + $0xe0] sm:$0xff]  ;;  %4931 = vst [vmem:[#allocation27_spill] sm:$0xff] %v3189_v10 }
  0x84   :  { %v612_v4 = vsub.f32 %v605_v22, %v610_v54  ;;  %v656_v59 = vadd.f32 %v655_v43, %v2650_v17  ;;  %v750_v44 = vperm.slane %v3052_v28, 4  ;;  %v4766_v24 = vperm.slane %v3052_v28, 5 }
  0x85   :  { %v711_v9 = vsub.f32 %v704_v27, %v709_v60  ;;  %v4765_v7 = vperm.slane %v3052_v28, 6  ;;  %v670_v50 = vsub.f32 0.0, %v668_v49  ;;  %v682_v17 = vmul.f32 %v680_v3, %v3150_v20  ;;  %v3216_v27 = vld [vmem:[#allocation2 + $0x50] sm:$0xff] }
  0x86   :  { %v619_v36 = vsub.f32 %v612_v4, %v617_v53  ;;  %v638_v54 = vmul.f32 %v636_v55, %v2794_v52  ;;  %657 = vst [vmem:[#allocation10] sm:$0x10] %v656_v59  ;;  %v730_v61 = vmul.f32 %v729_v19, %v3152_v47  ;;  %v737_v62 = vmul.f32 %v736_v25, %v3154_v51  ;;  %v3197_v55 = vld [vmem:[#allocation8 + $0x58] sm:$0xff]  ;;  %v3199_v53 = vld [vmem:[#allocation8 + $0x68] sm:$0xff] }
  0x87   :  { %v718_v6 = vsub.f32 %v711_v9, %v716_v46  ;;  %v744_v3 = vmul.f32 %v743_v14, %v3164_v38  ;;  %v677_v37 = vsub.f32 %v670_v50, %v675_v57  ;;  %v689_v52 = vmul.f32 %v687_v32, %v3168_v23  ;;  %4932 = vst [vmem:[#allocation28_spill] sm:$0xff] %v3197_v55  ;;  %v3225_v4 = vld [vmem:[#allocation2 + $0x58] sm:$0xff] }
  0x88   :  { %4933 = vst [vmem:[#allocation19_spill] sm:$0xff] %v3199_v53  ;;  %v626_v34 = vsub.f32 %v619_v36, %v624_v58  ;;  %v751_v5 = vmul.f32 %v750_v44, %v3170_v21  ;;  %v758_v60 = vmul.f32 %v4766_v24, %v3172_v11  ;;  %v4764_v46 = vperm.slane %v3052_v28, 7 }
  0x89   :  { %v725_v22 = vsub.f32 %v718_v6, %v723_v8  ;;  %v3211_v32 = vmul.f32 %v4765_v7, %v3187_v13  ;;  %v684_v43 = vsub.f32 %v677_v37, %v682_v17  ;;  %v696_v58 = vmul.f32 %v694_v45, %v3189_v10  ;;  %v3229_v45 = vld [vmem:[#allocation8 + $0x78] sm:$0xff]  ;;  %v3231_v17 = vld [vmem:[#allocation5 + $0x8] sm:$0xff] }
  0x8a   :  { %v633_v49 = vsub.f32 %v626_v34, %v3133_v39  ;;  %v703_v57 = vmul.f32 %v701_v0, %v3197_v55  ;;  %v710_v8 = vmul.f32 %v708_v48, %v3199_v53  ;;  %v782_v59 = vmul.f32 %v3216_v27, %v2554_v2  ;;  %v3239_v2 = vld [vmem:[#allocation8 + $0xf0] sm:$0xff]  ;;  %v3274_v7 = vld [vmem:[#allocation8 + $0xb8] sm:$0xff] }
  0x8b   :  { %v732_v9 = vsub.f32 %v725_v22, %v730_v61  ;;  %v691_v50 = vsub.f32 %v684_v43, %v689_v52  ;;  %v783_v39 = vmul.f32 %v3231_v17, %v3225_v4  ;;  %vm793_vm5 = vcmp.eq.s32.totalorder %v2552_v1, 5  ;;  %4934 = vst [vmem:[#allocation20_spill] sm:$0xff] %v3239_v2  ;;  %v3241_v52 = vld [vmem:[#allocation8 + $0x88] sm:$0xff]  ;;  %v3247_v43 = vld [vmem:[#allocation8 + $0x98] sm:$0xff] }
  0x8c   :  { %v640_v0 = vsub.f32 %v633_v49, %v638_v54  ;;  %v2308_v36 = vsel %vm793_vm5, 1.0, %v4928_v30  ;;  %v4762_v48 = vperm.slane %v3216_v27, 0  ;;  %v4763_v6 = vperm.slane %v3216_v27, 1 }
  0x8d   :  { %v739_v37 = vsub.f32 %v732_v9, %v737_v62  ;;  %v698_v61 = vsub.f32 %v691_v50, %v696_v58  ;;  %v784_v34 = vadd.f32 %v783_v39, %v782_v59  ;;  %v4769_v22 = vperm.slane %v3216_v27, 2  ;;  %v3256_v50 = vld [vmem:[#allocation8 + $0xa8] sm:$0xff] }
  0x8e   :  { %643 = vst [vmem:[#allocation11 + $0x38] sm:$0xff] %v640_v0  ;;  %v717_v54 = vmul.f32 %v715_v33, %v3229_v45  ;;  %v802_v49 = vmul.f32 %v4762_v48, %v3059_v16  ;;  %v809_v62 = vmul.f32 %v4763_v6, %v3061_v29  ;;  %v4768_v58 = vperm.slane %v3216_v27, 3 }
  0x8f   :  { %v746_v59 = vsub.f32 %v739_v37, %v744_v3  ;;  %v705_v9 = vsub.f32 %v698_v61, %v703_v57  ;;  %v785_v39 = vrot.slane %v784_v34, 4  ;;  %v4767_v18 = vperm.slane %v3216_v27, 4 }
  0x90   :  { %v772_v33 = vmul.f32 %v4764_v46, %v3239_v2  ;;  %v724_v0 = vmul.f32 %v722_v26, %v3241_v52  ;;  %v804_v48 = vsub.f32 %v2308_v36, %v802_v49  ;;  %v816_v6 = vmul.f32 %v4769_v22, %v3066_v42  ;;  %v3280_v49 = vld [vmem:[#allocation8 + $0xc8] sm:$0xff] }
  0x91   :  { %v753_v3 = vsub.f32 %v746_v59, %v751_v5  ;;  %v712_v57 = vsub.f32 %v705_v9, %v710_v8  ;;  %v731_v37 = vmul.f32 %v729_v19, %v3247_v43  ;;  %v786_v61 = vadd.f32 %v785_v39, %v784_v34  ;;  %v3282_v59 = vld [vmem:[#allocation8 + $0xd8] sm:$0xff]  ;;  %v3287_v34 = vld [vmem:[#allocation8 + $0xe8] sm:$0xff] }
  0x92   :  { %v738_v46 = vmul.f32 %v736_v25, %v3256_v50  ;;  %v811_v24 = vsub.f32 %v804_v48, %v809_v62  ;;  %v823_v26 = vmul.f32 %v4768_v58, %v3079_v31  ;;  %v4772_v36 = vperm.slane %v3216_v27, 5 }
  0x93   :  { %v760_v5 = vsub.f32 %v753_v3, %v758_v60  ;;  %v719_v8 = vsub.f32 %v712_v57, %v717_v54  ;;  %v787_v19 = vrot.slane %v786_v61, 2  ;;  %v830_v25 = vmul.f32 %v4767_v18, %v3091_v63 }
  0x94   :  { %v818_v48 = vsub.f32 %v811_v24, %v816_v6  ;;  %v843_v62 = vperm.slane %v3216_v27, 6  ;;  %v4770_v9 = vperm.slane %v3216_v27, 7  ;;  %v4771_v39 = vperm.slane %v3225_v4, 0 }
  0x95   :  { %v767_v60 = vsub.f32 %v760_v5, %v3211_v32  ;;  %v726_v54 = vsub.f32 %v719_v8, %v724_v0  ;;  %v745_v3 = vmul.f32 %v743_v14, %v3274_v7  ;;  %v788_v57 = vadd.f32 %v787_v19, %v786_v61 }
  0x96   :  { %v752_v18 = vmul.f32 %v750_v44, %v3280_v49  ;;  %v4935_v24 = vperm.slane %v3052_v28, 5  ;;  %v825_v58 = vsub.f32 %v818_v48, %v823_v26  ;;  %v837_v22 = vmul.f32 %v4772_v36, %v3106_v56 }
  0x97   :  { %v774_v32 = vsub.f32 %v767_v60, %v772_v33  ;;  %v733_v0 = vsub.f32 %v726_v54, %v731_v37  ;;  %v4936_v5 = vperm.slane %v3052_v28, 6  ;;  %v789_v61 = vrot.slane %v788_v57, 1  ;;  %v3317_v54 = vld [vmem:[#allocation8 + $0xf8] sm:$0xff] }
  0x98   :  { %v759_v6 = vmul.f32 %v4935_v24, %v3282_v59  ;;  %v832_v8 = vsub.f32 %v825_v58, %v830_v25  ;;  %v844_v19 = vmul.f32 %v843_v62, %v3115_v15  ;;  %v851_v44 = vmul.f32 %v4770_v9, %v3117_v41 }
  0x99   :  { %v766_v14 = vmul.f32 %v4936_v5, %v3287_v34  ;;  %v858_v26 = vmul.f32 %v4771_v39, %v3119_v12  ;;  %777 = vst [vmem:[#allocation11 + $0x40] sm:$0xff] %v774_v32  ;;  %v740_v48 = vsub.f32 %v733_v0, %v738_v46  ;;  %v790_v33 = vadd.f32 %v789_v61, %v788_v57  ;;  %v3326_v46 = vld [vmem:[#allocation7] sm:$0xff] }
  0x9a   :  { %v4774_v37 = vperm.slane %v3225_v4, 1  ;;  %v839_v58 = vsub.f32 %v832_v8, %v837_v22  ;;  %v4937_v24 = vperm.slane %v3216_v27, 0  ;;  %v4938_v9 = vperm.slane %v3216_v27, 1 }
  0x9b   :  { %v747_v32 = vsub.f32 %v740_v48, %v745_v3  ;;  %v791_v57 = vadd.f32 %v3326_v46, %v790_v33  ;;  %v4773_v0 = vperm.slane %v3225_v4, 4  ;;  %v4775_v61 = vperm.slane %v3225_v4, 5 }
  0x9c   :  { %v803_v5 = vmul.f32 %v4937_v24, %v3135_v35  ;;  %v810_v39 = vmul.f32 %v4938_v9, %v3137_v40  ;;  %v846_v22 = vsub.f32 %v839_v58, %v844_v19  ;;  %v4939_v24 = vperm.slane %v3216_v27, 2 }
  0x9d   :  { %v754_v60 = vsub.f32 %v747_v32, %v752_v18  ;;  %v4940_v9 = vperm.slane %v3052_v28, 7  ;;  %792 = vst [vmem:[#allocation10] sm:$0x20] %v791_v57  ;;  %v865_v48 = vmul.f32 %v4774_v37, %v3152_v47  ;;  %v4941_v19 = vperm.slane %v3225_v4, 2 }
  0x9e   :  { %v805_v36 = vsub.f32 0.0, %v803_v5  ;;  %v817_v25 = vmul.f32 %v4939_v24, %v3150_v20  ;;  %v853_v58 = vsub.f32 %v846_v22, %v851_v44  ;;  %v4942_v5 = vperm.slane %v3225_v4, 3  ;;  %v3369_v44 = vld [vmem:[#allocation2 + $0x68] sm:$0xff] }
  0x9f   :  { %v773_v3 = vmul.f32 %v4940_v9, %v3317_v54  ;;  %v872_v33 = vmul.f32 %v4941_v19, %v3154_v51  ;;  %v4943_v18 = vperm.slane %v3216_v27, 3  ;;  %v761_v32 = vsub.f32 %v754_v60, %v759_v6  ;;  %v3363_v60 = vld [vmem:[#allocation2 + $0x60] sm:$0xff] }
  0xa0   :  { %v879_v8 = vmul.f32 %v4942_v5, %v3164_v38  ;;  %v812_v24 = vsub.f32 %v805_v36, %v810_v39  ;;  %v886_v57 = vmul.f32 %v4773_v0, %v3170_v21  ;;  %v893_v9 = vmul.f32 %v4775_v61, %v3172_v11 }
  0xa1   :  { %v824_v28 = vmul.f32 %v4943_v18, %v3168_v23  ;;  %v860_v22 = vsub.f32 %v853_v58, %v858_v26  ;;  %v4944_v19 = vperm.slane %v3225_v4, 6  ;;  %v4945_v5 = vperm.slane %v3216_v27, 4  ;;  %v3371_v26 = vld [vmem:[#allocation5] sm:$0xff] }
  0xa2   :  { %v819_v39 = vsub.f32 %v812_v24, %v817_v25  ;;  %v768_v18 = vsub.f32 %v761_v32, %v766_v14  ;;  %v4946_v0 = vperm.slane %v3216_v27, 5  ;;  %v845_v61 = vmul.f32 %v843_v62, %v3199_v53 }
  0xa3   :  { %v900_v36 = vmul.f32 %v4944_v19, %v3187_v13  ;;  %v831_v6 = vmul.f32 %v4945_v5, %v3189_v10  ;;  %v917_v25 = vmul.f32 %v3371_v26, %v3363_v60  ;;  %v867_v58 = vsub.f32 %v860_v22, %v865_v48 }
  0xa4   :  { %v838_v37 = vmul.f32 %v4946_v0, %v3197_v55  ;;  %v826_v24 = vsub.f32 %v819_v39, %v824_v28  ;;  %v918_v19 = vmul.f32 %v3231_v17, %v3369_v44  ;;  %vm928_vm6 = vcmp.eq.s32.totalorder %v2552_v1, 6 }
  0xa5   :  { %v775_v14 = vsub.f32 %v768_v18, %v773_v3  ;;  %v2309_v32 = vsel %vm928_vm6, 1.0, %v4928_v30  ;;  %v936_v0 = vperm.slane %v3363_v60, 0  ;;  %v943_v62 = vperm.slane %v3363_v60, 1 }
  0xa6   :  { %v874_v5 = vsub.f32 %v867_v58, %v872_v33  ;;  %v833_v53 = vsub.f32 %v826_v24, %v831_v6  ;;  %v919_v55 = vadd.f32 %v918_v19, %v917_v25  ;;  %v950_v10 = vperm.slane %v3363_v60, 2 }
  0xa7   :  { %778 = vst [vmem:[#allocation11 + $0x48] sm:$0xff] %v775_v14  ;;  %v4947_v48 = vperm.slane %v3216_v27, 7  ;;  %v937_v22 = vmul.f32 %v936_v0, %v3059_v16  ;;  %v944_v3 = vmul.f32 %v943_v62, %v3061_v29  ;;  %v4948_v6 = vperm.slane %v3225_v4, 7 }
  0xa8   :  { %v881_v18 = vsub.f32 %v874_v5, %v879_v8  ;;  %v840_v30 = vsub.f32 %v833_v53, %v838_v37  ;;  %v920_v1 = vrot.slane %v919_v55, 4  ;;  %v4949_v58 = vperm.slane %v3225_v4, 0 }
  0xa9   :  { %v852_v28 = vmul.f32 %v4947_v48, %v3229_v45  ;;  %v907_v25 = vmul.f32 %v4948_v6, %v3239_v2  ;;  %v939_v24 = vsub.f32 %v2309_v32, %v937_v22  ;;  %v951_v19 = vmul.f32 %v950_v10, %v3066_v42 }
  0xaa   :  { %v859_v27 = vmul.f32 %v4949_v58, %v3241_v52  ;;  %v888_v14 = vsub.f32 %v881_v18, %v886_v57  ;;  %v847_v48 = vsub.f32 %v840_v30, %v845_v61  ;;  %v4950_v8 = vperm.slane %v3225_v4, 1 }
  0xab   :  { %v921_v37 = vadd.f32 %v920_v1, %v919_v55  ;;  %v4951_v5 = vperm.slane %v3225_v4, 2  ;;  %v946_v39 = vsub.f32 %v939_v24, %v944_v3  ;;  %v4952_v6 = vperm.slane %v3363_v60, 3 }
  0xac   :  { %v866_v53 = vmul.f32 %v4950_v8, %v3247_v43  ;;  %v971_v32 = vperm.slane %v3363_v60, 5  ;;  %v895_v22 = vsub.f32 %v888_v14, %v893_v9  ;;  %v854_v58 = vsub.f32 %v847_v48, %v852_v28 }
  0xad   :  { %v873_v33 = vmul.f32 %v4951_v5, %v3256_v50  ;;  %v958_v2 = vmul.f32 %v4952_v6, %v3079_v31  ;;  %v922_v57 = vrot.slane %v921_v37, 2  ;;  %v4953_v30 = vperm.slane %v3363_v60, 4 }
  0xae   :  { %v953_v18 = vsub.f32 %v946_v39, %v951_v19  ;;  %v978_v1 = vperm.slane %v3363_v60, 6  ;;  %v902_v24 = vsub.f32 %v895_v22, %v900_v36  ;;  %v861_v8 = vsub.f32 %v854_v58, %v859_v27 }
  0xaf   :  { %v965_v61 = vmul.f32 %v4953_v30, %v3091_v63  ;;  %v4954_v5 = vperm.slane %v3225_v4, 3  ;;  %v923_v9 = vadd.f32 %v922_v57, %v921_v37  ;;  %v4955_v28 = vperm.slane %v3225_v4, 4 }
  0xb0   :  { %v4956_v39 = vperm.slane %v3225_v4, 5  ;;  %v960_v48 = vsub.f32 %v953_v18, %v958_v2  ;;  %v972_v30 = vmul.f32 %v971_v32, %v3106_v56  ;;  %v909_v55 = vsub.f32 %v902_v24, %v907_v25 }
  0xb1   :  { %v880_v6 = vmul.f32 %v4954_v5, %v3274_v7  ;;  %v887_v14 = vmul.f32 %v4955_v28, %v3280_v49  ;;  %v868_v3 = vsub.f32 %v861_v8, %v866_v53  ;;  %v4957_v36 = vperm.slane %v3225_v4, 6 }
  0xb2   :  { %v894_v19 = vmul.f32 %v4956_v39, %v3282_v59  ;;  %v924_v22 = vrot.slane %v923_v9, 1  ;;  %v967_v58 = vsub.f32 %v960_v48, %v965_v61  ;;  %v979_v37 = vmul.f32 %v978_v1, %v3115_v15  ;;  %912 = vst [vmem:[#allocation11 + $0x50] sm:$0xff] %v909_v55 }
  0xb3   :  { %v901_v27 = vmul.f32 %v4957_v36, %v3287_v34  ;;  %v4958_v57 = vperm.slane %v3363_v60, 7  ;;  %v4959_v28 = vperm.slane %v3369_v44, 0  ;;  %v875_v18 = vsub.f32 %v868_v3, %v873_v33 }
  0xb4   :  { %v925_v25 = vadd.f32 %v924_v22, %v923_v9  ;;  %v4793_v53 = vperm.slane %v3369_v44, 1  ;;  %v4791_v24 = vperm.slane %v3369_v44, 2  ;;  %v974_v8 = vsub.f32 %v967_v58, %v972_v30 }
  0xb5   :  { %v986_v5 = vmul.f32 %v4958_v57, %v3117_v41  ;;  %v993_v2 = vmul.f32 %v4959_v28, %v3119_v12  ;;  %v4789_v61 = vperm.slane %v3369_v44, 3  ;;  %v938_v39 = vmul.f32 %v936_v0, %v3135_v35 }
  0xb6   :  { %v945_v48 = vmul.f32 %v943_v62, %v3137_v40  ;;  %v882_v36 = vsub.f32 %v875_v18, %v880_v6  ;;  %v926_v57 = vadd.f32 %v3326_v46, %v925_v25  ;;  %v4788_v41 = vperm.slane %v3369_v44, 4 }
  0xb7   :  { %v4790_v55 = vperm.slane %v3369_v44, 5  ;;  %v981_v33 = vsub.f32 %v974_v8, %v979_v37  ;;  %v4792_v3 = vperm.slane %v3369_v44, 6  ;;  %v940_v9 = vsub.f32 0.0, %v938_v39 }
  0xb8   :  { %v952_v22 = vmul.f32 %v950_v10, %v3150_v20  ;;  %v889_v30 = vsub.f32 %v882_v36, %v887_v14  ;;  %v4960_v58 = vperm.slane %v3225_v4, 7  ;;  %927 = vst [vmem:[#allocation10] sm:$0x40] %v926_v57  ;;  %v1000_v62 = vmul.f32 %v4793_v53, %v3152_v47  ;;  %v4962_v57 = vld [vmem:[#allocation27_spill] sm:$0xff] }
  0xb9   :  { %v1007_v6 = vmul.f32 %v4791_v24, %v3154_v51  ;;  %v988_v37 = vsub.f32 %v981_v33, %v986_v5  ;;  %v1014_v28 = vmul.f32 %v4789_v61, %v3164_v38  ;;  %v947_v10 = vsub.f32 %v940_v9, %v945_v48  ;;  %v3470_v9 = vld [vmem:[#allocation2 + $0x70] sm:$0xff] }
  0xba   :  { %v908_v0 = vmul.f32 %v4960_v58, %v3317_v54  ;;  %v4961_v14 = vperm.slane %v3363_v60, 3  ;;  %v896_v18 = vsub.f32 %v889_v30, %v894_v19  ;;  %v1021_v25 = vmul.f32 %v4788_v41, %v3170_v21  ;;  %v4964_v58 = vld [vmem:[#allocation28_spill] sm:$0xff]  ;;  %v4965_v41 = vld [vmem:[#allocation19_spill] sm:$0xff] }
  0xbb   :  { %v1028_v8 = vmul.f32 %v4790_v55, %v3172_v11  ;;  %v995_v39 = vsub.f32 %v988_v37, %v993_v2  ;;  %v1035_v48 = vmul.f32 %v4792_v3, %v3187_v13  ;;  %v954_v36 = vsub.f32 %v947_v10, %v952_v22  ;;  %v3474_v55 = vld [vmem:[#allocation2 + $0x78] sm:$0xff]  ;;  %v4966_v10 = vld [vmem:[#allocation18_spill] sm:$0xff] }
  0xbc   :  { %v959_v4 = vmul.f32 %v4961_v14, %v3168_v23  ;;  %v4963_v33 = vperm.slane %v3363_v60, 4  ;;  %v903_v30 = vsub.f32 %v896_v18, %v901_v27  ;;  %v973_v14 = vmul.f32 %v971_v32, %v4964_v58 }
  0xbd   :  { %v980_v61 = vmul.f32 %v978_v1, %v4965_v41  ;;  %v1052_v2 = vmul.f32 %v3371_v26, %v3470_v9  ;;  %v1002_v37 = vsub.f32 %v995_v39, %v1000_v62  ;;  %v1053_v22 = vmul.f32 %v3231_v17, %v3474_v55 }
  0xbe   :  { %v966_v19 = vmul.f32 %v4963_v33, %v4962_v57  ;;  %v961_v24 = vsub.f32 %v954_v36, %v959_v4  ;;  %vm1063_vm7 = vcmp.eq.s32.totalorder %v4966_v10, 7  ;;  %v910_v33 = vsub.f32 %v903_v30, %v908_v0 }
  0xbf   :  { %v4967_v3 = vmov 0.0   ;;  %v1071_v27 = vperm.slane %v3470_v9, 0  ;;  %v1078_v32 = vperm.slane %v3470_v9, 1  ;;  %v1009_v1 = vsub.f32 %v1002_v37, %v1007_v6 }
  0xc0   :  { %v2310_v53 = vsel %vm1063_vm7, 1.0, %v4967_v3  ;;  %v968_v18 = vsub.f32 %v961_v24, %v966_v19  ;;  %v1054_v5 = vadd.f32 %v1053_v22, %v1052_v2  ;;  %v1085_v41 = vperm.slane %v3470_v9, 2  ;;  %913 = vst [vmem:[#allocation11 + $0x58] sm:$0xff] %v910_v33  ;;  %v4969_v24 = vld [vmem:[#allocation20_spill] sm:$0xff] }
  0xc1   :  { %v4968_v62 = vperm.slane %v3363_v60, 7  ;;  %v1072_v39 = vmul.f32 %v1071_v27, %v3059_v16  ;;  %v1079_v0 = vmul.f32 %v1078_v32, %v3061_v29  ;;  %v1092_v36 = vperm.slane %v3470_v9, 3 }
  0xc2   :  { %v1016_v30 = vsub.f32 %v1009_v1, %v1014_v28  ;;  %v975_v3 = vsub.f32 %v968_v18, %v973_v14  ;;  %v1055_v10 = vrot.slane %v1054_v5, 4  ;;  %v4970_v19 = vperm.slane %v3369_v44, 7 }
  0xc3   :  { %v987_v4 = vmul.f32 %v4968_v62, %v3229_v45  ;;  %v4971_v37 = vperm.slane %v3369_v44, 0  ;;  %v1074_v22 = vsub.f32 %v2310_v53, %v1072_v39  ;;  %v1086_v16 = vmul.f32 %v1085_v41, %v3066_v42 }
  0xc4   :  { %v1042_v2 = vmul.f32 %v4970_v19, %v4969_v24  ;;  %v1023_v33 = vsub.f32 %v1016_v30, %v1021_v25  ;;  %v982_v29 = vsub.f32 %v975_v3, %v980_v61  ;;  %v4972_v28 = vperm.slane %v3369_v44, 1 }
  0xc5   :  { %v994_v60 = vmul.f32 %v4971_v37, %v3241_v52  ;;  %v1056_v1 = vadd.f32 %v1055_v10, %v1054_v5  ;;  %v4973_v18 = vperm.slane %v3369_v44, 2  ;;  %v1081_v6 = vsub.f32 %v1074_v22, %v1079_v0 }
  0xc6   :  { %v1001_v14 = vmul.f32 %v4972_v28, %v3247_v43  ;;  %v1093_v19 = vmul.f32 %v1092_v36, %v3079_v31  ;;  %v1106_v53 = vperm.slane %v3470_v9, 5  ;;  %v1030_v39 = vsub.f32 %v1023_v33, %v1028_v8 }
  0xc7   :  { %v1008_v62 = vmul.f32 %v4973_v18, %v3256_v50  ;;  %v989_v42 = vsub.f32 %v982_v29, %v987_v4  ;;  %v1057_v25 = vrot.slane %v1056_v1, 2  ;;  %v4974_v61 = vperm.slane %v3470_v9, 4 }
  0xc8   :  { %v1088_v30 = vsub.f32 %v1081_v6, %v1086_v16  ;;  %v1113_v5 = vperm.slane %v3470_v9, 6  ;;  %v1120_v10 = vperm.slane %v3470_v9, 7  ;;  %v1127_v0 = vperm.slane %v3474_v55, 0 }
  0xc9   :  { %v1100_v3 = vmul.f32 %v4974_v61, %v3091_v63  ;;  %v1037_v37 = vsub.f32 %v1030_v39, %v1035_v48  ;;  %v996_v22 = vsub.f32 %v989_v42, %v994_v60  ;;  %v4975_v31 = vperm.slane %v3369_v44, 3 }
  0xca   :  { %v1058_v8 = vadd.f32 %v1057_v25, %v1056_v1  ;;  %v4976_v4 = vperm.slane %v3369_v44, 4  ;;  %v4977_v63 = vperm.slane %v3369_v44, 5  ;;  %v1095_v16 = vsub.f32 %v1088_v30, %v1093_v19  ;;  %v4979_v25 = vld [vmem:[#allocation22_spill] sm:$0xff] }
  0xcb   :  { %v1015_v28 = vmul.f32 %v4975_v31, %v3274_v7  ;;  %v1107_v29 = vmul.f32 %v1106_v53, %v3106_v56  ;;  %v1044_v18 = vsub.f32 %v1037_v37, %v1042_v2  ;;  %v1003_v61 = vsub.f32 %v996_v22, %v1001_v14 }
  0xcc   :  { %v1022_v33 = vmul.f32 %v4976_v4, %v3280_v49  ;;  %v1029_v6 = vmul.f32 %v4977_v63, %v3282_v59  ;;  %v4978_v48 = vperm.slane %v3369_v44, 6  ;;  %v1059_v39 = vrot.slane %v1058_v8, 1 }
  0xcd   :  { %v1102_v42 = vsub.f32 %v1095_v16, %v1100_v3  ;;  %v1114_v1 = vmul.f32 %v1113_v5, %v3115_v15  ;;  %v1121_v31 = vmul.f32 %v1120_v10, %v4979_v25  ;;  %v1128_v19 = vmul.f32 %v1127_v0, %v3119_v12  ;;  %1047 = vst [vmem:[#allocation11 + $0x60] sm:$0xff] %v1044_v18  ;;  %v3579_v25 = vld [vmem:[#allocation2 + $0x88] sm:$0xff] }
  0xce   :  { %v1036_v60 = vmul.f32 %v4978_v48, %v3287_v34  ;;  %v1010_v56 = vsub.f32 %v1003_v61, %v1008_v62  ;;  %v1060_v2 = vadd.f32 %v1059_v39, %v1058_v8  ;;  %v1134_v14 = vperm.slane %v3474_v55, 1 }
  0xcf   :  { %v1141_v30 = vperm.slane %v3474_v55, 2  ;;  %v1109_v37 = vsub.f32 %v1102_v42, %v1107_v29  ;;  %v1148_v3 = vperm.slane %v3474_v55, 3  ;;  %v1073_v15 = vmul.f32 %v1071_v27, %v3135_v35 }
  0xd0   :  { %v1080_v22 = vmul.f32 %v1078_v32, %v3137_v40  ;;  %v1017_v4 = vsub.f32 %v1010_v56, %v1015_v28  ;;  %v1061_v63 = vadd.f32 %v3326_v46, %v1060_v2  ;;  %v1155_v16 = vperm.slane %v3474_v55, 4 }
  0xd1   :  { %v1162_v12 = vperm.slane %v3474_v55, 5  ;;  %v1116_v62 = vsub.f32 %v1109_v37, %v1114_v1  ;;  %v1169_v8 = vperm.slane %v3474_v55, 6  ;;  %v1075_v18 = vsub.f32 0.0, %v1073_v15  ;;  %v4982_v1 = vld [vmem:[#allocation19_spill] sm:$0xff] }
  0xd2   :  { %v1087_v61 = vmul.f32 %v1085_v41, %v3150_v20  ;;  %v1024_v29 = vsub.f32 %v1017_v4, %v1022_v33  ;;  %v4980_v48 = vperm.slane %v3369_v44, 7  ;;  %1062 = vst [vmem:[#allocation10] sm:$0x80] %v1061_v63  ;;  %v1135_v40 = vmul.f32 %v1134_v14, %v3152_v47  ;;  %v3567_v33 = vld [vmem:[#allocation2 + $0x80] sm:$0xff] }
  0xd3   :  { %v1142_v46 = vmul.f32 %v1141_v30, %v3154_v51  ;;  %v1123_v27 = vsub.f32 %v1116_v62, %v1121_v31  ;;  %v1149_v32 = vmul.f32 %v1148_v3, %v3164_v38  ;;  %v1082_v41 = vsub.f32 %v1075_v18, %v1080_v22  ;;  %v3598_v18 = vld [vmem:[#allocation8 + $0x30] sm:$0xff] }
  0xd4   :  { %v1043_v35 = vmul.f32 %v4980_v48, %v3317_v54  ;;  %v1094_v20 = vmul.f32 %v1092_v36, %v3168_v23  ;;  %v1031_v44 = vsub.f32 %v1024_v29, %v1029_v6  ;;  %v1156_v28 = vmul.f32 %v1155_v16, %v3170_v21 }
  0xd5   :  { %v1163_v47 = vmul.f32 %v1162_v12, %v3172_v11  ;;  %v1176_v51 = vperm.slane %v3474_v55, 7  ;;  %v1130_v39 = vsub.f32 %v1123_v27, %v1128_v19  ;;  %v3572_v38 = vmul.f32 %v1169_v8, %v3187_v13  ;;  %v3583_v19 = vld [vmem:[#allocation8] sm:$0xff] }
  0xd6   :  { %v1089_v23 = vsub.f32 %v1082_v41, %v1087_v61  ;;  %v4981_v36 = vperm.slane %v3470_v9, 4  ;;  %v1038_v21 = vsub.f32 %v1031_v44, %v1036_v60  ;;  %v1108_v42 = vmul.f32 %v1106_v53, %v4964_v58  ;;  %v3590_v60 = vld [vmem:[#allocation8 + $0x20] sm:$0xff] }
  0xd7   :  { %v1115_v11 = vmul.f32 %v1113_v5, %v4982_v1  ;;  %v1187_v31 = vmul.f32 %v3371_v26, %v3567_v33  ;;  %v1137_v56 = vsub.f32 %v1130_v39, %v1135_v40  ;;  %v1188_v2 = vmul.f32 %v3231_v17, %v3579_v25 }
  0xd8   :  { %v1101_v6 = vmul.f32 %v4981_v36, %v4962_v57  ;;  %v1096_v13 = vsub.f32 %v1089_v23, %v1094_v20  ;;  %v1206_v37 = vperm.slane %v3567_v33, 0  ;;  %v3588_v57 = vld [vmem:[#allocation8 + $0x10] sm:$0xff]  ;;  %v1045_v58 = vsub.f32 %v1038_v21, %v1043_v35  ;;  %v3610_v20 = vld [vmem:[#allocation8 + $0x40] sm:$0xff] }
  0xd9   :  { %v1213_v53 = vperm.slane %v3567_v33, 1  ;;  %v1220_v5 = vperm.slane %v3567_v33, 2  ;;  %v1227_v15 = vperm.slane %v3567_v33, 3  ;;  %v1144_v22 = vsub.f32 %v1137_v56, %v1142_v46 }
  0xda   :  { %v1103_v4 = vsub.f32 %v1096_v13, %v1101_v6  ;;  %v1189_v63 = vadd.f32 %v1188_v2, %v1187_v31  ;;  %v1207_v62 = vmul.f32 %v1206_v37, %v3583_v19  ;;  %1048 = vst [vmem:[#allocation11 + $0x68] sm:$0xff] %v1045_v58  ;;  %v1122_v61 = vmul.f32 %v1120_v10, %v3229_v45  ;;  %v3622_v6 = vld [vmem:[#allocation8 + $0x50] sm:$0xff]  ;;  %v3634_v31 = vld [vmem:[#allocation8 + $0x60] sm:$0xff] }
  0xdb   :  { %v1214_v29 = vmul.f32 %v1213_v53, %v3588_v57  ;;  %v1221_v48 = vmul.f32 %v1220_v5, %v3590_v60  ;;  %v1234_v35 = vperm.slane %v3567_v33, 4  ;;  %v1151_v40 = vsub.f32 %v1144_v22, %v1149_v32  ;;  %v3645_v58 = vld [vmem:[#allocation8 + $0x70] sm:$0xff]  ;;  %v3647_v22 = vld [vmem:[#allocation8 + $0x80] sm:$0xff] }
  0xdc   :  { %v1110_v46 = vsub.f32 %v1103_v4, %v1108_v42  ;;  %v1190_v27 = vrot.slane %v1189_v63, 4  ;;  %v1209_v41 = vsub.f32 0.0, %v1207_v62  ;;  %v1177_v45 = vmul.f32 %v1176_v51, %v4969_v24 }
  0xdd   :  { %v1129_v9 = vmul.f32 %v1127_v0, %v3241_v52  ;;  %v1228_v10 = vmul.f32 %v1227_v15, %v3598_v18  ;;  %v1241_v44 = vperm.slane %v3567_v33, 5  ;;  %v1158_v32 = vsub.f32 %v1151_v40, %v1156_v28  ;;  %v3661_v40 = vld [vmem:[#allocation8 + $0x8] sm:$0xff] }
  0xde   :  { %v1117_v39 = vsub.f32 %v1110_v46, %v1115_v11  ;;  %v1191_v23 = vadd.f32 %v1190_v27, %v1189_v63  ;;  %v1216_v36 = vsub.f32 %v1209_v41, %v1214_v29  ;;  %v1136_v24 = vmul.f32 %v1134_v14, %v3247_v43 }
  0xdf   :  { %v1143_v52 = vmul.f32 %v1141_v30, %v3256_v50  ;;  %v1235_v0 = vmul.f32 %v1234_v35, %v3610_v20  ;;  %v1248_v21 = vperm.slane %v3567_v33, 6  ;;  %v1165_v28 = vsub.f32 %v1158_v32, %v1163_v47 }
  0xe0   :  { %v1124_v42 = vsub.f32 %v1117_v39, %v1122_v61  ;;  %v1192_v1 = vrot.slane %v1191_v23, 2  ;;  %v1223_v11 = vsub.f32 %v1216_v36, %v1221_v48  ;;  %v1150_v43 = vmul.f32 %v1148_v3, %v3274_v7  ;;  %v3659_v48 = vld [vmem:[#allocation8 + $0x90] sm:$0xff]  ;;  %v3688_v36 = vld [vmem:[#allocation8 + $0x28] sm:$0xff] }
  0xe1   :  { %v1242_v50 = vmul.f32 %v1241_v44, %v3622_v6  ;;  %v1255_v14 = vperm.slane %v3567_v33, 7  ;;  %v1262_v30 = vperm.slane %v3579_v25, 0  ;;  %v1172_v56 = vsub.f32 %v1165_v28, %v3572_v38  ;;  %v3691_v28 = vld [vmem:[#allocation8 + $0xa0] sm:$0xff]  ;;  %v3796_v33 = vld [vmem:[#allocation8 + $0xa8] sm:$0xff] }
  0xe2   :  { %v1131_v47 = vsub.f32 %v1124_v42, %v1129_v9  ;;  %v1193_v13 = vadd.f32 %v1192_v1, %v1191_v23  ;;  %v1230_v2 = vsub.f32 %v1223_v11, %v1228_v10  ;;  %v1157_v7 = vmul.f32 %v1155_v16, %v3280_v49  ;;  %v3666_v16 = vld [vmem:[#allocation7 + $0x8] sm:$0xff]  ;;  %v4983_v9 = vld [vmem:[#allocation18_spill] sm:$0xff] }
  0xe3   :  { %v1164_v3 = vmul.f32 %v1162_v12, %v3282_v59  ;;  %v1249_v4 = vmul.f32 %v1248_v21, %v3634_v31  ;;  %v1269_v38 = vperm.slane %v3579_v25, 1  ;;  %v1179_v63 = vsub.f32 %v1172_v56, %v1177_v45  ;;  %v3693_v42 = vld [vmem:[#allocation8 + $0xb0] sm:$0xff] }
  0xe4   :  { %v1138_v62 = vsub.f32 %v1131_v47, %v1136_v24  ;;  %v1194_v61 = vrot.slane %v1193_v13, 1  ;;  %v1237_v29 = vsub.f32 %v1230_v2, %v1235_v0  ;;  %v1171_v49 = vmul.f32 %v1169_v8, %v3287_v34  ;;  %v3678_v34 = vld [vmem:[#allocation8 + $0x18] sm:$0xff]  ;;  %v3704_v2 = vld [vmem:[#allocation8 + $0xc0] sm:$0xff] }
  0xe5   :  { %v1256_v59 = vmul.f32 %v1255_v14, %v3645_v58  ;;  %v1263_v12 = vmul.f32 %v1262_v30, %v3647_v22  ;;  %v1276_v46 = vperm.slane %v3579_v25, 2  ;;  %1182 = vst [vmem:[#allocation11 + $0x70] sm:$0xff] %v1179_v63  ;;  %v3676_v10 = vadd.s32 8, %v4983_v9  ;;  %v3708_v63 = vld [vmem:[#allocation8 + $0xe0] sm:$0xff]  ;;  %v3727_v9 = vld [vmem:[#allocation8 + $0x58] sm:$0xff] }
  0xe6   :  { %v1145_v27 = vsub.f32 %v1138_v62, %v1143_v52  ;;  %v1195_v41 = vadd.f32 %v1194_v61, %v1193_v13  ;;  %v1244_v45 = vsub.f32 %v1237_v29, %v1242_v50  ;;  %v1270_v8 = vmul.f32 %v1269_v38, %v3659_v48  ;;  %4985 = vst [vmem:[#allocation26_spill] sm:$0xff] %v3727_v9 }
  0xe7   :  { %v1283_v32 = vperm.slane %v3579_v25, 3  ;;  %v4799_v39 = vperm.slane %v3579_v25, 4  ;;  %v1208_v23 = vmul.f32 %v1206_v37, %v3661_v40  ;;  %vm1199_vm8 = vcmp.eq.s32.totalorder %v3676_v10, 8 }
  0xe8   :  { %v1152_v24 = vsub.f32 %v1145_v27, %v1150_v43  ;;  %v1196_v52 = vadd.f32 %v1195_v41, %v3666_v16  ;;  %v1251_v0 = vsub.f32 %v1244_v45, %v1249_v4  ;;  %v4795_v1 = vperm.slane %v3579_v25, 5  ;;  %v3702_v43 = vld [vmem:[#allocation8 + $0x38] sm:$0xff]  ;;  %v3706_v4 = vld [vmem:[#allocation8 + $0xd0] sm:$0xff] }
  0xe9   :  { %v4794_v11 = vperm.slane %v3579_v25, 6  ;;  %v4984_v50 = vmov 0.0   ;;  %v1215_v37 = vmul.f32 %v1213_v53, %v3678_v34  ;;  %v1222_v61 = vmul.f32 %v1220_v5, %v3688_v36 }
  0xea   :  { %v2311_v56 = vsel %vm1199_vm8, 1.0, %v4984_v50  ;;  %v1159_v47 = vsub.f32 %v1152_v24, %v1157_v7  ;;  %1197 = vst [vmem:[#allocation10 + $0x8] sm:$0x1] %v1196_v52  ;;  %v1258_v13 = vsub.f32 %v1251_v0, %v1256_v59  ;;  %v1178_v53 = vmul.f32 %v1176_v51, %v3317_v54  ;;  %v3722_v59 = vld [vmem:[#allocation8 + $0x48] sm:$0xff]  ;;  %v3729_v54 = vld [vmem:[#allocation2 + $0x90] sm:$0xff]  ;;  %v3744_v0 = vld [vmem:[#allocation2 + $0x98] sm:$0xff] }
  0xeb   :  { %v1210_v62 = vsub.f32 %v2311_v56, %v1208_v23  ;;  %v1277_v7 = vmul.f32 %v1276_v46, %v3691_v28  ;;  %v1284_v29 = vmul.f32 %v1283_v32, %v3693_v42  ;;  %v1229_v5 = vmul.f32 %v1227_v15, %v3702_v43 }
  0xec   :  { %v1166_v27 = vsub.f32 %v1159_v47, %v1164_v3  ;;  %v1265_v41 = vsub.f32 %v1258_v13, %v1263_v12  ;;  %v1291_v55 = vmul.f32 %v4799_v39, %v3704_v2  ;;  %v1298_v51 = vmul.f32 %v4795_v1, %v3706_v4 }
  0xed   :  { %v1217_v45 = vsub.f32 %v1210_v62, %v1215_v37  ;;  %v1305_v3 = vmul.f32 %v4794_v11, %v3708_v63  ;;  %v1311_v12 = vperm.slane %v3579_v25, 7  ;;  %v1236_v52 = vmul.f32 %v1234_v35, %v3722_v59  ;;  %v3749_v37 = vld [vmem:[#allocation8 + $0x68] sm:$0xff] }
  0xee   :  { %v1173_v23 = vsub.f32 %v1166_v27, %v1171_v49  ;;  %v1272_v15 = vsub.f32 %v1265_v41, %v1270_v8  ;;  %v1243_v56 = vmul.f32 %v1241_v44, %v3727_v9  ;;  %v1322_v47 = vmul.f32 %v3371_v26, %v3729_v54  ;;  %v3757_v27 = vld [vmem:[#allocation8 + $0xf0] sm:$0xff]  ;;  %v3759_v41 = vld [vmem:[#allocation8 + $0x78] sm:$0xff] }
  0xef   :  { %v1224_v24 = vsub.f32 %v1217_v45, %v1222_v61  ;;  %v1323_v49 = vmul.f32 %v3231_v17, %v3744_v0  ;;  %v4798_v8 = vperm.slane %v3729_v54, 0  ;;  %v4796_v35 = vperm.slane %v3729_v54, 1 }
  0xf0   :  { %v1180_v13 = vsub.f32 %v1173_v23, %v1178_v53  ;;  %v1279_v62 = vsub.f32 %v1272_v15, %v1277_v7  ;;  %v4797_v11 = vperm.slane %v3729_v54, 2  ;;  %v4805_v17 = vperm.slane %v3729_v54, 3  ;;  %v3772_v23 = vld [vmem:[#allocation8 + $0x88] sm:$0xff]  ;;  %v3774_v15 = vld [vmem:[#allocation8 + $0x98] sm:$0xff] }
  0xf1   :  { %v1231_v61 = vsub.f32 %v1224_v24, %v1229_v5  ;;  %v1324_v44 = vadd.f32 %v1323_v49, %v1322_v47  ;;  %v1342_v45 = vmul.f32 %v4798_v8, %v3583_v19  ;;  %v1250_v7 = vmul.f32 %v1248_v21, %v3749_v37 }
  0xf2   :  { %1183 = vst [vmem:[#allocation11 + $0x78] sm:$0xff] %v1180_v13  ;;  %v1286_v1 = vsub.f32 %v1279_v62, %v1284_v29  ;;  %v1349_v5 = vmul.f32 %v4796_v35, %v3588_v57  ;;  %v1356_v49 = vmul.f32 %v4797_v11, %v3590_v60  ;;  %v4800_v29 = vperm.slane %v3729_v54, 4 }
  0xf3   :  { %v1238_v53 = vsub.f32 %v1231_v61, %v1236_v52  ;;  %v1325_v24 = vrot.slane %v1324_v44, 4  ;;  %v1344_v47 = vsub.f32 0.0, %v1342_v45  ;;  %v1312_v21 = vmul.f32 %v1311_v12, %v3757_v27 }
  0xf4   :  { %v1293_v52 = vsub.f32 %v1286_v1, %v1291_v55  ;;  %v1257_v62 = vmul.f32 %v1255_v14, %v3759_v41  ;;  %v1363_v45 = vmul.f32 %v4805_v17, %v3598_v18  ;;  %v4804_v11 = vperm.slane %v3729_v54, 5  ;;  %v3798_v14 = vld [vmem:[#allocation8 + $0xb8] sm:$0xff] }
  0xf5   :  { %v1245_v13 = vsub.f32 %v1238_v53, %v1243_v56  ;;  %v1326_v61 = vadd.f32 %v1325_v24, %v1324_v44  ;;  %v1351_v35 = vsub.f32 %v1344_v47, %v1349_v5  ;;  %v1264_v1 = vmul.f32 %v1262_v30, %v3772_v23  ;;  %v3804_v24 = vld [vmem:[#allocation8 + $0xc8] sm:$0xff]  ;;  %v3808_v47 = vld [vmem:[#allocation8 + $0xd8] sm:$0xff] }
  0xf6   :  { %v1300_v8 = vsub.f32 %v1293_v52, %v1298_v51  ;;  %v1271_v55 = vmul.f32 %v1269_v38, %v3774_v15  ;;  %v1370_v53 = vmul.f32 %v4800_v29, %v3610_v20  ;;  %v4803_v51 = vperm.slane %v3729_v54, 6 }
  0xf7   :  { %v1252_v39 = vsub.f32 %v1245_v13, %v1250_v7  ;;  %v1327_v56 = vrot.slane %v1326_v61, 2  ;;  %v1358_v44 = vsub.f32 %v1351_v35, %v1356_v49  ;;  %v4801_v30 = vperm.slane %v3729_v54, 7 }
  0xf8   :  { %v1307_v7 = vsub.f32 %v1300_v8, %v1305_v3  ;;  %v4802_v38 = vperm.slane %v3744_v0, 0  ;;  %v1377_v35 = vmul.f32 %v4804_v11, %v3622_v6  ;;  %v1285_v3 = vmul.f32 %v1283_v32, %v3798_v14 }
  0xf9   :  { %v1259_v5 = vsub.f32 %v1252_v39, %v1257_v62  ;;  %v1328_v52 = vadd.f32 %v1327_v56, %v1326_v61  ;;  %v1365_v13 = vsub.f32 %v1358_v44, %v1363_v45  ;;  %v1278_v39 = vmul.f32 %v1276_v46, %v3796_v33 }
  0xfa   :  { %v1314_v49 = vsub.f32 %v1307_v7, %v1312_v21  ;;  %v4986_v8 = vperm.slane %v3579_v25, 4  ;;  %v1384_v56 = vmul.f32 %v4803_v51, %v3634_v31  ;;  %v1391_v32 = vmul.f32 %v4801_v30, %v3645_v58  ;;  %v3834_v7 = vld [vmem:[#allocation8 + $0xe8] sm:$0xff] }
  0xfb   :  { %v1266_v29 = vsub.f32 %v1259_v5, %v1264_v1  ;;  %v1329_v61 = vrot.slane %v1328_v52, 1  ;;  %v1372_v45 = vsub.f32 %v1365_v13, %v1370_v53  ;;  %v4987_v1 = vperm.slane %v3579_v25, 5 }
  0xfc   :  { %v1292_v62 = vmul.f32 %v4986_v8, %v3804_v24  ;;  %1317 = vst [vmem:[#allocation11 + $0x80] sm:$0xff] %v1314_v49  ;;  %v1398_v44 = vmul.f32 %v4802_v38, %v3647_v22  ;;  %v4810_v13 = vperm.slane %v3744_v0, 1  ;;  %vm1334_vm9 = vcmp.eq.s32.totalorder %v3676_v10, 9 }
  0xfd   :  { %v1273_v21 = vsub.f32 %v1266_v29, %v1271_v55  ;;  %v1299_v46 = vmul.f32 %v4987_v1, %v3808_v47  ;;  %v1330_v53 = vadd.f32 %v1329_v61, %v1328_v52  ;;  %v1379_v5 = vsub.f32 %v1372_v45, %v1377_v35  ;;  %v3841_v1 = vld [vmem:[#allocation8 + $0xf8] sm:$0xff] }
  0xfe   :  { %v4808_v55 = vperm.slane %v3744_v0, 2  ;;  %v4806_v49 = vperm.slane %v3744_v0, 3  ;;  %v2312_v8 = vsel %vm1334_vm9, 1.0, %v4984_v50  ;;  %v4807_v51 = vperm.slane %v3744_v0, 4 }
  0xff   :  { %v1280_v29 = vsub.f32 %v1273_v21, %v1278_v39  ;;  %v1331_v30 = vadd.f32 %v1330_v53, %v3666_v16  ;;  %v1386_v38 = vsub.f32 %v1379_v5, %v1384_v56  ;;  %v4988_v52 = vperm.slane %v3729_v54, 0 }
 0x100   :  { %v4989_v39 = vperm.slane %v3579_v25, 6  ;;  %v4809_v21 = vperm.slane %v3744_v0, 5  ;;  %v4990_v11 = vperm.slane %v3729_v54, 1  ;;  %v1405_v56 = vmul.f32 %v4810_v13, %v3659_v48  ;;  %v3876_v25 = vld [vmem:[#allocation2 + $0xa0] sm:$0xff] }
 0x101   :  { %v1343_v35 = vmul.f32 %v4988_v52, %v3661_v40  ;;  %v1287_v61 = vsub.f32 %v1280_v29, %v1285_v3  ;;  %1332 = vst [vmem:[#allocation10 + $0x8] sm:$0x2] %v1331_v30  ;;  %v1393_v53 = vsub.f32 %v1386_v38, %v1391_v32  ;;  %v4991_v3 = vperm.slane %v3729_v54, 2 }
 0x102   :  { %v1306_v45 = vmul.f32 %v4989_v39, %v3834_v7  ;;  %v1350_v17 = vmul.f32 %v4990_v11, %v3678_v34  ;;  %v1313_v39 = vmul.f32 %v1311_v12, %v3841_v1  ;;  %v1412_v11 = vmul.f32 %v4808_v55, %v3691_v28  ;;  %v3889_v55 = vld [vmem:[#allocation2 + $0xa8] sm:$0xff] }
 0x103   :  { %v1345_v5 = vsub.f32 %v2312_v8, %v1343_v35  ;;  %v1357_v29 = vmul.f32 %v4991_v3, %v3688_v36  ;;  %v1294_v52 = vsub.f32 %v1287_v61, %v1292_v62  ;;  %v1419_v30 = vmul.f32 %v4806_v49, %v3693_v42 }
 0x104   :  { %v1400_v38 = vsub.f32 %v1393_v53, %v1398_v44  ;;  %v1426_v32 = vmul.f32 %v4807_v51, %v3704_v2  ;;  %v4992_v62 = vperm.slane %v3729_v54, 3  ;;  %v1433_v61 = vmul.f32 %v4809_v21, %v3706_v4  ;;  %v3893_v21 = vld [vmem:[#allocation5 + $0x8] sm:$0xff] }
 0x105   :  { %v1352_v8 = vsub.f32 %v1345_v5, %v1350_v17  ;;  %v1301_v12 = vsub.f32 %v1294_v52, %v1299_v46  ;;  %v4993_v17 = vperm.slane %v3729_v54, 4  ;;  %v1457_v52 = vmul.f32 %v3371_v26, %v3876_v25  ;;  %4995 = vst [vmem:[#allocation21_spill] sm:$0xff] %v3893_v21 }
 0x106   :  { %v1364_v35 = vmul.f32 %v4992_v62, %v3702_v43  ;;  %v1407_v53 = vsub.f32 %v1400_v38, %v1405_v56  ;;  %v4994_v62 = vperm.slane %v3729_v54, 5  ;;  %v1458_v56 = vmul.f32 %v3893_v21, %v3889_v55 }
 0x107   :  { %v1359_v49 = vsub.f32 %v1352_v8, %v1357_v29  ;;  %v1371_v5 = vmul.f32 %v4993_v17, %v3722_v59  ;;  %v1308_v46 = vsub.f32 %v1301_v12, %v1306_v45  ;;  %v1476_v29 = vperm.slane %v3876_v25, 0 }
 0x108   :  { %v1378_v51 = vmul.f32 %v4994_v62, %v3727_v9  ;;  %v1414_v38 = vsub.f32 %v1407_v53, %v1412_v11  ;;  %v4816_v17 = vperm.slane %v3876_v25, 1  ;;  %v4815_v13 = vperm.slane %v3876_v25, 2 }
 0x109   :  { %v1366_v8 = vsub.f32 %v1359_v49, %v1364_v35  ;;  %v1315_v62 = vsub.f32 %v1308_v46, %v1313_v39  ;;  %v1459_v44 = vadd.f32 %v1458_v56, %v1457_v52  ;;  %v1477_v45 = vmul.f32 %v1476_v29, %v3583_v19 }
 0x10a   :  { %v4818_v26 = vperm.slane %v3876_v25, 3  ;;  %v1421_v12 = vsub.f32 %v1414_v38, %v1419_v30  ;;  %v4996_v21 = vperm.slane %v3729_v54, 6  ;;  %v1484_v49 = vmul.f32 %v4816_v17, %v3588_v57 }
 0x10b   :  { %v1373_v3 = vsub.f32 %v1366_v8, %v1371_v5  ;;  %1318 = vst [vmem:[#allocation11 + $0x88] sm:$0xff] %v1315_v62  ;;  %v1460_v11 = vrot.slane %v1459_v44, 4  ;;  %v1479_v39 = vsub.f32 0.0, %v1477_v45  ;;  %v1491_v35 = vmul.f32 %v4815_v13, %v3590_v60 }
 0x10c   :  { %v1385_v9 = vmul.f32 %v4996_v21, %v3749_v37  ;;  %v4817_v53 = vperm.slane %v3876_v25, 4  ;;  %v1428_v46 = vsub.f32 %v1421_v12, %v1426_v32  ;;  %v4997_v30 = vperm.slane %v3744_v0, 6 }
 0x10d   :  { %v1380_v52 = vsub.f32 %v1373_v3, %v1378_v51  ;;  %v4998_v21 = vperm.slane %v3729_v54, 7  ;;  %v1461_v38 = vadd.f32 %v1460_v11, %v1459_v44  ;;  %v1486_v8 = vsub.f32 %v1479_v39, %v1484_v49 }
 0x10e   :  { %v1440_v5 = vmul.f32 %v4997_v30, %v3708_v63  ;;  %v1498_v62 = vmul.f32 %v4818_v26, %v3598_v18  ;;  %v1511_v45 = vperm.slane %v3876_v25, 5  ;;  %v1435_v13 = vsub.f32 %v1428_v46, %v1433_v61 }
 0x10f   :  { %v1392_v56 = vmul.f32 %v4998_v21, %v3759_v41  ;;  %v4999_v32 = vperm.slane %v3744_v0, 7  ;;  %v1387_v17 = vsub.f32 %v1380_v52, %v1385_v9  ;;  %v5000_v51 = vperm.slane %v3744_v0, 0 }
 0x110   :  { %v1462_v54 = vrot.slane %v1461_v38, 2  ;;  %v1493_v30 = vsub.f32 %v1486_v8, %v1491_v35  ;;  %v1505_v44 = vmul.f32 %v4817_v53, %v3610_v20  ;;  %v4826_v49 = vperm.slane %v3876_v25, 6 }
 0x111   :  { %v1447_v12 = vmul.f32 %v4999_v32, %v3757_v27  ;;  %v1399_v3 = vmul.f32 %v5000_v51, %v3772_v23  ;;  %v1442_v11 = vsub.f32 %v1435_v13, %v1440_v5  ;;  %v1394_v39 = vsub.f32 %v1387_v17, %v1392_v56 }
 0x112   :  { %v5001_v61 = vperm.slane %v3744_v0, 1  ;;  %v4820_v9 = vperm.slane %v3876_v25, 7  ;;  %v5002_v52 = vperm.slane %v3744_v0, 2  ;;  %v1463_v32 = vadd.f32 %v1462_v54, %v1461_v38 }
 0x113   :  { %v1500_v35 = vsub.f32 %v1493_v30, %v1498_v62  ;;  %v1512_v8 = vmul.f32 %v1511_v45, %v3622_v6  ;;  %v1449_v51 = vsub.f32 %v1442_v11, %v1447_v12  ;;  %v1401_v53 = vsub.f32 %v1394_v39, %v1399_v3 }
 0x114   :  { %v1406_v46 = vmul.f32 %v5001_v61, %v3774_v15  ;;  %v1413_v21 = vmul.f32 %v5002_v52, %v3796_v33  ;;  %v5003_v13 = vperm.slane %v3744_v0, 3  ;;  %v4819_v5 = vperm.slane %v3889_v55, 0 }
 0x115   :  { %v5004_v56 = vperm.slane %v3744_v0, 4  ;;  %v1464_v26 = vrot.slane %v1463_v32, 1  ;;  %v1507_v52 = vsub.f32 %v1500_v35, %v1505_v44  ;;  %v1519_v38 = vmul.f32 %v4826_v49, %v3634_v31  ;;  %1452 = vst [vmem:[#allocation11 + $0x90] sm:$0xff] %v1449_v51 }
 0x116   :  { %v1420_v17 = vmul.f32 %v5003_v13, %v3798_v14  ;;  %v1408_v62 = vsub.f32 %v1401_v53, %v1406_v46  ;;  %v5005_v12 = vperm.slane %v3744_v0, 5  ;;  %v5006_v54 = vperm.slane %v3744_v0, 6 }
 0x117   :  { %v1427_v61 = vmul.f32 %v5004_v56, %v3804_v24  ;;  %v1526_v11 = vmul.f32 %v4820_v9, %v3645_v58  ;;  %v1465_v39 = vadd.f32 %v1464_v26, %v1463_v32  ;;  %v1514_v44 = vsub.f32 %v1507_v52, %v1512_v8 }
 0x118   :  { %v1434_v3 = vmul.f32 %v5005_v12, %v3808_v47  ;;  %v1441_v30 = vmul.f32 %v5006_v54, %v3834_v7  ;;  %v4825_v35 = vperm.slane %v3889_v55, 1  ;;  %vm1469_vm10 = vcmp.eq.s32.totalorder %v3676_v10, 10 }
 0x119   :  { %v1415_v51 = vsub.f32 %v1408_v62, %v1413_v21  ;;  %v1533_v53 = vmul.f32 %v4819_v5, %v3647_v22  ;;  %v4822_v46 = vperm.slane %v3889_v55, 2  ;;  %v4821_v13 = vperm.slane %v3889_v55, 3 }
 0x11a   :  { %v1466_v56 = vadd.f32 %v1465_v39, %v3666_v16  ;;  %v1521_v12 = vsub.f32 %v1514_v44, %v1519_v38  ;;  %v2313_v54 = vsel %vm1469_vm10, 1.0, %v4984_v50  ;;  %v1478_v26 = vmul.f32 %v1476_v29, %v3661_v40 }
 0x11b   :  { %v1422_v32 = vsub.f32 %v1415_v51, %v1420_v17  ;;  %v4823_v21 = vperm.slane %v3889_v55, 4  ;;  %v4824_v8 = vperm.slane %v3889_v55, 5  ;;  %v5007_v52 = vperm.slane %v3876_v25, 1 }
 0x11c   :  { %1467 = vst [vmem:[#allocation10 + $0x8] sm:$0x4] %v1466_v56  ;;  %v1528_v5 = vsub.f32 %v1521_v12, %v1526_v11  ;;  %v1540_v38 = vmul.f32 %v4825_v35, %v3659_v48  ;;  %v1480_v39 = vsub.f32 %v2313_v54, %v1478_v26  ;;  %v5008_v44 = vperm.slane %v3876_v25, 2  ;;  %v5014_v35 = vld [vmem:[#allocation21_spill] sm:$0xff] }
 0x11d   :  { %v1485_v62 = vmul.f32 %v5007_v52, %v3678_v34  ;;  %v1429_v17 = vsub.f32 %v1422_v32, %v1427_v61  ;;  %v5009_v51 = vperm.slane %v3744_v0, 7  ;;  %v1547_v52 = vmul.f32 %v4822_v46, %v3691_v28  ;;  %v3999_v32 = vld [vmem:[#allocation2 + $0xb0] sm:$0xff] }
 0x11e   :  { %v1492_v29 = vmul.f32 %v5008_v44, %v3688_v36  ;;  %v1554_v11 = vmul.f32 %v4821_v13, %v3693_v42  ;;  %v1535_v56 = vsub.f32 %v1528_v5, %v1533_v53  ;;  %v5010_v26 = vperm.slane %v3876_v25, 3 }
 0x11f   :  { %v1448_v9 = vmul.f32 %v5009_v51, %v3841_v1  ;;  %v1487_v54 = vsub.f32 %v1480_v39, %v1485_v62  ;;  %v1436_v0 = vsub.f32 %v1429_v17, %v1434_v3  ;;  %v1561_v44 = vmul.f32 %v4823_v21, %v3704_v2  ;;  %v4014_v17 = vld [vmem:[#allocation2 + $0xb8] sm:$0xff]  ;;  %v4016_v21 = vld [vmem:[#allocation5] sm:$0xff] }
 0x120   :  { %v1499_v61 = vmul.f32 %v5010_v26, %v3702_v43  ;;  %v1568_v51 = vmul.f32 %v4824_v8, %v3706_v4  ;;  %v1542_v53 = vsub.f32 %v1535_v56, %v1540_v38  ;;  %v5011_v62 = vperm.slane %v3876_v25, 4  ;;  %v5012_v26 = vld [vmem:[#allocation26_spill] sm:$0xff]  ;;  %5013 = vst [vmem:[#allocation23_spill] sm:$0xff] %v4016_v21 }
 0x121   :  { %v1494_v13 = vsub.f32 %v1487_v54, %v1492_v29  ;;  %v1513_v3 = vmul.f32 %v1511_v45, %v5012_v26  ;;  %v1443_v46 = vsub.f32 %v1436_v0, %v1441_v30  ;;  %v1592_v8 = vmul.f32 %v4016_v21, %v3999_v32 }
 0x122   :  { %v1506_v39 = vmul.f32 %v5011_v62, %v3722_v59  ;;  %v1593_v38 = vmul.f32 %v5014_v35, %v4014_v17  ;;  %v1611_v29 = vperm.slane %v3999_v32, 0  ;;  %v1549_v56 = vsub.f32 %v1542_v53, %v1547_v52 }
 0x123   :  { %v1501_v54 = vsub.f32 %v1494_v13, %v1499_v61  ;;  %v1618_v62 = vperm.slane %v3999_v32, 1  ;;  %v1625_v5 = vperm.slane %v3999_v32, 2  ;;  %v1450_v45 = vsub.f32 %v1443_v46, %v1448_v9 }
 0x124   :  { %v1594_v12 = vadd.f32 %v1593_v38, %v1592_v8  ;;  %v1612_v30 = vmul.f32 %v1611_v29, %v3583_v19  ;;  %v1632_v0 = vperm.slane %v3999_v32, 3  ;;  %v1556_v49 = vsub.f32 %v1549_v56, %v1554_v11 }
 0x125   :  { %v1508_v21 = vsub.f32 %v1501_v54, %v1506_v39  ;;  %v5015_v35 = vperm.slane %v3876_v25, 6  ;;  %v1619_v13 = vmul.f32 %v1618_v62, %v3588_v57  ;;  %1453 = vst [vmem:[#allocation11 + $0x98] sm:$0xff] %v1450_v45  ;;  %v1626_v46 = vmul.f32 %v1625_v5, %v3590_v60 }
 0x126   :  { %v1595_v52 = vrot.slane %v1594_v12, 4  ;;  %v1614_v9 = vsub.f32 0.0, %v1612_v30  ;;  %v1639_v19 = vperm.slane %v3999_v32, 4  ;;  %v1563_v8 = vsub.f32 %v1556_v49, %v1561_v44 }
 0x127   :  { %v1520_v26 = vmul.f32 %v5015_v35, %v3749_v37  ;;  %v5016_v11 = vperm.slane %v3889_v55, 6  ;;  %v1515_v53 = vsub.f32 %v1508_v21, %v1513_v3  ;;  %v5017_v35 = vperm.slane %v3876_v25, 7 }
 0x128   :  { %v1596_v57 = vadd.f32 %v1595_v52, %v1594_v12  ;;  %v1621_v38 = vsub.f32 %v1614_v9, %v1619_v13  ;;  %v1633_v56 = vmul.f32 %v1632_v0, %v3598_v18  ;;  %v1646_v60 = vperm.slane %v3999_v32, 5 }
 0x129   :  { %v1575_v61 = vmul.f32 %v5016_v11, %v3708_v63  ;;  %v1527_v39 = vmul.f32 %v5017_v35, %v3759_v41  ;;  %v1570_v54 = vsub.f32 %v1563_v8, %v1568_v51  ;;  %v5018_v49 = vperm.slane %v3889_v55, 7 }
 0x12a   :  { %v1522_v45 = vsub.f32 %v1515_v53, %v1520_v26  ;;  %v5019_v21 = vperm.slane %v3889_v55, 0  ;;  %v1597_v25 = vrot.slane %v1596_v57, 2  ;;  %v1628_v30 = vsub.f32 %v1621_v38, %v1626_v46 }
 0x12b   :  { %v1582_v44 = vmul.f32 %v5018_v49, %v3757_v27  ;;  %v1640_v12 = vmul.f32 %v1639_v19, %v3610_v20  ;;  %v1653_v18 = vperm.slane %v3999_v32, 6  ;;  %v1577_v13 = vsub.f32 %v1570_v54, %v1575_v61 }
 0x12c   :  { %v1534_v3 = vmul.f32 %v5019_v21, %v3772_v23  ;;  %v1529_v52 = vsub.f32 %v1522_v45, %v1527_v39  ;;  %v5020_v51 = vperm.slane %v3889_v55, 1  ;;  %v1660_v26 = vperm.slane %v3999_v32, 7  ;;  %v4188_v32 = vld [vmem:[#allocation8 + $0x50] sm:$0xff] }
 0x12d   :  { %v5021_v8 = vperm.slane %v3889_v55, 2  ;;  %v1598_v53 = vadd.f32 %v1597_v25, %v1596_v57  ;;  %v1635_v46 = vsub.f32 %v1628_v30, %v1633_v56  ;;  %v1647_v20 = vmul.f32 %v1646_v60, %v3622_v6 }
 0x12e   :  { %v1541_v9 = vmul.f32 %v5020_v51, %v3774_v15  ;;  %v1584_v35 = vsub.f32 %v1577_v13, %v1582_v44  ;;  %v1536_v38 = vsub.f32 %v1529_v52, %v1534_v3  ;;  %v5022_v61 = vperm.slane %v3889_v55, 3 }
 0x12f   :  { %v1548_v11 = vmul.f32 %v5021_v8, %v3796_v33  ;;  %v1667_v54 = vperm.slane %v4014_v17, 0  ;;  %v5023_v49 = vperm.slane %v3889_v55, 4  ;;  %v1599_v21 = vrot.slane %v1598_v53, 1 }
 0x130   :  { %v1555_v39 = vmul.f32 %v5022_v61, %v3798_v14  ;;  %v1642_v51 = vsub.f32 %v1635_v46, %v1640_v12  ;;  %v1654_v57 = vmul.f32 %v1653_v18, %v3634_v31  ;;  %1587 = vst [vmem:[#allocation11 + $0xa0] sm:$0xff] %v1584_v35  ;;  %v1543_v6 = vsub.f32 %v1536_v38, %v1541_v9 }
 0x131   :  { %v1562_v45 = vmul.f32 %v5023_v49, %v3804_v24  ;;  %v5024_v56 = vperm.slane %v3889_v55, 5  ;;  %v5025_v3 = vperm.slane %v3889_v55, 6  ;;  %v1661_v30 = vmul.f32 %v1660_v26, %v3645_v58 }
 0x132   :  { %v1600_v13 = vadd.f32 %v1599_v21, %v1598_v53  ;;  %v1649_v12 = vsub.f32 %v1642_v51, %v1647_v20  ;;  %v1674_v52 = vperm.slane %v4014_v17, 1  ;;  %vm1604_vm11 = vcmp.eq.s32.totalorder %v3676_v10, 11 }
 0x133   :  { %v1569_v44 = vmul.f32 %v5024_v56, %v3808_v47  ;;  %v1576_v25 = vmul.f32 %v5025_v3, %v3834_v7  ;;  %v1550_v31 = vsub.f32 %v1543_v6, %v1548_v11  ;;  %v1668_v9 = vmul.f32 %v1667_v54, %v3647_v22 }
 0x134   :  { %v1681_v8 = vperm.slane %v4014_v17, 2  ;;  %v1688_v46 = vperm.slane %v4014_v17, 3  ;;  %v1601_v35 = vadd.f32 %v1600_v13, %v3666_v16  ;;  %v1656_v38 = vsub.f32 %v1649_v12, %v1654_v57  ;;  %v4141_v12 = vld [vmem:[#allocation8] sm:$0xff] }
 0x135   :  { %v2314_v58 = vsel %vm1604_vm11, 1.0, %v4984_v50  ;;  %v1613_v53 = vmul.f32 %v1611_v29, %v3661_v40  ;;  %v1557_v20 = vsub.f32 %v1550_v31, %v1555_v39  ;;  %v1695_v11 = vperm.slane %v4014_v17, 4  ;;  %v5028_v31 = vld [vmem:[#allocation23_spill] sm:$0xff] }
 0x136   :  { %v1702_v61 = vperm.slane %v4014_v17, 5  ;;  %v1620_v22 = vmul.f32 %v1618_v62, %v3678_v34  ;;  %1602 = vst [vmem:[#allocation10 + $0x8] sm:$0x8] %v1601_v35  ;;  %v1663_v49 = vsub.f32 %v1656_v38, %v1661_v30  ;;  %v1675_v21 = vmul.f32 %v1674_v52, %v3659_v48 }
 0x137   :  { %v1615_v51 = vsub.f32 %v2314_v58, %v1613_v53  ;;  %v1627_v40 = vmul.f32 %v1625_v5, %v3688_v36  ;;  %v1564_v29 = vsub.f32 %v1557_v20, %v1562_v45  ;;  %v5026_v39 = vperm.slane %v3889_v55, 7  ;;  %v4124_v5 = vld [vmem:[#allocation2 + $0xc0] sm:$0xff]  ;;  %v4148_v58 = vld [vmem:[#allocation8 + $0x10] sm:$0xff] }
 0x138   :  { %v1682_v34 = vmul.f32 %v1681_v8, %v3691_v28  ;;  %v1689_v62 = vmul.f32 %v1688_v46, %v3693_v42  ;;  %v1670_v6 = vsub.f32 %v1663_v49, %v1668_v9  ;;  %v1709_v48 = vperm.slane %v4014_v17, 6  ;;  %v5029_v9 = vld [vmem:[#allocation21_spill] sm:$0xff] }
 0x139   :  { %v1583_v57 = vmul.f32 %v5026_v39, %v3841_v1  ;;  %v1622_v56 = vsub.f32 %v1615_v51, %v1620_v22  ;;  %v1634_v36 = vmul.f32 %v1632_v0, %v3702_v43  ;;  %v1571_v55 = vsub.f32 %v1564_v29, %v1569_v44  ;;  %v5027_v43 = vld [vmem:[#allocation26_spill] sm:$0xff]  ;;  %v4139_v44 = vld [vmem:[#allocation2 + $0xc8] sm:$0xff] }
 0x13a   :  { %v1696_v45 = vmul.f32 %v1695_v11, %v3704_v2  ;;  %v1703_v28 = vmul.f32 %v1702_v61, %v3706_v4  ;;  %v1716_v42 = vperm.slane %v4014_v17, 7  ;;  %v1677_v3 = vsub.f32 %v1670_v6, %v1675_v21  ;;  %v4287_v17 = vld [vmem:[#allocation2 + $0xd0] sm:$0xff] }
 0x13b   :  { %v1629_v30 = vsub.f32 %v1622_v56, %v1627_v40  ;;  %v1641_v13 = vmul.f32 %v1639_v19, %v3722_v59  ;;  %v1648_v0 = vmul.f32 %v1646_v60, %v5027_v43  ;;  %v1578_v2 = vsub.f32 %v1571_v55, %v1576_v25  ;;  %v4151_v60 = vld [vmem:[#allocation8 + $0x20] sm:$0xff] }
 0x13c   :  { %v1727_v4 = vmul.f32 %v5028_v31, %v4124_v5  ;;  %v1728_v35 = vmul.f32 %v5029_v9, %v4139_v44  ;;  %v1746_v38 = vperm.slane %v4124_v5, 0  ;;  %v1684_v59 = vsub.f32 %v1677_v3, %v1682_v34  ;;  %v4164_v34 = vld [vmem:[#allocation8 + $0x30] sm:$0xff]  ;;  %v4176_v3 = vld [vmem:[#allocation8 + $0x40] sm:$0xff] }
 0x13d   :  { %v1636_v19 = vsub.f32 %v1629_v30, %v1634_v36  ;;  %v1753_v53 = vperm.slane %v4124_v5, 1  ;;  %v1760_v20 = vperm.slane %v4124_v5, 2  ;;  %v1585_v22 = vsub.f32 %v1578_v2, %v1583_v57 }
 0x13e   :  { %v1729_v25 = vadd.f32 %v1728_v35, %v1727_v4  ;;  %v1747_v49 = vmul.f32 %v1746_v38, %v4141_v12  ;;  %v1767_v21 = vperm.slane %v4124_v5, 3  ;;  %v1691_v51 = vsub.f32 %v1684_v59, %v1689_v62 }
 0x13f   :  { %v1643_v40 = vsub.f32 %v1636_v19, %v1641_v13  ;;  %v1655_v29 = vmul.f32 %v1653_v18, %v3749_v37  ;;  %v1754_v39 = vmul.f32 %v1753_v53, %v4148_v58  ;;  %1588 = vst [vmem:[#allocation11 + $0xa8] sm:$0xff] %v1585_v22  ;;  %v1761_v56 = vmul.f32 %v1760_v20, %v4151_v60  ;;  %v4197_v22 = vld [vmem:[#allocation8 + $0x60] sm:$0xff] }
 0x140   :  { %v1730_v57 = vrot.slane %v1729_v25, 4  ;;  %v1749_v6 = vsub.f32 0.0, %v1747_v49  ;;  %v1774_v62 = vperm.slane %v4124_v5, 4  ;;  %v1698_v36 = vsub.f32 %v1691_v51, %v1696_v45 }
 0x141   :  { %v1710_v37 = vmul.f32 %v1709_v48, %v3708_v63  ;;  %v1650_v18 = vsub.f32 %v1643_v40, %v1648_v0  ;;  %v1662_v55 = vmul.f32 %v1660_v26, %v3759_v41  ;;  %v1768_v43 = vmul.f32 %v1767_v21, %v4164_v34  ;;  %v4206_v40 = vld [vmem:[#allocation8 + $0x70] sm:$0xff] }
 0x142   :  { %v1731_v30 = vadd.f32 %v1730_v57, %v1729_v25  ;;  %v1756_v13 = vsub.f32 %v1749_v6, %v1754_v39  ;;  %v1781_v2 = vperm.slane %v4124_v5, 5  ;;  %v1705_v45 = vsub.f32 %v1698_v36, %v1703_v28 }
 0x143   :  { %v1717_v63 = vmul.f32 %v1716_v42, %v3757_v27  ;;  %v1657_v0 = vsub.f32 %v1650_v18, %v1655_v29  ;;  %v1669_v41 = vmul.f32 %v1667_v54, %v3772_v23  ;;  %v1775_v35 = vmul.f32 %v1774_v62, %v4176_v3 }
 0x144   :  { %v1732_v26 = vrot.slane %v1731_v30, 2  ;;  %v1763_v4 = vsub.f32 %v1756_v13, %v1761_v56  ;;  %v1788_v59 = vperm.slane %v4124_v5, 6  ;;  %v1712_v28 = vsub.f32 %v1705_v45, %v1710_v37  ;;  %v4218_v56 = vld [vmem:[#allocation8 + $0x80] sm:$0xff] }
 0x145   :  { %v1664_v19 = vsub.f32 %v1657_v0, %v1662_v55  ;;  %v1676_v27 = vmul.f32 %v1674_v52, %v3774_v15  ;;  %v1795_v23 = vperm.slane %v4124_v5, 7  ;;  %v1683_v54 = vmul.f32 %v1681_v8, %v3796_v33  ;;  %v4245_v0 = vld [vmem:[#allocation8 + $0xa0] sm:$0xff] }
 0x146   :  { %v1733_v25 = vadd.f32 %v1732_v26, %v1731_v30  ;;  %v1770_v49 = vsub.f32 %v1763_v4, %v1768_v43  ;;  %v1782_v51 = vmul.f32 %v1781_v2, %v4188_v32  ;;  %v1719_v29 = vsub.f32 %v1712_v28, %v1717_v63  ;;  %v4233_v30 = vld [vmem:[#allocation8 + $0x18] sm:$0xff]  ;;  %v4242_v43 = vld [vmem:[#allocation8 + $0x28] sm:$0xff] }
 0x147   :  { %v1671_v39 = vsub.f32 %v1664_v19, %v1669_v41  ;;  %v1690_v15 = vmul.f32 %v1688_v46, %v3798_v14  ;;  %v1802_v52 = vperm.slane %v4139_v44, 0  ;;  %v1697_v33 = vmul.f32 %v1695_v11, %v3804_v24  ;;  %v4229_v11 = vld [vmem:[#allocation8 + $0x8] sm:$0xff]  ;;  %v4247_v41 = vld [vmem:[#allocation8 + $0xb0] sm:$0xff] }
 0x148   :  { %v1734_v8 = vrot.slane %v1733_v25, 1  ;;  %v1777_v57 = vsub.f32 %v1770_v49, %v1775_v35  ;;  %v1789_v6 = vmul.f32 %v1788_v59, %v4197_v22  ;;  %1722 = vst [vmem:[#allocation11 + $0xb0] sm:$0xff] %v1719_v29  ;;  %v1704_v14 = vmul.f32 %v1702_v61, %v3808_v47  ;;  %v4263_v49 = vld [vmem:[#allocation8 + $0xc0] sm:$0xff] }
 0x149   :  { %v1678_v36 = vsub.f32 %v1671_v39, %v1676_v27  ;;  %v1711_v46 = vmul.f32 %v1709_v48, %v3834_v7  ;;  %v1796_v24 = vmul.f32 %v1795_v23, %v4206_v40  ;;  %v1809_v55 = vperm.slane %v4139_v44, 1  ;;  %v4238_v7 = vld [vmem:[#allocation8 + $0x90] sm:$0xff]  ;;  %v4258_v27 = vld [vmem:[#allocation8 + $0x38] sm:$0xff] }
 0x14a   :  { %v1735_v37 = vadd.f32 %v1734_v8, %v1733_v25  ;;  %v1784_v18 = vsub.f32 %v1777_v57, %v1782_v51  ;;  %vm1739_vm12 = vcmp.eq.s32.totalorder %v3676_v10, 12  ;;  %v1803_v47 = vmul.f32 %v1802_v52, %v4218_v56  ;;  %v4279_v57 = vld [vmem:[#allocation8 + $0x48] sm:$0xff] }
 0x14b   :  { %v1685_v13 = vsub.f32 %v1678_v36, %v1683_v54  ;;  %v1816_v61 = vperm.slane %v4139_v44, 2  ;;  %v1823_v48 = vperm.slane %v4139_v44, 3  ;;  %v2315_v26 = vsel %vm1739_vm12, 1.0, %v4984_v50 }
 0x14c   :  { %v1736_v45 = vadd.f32 %v1735_v37, %v3666_v16  ;;  %v1791_v63 = vsub.f32 %v1784_v18, %v1789_v6  ;;  %v1748_v4 = vmul.f32 %v1746_v38, %v4229_v11  ;;  %v1830_v28 = vperm.slane %v4139_v44, 4  ;;  %v4265_v38 = vld [vmem:[#allocation8 + $0xd0] sm:$0xff]  ;;  %v4281_v6 = vld [vmem:[#allocation8 + $0x58] sm:$0xff] }
 0x14d   :  { %v1692_v35 = vsub.f32 %v1685_v13, %v1690_v15  ;;  %v4829_v19 = vperm.slane %v4139_v44, 5  ;;  %v1755_v16 = vmul.f32 %v1753_v53, %v4233_v30  ;;  %v1810_v25 = vmul.f32 %v1809_v55, %v4238_v7  ;;  %5030 = vst [vmem:[#allocation24_spill] sm:$0xff] %v4265_v38 }
 0x14e   :  { %1737 = vst [vmem:[#allocation10 + $0x8] sm:$0x10] %v1736_v45  ;;  %v1798_v54 = vsub.f32 %v1791_v63, %v1796_v24  ;;  %v1750_v51 = vsub.f32 %v2315_v26, %v1748_v4  ;;  %v1762_v29 = vmul.f32 %v1760_v20, %v4242_v43  ;;  %v1718_v53 = vmul.f32 %v1716_v42, %v3841_v1  ;;  %v4304_v26 = vld [vmem:[#allocation8 + $0x68] sm:$0xff] }
 0x14f   :  { %v1699_v39 = vsub.f32 %v1692_v35, %v1697_v33  ;;  %v1817_v15 = vmul.f32 %v1816_v61, %v4245_v0  ;;  %v1824_v8 = vmul.f32 %v1823_v48, %v4247_v41  ;;  %5031 = vst [vmem:[#allocation25_spill] sm:$0xff] %v4281_v6  ;;  %v1844_v20 = vperm.slane %v4139_v44, 6 }
 0x150   :  { %v1805_v36 = vsub.f32 %v1798_v54, %v1803_v47  ;;  %v1757_v33 = vsub.f32 %v1750_v51, %v1755_v16  ;;  %v1769_v1 = vmul.f32 %v1767_v21, %v4258_v27  ;;  %v1831_v24 = vmul.f32 %v1830_v28, %v4263_v49 }
 0x151   :  { %v1706_v42 = vsub.f32 %v1699_v39, %v1704_v14  ;;  %v1838_v37 = vmul.f32 %v4829_v19, %v4265_v38  ;;  %v4834_v18 = vperm.slane %v4139_v44, 7  ;;  %v1776_v45 = vmul.f32 %v1774_v62, %v4279_v57  ;;  %v4302_v14 = vld [vmem:[#allocation2 + $0xd8] sm:$0xff] }
 0x152   :  { %v1812_v13 = vsub.f32 %v1805_v36, %v1810_v25  ;;  %v1764_v47 = vsub.f32 %v1757_v33, %v1762_v29  ;;  %v1783_v21 = vmul.f32 %v1781_v2, %v4281_v6  ;;  %v1862_v4 = vmul.f32 %v5028_v31, %v4287_v17  ;;  %v4313_v29 = vld [vmem:[#allocation8 + $0xe0] sm:$0xff] }
 0x153   :  { %v1713_v63 = vsub.f32 %v1706_v42, %v1711_v46  ;;  %v1863_v35 = vmul.f32 %v5029_v9, %v4302_v14  ;;  %v4835_v16 = vperm.slane %v4287_v17, 0  ;;  %v4831_v62 = vperm.slane %v4287_v17, 1  ;;  %v4315_v46 = vld [vmem:[#allocation8 + $0x78] sm:$0xff] }
 0x154   :  { %v1819_v54 = vsub.f32 %v1812_v13, %v1817_v15  ;;  %v1771_v25 = vsub.f32 %v1764_v47, %v1769_v1  ;;  %v4830_v51 = vperm.slane %v4287_v17, 2  ;;  %v4832_v33 = vperm.slane %v4287_v17, 3  ;;  %v4327_v1 = vld [vmem:[#allocation8 + $0xf0] sm:$0xff]  ;;  %v4329_v13 = vld [vmem:[#allocation8 + $0x88] sm:$0xff] }
 0x155   :  { %v1720_v2 = vsub.f32 %v1713_v63, %v1718_v53  ;;  %v1864_v39 = vadd.f32 %v1863_v35, %v1862_v4  ;;  %v1882_v36 = vmul.f32 %v4835_v16, %v4141_v12  ;;  %v1790_v15 = vmul.f32 %v1788_v59, %v4304_v26 }
 0x156   :  { %v1826_v42 = vsub.f32 %v1819_v54, %v1824_v8  ;;  %v1778_v19 = vsub.f32 %v1771_v25, %v1776_v45  ;;  %v1889_v53 = vmul.f32 %v4831_v62, %v4148_v58  ;;  %v1896_v8 = vmul.f32 %v4830_v51, %v4151_v60  ;;  %v4341_v25 = vld [vmem:[#allocation8 + $0x98] sm:$0xff] }
 0x157   :  { %1723 = vst [vmem:[#allocation11 + $0xb8] sm:$0xff] %v1720_v2  ;;  %v1865_v47 = vrot.slane %v1864_v39, 4  ;;  %v1884_v63 = vsub.f32 0.0, %v1882_v36  ;;  %v4833_v45 = vperm.slane %v4287_v17, 4  ;;  %v1845_v59 = vmul.f32 %v1844_v20, %v4313_v29 }
 0x158   :  { %v1833_v4 = vsub.f32 %v1826_v42, %v1831_v24  ;;  %v1785_v35 = vsub.f32 %v1778_v19, %v1783_v21  ;;  %v1797_v54 = vmul.f32 %v1795_v23, %v4315_v46  ;;  %v1903_v51 = vmul.f32 %v4832_v33, %v4164_v34  ;;  %v4353_v23 = vld [vmem:[#allocation8 + $0xa8] sm:$0xff]  ;;  %v4355_v21 = vld [vmem:[#allocation8 + $0xb8] sm:$0xff] }
 0x159   :  { %v1866_v2 = vadd.f32 %v1865_v47, %v1864_v39  ;;  %v1891_v36 = vsub.f32 %v1884_v63, %v1889_v53  ;;  %v4838_v62 = vperm.slane %v4287_v17, 5  ;;  %v1852_v42 = vmul.f32 %v4834_v18, %v4327_v1  ;;  %v4372_v33 = vld [vmem:[#allocation8 + $0xe8] sm:$0xff] }
 0x15a   :  { %v1840_v24 = vsub.f32 %v1833_v4, %v1838_v37  ;;  %v1792_v19 = vsub.f32 %v1785_v35, %v1790_v15  ;;  %v1804_v5 = vmul.f32 %v1802_v52, %v4329_v13  ;;  %v1910_v47 = vmul.f32 %v4833_v45, %v4176_v3  ;;  %v4364_v35 = vld [vmem:[#allocation8 + $0xc8] sm:$0xff] }
 0x15b   :  { %v1867_v39 = vrot.slane %v1866_v2, 2  ;;  %v1898_v53 = vsub.f32 %v1891_v36, %v1896_v8  ;;  %v4837_v37 = vperm.slane %v4287_v17, 6  ;;  %v1811_v15 = vmul.f32 %v1809_v55, %v4341_v25  ;;  %v4370_v36 = vld [vmem:[#allocation8 + $0xd8] sm:$0xff] }
 0x15c   :  { %v1847_v63 = vsub.f32 %v1840_v24, %v1845_v59  ;;  %v1799_v4 = vsub.f32 %v1792_v19, %v1797_v54  ;;  %v1818_v8 = vmul.f32 %v1816_v61, %v4353_v23  ;;  %v1917_v59 = vmul.f32 %v4838_v62, %v4188_v32 }
 0x15d   :  { %v1868_v45 = vadd.f32 %v1867_v39, %v1866_v2  ;;  %v1905_v18 = vsub.f32 %v1898_v53, %v1903_v51  ;;  %v1825_v24 = vmul.f32 %v1823_v48, %v4355_v21  ;;  %v4836_v19 = vperm.slane %v4302_v14, 0 }
 0x15e   :  { %v1854_v54 = vsub.f32 %v1847_v63, %v1852_v42  ;;  %v1806_v55 = vsub.f32 %v1799_v4, %v1804_v5  ;;  %v1832_v61 = vmul.f32 %v1830_v28, %v4364_v35  ;;  %v1924_v51 = vmul.f32 %v4837_v37, %v4197_v22 }
 0x15f   :  { %v1869_v16 = vrot.slane %v1868_v45, 1  ;;  %v1912_v52 = vsub.f32 %v1905_v18, %v1910_v47  ;;  %v5032_v42 = vperm.slane %v4139_v44, 5  ;;  %v1846_v48 = vmul.f32 %v1844_v20, %v4372_v33  ;;  %v4403_v20 = vld [vmem:[#allocation8 + $0xf8] sm:$0xff] }
 0x160   :  { %1857 = vst [vmem:[#allocation11 + $0xc0] sm:$0xff] %v1854_v54  ;;  %v1813_v2 = vsub.f32 %v1806_v55, %v1811_v15  ;;  %v5033_v39 = vperm.slane %v4287_v17, 7  ;;  %v4841_v47 = vperm.slane %v4302_v14, 1  ;;  %vm1874_vm13 = vcmp.eq.s32.totalorder %v3676_v10, 13  ;;  %v4405_v55 = vld [vmem:[#allocation7 + $0x8] sm:$0xff] }
 0x161   :  { %v1839_v5 = vmul.f32 %v5032_v42, %v4370_v36  ;;  %v1870_v53 = vadd.f32 %v1869_v16, %v1868_v45  ;;  %v1919_v18 = vsub.f32 %v1912_v52, %v1917_v59  ;;  %v1938_v4 = vmul.f32 %v4836_v19, %v4218_v56 }
 0x162   :  { %v1931_v28 = vmul.f32 %v5033_v39, %v4206_v40  ;;  %v1820_v63 = vsub.f32 %v1813_v2, %v1818_v8  ;;  %v4839_v15 = vperm.slane %v4302_v14, 2  ;;  %v4840_v54 = vperm.slane %v4302_v14, 3 }
 0x163   :  { %v1871_v16 = vadd.f32 %v4405_v55, %v1870_v53  ;;  %v1926_v45 = vsub.f32 %v1919_v18, %v1924_v51  ;;  %v2316_v52 = vsel %vm1874_vm13, 1.0, %v4984_v50  ;;  %v5034_v8 = vperm.slane %v4287_v17, 0 }
 0x164   :  { %v1827_v2 = vsub.f32 %v1820_v63, %v1825_v24  ;;  %v4842_v42 = vperm.slane %v4302_v14, 4  ;;  %v5035_v19 = vperm.slane %v4287_v17, 1  ;;  %v1945_v51 = vmul.f32 %v4841_v47, %v4238_v7 }
 0x165   :  { %v1883_v59 = vmul.f32 %v5034_v8, %v4229_v11  ;;  %1872 = vst [vmem:[#allocation10 + $0x8] sm:$0x20] %v1871_v16  ;;  %v1933_v62 = vsub.f32 %v1926_v45, %v1931_v28  ;;  %v5036_v18 = vperm.slane %v4287_v17, 2  ;;  %v5037_v63 = vperm.slane %v4139_v44, 7 }
 0x166   :  { %v1890_v37 = vmul.f32 %v5035_v19, %v4233_v30  ;;  %v1834_v24 = vsub.f32 %v1827_v2, %v1832_v61  ;;  %v1952_v19 = vmul.f32 %v4839_v15, %v4245_v0  ;;  %v1959_v28 = vmul.f32 %v4840_v54, %v4247_v41  ;;  %v4436_v2 = vld [vmem:[#allocation2 + $0xe0] sm:$0xff] }
 0x167   :  { %v1885_v53 = vsub.f32 %v2316_v52, %v1883_v59  ;;  %v1897_v8 = vmul.f32 %v5036_v18, %v4242_v43  ;;  %v1853_v39 = vmul.f32 %v5037_v63, %v4403_v20  ;;  %v1940_v16 = vsub.f32 %v1933_v62, %v1938_v4 }
 0x168   :  { %v5038_v59 = vperm.slane %v4287_v17, 3  ;;  %v1841_v44 = vsub.f32 %v1834_v24, %v1839_v5  ;;  %v1966_v18 = vmul.f32 %v4842_v42, %v4263_v49  ;;  %v5039_v63 = vperm.slane %v4302_v14, 5  ;;  %v4451_v24 = vld [vmem:[#allocation2 + $0xe8] sm:$0xff] }
 0x169   :  { %v1892_v52 = vsub.f32 %v1885_v53, %v1890_v37  ;;  %v1947_v4 = vsub.f32 %v1940_v16, %v1945_v51  ;;  %v5040_v37 = vperm.slane %v4287_v17, 4  ;;  %v1997_v42 = vmul.f32 %v5028_v31, %v4436_v2 }
 0x16a   :  { %v1904_v61 = vmul.f32 %v5038_v59, %v4258_v27  ;;  %v1973_v15 = vmul.f32 %v5039_v63, %v4265_v38  ;;  %v5041_v59 = vperm.slane %v4287_v17, 5  ;;  %v1848_v47 = vsub.f32 %v1841_v44, %v1846_v48 }
 0x16b   :  { %v1899_v54 = vsub.f32 %v1892_v52, %v1897_v8  ;;  %v1911_v53 = vmul.f32 %v5040_v37, %v4279_v57  ;;  %v1998_v63 = vmul.f32 %v5029_v9, %v4451_v24  ;;  %v2016_v51 = vperm.slane %v4436_v2, 0 }
 0x16c   :  { %v1918_v5 = vmul.f32 %v5041_v59, %v4281_v6  ;;  %v1954_v8 = vsub.f32 %v1947_v4, %v1952_v19  ;;  %v4847_v52 = vperm.slane %v4436_v2, 1  ;;  %v4846_v37 = vperm.slane %v4436_v2, 2 }
 0x16d   :  { %v1906_v16 = vsub.f32 %v1899_v54, %v1904_v61  ;;  %v1855_v62 = vsub.f32 %v1848_v47, %v1853_v39  ;;  %v1999_v45 = vadd.f32 %v1998_v63, %v1997_v42  ;;  %v2017_v48 = vmul.f32 %v2016_v51, %v4141_v12 }
 0x16e   :  { %v4849_v44 = vperm.slane %v4436_v2, 3  ;;  %v1961_v59 = vsub.f32 %v1954_v8, %v1959_v28  ;;  %v5042_v9 = vperm.slane %v4287_v17, 6  ;;  %v2024_v54 = vmul.f32 %v4847_v52, %v4148_v58 }
 0x16f   :  { %v1913_v31 = vsub.f32 %v1906_v16, %v1911_v53  ;;  %1858 = vst [vmem:[#allocation11 + $0xc8] sm:$0xff] %v1855_v62  ;;  %v2000_v19 = vrot.slane %v1999_v45, 4  ;;  %v2019_v47 = vsub.f32 0.0, %v2017_v48  ;;  %v2031_v42 = vmul.f32 %v4846_v37, %v4151_v60 }
 0x170   :  { %v1925_v6 = vmul.f32 %v5042_v9, %v4304_v26  ;;  %v4848_v39 = vperm.slane %v4436_v2, 4  ;;  %v1968_v61 = vsub.f32 %v1961_v59, %v1966_v18  ;;  %v5043_v28 = vperm.slane %v4302_v14, 6 }
 0x171   :  { %v1920_v53 = vsub.f32 %v1913_v31, %v1918_v5  ;;  %v5044_v63 = vperm.slane %v4287_v17, 7  ;;  %v2001_v16 = vadd.f32 %v2000_v19, %v1999_v45  ;;  %v2026_v62 = vsub.f32 %v2019_v47, %v2024_v54 }
 0x172   :  { %v1980_v4 = vmul.f32 %v5043_v28, %v4313_v29  ;;  %v2038_v48 = vmul.f32 %v4849_v44, %v4164_v34  ;;  %v2051_v9 = vperm.slane %v4436_v2, 5  ;;  %v1975_v37 = vsub.f32 %v1968_v61, %v1973_v15 }
 0x173   :  { %v1932_v8 = vmul.f32 %v5044_v63, %v4315_v46  ;;  %v5045_v18 = vperm.slane %v4302_v14, 7  ;;  %v1927_v52 = vsub.f32 %v1920_v53, %v1925_v6  ;;  %v5046_v31 = vperm.slane %v4302_v14, 0 }
 0x174   :  { %v2002_v17 = vrot.slane %v2001_v16, 2  ;;  %v2033_v28 = vsub.f32 %v2026_v62, %v2031_v42  ;;  %v2045_v45 = vmul.f32 %v4848_v39, %v4176_v3  ;;  %v4857_v54 = vperm.slane %v4436_v2, 6 }
 0x175   :  { %v1987_v59 = vmul.f32 %v5045_v18, %v4327_v1  ;;  %v1939_v5 = vmul.f32 %v5046_v31, %v4329_v13  ;;  %v1982_v19 = vsub.f32 %v1975_v37, %v1980_v4  ;;  %v1934_v47 = vsub.f32 %v1927_v52, %v1932_v8 }
 0x176   :  { %v5047_v15 = vperm.slane %v4302_v14, 1  ;;  %v4851_v6 = vperm.slane %v4436_v2, 7  ;;  %v5048_v53 = vperm.slane %v4302_v14, 2  ;;  %v2003_v18 = vadd.f32 %v2002_v17, %v2001_v16 }
 0x177   :  { %v2040_v42 = vsub.f32 %v2033_v28, %v2038_v48  ;;  %v2052_v62 = vmul.f32 %v2051_v9, %v4188_v32  ;;  %v1989_v31 = vsub.f32 %v1982_v19, %v1987_v59  ;;  %v1941_v39 = vsub.f32 %v1934_v47, %v1939_v5 }
 0x178   :  { %v1946_v61 = vmul.f32 %v5047_v15, %v4341_v25  ;;  %v1953_v63 = vmul.f32 %v5048_v53, %v4353_v23  ;;  %v5049_v52 = vperm.slane %v4302_v14, 3  ;;  %v4850_v4 = vperm.slane %v4451_v24, 0 }
 0x179   :  { %v5050_v8 = vperm.slane %v4302_v14, 4  ;;  %v2004_v44 = vrot.slane %v2003_v18, 1  ;;  %v2047_v53 = vsub.f32 %v2040_v42, %v2045_v45  ;;  %v2059_v16 = vmul.f32 %v4857_v54, %v4197_v22  ;;  %1992 = vst [vmem:[#allocation11 + $0xd0] sm:$0xff] %v1989_v31 }
 0x17a   :  { %v1960_v37 = vmul.f32 %v5049_v52, %v4355_v21  ;;  %v1948_v48 = vsub.f32 %v1941_v39, %v1946_v61  ;;  %v5051_v59 = vperm.slane %v4302_v14, 5  ;;  %v5052_v17 = vperm.slane %v4302_v14, 6 }
 0x17b   :  { %v1967_v15 = vmul.f32 %v5050_v8, %v4364_v35  ;;  %v2066_v19 = vmul.f32 %v4851_v6, %v4206_v40  ;;  %v2005_v47 = vadd.f32 %v2004_v44, %v2003_v18  ;;  %v2054_v45 = vsub.f32 %v2047_v53, %v2052_v62 }
 0x17c   :  { %v1974_v5 = vmul.f32 %v5051_v59, %v4370_v36  ;;  %v1981_v28 = vmul.f32 %v5052_v17, %v4372_v33  ;;  %v4855_v42 = vperm.slane %v4451_v24, 1  ;;  %vm2009_vm14 = vcmp.eq.s32.totalorder %v3676_v10, 14 }
 0x17d   :  { %v1955_v31 = vsub.f32 %v1948_v48, %v1953_v63  ;;  %v2073_v39 = vmul.f32 %v4850_v4, %v4218_v56  ;;  %v4853_v61 = vperm.slane %v4451_v24, 2  ;;  %v4852_v52 = vperm.slane %v4451_v24, 3 }
 0x17e   :  { %v2006_v8 = vadd.f32 %v4405_v55, %v2005_v47  ;;  %v2061_v59 = vsub.f32 %v2054_v45, %v2059_v16  ;;  %v2317_v17 = vsel %vm2009_vm14, 1.0, %v4984_v50  ;;  %v2018_v44 = vmul.f32 %v2016_v51, %v4229_v11 }
 0x17f   :  { %v1962_v18 = vsub.f32 %v1955_v31, %v1960_v37  ;;  %v4854_v63 = vperm.slane %v4451_v24, 4  ;;  %v4856_v62 = vperm.slane %v4451_v24, 5  ;;  %v5053_v53 = vperm.slane %v4436_v2, 1 }
 0x180   :  { %2007 = vst [vmem:[#allocation10 + $0x8] sm:$0x40] %v2006_v8  ;;  %v2068_v4 = vsub.f32 %v2061_v59, %v2066_v19  ;;  %v2080_v16 = vmul.f32 %v4855_v42, %v4238_v7  ;;  %v2020_v47 = vsub.f32 %v2317_v17, %v2018_v44  ;;  %v5054_v45 = vperm.slane %v4436_v2, 2  ;;  %v2334_v59 = vld [vmem:[#allocation5 + $0x8] sm:$0xff] }
 0x181   :  { %v2025_v48 = vmul.f32 %v5053_v53, %v4233_v30  ;;  %v1969_v37 = vsub.f32 %v1962_v18, %v1967_v15  ;;  %v5055_v31 = vperm.slane %v4302_v14, 7  ;;  %v2087_v53 = vmul.f32 %v4853_v61, %v4245_v0  ;;  %v4559_v18 = vld [vmem:[#allocation2 + $0xf0] sm:$0xff] }
 0x182   :  { %v2032_v51 = vmul.f32 %v5054_v45, %v4242_v43  ;;  %v2094_v19 = vmul.f32 %v4852_v52, %v4247_v41  ;;  %v2075_v8 = vsub.f32 %v2068_v4, %v2073_v39  ;;  %v5056_v44 = vperm.slane %v4436_v2, 3 }
 0x183   :  { %v1988_v6 = vmul.f32 %v5055_v31, %v4403_v20  ;;  %v2027_v17 = vsub.f32 %v2020_v47, %v2025_v48  ;;  %v1976_v14 = vsub.f32 %v1969_v37, %v1974_v5  ;;  %v2101_v45 = vmul.f32 %v4854_v63, %v4263_v49  ;;  %v4574_v37 = vld [vmem:[#allocation2 + $0xf8] sm:$0xff] }
 0x184   :  { %v2039_v15 = vmul.f32 %v5056_v44, %v4258_v27  ;;  %v2108_v31 = vmul.f32 %v4856_v62, %v4265_v38  ;;  %v2082_v39 = vsub.f32 %v2075_v8, %v2080_v16  ;;  %v5057_v48 = vperm.slane %v4436_v2, 4  ;;  %v5058_v44 = vld [vmem:[#allocation25_spill] sm:$0xff]  ;;  %v5059_v63 = vld [vmem:[#allocation23_spill] sm:$0xff] }
 0x185   :  { %v2034_v52 = vsub.f32 %v2027_v17, %v2032_v51  ;;  %v2053_v5 = vmul.f32 %v2051_v9, %v5058_v44  ;;  %v1983_v61 = vsub.f32 %v1976_v14, %v1981_v28  ;;  %v2132_v42 = vmul.f32 %v5059_v63, %v4559_v18 }
 0x186   :  { %v2046_v47 = vmul.f32 %v5057_v48, %v4279_v57  ;;  %v2133_v62 = vmul.f32 %v2334_v59, %v4574_v37  ;;  %v2151_v16 = vperm.slane %v4559_v18, 0  ;;  %v2089_v51 = vsub.f32 %v2082_v39, %v2087_v53 }
 0x187   :  { %v2041_v8 = vsub.f32 %v2034_v52, %v2039_v15  ;;  %v2158_v17 = vperm.slane %v4559_v18, 1  ;;  %v2165_v48 = vperm.slane %v4559_v18, 2  ;;  %v1990_v4 = vsub.f32 %v1983_v61, %v1988_v6 }
 0x188   :  { %v2134_v54 = vadd.f32 %v2133_v62, %v2132_v42  ;;  %v2152_v9 = vmul.f32 %v2151_v16, %v4141_v12  ;;  %v2172_v28 = vperm.slane %v4559_v18, 3  ;;  %v2096_v63 = vsub.f32 %v2089_v51, %v2094_v19 }
 0x189   :  { %v2048_v14 = vsub.f32 %v2041_v8, %v2046_v47  ;;  %v5060_v59 = vperm.slane %v4436_v2, 6  ;;  %v2159_v52 = vmul.f32 %v2158_v17, %v4148_v58  ;;  %1993 = vst [vmem:[#allocation11 + $0xd8] sm:$0xff] %v1990_v4  ;;  %v2166_v42 = vmul.f32 %v2165_v48, %v4151_v60 }
 0x18a   :  { %v2135_v53 = vrot.slane %v2134_v54, 4  ;;  %v2154_v6 = vsub.f32 0.0, %v2152_v9  ;;  %v2179_v12 = vperm.slane %v4559_v18, 4  ;;  %v2103_v61 = vsub.f32 %v2096_v63, %v2101_v45 }
 0x18b   :  { %v2060_v38 = vmul.f32 %v5060_v59, %v4304_v26  ;;  %v5061_v62 = vperm.slane %v4451_v24, 6  ;;  %v2055_v15 = vsub.f32 %v2048_v14, %v2053_v5  ;;  %v5062_v39 = vperm.slane %v4436_v2, 7 }
 0x18c   :  { %v2136_v58 = vadd.f32 %v2135_v53, %v2134_v54  ;;  %v2161_v4 = vsub.f32 %v2154_v6, %v2159_v52  ;;  %v2173_v51 = vmul.f32 %v2172_v28, %v4164_v34  ;;  %v2186_v60 = vperm.slane %v4559_v18, 5 }
 0x18d   :  { %v2115_v19 = vmul.f32 %v5061_v62, %v4313_v29  ;;  %v2067_v47 = vmul.f32 %v5062_v39, %v4315_v46  ;;  %v2110_v8 = vsub.f32 %v2103_v61, %v2108_v31  ;;  %v5063_v45 = vperm.slane %v4451_v24, 7 }
 0x18e   :  { %v2062_v63 = vsub.f32 %v2055_v15, %v2060_v38  ;;  %v5064_v5 = vperm.slane %v4451_v24, 0  ;;  %v2137_v2 = vrot.slane %v2136_v58, 2  ;;  %v2168_v59 = vsub.f32 %v2161_v4, %v2166_v42 }
 0x18f   :  { %v2122_v9 = vmul.f32 %v5063_v45, %v4327_v1  ;;  %v2180_v54 = vmul.f32 %v2179_v12, %v4176_v3  ;;  %v2193_v34 = vperm.slane %v4559_v18, 6  ;;  %v2117_v52 = vsub.f32 %v2110_v8, %v2115_v19 }
 0x190   :  { %v2074_v14 = vmul.f32 %v5064_v5, %v4329_v13  ;;  %v2069_v53 = vsub.f32 %v2062_v63, %v2067_v47  ;;  %v5065_v31 = vperm.slane %v4451_v24, 1  ;;  %v2200_v38 = vperm.slane %v4559_v18, 7 }
 0x191   :  { %v2138_v61 = vadd.f32 %v2137_v2, %v2136_v58  ;;  %v2175_v62 = vsub.f32 %v2168_v59, %v2173_v51  ;;  %v2187_v42 = vmul.f32 %v2186_v60, %v4188_v32  ;;  %v2124_v15 = vsub.f32 %v2117_v52, %v2122_v9 }
 0x192   :  { %v2081_v6 = vmul.f32 %v5065_v31, %v4341_v25  ;;  %v2076_v39 = vsub.f32 %v2069_v53, %v2074_v14  ;;  %v5066_v3 = vperm.slane %v4451_v24, 2  ;;  %v2207_v19 = vperm.slane %v4574_v37, 0 }
 0x193   :  { %v2139_v47 = vrot.slane %v2138_v61, 1  ;;  %v2182_v8 = vsub.f32 %v2175_v62, %v2180_v54  ;;  %v2194_v45 = vmul.f32 %v2193_v34, %v4197_v22  ;;  %2127 = vst [vmem:[#allocation11 + $0xe0] sm:$0xff] %v2124_v15  ;;  %v5067_v51 = vperm.slane %v4451_v24, 3 }
 0x194   :  { %v2088_v4 = vmul.f32 %v5066_v3, %v4353_v23  ;;  %v2083_v58 = vsub.f32 %v2076_v39, %v2081_v6  ;;  %v2201_v9 = vmul.f32 %v2200_v38, %v4206_v40  ;;  %v2214_v5 = vperm.slane %v4574_v37, 1 }
 0x195   :  { %v2095_v32 = vmul.f32 %v5067_v51, %v4355_v21  ;;  %v2140_v63 = vadd.f32 %v2139_v47, %v2138_v61  ;;  %v2189_v22 = vsub.f32 %v2182_v8, %v2187_v42  ;;  %vm2144_vm15 = vcmp.eq.s32.totalorder %v3676_v10, 15 }
 0x196   :  { %v2090_v14 = vsub.f32 %v2083_v58, %v2088_v4  ;;  %v5068_v2 = vperm.slane %v4451_v24, 4  ;;  %v2208_v40 = vmul.f32 %v2207_v19, %v4218_v56  ;;  %v2221_v54 = vperm.slane %v4574_v37, 2 }
 0x197   :  { %v2141_v52 = vadd.f32 %v4405_v55, %v2140_v63  ;;  %v2196_v53 = vsub.f32 %v2189_v22, %v2194_v45  ;;  %v2318_v31 = vsel %vm2144_vm15, 1.0, %v4984_v50  ;;  %v2153_v10 = vmul.f32 %v2151_v16, %v4229_v11 }
 0x198   :  { %v2102_v59 = vmul.f32 %v5068_v2, %v4364_v35  ;;  %v2097_v6 = vsub.f32 %v2090_v14, %v2095_v32  ;;  %v5069_v61 = vperm.slane %v4451_v24, 5  ;;  %v2228_v56 = vperm.slane %v4574_v37, 3 }
 0x199   :  { %v2160_v55 = vmul.f32 %v2158_v17, %v4233_v30  ;;  %2142 = vst [vmem:[#allocation10 + $0x8] sm:$0x80] %v2141_v52  ;;  %v2203_v42 = vsub.f32 %v2196_v53, %v2201_v9  ;;  %v2215_v50 = vmul.f32 %v2214_v5, %v4238_v7  ;;  %v2155_v15 = vsub.f32 %v2318_v31, %v2153_v10 }
 0x19a   :  { %v2109_v62 = vmul.f32 %v5069_v61, %v4370_v36  ;;  %v2167_v11 = vmul.f32 %v2165_v48, %v4242_v43  ;;  %v2104_v16 = vsub.f32 %v2097_v6, %v2102_v59  ;;  %v5070_v39 = vperm.slane %v4451_v24, 6  ;;  %2276 = dma.vmem_to_hbm [thread:$0]  %s2269_s12, 256, %s2271_s15, [#allocation4], %s2490_s26, %s2490_s26, %s2491_s27   ;;  %v5072_v59 = vld [vmem:[#allocation24_spill] sm:$0xff] }
 0x19b   :  { %v2222_v4 = vmul.f32 %v2221_v54, %v4245_v0  ;;  %v2210_v30 = vsub.f32 %v2203_v42, %v2208_v40  ;;  %v2235_v17 = vperm.slane %v4574_v37, 4  ;;  %v2162_v7 = vsub.f32 %v2155_v15, %v2160_v55 }
 0x19c   :  { %v2116_v3 = vmul.f32 %v5070_v39, %v4372_v33  ;;  %v2174_v47 = vmul.f32 %v2172_v28, %v4258_v27  ;;  %v2111_v43 = vsub.f32 %v2104_v16, %v2109_v62  ;;  %v5071_v48 = vperm.slane %v4451_v24, 7 }
 0x19d   :  { %v2229_v45 = vmul.f32 %v2228_v56, %v4247_v41  ;;  %v2217_v0 = vsub.f32 %v2210_v30, %v2215_v50  ;;  %v2242_v58 = vperm.slane %v4574_v37, 5  ;;  %v2169_v51 = vsub.f32 %v2162_v7, %v2167_v11 }
 0x19e   :  { %v2123_v8 = vmul.f32 %v5071_v48, %v4403_v20  ;;  %v2181_v32 = vmul.f32 %v2179_v12, %v4279_v57  ;;  %v2118_v9 = vsub.f32 %v2111_v43, %v2116_v3  ;;  %v2249_v63 = vperm.slane %v4574_v37, 6 }
 0x19f   :  { %v2224_v22 = vsub.f32 %v2217_v0, %v2222_v4  ;;  %v2236_v27 = vmul.f32 %v2235_v17, %v4263_v49  ;;  %v2176_v28 = vsub.f32 %v2169_v51, %v2174_v47  ;;  %v2188_v24 = vmul.f32 %v2186_v60, %v5058_v44 }
 0x1a0   :  { %v2125_v41 = vsub.f32 %v2118_v9, %v2123_v8  ;;  %v2256_v14 = vperm.slane %v4574_v37, 7  ;;  %v2243_v40 = vmul.f32 %v2242_v58, %v5072_v59  ;;  %v2195_v57 = vmul.f32 %v2193_v34, %v4304_v26 }
 0x1a1   :  { %v2231_v2 = vsub.f32 %v2224_v22, %v2229_v45  ;;  %v2183_v52 = vsub.f32 %v2176_v28, %v2181_v32  ;;  %v2250_v49 = vmul.f32 %v2249_v63, %v4313_v29  ;;  %v2202_v44 = vmul.f32 %v2200_v38, %v4315_v46 }
 0x1a2   :  { %2128 = vst [vmem:[#allocation11 + $0xe8] sm:$0xff] %v2125_v41  ;;  %v2257_v31 = vmul.f32 %v2256_v14, %v4327_v1  ;;  %v2209_v6 = vmul.f32 %v2207_v19, %v4329_v13  ;;  %v2216_v26 = vmul.f32 %v2214_v5, %v4341_v25  ;;  %v2223_v29 = vmul.f32 %v2221_v54, %v4353_v23 }
 0x1a3   :  { %v2238_v12 = vsub.f32 %v2231_v2, %v2236_v27  ;;  %v2190_v53 = vsub.f32 %v2183_v52, %v2188_v24  ;;  %v2230_v46 = vmul.f32 %v2228_v56, %v4355_v21  ;;  %v2237_v1 = vmul.f32 %v2235_v17, %v4364_v35 }
 0x1a4   :  { %v2244_v50 = vmul.f32 %v2242_v58, %v4370_v36  ;;  %v2251_v13 = vmul.f32 %v2249_v63, %v4372_v33  ;;  %v2258_v25 = vmul.f32 %v2256_v14, %v4403_v20 }
 0x1a5   :  { %v2245_v60 = vsub.f32 %v2238_v12, %v2243_v40  ;;  %v2197_v10 = vsub.f32 %v2190_v53, %v2195_v57 }
 0x1a7   :  { %v2252_v61 = vsub.f32 %v2245_v60, %v2250_v49  ;;  %v2204_v62 = vsub.f32 %v2197_v10, %v2202_v44 }
 0x1a9   :  { %v2259_v34 = vsub.f32 %v2252_v61, %v2257_v31  ;;  %v2211_v55 = vsub.f32 %v2204_v62, %v2209_v6 }
 0x1ab   :  { %2262 = vst [vmem:[#allocation11 + $0xf0] sm:$0xff] %v2259_v34  ;;  %v2218_v42 = vsub.f32 %v2211_v55, %v2216_v26 }
 0x1ad   :  { %v2225_v18 = vsub.f32 %v2218_v42, %v2223_v29 }
 0x1af   :  { %v2232_v38 = vsub.f32 %v2225_v18, %v2230_v46 }
 0x1b1   :  { %v2239_v37 = vsub.f32 %v2232_v38, %v2237_v1 }
 0x1b3   :  { %v2246_v19 = vsub.f32 %v2239_v37, %v2244_v50 }
 0x1b5   :  { %v2253_v23 = vsub.f32 %v2246_v19, %v2251_v13 }
 0x1b7   :  { %v2260_v21 = vsub.f32 %v2253_v23, %v2258_v25 }
 0x1b9   :  { %2263 = vst [vmem:[#allocation11 + $0xf8] sm:$0xff] %v2260_v21 }
 0x1ba   :  { %2289 = dma.vmem_to_hbm [thread:$0]  %s2282_s16, 4096, %s2284_s19, [#allocation12], %s2490_s26, %s2490_s26, %s2491_s27  }
 0x1bb   :  { %2485 = dma.done.wait [#allocation4], 256  }
 0x1bc   :  { %2486 = vsyncadd [#allocation4], 4294967040 }
 0x1bd   :  { %2487 = dma.done.wait [#allocation12], 4096  }
 0x1be   :  { %2488 = vsyncadd [#allocation12], 4294963200 }
 0x1bf   :  { %2298 = vsyncpa [#allocation3], 1 }
 0x1c0   :  { %2299 = vsyncpa [#allocation6], 1 }
 0x1c1   :  { %2300 = vsyncpa [#allocation9], 1 }
 0x1c2   :  { %2301 = vsyncpa [#allocation4], 1 }
 0x1c3   :  { %2302 = vsyncpa [#allocation12], 1 }

</bundles_post_ra>
